<compile_context>
chip_gen: v6e
topology: v6e:2x2x1
jax: 0.10.0
libtpu: 0.0.40
codegen_flags: <defaults>
</compile_context>

<pallas_src>
import functools
import math

import jax
import jax.numpy as jnp
from jax.experimental import pallas as pl
from jax.experimental.pallas import tpu as pltpu

C_IN = 3      # conv0 input channels
C0 = 64       # conv0 output channels
C1 = 256      # conv1 output channels (BatchNorm width)
C2 = 64       # conv2 output channels
CH = 128      # conv1 Cout tile (per grid step)


# ----------------------------- Pallas kernels ------------------------------


def _fused_conv01_kernel(xcol_ref, w0_ref, b0_ref, w1_ref, b1_ref,
                         y1_ref, sum_ref, ssq_ref, h0col_ref, *, H, W):
    """conv0 + ReLU + conv1 + ReLU + partial BatchNorm statistics.

    Grid = (N, 2):  n = image, co = 128-wide half of conv1's 256 channels.

    xcol_ref : (1, H*W, 27)  bf16   im2col'd input (conv0, K = 27)
    w0_ref   : (27, 64)      bf16
    b0_ref   : (1, 64)       f32
    w1_ref   : (3, 192, 128) bf16   dx-folded conv1 weights, this Cout half
    b1_ref   : (1, 128)      f32
    y1_ref   : (1, H, W, 128) bf16  conv1 output (this Cout half)
    sum_ref  : (1, 2, 128)   f32    per-channel sums (row = Cout half)
    ssq_ref  : (1, 2, 128)   f32    per-channel sums of squares
    h0col_ref: (H+2, W, 192) bf16   VMEM scratch: dx-folded, zero-padded conv0
    """
    co = pl.program_id(1)

    @pl.when(co == 0)
    def _build_h0col():
        # conv0 (single K=27 matmul) + bias + ReLU, once per image.
        h0 = jnp.dot(xcol_ref[0], w0_ref[...],
                     preferred_element_type=jnp.float32)          # (H*W, 64)
        h0 = jnp.maximum(h0 + b0_ref[...], 0.0)
        h0 = h0.astype(jnp.bfloat16).reshape(H, W, C0)
        # Fold the three dx taps into the lane dim:
        #   h0col[y, x, dx*64 + c] = zero_padded_h0[y, x + dx, c]
        zc = jnp.zeros((H, 1, C0), jnp.bfloat16)
        folded = jnp.concatenate(
            [jnp.concatenate([zc, h0[:, :W - 1, :]], axis=1),     # x - 1
             h0,                                                  # x
             jnp.concatenate([h0[:, 1:, :], zc], axis=1)],        # x + 1
            axis=-1)                                              # (H, W, 192)
        zrow = jnp.zeros((1, W, 3 * C0), jnp.bfloat16)
        h0col_ref[0:1] = zrow                                     # top halo
        h0col_ref[H + 1:H + 2] = zrow                             # bottom halo
        h0col_ref[1:H + 1] = folded

    # conv1 for this 128-wide Cout half: 3 MXU matmuls with K = 3*64 = 192.
    acc = jnp.zeros((H * W, CH), jnp.float32)
    for dy in range(3):
        patch = h0col_ref[dy:dy + H].reshape(H * W, 3 * C0)
        acc = acc + jnp.dot(patch, w1_ref[dy],
                            preferred_element_type=jnp.float32)
    acc = jnp.maximum(acc + b1_ref[...], 0.0)                     # bias + ReLU
    y1_ref[0] = acc.astype(jnp.bfloat16).reshape(H, W, CH)

    # Partial BatchNorm statistics (f32, computed under the MXU shadow).
    s = jnp.sum(acc, axis=0).reshape(1, CH)
    q = jnp.sum(acc * acc, axis=0).reshape(1, CH)

    @pl.when(co == 0)
    def _store_stats_half0():
        sum_ref[0, 0:1, :] = s
        ssq_ref[0, 0:1, :] = q

    @pl.when(co == 1)
    def _store_stats_half1():
        sum_ref[0, 1:2, :] = s
        ssq_ref[0, 1:2, :] = q


def _fused_bn_conv2_kernel(y1_ref, scale_ref, shift_ref, w2_ref, b2_ref,
                           o_ref, ycol_ref, *, H, W):
    """BatchNorm application fused with conv2 (grid = (N,)).

    y1_ref   : (1, H, W, 256) bf16
    scale_ref: (1, 256) f32        gamma / sqrt(var + eps)
    shift_ref: (1, 256) f32        beta - mean * scale
    w2_ref   : (3, 768, 64) bf16   dx-folded conv2 weights
    b2_ref   : (1, 64) f32
    o_ref    : (1, H, W, 64) f32
    ycol_ref : (H+2, W, 768) bf16  VMEM scratch (dx-folded, zero-padded)
    """
    zrow = jnp.zeros((1, W, 3 * C1), jnp.bfloat16)
    ycol_ref[0:1] = zrow
    ycol_ref[H + 1:H + 2] = zrow

    # Hoisted loads (JAX doesn't CSE broadcast_in_dim; keep them out of loop).
    scale = scale_ref[...]
    shift = shift_ref[...]

    RB = 4  # row block, bounds live vregs while filling the scratch
    zc = jnp.zeros((RB, 1, C1), jnp.bfloat16)
    for r in range(0, H, RB):
        # BN applied (in f32) to the interior only; the halo stays exactly
        # zero, matching conv2's zero padding in the reference module.
        yb = (y1_ref[0, r:r + RB].astype(jnp.float32) * scale
              + shift).astype(jnp.bfloat16)                       # (RB, W, 256)
        ycol_ref[1 + r:1 + r + RB] = jnp.concatenate(
            [jnp.concatenate([zc, yb[:, :W - 1, :]], axis=1),     # x - 1
             yb,                                                  # x
             jnp.concatenate([yb[:, 1:, :], zc], axis=1)],        # x + 1
            axis=-1)                                              # (RB, W, 768)

    # conv2: 3 MXU matmuls with K = 3*256 = 768.
    acc = jnp.zeros((H * W, C2), jnp.float32)
    for dy in range(3):
        patch = ycol_ref[dy:dy + H].reshape(H * W, 3 * C1)
        acc = acc + jnp.dot(patch, w2_ref[dy],
                            preferred_element_type=jnp.float32)
    acc = acc + b2_ref[...]
    o_ref[0] = acc.reshape(H, W, C2)


# ----------------------------- pallas_call wrappers -------------------------


def fused_conv0_conv1(xcol, w0, b0, w1fold, b1, *, H, W):
    N = xcol.shape[0]
    kernel = functools.partial(_fused_conv01_kernel, H=H, W=W)
    return pl.pallas_call(
        kernel,
        out_shape=(
            jax.ShapeDtypeStruct((N, H, W, C1), jnp.bfloat16),  # conv1+ReLU
            jax.ShapeDtypeStruct((N, 2, CH), jnp.float32),      # BN sums
            jax.ShapeDtypeStruct((N, 2, CH), jnp.float32),      # BN sum-sq
        ),
        grid=(N, C1 // CH),
        in_specs=[
            pl.BlockSpec((1, H * W, 3 * 3 * C_IN), lambda n, co: (n, 0, 0)),
            pl.BlockSpec((3 * 3 * C_IN, C0), lambda n, co: (0, 0)),
            pl.BlockSpec((1, C0), lambda n, co: (0, 0)),
            pl.BlockSpec((3, 3 * C0, CH), lambda n, co: (0, 0, co)),
            pl.BlockSpec((1, CH), lambda n, co: (0, co)),
        ],
        out_specs=(
            pl.BlockSpec((1, H, W, CH), lambda n, co: (n, 0, 0, co)),
            pl.BlockSpec((1, 2, CH), lambda n, co: (n, 0, 0)),
            pl.BlockSpec((1, 2, CH), lambda n, co: (n, 0, 0)),
        ),
        scratch_shapes=[pltpu.VMEM((H + 2, W, 3 * C0), jnp.bfloat16)],
        compiler_params=pltpu.CompilerParams(
            dimension_semantics=("parallel", "arbitrary")),
    )(xcol, w0, b0, w1fold, b1)


def fused_bn_conv2(y1, scale, shift, w2fold, b2, *, H, W):
    N = y1.shape[0]
    kernel = functools.partial(_fused_bn_conv2_kernel, H=H, W=W)
    return pl.pallas_call(
        kernel,
        out_shape=jax.ShapeDtypeStruct((N, H, W, C2), jnp.float32),
        grid=(N,),
        in_specs=[
            pl.BlockSpec((1, H, W, C1), lambda n: (n, 0, 0, 0)),
            pl.BlockSpec((1, C1), lambda n: (0, 0)),
            pl.BlockSpec((1, C1), lambda n: (0, 0)),
            pl.BlockSpec((3, 3 * C1, C2), lambda n: (0, 0, 0)),
            pl.BlockSpec((1, C2), lambda n: (0, 0)),
        ],
        out_specs=pl.BlockSpec((1, H, W, C2), lambda n: (n, 0, 0, 0)),
        scratch_shapes=[pltpu.VMEM((H + 2, W, 3 * C1), jnp.bfloat16)],
        compiler_params=pltpu.CompilerParams(
            dimension_semantics=("parallel",)),
    )(y1, scale, shift, w2fold, b2)


# ----------------------------- model glue -----------------------------------


def init_params(key, input_features):
    """Deterministic init mirroring reset_parameters: U(-stdv, +stdv)."""
    stdv = 1.0 / math.sqrt(input_features)
    ks = jax.random.split(key, 8)
    u = lambda k, shape: jax.random.uniform(
        k, shape, jnp.float32, minval=-stdv, maxval=stdv)
    # PyTorch conv weights are (Cout, Cin, KH, KW); store as (KH, KW, Cin, Cout).
    w0 = jnp.transpose(u(ks[0], (C0, C_IN, 3, 3)), (2, 3, 1, 0))
    b0 = u(ks[1], (C0,))
    w1 = jnp.transpose(u(ks[2], (C1, C0, 3, 3)), (2, 3, 1, 0))
    b1 = u(ks[3], (C1,))
    bn_gamma = u(ks[4], (C1,))
    bn_beta = u(ks[5], (C1,))
    w2 = jnp.transpose(u(ks[6], (C2, C1, 3, 3)), (2, 3, 1, 0))
    b2 = u(ks[7], (C2,))
    return dict(w0=w0, b0=b0, w1=w1, b1=b1,
                bn_gamma=bn_gamma, bn_beta=bn_beta, w2=w2, b2=b2)


def custom_cnn_1_forward(x_flat, params, *, H, W):
    """x_flat: (B, 3*H*W) float32, mirroring X1.reshape(-1, 3, H, W)."""
    assert W % 8 == 0 and H % 4 == 0, "demo kernel assumes aligned spatial dims"
    N = x_flat.shape[0]
    x = jnp.transpose(x_flat.reshape(N, C_IN, H, W), (0, 2, 3, 1))   # NHWC

    # conv0 im2col in the wrapper (cheap: only 3 input channels), K = 27.
    xp = jnp.pad(x, ((0, 0), (1, 1), (1, 1), (0, 0)))
    xcol = jnp.concatenate(
        [xp[:, dy:dy + H, dx:dx + W, :] for dy in range(3) for dx in range(3)],
        axis=-1).reshape(N, H * W, 3 * 3 * C_IN).astype(jnp.bfloat16)

    w0 = params["w0"].reshape(3 * 3 * C_IN, C0).astype(jnp.bfloat16)
    b0 = params["b0"].reshape(1, C0)
    w1 = params["w1"].reshape(3, 3 * C0, C1).astype(jnp.bfloat16)   # dx folded
    b1 = params["b1"].reshape(1, C1)

    y1, sums, ssqs = fused_conv0_conv1(xcol, w0, b0, w1, b1, H=H, W=W)

    # BatchNorm2d training-mode statistics from the in-kernel partial sums
    # (biased variance over N*H*W, matching PyTorch's normalization).
    count = N * H * W
    mean = jnp.sum(sums.reshape(N, C1), axis=0) / count
    ex2 = jnp.sum(ssqs.reshape(N, C1), axis=0) / count
    var = jnp.maximum(ex2 - mean * mean, 0.0)
    scale = params["bn_gamma"] * jax.lax.rsqrt(var + 1e-5)
    shift = params["bn_beta"] - mean * scale

    w2 = params["w2"].reshape(3, 3 * C1, C2).astype(jnp.bfloat16)   # dx folded
    b2 = params["b2"].reshape(1, C2)

    out = fused_bn_conv2(y1, scale.reshape(1, C1), shift.reshape(1, C1),
                         w2, b2, H=H, W=W)
    return jnp.transpose(out, (0, 3, 1, 2))                         # NCHW


if __name__ == "__main__":
    B, H, W = 2, 16, 16                      # small demo spatial size
    input_features = C_IN * H * W            # module uses 3*224*224

    key = jax.random.PRNGKey(0)
    k_param, k_x = jax.random.split(key)
    params = init_params(k_param, input_features)
    x = jax.random.normal(k_x, (B, input_features), jnp.float32)

    fwd = jax.jit(functools.partial(custom_cnn_1_forward, H=H, W=W))
    out = fwd(x, params)
    jax.block_until_ready(out)
    assert out.shape == (B, C2, H, W)
    assert bool(jnp.all(jnp.isfinite(out)))
    print("KERNEL_OK")
</pallas_src>

<mosaic_0001>
module attributes {stable_mosaic.version = 11 : i64} {
  func.func @_fused_conv01_kernel(%arg0: i32, %arg1: i32, %arg2: memref<1x256x27xbf16, #tpu.memory_space<vmem>>, %arg3: memref<27x64xbf16, #tpu.memory_space<vmem>>, %arg4: memref<1x64xf32, #tpu.memory_space<vmem>>, %arg5: memref<3x192x128xbf16, #tpu.memory_space<vmem>>, %arg6: memref<1x128xf32, #tpu.memory_space<vmem>>, %arg7: memref<1x16x16x128xbf16, #tpu.memory_space<vmem>>, %arg8: memref<1x2x128xf32, #tpu.memory_space<vmem>>, %arg9: memref<1x2x128xf32, #tpu.memory_space<vmem>>, %arg10: memref<18x16x192xbf16, #tpu.memory_space<vmem>>) attributes {dimension_semantics = [#tpu.dimension_semantics<parallel>, #tpu.dimension_semantics<arbitrary>], iteration_bounds = array<i64: 2, 2>, scalar_prefetch = 0 : i64, scratch_operands = 1 : i64, tpu.core_type = #tpu.core_type<tc>, window_params = [{transform_indices = @transform_0, window_bounds = array<i64: 1, 256, 27>}, {pipeline_mode = #tpu.pipeline_mode<synchronous>, transform_indices = @transform_1, window_bounds = array<i64: 27, 64>}, {pipeline_mode = #tpu.pipeline_mode<synchronous>, transform_indices = @transform_2, window_bounds = array<i64: 1, 64>}, {transform_indices = @transform_3, window_bounds = array<i64: 3, 192, 128>}, {transform_indices = @transform_4, window_bounds = array<i64: 1, 128>}, {transform_indices = @transform_5, window_bounds = array<i64: 1, 16, 16, 128>}, {transform_indices = @transform_6, window_bounds = array<i64: 1, 2, 128>}, {transform_indices = @transform_7, window_bounds = array<i64: 1, 2, 128>}]} {
    %c0_i32 = arith.constant 0 : i32
    %0 = arith.cmpi eq, %arg1, %c0_i32 : i32
    %1 = arith.extui %0 : i1 to i32
    %c0_i32_0 = arith.constant 0 : i32
    %2 = arith.cmpi ne, %1, %c0_i32_0 : i32
    scf.if %2 {
      %c0_31 = arith.constant 0 : index
      %c0_32 = arith.constant 0 : index
      %c0_33 = arith.constant 0 : index
      %43 = vector.load %arg2[%c0_31, %c0_32, %c0_33] : memref<1x256x27xbf16, #tpu.memory_space<vmem>>, vector<1x256x27xbf16>
      %44 = vector.shape_cast %43 : vector<1x256x27xbf16> to vector<256x27xbf16>
      %c0_34 = arith.constant 0 : index
      %c0_35 = arith.constant 0 : index
      %45 = vector.load %arg3[%c0_34, %c0_35] : memref<27x64xbf16, #tpu.memory_space<vmem>>, vector<27x64xbf16>
      %cst_36 = arith.constant dense<0.000000e+00> : vector<256x64xf32>
      %46 = tpu.matmul %44, %45, %cst_36 {dimension_numbers = #tpu.dot_dimension_numbers<[1], [0], [0], [1], [0, 0, 1, 1], [], []>} : vector<256x27xbf16>, vector<27x64xbf16>, vector<256x64xf32> -> vector<256x64xf32>
      %c0_37 = arith.constant 0 : index
      %c0_38 = arith.constant 0 : index
      %47 = vector.load %arg4[%c0_37, %c0_38] : memref<1x64xf32, #tpu.memory_space<vmem>>, vector<1x64xf32>
      %48 = vector.broadcast %47 : vector<1x64xf32> to vector<256x64xf32>
      %49 = arith.addf %46, %48 : vector<256x64xf32>
      %cst_39 = arith.constant 0.000000e+00 : f32
      %50 = vector.broadcast %cst_39 : f32 to vector<256x64xf32>
      %51 = arith.maximumf %49, %50 : vector<256x64xf32>
      %52 = arith.truncf %51 : vector<256x64xf32> to vector<256x64xbf16>
      %53 = vector.shape_cast %52 : vector<256x64xbf16> to vector<16x16x64xbf16>
      %cst_40 = arith.constant 0.000000e+00 : bf16
      %54 = vector.broadcast %cst_40 : bf16 to vector<16x1x64xbf16>
      %55 = vector.extract_strided_slice %53 {offsets = [0, 0, 0], sizes = [16, 15, 64], strides = [1, 1, 1]} : vector<16x16x64xbf16> to vector<16x15x64xbf16>
      %56 = tpu.concatenate %54, %55 in 1 : vector<16x1x64xbf16>, vector<16x15x64xbf16> -> vector<16x16x64xbf16>
      %57 = vector.extract_strided_slice %53 {offsets = [0, 1, 0], sizes = [16, 15, 64], strides = [1, 1, 1]} : vector<16x16x64xbf16> to vector<16x15x64xbf16>
      %58 = tpu.concatenate %57, %54 in 1 : vector<16x15x64xbf16>, vector<16x1x64xbf16> -> vector<16x16x64xbf16>
      %59 = tpu.concatenate %56, %53, %58 in 2 : vector<16x16x64xbf16>, vector<16x16x64xbf16>, vector<16x16x64xbf16> -> vector<16x16x192xbf16>
      %cst_41 = arith.constant 0.000000e+00 : bf16
      %60 = vector.broadcast %cst_41 : bf16 to vector<1x16x192xbf16>
      %c0_42 = arith.constant 0 : index
      %c0_43 = arith.constant 0 : index
      %c0_44 = arith.constant 0 : index
      %61 = vector.load %arg10[%c0_42, %c0_43, %c0_44] : memref<18x16x192xbf16, #tpu.memory_space<vmem>>, vector<1x16x192xbf16>
      tpu.vector_store %arg10[%c0_42, %c0_43, %c0_44], %60 {strides = array<i32>} : memref<18x16x192xbf16, #tpu.memory_space<vmem>>, vector<1x16x192xbf16>,
      %c17 = arith.constant 17 : index
      %c0_45 = arith.constant 0 : index
      %c0_46 = arith.constant 0 : index
      %62 = vector.load %arg10[%c17, %c0_45, %c0_46] : memref<18x16x192xbf16, #tpu.memory_space<vmem>>, vector<1x16x192xbf16>
      tpu.vector_store %arg10[%c17, %c0_45, %c0_46], %60 {strides = array<i32>} : memref<18x16x192xbf16, #tpu.memory_space<vmem>>, vector<1x16x192xbf16>,
      %c1_47 = arith.constant 1 : index
      %c0_48 = arith.constant 0 : index
      %c0_49 = arith.constant 0 : index
      %63 = vector.load %arg10[%c1_47, %c0_48, %c0_49] : memref<18x16x192xbf16, #tpu.memory_space<vmem>>, vector<16x16x192xbf16>
      tpu.vector_store %arg10[%c1_47, %c0_48, %c0_49], %59 {strides = array<i32>} : memref<18x16x192xbf16, #tpu.memory_space<vmem>>, vector<16x16x192xbf16>,
    } else {
    }
    %cst = arith.constant 0.000000e+00 : f32
    %3 = vector.broadcast %cst : f32 to vector<256x128xf32>
    %c0 = arith.constant 0 : index
    %c0_1 = arith.constant 0 : index
    %c0_2 = arith.constant 0 : index
    %4 = vector.load %arg10[%c0, %c0_1, %c0_2] : memref<18x16x192xbf16, #tpu.memory_space<vmem>>, vector<16x16x192xbf16>
    %5 = vector.shape_cast %4 : vector<16x16x192xbf16> to vector<256x192xbf16>
    %c0_3 = arith.constant 0 : index
    %c0_4 = arith.constant 0 : index
    %c0_5 = arith.constant 0 : index
    %6 = vector.load %arg5[%c0_3, %c0_4, %c0_5] : memref<3x192x128xbf16, #tpu.memory_space<vmem>>, vector<1x192x128xbf16>
    %7 = vector.shape_cast %6 : vector<1x192x128xbf16> to vector<192x128xbf16>
    %cst_6 = arith.constant dense<0.000000e+00> : vector<256x128xf32>
    %8 = tpu.matmul %5, %7, %cst_6 {dimension_numbers = #tpu.dot_dimension_numbers<[1], [0], [0], [1], [0, 0, 1, 1], [], []>} : vector<256x192xbf16>, vector<192x128xbf16>, vector<256x128xf32> -> vector<256x128xf32>
    %9 = arith.addf %3, %8 : vector<256x128xf32>
    %c1 = arith.constant 1 : index
    %c0_7 = arith.constant 0 : index
    %c0_8 = arith.constant 0 : index
    %10 = vector.load %arg10[%c1, %c0_7, %c0_8] : memref<18x16x192xbf16, #tpu.memory_space<vmem>>, vector<16x16x192xbf16>
    %11 = vector.shape_cast %10 : vector<16x16x192xbf16> to vector<256x192xbf16>
    %c1_9 = arith.constant 1 : index
    %c0_10 = arith.constant 0 : index
    %c0_11 = arith.constant 0 : index
    %12 = vector.load %arg5[%c1_9, %c0_10, %c0_11] : memref<3x192x128xbf16, #tpu.memory_space<vmem>>, vector<1x192x128xbf16>
    %13 = vector.shape_cast %12 : vector<1x192x128xbf16> to vector<192x128xbf16>
    %cst_12 = arith.constant dense<0.000000e+00> : vector<256x128xf32>
    %14 = tpu.matmul %11, %13, %cst_12 {dimension_numbers = #tpu.dot_dimension_numbers<[1], [0], [0], [1], [0, 0, 1, 1], [], []>} : vector<256x192xbf16>, vector<192x128xbf16>, vector<256x128xf32> -> vector<256x128xf32>
    %15 = arith.addf %9, %14 : vector<256x128xf32>
    %c2 = arith.constant 2 : index
    %c0_13 = arith.constant 0 : index
    %c0_14 = arith.constant 0 : index
    %16 = vector.load %arg10[%c2, %c0_13, %c0_14] : memref<18x16x192xbf16, #tpu.memory_space<vmem>>, vector<16x16x192xbf16>
    %17 = vector.shape_cast %16 : vector<16x16x192xbf16> to vector<256x192xbf16>
    %c2_15 = arith.constant 2 : index
    %c0_16 = arith.constant 0 : index
    %c0_17 = arith.constant 0 : index
    %18 = vector.load %arg5[%c2_15, %c0_16, %c0_17] : memref<3x192x128xbf16, #tpu.memory_space<vmem>>, vector<1x192x128xbf16>
    %19 = vector.shape_cast %18 : vector<1x192x128xbf16> to vector<192x128xbf16>
    %cst_18 = arith.constant dense<0.000000e+00> : vector<256x128xf32>
    %20 = tpu.matmul %17, %19, %cst_18 {dimension_numbers = #tpu.dot_dimension_numbers<[1], [0], [0], [1], [0, 0, 1, 1], [], []>} : vector<256x192xbf16>, vector<192x128xbf16>, vector<256x128xf32> -> vector<256x128xf32>
    %21 = arith.addf %15, %20 : vector<256x128xf32>
    %c0_19 = arith.constant 0 : index
    %c0_20 = arith.constant 0 : index
    %22 = vector.load %arg6[%c0_19, %c0_20] : memref<1x128xf32, #tpu.memory_space<vmem>>, vector<1x128xf32>
    %23 = vector.broadcast %22 : vector<1x128xf32> to vector<256x128xf32>
    %24 = arith.addf %21, %23 : vector<256x128xf32>
    %cst_21 = arith.constant 0.000000e+00 : f32
    %25 = vector.broadcast %cst_21 : f32 to vector<256x128xf32>
    %26 = arith.maximumf %24, %25 : vector<256x128xf32>
    %27 = arith.truncf %26 : vector<256x128xf32> to vector<256x128xbf16>
    %28 = vector.shape_cast %27 : vector<256x128xbf16> to vector<16x16x128xbf16>
    %c0_22 = arith.constant 0 : index
    %c0_23 = arith.constant 0 : index
    %c0_24 = arith.constant 0 : index
    %c0_25 = arith.constant 0 : index
    %29 = vector.load %arg7[%c0_22, %c0_23, %c0_24, %c0_25] : memref<1x16x16x128xbf16, #tpu.memory_space<vmem>>, vector<1x16x16x128xbf16>
    %30 = vector.shape_cast %29 : vector<1x16x16x128xbf16> to vector<16x16x128xbf16>
    %31 = vector.shape_cast %28 : vector<16x16x128xbf16> to vector<1x16x16x128xbf16>
    tpu.vector_store %arg7[%c0_22, %c0_23, %c0_24, %c0_25], %31 {strides = array<i32>} : memref<1x16x16x128xbf16, #tpu.memory_space<vmem>>, vector<1x16x16x128xbf16>,
    %cst_26 = arith.constant dense<0.000000e+00> : vector<128xf32>
    %32 = vector.multi_reduction <add>, %26, %cst_26 [0] : vector<256x128xf32> to vector<128xf32>
    %33 = vector.shape_cast %32 : vector<128xf32> to vector<1x128xf32>
    %34 = arith.mulf %26, %26 : vector<256x128xf32>
    %cst_27 = arith.constant dense<0.000000e+00> : vector<128xf32>
    %35 = vector.multi_reduction <add>, %34, %cst_27 [0] : vector<256x128xf32> to vector<128xf32>
    %36 = vector.shape_cast %35 : vector<128xf32> to vector<1x128xf32>
    %c0_i32_28 = arith.constant 0 : i32
    %37 = arith.cmpi eq, %arg1, %c0_i32_28 : i32
    %38 = arith.extui %37 : i1 to i32
    %c0_i32_29 = arith.constant 0 : i32
    %39 = arith.cmpi ne, %38, %c0_i32_29 : i32
    scf.if %39 {
      %c0_31 = arith.constant 0 : index
      %c0_32 = arith.constant 0 : index
      %c0_33 = arith.constant 0 : index
      %43 = vector.load %arg8[%c0_31, %c0_32, %c0_33] : memref<1x2x128xf32, #tpu.memory_space<vmem>>, vector<1x1x128xf32>
      %44 = vector.shape_cast %43 : vector<1x1x128xf32> to vector<1x128xf32>
      %45 = vector.shape_cast %33 : vector<1x128xf32> to vector<1x1x128xf32>
      tpu.vector_store %arg8[%c0_31, %c0_32, %c0_33], %45 {strides = array<i32>} : memref<1x2x128xf32, #tpu.memory_space<vmem>>, vector<1x1x128xf32>,
      %c0_34 = arith.constant 0 : index
      %c0_35 = arith.constant 0 : index
      %c0_36 = arith.constant 0 : index
      %46 = vector.load %arg9[%c0_34, %c0_35, %c0_36] : memref<1x2x128xf32, #tpu.memory_space<vmem>>, vector<1x1x128xf32>
      %47 = vector.shape_cast %46 : vector<1x1x128xf32> to vector<1x128xf32>
      %48 = vector.shape_cast %36 : vector<1x128xf32> to vector<1x1x128xf32>
      tpu.vector_store %arg9[%c0_34, %c0_35, %c0_36], %48 {strides = array<i32>} : memref<1x2x128xf32, #tpu.memory_space<vmem>>, vector<1x1x128xf32>,
    } else {
    }
    %c1_i32 = arith.constant 1 : i32
    %40 = arith.cmpi eq, %arg1, %c1_i32 : i32
    %41 = arith.extui %40 : i1 to i32
    %c0_i32_30 = arith.constant 0 : i32
    %42 = arith.cmpi ne, %41, %c0_i32_30 : i32
    scf.if %42 {
      %c0_31 = arith.constant 0 : index
      %c1_32 = arith.constant 1 : index
      %c0_33 = arith.constant 0 : index
      %43 = vector.load %arg8[%c0_31, %c1_32, %c0_33] : memref<1x2x128xf32, #tpu.memory_space<vmem>>, vector<1x1x128xf32>
      %44 = vector.shape_cast %43 : vector<1x1x128xf32> to vector<1x128xf32>
      %45 = vector.shape_cast %33 : vector<1x128xf32> to vector<1x1x128xf32>
      tpu.vector_store %arg8[%c0_31, %c1_32, %c0_33], %45 {strides = array<i32>} : memref<1x2x128xf32, #tpu.memory_space<vmem>>, vector<1x1x128xf32>,
      %c0_34 = arith.constant 0 : index
      %c1_35 = arith.constant 1 : index
      %c0_36 = arith.constant 0 : index
      %46 = vector.load %arg9[%c0_34, %c1_35, %c0_36] : memref<1x2x128xf32, #tpu.memory_space<vmem>>, vector<1x1x128xf32>
      %47 = vector.shape_cast %46 : vector<1x1x128xf32> to vector<1x128xf32>
      %48 = vector.shape_cast %36 : vector<1x128xf32> to vector<1x1x128xf32>
      tpu.vector_store %arg9[%c0_34, %c1_35, %c0_36], %48 {strides = array<i32>} : memref<1x2x128xf32, #tpu.memory_space<vmem>>, vector<1x1x128xf32>,
    } else {
    }
    return
  }
  func.func @transform_0(%arg0: i32, %arg1: i32) -> (i32, i32, i32) {
    %c0_i32 = arith.constant 0 : i32
    %c0_i32_0 = arith.constant 0 : i32
    %c0_i32_1 = arith.constant 0 : i32
    return %arg0, %c0_i32, %c0_i32_0 : i32, i32, i32
  }
  func.func @transform_1(%arg0: i32, %arg1: i32) -> (i32, i32) {
    %c0_i32 = arith.constant 0 : i32
    %c0_i32_0 = arith.constant 0 : i32
    %c0_i32_1 = arith.constant 0 : i32
    return %c0_i32, %c0_i32_0 : i32, i32
  }
  func.func @transform_2(%arg0: i32, %arg1: i32) -> (i32, i32) {
    %c0_i32 = arith.constant 0 : i32
    %c0_i32_0 = arith.constant 0 : i32
    %c0_i32_1 = arith.constant 0 : i32
    return %c0_i32, %c0_i32_0 : i32, i32
  }
  func.func @transform_3(%arg0: i32, %arg1: i32) -> (i32, i32, i32) {
    %c0_i32 = arith.constant 0 : i32
    %c0_i32_0 = arith.constant 0 : i32
    %c0_i32_1 = arith.constant 0 : i32
    return %c0_i32, %c0_i32_0, %arg1 : i32, i32, i32
  }
  func.func @transform_4(%arg0: i32, %arg1: i32) -> (i32, i32) {
    %c0_i32 = arith.constant 0 : i32
    %c0_i32_0 = arith.constant 0 : i32
    return %c0_i32, %arg1 : i32, i32
  }
  func.func @transform_5(%arg0: i32, %arg1: i32) -> (i32, i32, i32, i32) {
    %c0_i32 = arith.constant 0 : i32
    %c0_i32_0 = arith.constant 0 : i32
    %c0_i32_1 = arith.constant 0 : i32
    return %arg0, %c0_i32, %c0_i32_0, %arg1 : i32, i32, i32, i32
  }
  func.func @transform_6(%arg0: i32, %arg1: i32) -> (i32, i32, i32) {
    %c0_i32 = arith.constant 0 : i32
    %c0_i32_0 = arith.constant 0 : i32
    %c0_i32_1 = arith.constant 0 : i32
    return %arg0, %c0_i32, %c0_i32_0 : i32, i32, i32
  }
  func.func @transform_7(%arg0: i32, %arg1: i32) -> (i32, i32, i32) {
    %c0_i32 = arith.constant 0 : i32
    %c0_i32_0 = arith.constant 0 : i32
    %c0_i32_1 = arith.constant 0 : i32
    return %arg0, %c0_i32, %c0_i32_0 : i32, i32, i32
  }
}

module attributes {stable_mosaic.version = 11 : i64} {
  func.func @_fused_bn_conv2_kernel(%arg0: i32, %arg1: memref<1x16x16x256xbf16, #tpu.memory_space<vmem>>, %arg2: memref<1x256xf32, #tpu.memory_space<vmem>>, %arg3: memref<1x256xf32, #tpu.memory_space<vmem>>, %arg4: memref<3x768x64xbf16, #tpu.memory_space<vmem>>, %arg5: memref<1x64xf32, #tpu.memory_space<vmem>>, %arg6: memref<1x16x16x64xf32, #tpu.memory_space<vmem>>, %arg7: memref<18x16x768xbf16, #tpu.memory_space<vmem>>) attributes {dimension_semantics = [#tpu.dimension_semantics<parallel>], iteration_bounds = array<i64: 2>, scalar_prefetch = 0 : i64, scratch_operands = 1 : i64, tpu.core_type = #tpu.core_type<tc>, window_params = [{transform_indices = @transform_0, window_bounds = array<i64: 1, 16, 16, 256>}, {pipeline_mode = #tpu.pipeline_mode<synchronous>, transform_indices = @transform_1, window_bounds = array<i64: 1, 256>}, {pipeline_mode = #tpu.pipeline_mode<synchronous>, transform_indices = @transform_2, window_bounds = array<i64: 1, 256>}, {pipeline_mode = #tpu.pipeline_mode<synchronous>, transform_indices = @transform_3, window_bounds = array<i64: 3, 768, 64>}, {pipeline_mode = #tpu.pipeline_mode<synchronous>, transform_indices = @transform_4, window_bounds = array<i64: 1, 64>}, {transform_indices = @transform_5, window_bounds = array<i64: 1, 16, 16, 64>}]} {
    %cst = arith.constant 0.000000e+00 : bf16
    %0 = vector.broadcast %cst : bf16 to vector<1x16x768xbf16>
    %c0 = arith.constant 0 : index
    %c0_0 = arith.constant 0 : index
    %c0_1 = arith.constant 0 : index
    %1 = vector.load %arg7[%c0, %c0_0, %c0_1] : memref<18x16x768xbf16, #tpu.memory_space<vmem>>, vector<1x16x768xbf16>
    tpu.vector_store %arg7[%c0, %c0_0, %c0_1], %0 {strides = array<i32>} : memref<18x16x768xbf16, #tpu.memory_space<vmem>>, vector<1x16x768xbf16>,
    %c17 = arith.constant 17 : index
    %c0_2 = arith.constant 0 : index
    %c0_3 = arith.constant 0 : index
    %2 = vector.load %arg7[%c17, %c0_2, %c0_3] : memref<18x16x768xbf16, #tpu.memory_space<vmem>>, vector<1x16x768xbf16>
    tpu.vector_store %arg7[%c17, %c0_2, %c0_3], %0 {strides = array<i32>} : memref<18x16x768xbf16, #tpu.memory_space<vmem>>, vector<1x16x768xbf16>,
    %c0_4 = arith.constant 0 : index
    %c0_5 = arith.constant 0 : index
    %3 = vector.load %arg2[%c0_4, %c0_5] : memref<1x256xf32, #tpu.memory_space<vmem>>, vector<1x256xf32>
    %c0_6 = arith.constant 0 : index
    %c0_7 = arith.constant 0 : index
    %4 = vector.load %arg3[%c0_6, %c0_7] : memref<1x256xf32, #tpu.memory_space<vmem>>, vector<1x256xf32>
    %cst_8 = arith.constant 0.000000e+00 : bf16
    %5 = vector.broadcast %cst_8 : bf16 to vector<4x1x256xbf16>
    %c0_9 = arith.constant 0 : index
    %c0_10 = arith.constant 0 : index
    %c0_11 = arith.constant 0 : index
    %c0_12 = arith.constant 0 : index
    %6 = vector.load %arg1[%c0_9, %c0_10, %c0_11, %c0_12] : memref<1x16x16x256xbf16, #tpu.memory_space<vmem>>, vector<1x4x16x256xbf16>
    %7 = vector.shape_cast %6 : vector<1x4x16x256xbf16> to vector<4x16x256xbf16>
    %8 = arith.extf %7 : vector<4x16x256xbf16> to vector<4x16x256xf32>
    %9 = vector.shape_cast %3 : vector<1x256xf32> to vector<1x1x256xf32>
    %10 = vector.broadcast %9 : vector<1x1x256xf32> to vector<4x16x256xf32>
    %11 = arith.mulf %8, %10 : vector<4x16x256xf32>
    %12 = vector.shape_cast %4 : vector<1x256xf32> to vector<1x1x256xf32>
    %13 = vector.broadcast %12 : vector<1x1x256xf32> to vector<4x16x256xf32>
    %14 = arith.addf %11, %13 : vector<4x16x256xf32>
    %15 = arith.truncf %14 : vector<4x16x256xf32> to vector<4x16x256xbf16>
    %16 = vector.extract_strided_slice %15 {offsets = [0, 0, 0], sizes = [4, 15, 256], strides = [1, 1, 1]} : vector<4x16x256xbf16> to vector<4x15x256xbf16>
    %17 = tpu.concatenate %5, %16 in 1 : vector<4x1x256xbf16>, vector<4x15x256xbf16> -> vector<4x16x256xbf16>
    %18 = vector.extract_strided_slice %15 {offsets = [0, 1, 0], sizes = [4, 15, 256], strides = [1, 1, 1]} : vector<4x16x256xbf16> to vector<4x15x256xbf16>
    %19 = tpu.concatenate %18, %5 in 1 : vector<4x15x256xbf16>, vector<4x1x256xbf16> -> vector<4x16x256xbf16>
    %20 = tpu.concatenate %17, %15, %19 in 2 : vector<4x16x256xbf16>, vector<4x16x256xbf16>, vector<4x16x256xbf16> -> vector<4x16x768xbf16>
    %c1 = arith.constant 1 : index
    %c0_13 = arith.constant 0 : index
    %c0_14 = arith.constant 0 : index
    %21 = vector.load %arg7[%c1, %c0_13, %c0_14] : memref<18x16x768xbf16, #tpu.memory_space<vmem>>, vector<4x16x768xbf16>
    tpu.vector_store %arg7[%c1, %c0_13, %c0_14], %20 {strides = array<i32>} : memref<18x16x768xbf16, #tpu.memory_space<vmem>>, vector<4x16x768xbf16>,
    %c0_15 = arith.constant 0 : index
    %c4 = arith.constant 4 : index
    %c0_16 = arith.constant 0 : index
    %c0_17 = arith.constant 0 : index
    %22 = vector.load %arg1[%c0_15, %c4, %c0_16, %c0_17] : memref<1x16x16x256xbf16, #tpu.memory_space<vmem>>, vector<1x4x16x256xbf16>
    %23 = vector.shape_cast %22 : vector<1x4x16x256xbf16> to vector<4x16x256xbf16>
    %24 = arith.extf %23 : vector<4x16x256xbf16> to vector<4x16x256xf32>
    %25 = vector.shape_cast %3 : vector<1x256xf32> to vector<1x1x256xf32>
    %26 = vector.broadcast %25 : vector<1x1x256xf32> to vector<4x16x256xf32>
    %27 = arith.mulf %24, %26 : vector<4x16x256xf32>
    %28 = vector.shape_cast %4 : vector<1x256xf32> to vector<1x1x256xf32>
    %29 = vector.broadcast %28 : vector<1x1x256xf32> to vector<4x16x256xf32>
    %30 = arith.addf %27, %29 : vector<4x16x256xf32>
    %31 = arith.truncf %30 : vector<4x16x256xf32> to vector<4x16x256xbf16>
    %32 = vector.extract_strided_slice %31 {offsets = [0, 0, 0], sizes = [4, 15, 256], strides = [1, 1, 1]} : vector<4x16x256xbf16> to vector<4x15x256xbf16>
    %33 = tpu.concatenate %5, %32 in 1 : vector<4x1x256xbf16>, vector<4x15x256xbf16> -> vector<4x16x256xbf16>
    %34 = vector.extract_strided_slice %31 {offsets = [0, 1, 0], sizes = [4, 15, 256], strides = [1, 1, 1]} : vector<4x16x256xbf16> to vector<4x15x256xbf16>
    %35 = tpu.concatenate %34, %5 in 1 : vector<4x15x256xbf16>, vector<4x1x256xbf16> -> vector<4x16x256xbf16>
    %36 = tpu.concatenate %33, %31, %35 in 2 : vector<4x16x256xbf16>, vector<4x16x256xbf16>, vector<4x16x256xbf16> -> vector<4x16x768xbf16>
    %c5 = arith.constant 5 : index
    %c0_18 = arith.constant 0 : index
    %c0_19 = arith.constant 0 : index
    %37 = vector.load %arg7[%c5, %c0_18, %c0_19] : memref<18x16x768xbf16, #tpu.memory_space<vmem>>, vector<4x16x768xbf16>
    tpu.vector_store %arg7[%c5, %c0_18, %c0_19], %36 {strides = array<i32>} : memref<18x16x768xbf16, #tpu.memory_space<vmem>>, vector<4x16x768xbf16>,
    %c0_20 = arith.constant 0 : index
    %c8 = arith.constant 8 : index
    %c0_21 = arith.constant 0 : index
    %c0_22 = arith.constant 0 : index
    %38 = vector.load %arg1[%c0_20, %c8, %c0_21, %c0_22] : memref<1x16x16x256xbf16, #tpu.memory_space<vmem>>, vector<1x4x16x256xbf16>
    %39 = vector.shape_cast %38 : vector<1x4x16x256xbf16> to vector<4x16x256xbf16>
    %40 = arith.extf %39 : vector<4x16x256xbf16> to vector<4x16x256xf32>
    %41 = vector.shape_cast %3 : vector<1x256xf32> to vector<1x1x256xf32>
    %42 = vector.broadcast %41 : vector<1x1x256xf32> to vector<4x16x256xf32>
    %43 = arith.mulf %40, %42 : vector<4x16x256xf32>
    %44 = vector.shape_cast %4 : vector<1x256xf32> to vector<1x1x256xf32>
    %45 = vector.broadcast %44 : vector<1x1x256xf32> to vector<4x16x256xf32>
    %46 = arith.addf %43, %45 : vector<4x16x256xf32>
    %47 = arith.truncf %46 : vector<4x16x256xf32> to vector<4x16x256xbf16>
    %48 = vector.extract_strided_slice %47 {offsets = [0, 0, 0], sizes = [4, 15, 256], strides = [1, 1, 1]} : vector<4x16x256xbf16> to vector<4x15x256xbf16>
    %49 = tpu.concatenate %5, %48 in 1 : vector<4x1x256xbf16>, vector<4x15x256xbf16> -> vector<4x16x256xbf16>
    %50 = vector.extract_strided_slice %47 {offsets = [0, 1, 0], sizes = [4, 15, 256], strides = [1, 1, 1]} : vector<4x16x256xbf16> to vector<4x15x256xbf16>
    %51 = tpu.concatenate %50, %5 in 1 : vector<4x15x256xbf16>, vector<4x1x256xbf16> -> vector<4x16x256xbf16>
    %52 = tpu.concatenate %49, %47, %51 in 2 : vector<4x16x256xbf16>, vector<4x16x256xbf16>, vector<4x16x256xbf16> -> vector<4x16x768xbf16>
    %c9 = arith.constant 9 : index
    %c0_23 = arith.constant 0 : index
    %c0_24 = arith.constant 0 : index
    %53 = vector.load %arg7[%c9, %c0_23, %c0_24] : memref<18x16x768xbf16, #tpu.memory_space<vmem>>, vector<4x16x768xbf16>
    tpu.vector_store %arg7[%c9, %c0_23, %c0_24], %52 {strides = array<i32>} : memref<18x16x768xbf16, #tpu.memory_space<vmem>>, vector<4x16x768xbf16>,
    %c0_25 = arith.constant 0 : index
    %c12 = arith.constant 12 : index
    %c0_26 = arith.constant 0 : index
    %c0_27 = arith.constant 0 : index
    %54 = vector.load %arg1[%c0_25, %c12, %c0_26, %c0_27] : memref<1x16x16x256xbf16, #tpu.memory_space<vmem>>, vector<1x4x16x256xbf16>
    %55 = vector.shape_cast %54 : vector<1x4x16x256xbf16> to vector<4x16x256xbf16>
    %56 = arith.extf %55 : vector<4x16x256xbf16> to vector<4x16x256xf32>
    %57 = vector.shape_cast %3 : vector<1x256xf32> to vector<1x1x256xf32>
    %58 = vector.broadcast %57 : vector<1x1x256xf32> to vector<4x16x256xf32>
    %59 = arith.mulf %56, %58 : vector<4x16x256xf32>
    %60 = vector.shape_cast %4 : vector<1x256xf32> to vector<1x1x256xf32>
    %61 = vector.broadcast %60 : vector<1x1x256xf32> to vector<4x16x256xf32>
    %62 = arith.addf %59, %61 : vector<4x16x256xf32>
    %63 = arith.truncf %62 : vector<4x16x256xf32> to vector<4x16x256xbf16>
    %64 = vector.extract_strided_slice %63 {offsets = [0, 0, 0], sizes = [4, 15, 256], strides = [1, 1, 1]} : vector<4x16x256xbf16> to vector<4x15x256xbf16>
    %65 = tpu.concatenate %5, %64 in 1 : vector<4x1x256xbf16>, vector<4x15x256xbf16> -> vector<4x16x256xbf16>
    %66 = vector.extract_strided_slice %63 {offsets = [0, 1, 0], sizes = [4, 15, 256], strides = [1, 1, 1]} : vector<4x16x256xbf16> to vector<4x15x256xbf16>
    %67 = tpu.concatenate %66, %5 in 1 : vector<4x15x256xbf16>, vector<4x1x256xbf16> -> vector<4x16x256xbf16>
    %68 = tpu.concatenate %65, %63, %67 in 2 : vector<4x16x256xbf16>, vector<4x16x256xbf16>, vector<4x16x256xbf16> -> vector<4x16x768xbf16>
    %c13 = arith.constant 13 : index
    %c0_28 = arith.constant 0 : index
    %c0_29 = arith.constant 0 : index
    %69 = vector.load %arg7[%c13, %c0_28, %c0_29] : memref<18x16x768xbf16, #tpu.memory_space<vmem>>, vector<4x16x768xbf16>
    tpu.vector_store %arg7[%c13, %c0_28, %c0_29], %68 {strides = array<i32>} : memref<18x16x768xbf16, #tpu.memory_space<vmem>>, vector<4x16x768xbf16>,
    %cst_30 = arith.constant 0.000000e+00 : f32
    %70 = vector.broadcast %cst_30 : f32 to vector<256x64xf32>
    %c0_31 = arith.constant 0 : index
    %c0_32 = arith.constant 0 : index
    %c0_33 = arith.constant 0 : index
    %71 = vector.load %arg7[%c0_31, %c0_32, %c0_33] : memref<18x16x768xbf16, #tpu.memory_space<vmem>>, vector<16x16x768xbf16>
    %72 = vector.shape_cast %71 : vector<16x16x768xbf16> to vector<256x768xbf16>
    %c0_34 = arith.constant 0 : index
    %c0_35 = arith.constant 0 : index
    %c0_36 = arith.constant 0 : index
    %73 = vector.load %arg4[%c0_34, %c0_35, %c0_36] : memref<3x768x64xbf16, #tpu.memory_space<vmem>>, vector<1x768x64xbf16>
    %74 = vector.shape_cast %73 : vector<1x768x64xbf16> to vector<768x64xbf16>
    %cst_37 = arith.constant dense<0.000000e+00> : vector<256x64xf32>
    %75 = tpu.matmul %72, %74, %cst_37 {dimension_numbers = #tpu.dot_dimension_numbers<[1], [0], [0], [1], [0, 0, 1, 1], [], []>} : vector<256x768xbf16>, vector<768x64xbf16>, vector<256x64xf32> -> vector<256x64xf32>
    %76 = arith.addf %70, %75 : vector<256x64xf32>
    %c1_38 = arith.constant 1 : index
    %c0_39 = arith.constant 0 : index
    %c0_40 = arith.constant 0 : index
    %77 = vector.load %arg7[%c1_38, %c0_39, %c0_40] : memref<18x16x768xbf16, #tpu.memory_space<vmem>>, vector<16x16x768xbf16>
    %78 = vector.shape_cast %77 : vector<16x16x768xbf16> to vector<256x768xbf16>
    %c1_41 = arith.constant 1 : index
    %c0_42 = arith.constant 0 : index
    %c0_43 = arith.constant 0 : index
    %79 = vector.load %arg4[%c1_41, %c0_42, %c0_43] : memref<3x768x64xbf16, #tpu.memory_space<vmem>>, vector<1x768x64xbf16>
    %80 = vector.shape_cast %79 : vector<1x768x64xbf16> to vector<768x64xbf16>
    %cst_44 = arith.constant dense<0.000000e+00> : vector<256x64xf32>
    %81 = tpu.matmul %78, %80, %cst_44 {dimension_numbers = #tpu.dot_dimension_numbers<[1], [0], [0], [1], [0, 0, 1, 1], [], []>} : vector<256x768xbf16>, vector<768x64xbf16>, vector<256x64xf32> -> vector<256x64xf32>
    %82 = arith.addf %76, %81 : vector<256x64xf32>
    %c2 = arith.constant 2 : index
    %c0_45 = arith.constant 0 : index
    %c0_46 = arith.constant 0 : index
    %83 = vector.load %arg7[%c2, %c0_45, %c0_46] : memref<18x16x768xbf16, #tpu.memory_space<vmem>>, vector<16x16x768xbf16>
    %84 = vector.shape_cast %83 : vector<16x16x768xbf16> to vector<256x768xbf16>
    %c2_47 = arith.constant 2 : index
    %c0_48 = arith.constant 0 : index
    %c0_49 = arith.constant 0 : index
    %85 = vector.load %arg4[%c2_47, %c0_48, %c0_49] : memref<3x768x64xbf16, #tpu.memory_space<vmem>>, vector<1x768x64xbf16>
    %86 = vector.shape_cast %85 : vector<1x768x64xbf16> to vector<768x64xbf16>
    %cst_50 = arith.constant dense<0.000000e+00> : vector<256x64xf32>
    %87 = tpu.matmul %84, %86, %cst_50 {dimension_numbers = #tpu.dot_dimension_numbers<[1], [0], [0], [1], [0, 0, 1, 1], [], []>} : vector<256x768xbf16>, vector<768x64xbf16>, vector<256x64xf32> -> vector<256x64xf32>
    %88 = arith.addf %82, %87 : vector<256x64xf32>
    %c0_51 = arith.constant 0 : index
    %c0_52 = arith.constant 0 : index
    %89 = vector.load %arg5[%c0_51, %c0_52] : memref<1x64xf32, #tpu.memory_space<vmem>>, vector<1x64xf32>
    %90 = vector.broadcast %89 : vector<1x64xf32> to vector<256x64xf32>
    %91 = arith.addf %88, %90 : vector<256x64xf32>
    %92 = vector.shape_cast %91 : vector<256x64xf32> to vector<16x16x64xf32>
    %c0_53 = arith.constant 0 : index
    %c0_54 = arith.constant 0 : index
    %c0_55 = arith.constant 0 : index
    %c0_56 = arith.constant 0 : index
    %93 = vector.load %arg6[%c0_53, %c0_54, %c0_55, %c0_56] : memref<1x16x16x64xf32, #tpu.memory_space<vmem>>, vector<1x16x16x64xf32>
    %94 = vector.shape_cast %93 : vector<1x16x16x64xf32> to vector<16x16x64xf32>
    %95 = vector.shape_cast %92 : vector<16x16x64xf32> to vector<1x16x16x64xf32>
    tpu.vector_store %arg6[%c0_53, %c0_54, %c0_55, %c0_56], %95 {strides = array<i32>} : memref<1x16x16x64xf32, #tpu.memory_space<vmem>>, vector<1x16x16x64xf32>,
    return
  }
  func.func @transform_0(%arg0: i32) -> (i32, i32, i32, i32) {
    %c0_i32 = arith.constant 0 : i32
    %c0_i32_0 = arith.constant 0 : i32
    %c0_i32_1 = arith.constant 0 : i32
    %c0_i32_2 = arith.constant 0 : i32
    return %arg0, %c0_i32, %c0_i32_0, %c0_i32_1 : i32, i32, i32, i32
  }
  func.func @transform_1(%arg0: i32) -> (i32, i32) {
    %c0_i32 = arith.constant 0 : i32
    %c0_i32_0 = arith.constant 0 : i32
    %c0_i32_1 = arith.constant 0 : i32
    return %c0_i32, %c0_i32_0 : i32, i32
  }
  func.func @transform_2(%arg0: i32) -> (i32, i32) {
    %c0_i32 = arith.constant 0 : i32
    %c0_i32_0 = arith.constant 0 : i32
    %c0_i32_1 = arith.constant 0 : i32
    return %c0_i32, %c0_i32_0 : i32, i32
  }
  func.func @transform_3(%arg0: i32) -> (i32, i32, i32) {
    %c0_i32 = arith.constant 0 : i32
    %c0_i32_0 = arith.constant 0 : i32
    %c0_i32_1 = arith.constant 0 : i32
    %c0_i32_2 = arith.constant 0 : i32
    return %c0_i32, %c0_i32_0, %c0_i32_1 : i32, i32, i32
  }
  func.func @transform_4(%arg0: i32) -> (i32, i32) {
    %c0_i32 = arith.constant 0 : i32
    %c0_i32_0 = arith.constant 0 : i32
    %c0_i32_1 = arith.constant 0 : i32
    return %c0_i32, %c0_i32_0 : i32, i32
  }
  func.func @transform_5(%arg0: i32) -> (i32, i32, i32, i32) {
    %c0_i32 = arith.constant 0 : i32
    %c0_i32_0 = arith.constant 0 : i32
    %c0_i32_1 = arith.constant 0 : i32
    %c0_i32_2 = arith.constant 0 : i32
    return %arg0, %c0_i32, %c0_i32_0, %c0_i32_1 : i32, i32, i32, i32
  }
}

</mosaic_0001>

<bundles_post_ra>
// kernel: custom_cnn_1_forward.2
= control target key start
LH: loop header
LB: loop body
LE: loop exit
PB: predicated region body
PF: predicated region fallthrough
CT: control target
= control target key end

     0   :  { %s5829_s0 = inlined_call_operand.vmem [shape: bf16[2,256,27], index: 0, kind: input, shape index: {}]   ;;  %s5830_s1 = inlined_call_operand.vmem [shape: bf16[27,64], index: 1, kind: input, shape index: {}]   ;;  %s5831_s2 = inlined_call_operand.vmem [shape: f32[1,64], index: 2, kind: input, shape index: {}]   ;;  %s5832_s3 = inlined_call_operand.vmem [shape: bf16[3,192,256], index: 3, kind: input, shape index: {}]   ;;  %s5833_s4 = inlined_call_operand.vmem [shape: f32[1,256], index: 4, kind: input, shape index: {}]   ;;  %s5834_s5 = inlined_call_operand.vmem [shape: bf16[2,16,16,256], index: 5, kind: output, shape index: {0}]   ;;  %s5835_s6 = inlined_call_operand.vmem [shape: f32[2,2,128], index: 6, kind: output, shape index: {1}]   ;;  %s5836_s7 = inlined_call_operand.vmem [shape: f32[2,2,128], index: 7, kind: output, shape index: {2}]  }
   0x1   :  { %5842 = sst [smem:[#allocation12_spill]] %s5832_s3 }
   0x2   :  { %s4601_s24 = smov 0   ;;  %s4603_s25 = smov 0  }
   0x3   :  { %s4605_s26 = smov 0   ;;  %s4607_s27 = smov 0  }
   0x4   :  { %s4609_s28 = smov 0   ;;  %s4611_s29 = smov 0  }
   0x5   :  { %s4613_s30 = smov 0   ;;  %s4615_s8 = smov 0  }
   0x6   :  { %s4617_s9 = smov 0  }
   0x7 LB: > { %5843 = sst [smem:[#allocation5_spill]] %s4535_s27  ;;  %s3742_s10 = sadd.s32 4294967295, %s4555_s9   ;;  %s4555_s9 = sphi %s4617_s9, %s18_s9   ;;  %s4551_s8 = sphi %s4615_s8, %s5866_s8   ;;  %s4547_s30 = sphi %s4613_s30, %s5865_s30   ;;  %s4543_s29 = sphi %s4611_s29, %s5870_s29   ;;  %s4539_s28 = sphi %s4609_s28, %s5869_s28   ;;  %s4535_s27 = sphi %s4607_s27, %s5862_s27   ;;  %s4531_s26 = sphi %s4605_s26, %s5861_s26   ;;  %s4527_s25 = sphi %s4603_s25, %s5868_s25   ;;  %s4523_s24 = sphi %s4601_s24, %s5867_s24  }
   0x8   : > { %5844 = sst [smem:[#allocation6_spill]] %s4547_s30  ;;  %s27_s11 = sadd.s32 1, %s4547_s30 }
   0x9   : > { %5845 = sst [smem:[#allocation7_spill]] %s4551_s8  ;;  %p28_p0 = scmp.ge.s32.totalorder %s27_s11, 2 }
   0xa   : > { %s30_s12 = sadd.s32 1, %s4551_s8  ;;  %s105_s13 = sadd.s32 1, %s4535_s27 }
   0xb   : > { %p112_p1 = scmp.ne.s32.totalorder %s4535_s27, %s4531_s26  ;;  %s5872_s11 = smov (%p28_p0, %s27_s11), 0 }
   0xc   : > { %5846 = sst [smem:[#allocation8_spill]] %s5872_s11  ;;  %s5874_s12 = smov (!%p28_p0, %s30_s12), %s4551_s8 }
   0xd   : > { %s102_s14 = ssub.s32 %s4547_s30, %s5872_s11  ;;  %p113_p2 = scmp.eq.s32.totalorder %s4555_s9, 0 }
   0xe   : > { %p32_p3 = scmp.ge.s32.totalorder %s5874_s12, 2  ;;  %p103_p4 = scmp.eq.s32.totalorder %s102_s14, 0 }
   0xf   : > { %p114_p5 = por %p113_p2, %p112_p1  ;;  %s159_s15 = sadd.s32 1, %s4527_s25 }
  0x10   : > { %s5876_s12 = smov (%p32_p3, %s5874_s12), 0  ;;  %p169_p6 = scmp.ne.s32.totalorder %s4527_s25, %s4523_s24 }
  0x11   : > { %5847 = sst [smem:[#allocation9_spill]] %s5876_s12  ;;  %s154_s17 = ssub.s32 %s4551_s8, %s5876_s12 }
  0x12   : > { %s4662_s16 = scalar_select %p103_p4, %s4535_s27, %s105_s13  }
  0x13   : > { %s156_s18 = sor.u32 %s154_s17, %s102_s14  ;;  %p170_p7 = scmp.eq.s32.totalorder %s3742_s10, 3 }
  0x14   : > { %5848 = sst [smem:[#allocation10_spill]] %s4662_s16  ;;  %p157_p8 = scmp.eq.s32.totalorder %s156_s18, 0 }
  0x15   : > { %p4668_p9 = por %p170_p7, %p169_p6  ;;  %p3745_p10 = scmp.ge.s32.totalorder %s4555_s9, 4 }
  0x16   : > { %s4673_s20 = scalar_select %p157_p8, %s4527_s25, %s159_s15  }
  0x17   : > { %250 = sbr.rel (%p3745_p10) target bundleno = 86 (0x56), region = 24 }
  0x18   : > { %5850 = sst [smem:[#allocation11_spill]] %s4673_s20 }
  0x1c   : > { %261 = sbr.rel (!%p114_p5) target bundleno = 86 (0x56), region = 32  ;;  %s263_s21 = sand.u32 (%p114_p5), 1, %s4535_s27  }
  0x1d   : > { %s3746_s22 = sshll.u32 (%p114_p5), %s4547_s30, 2  ;;  %s4299_s23 = smul.u32 (%p114_p5), 288, %s263_s21 }
  0x1e   : > { %s5851_s3 = sld [smem:[#allocation12_spill]] (%p114_p5) }
  0x1f   : > { %s4688_s14 = scalar_lea.vmem (%p114_p5), [#allocation3], %s4299_s23 }
  0x24   : > { %s4681_s10 = scalar_lea.vmem %s5851_s3, %s3746_s22 }
  0x25   : > { %v284_v0 = vld [vmem:[%s4681_s10] sm:$0xf]  ;;  %v286_v1 = vld [vmem:[%s4681_s10 + $0x8] sm:$0xf]  ;;  %v288_v2 = vld [vmem:[%s4681_s10 + $0x10] sm:$0xf] }
  0x26   : > { %v290_v3 = vld [vmem:[%s4681_s10 + $0x18] sm:$0xf]  ;;  %v292_v4 = vld [vmem:[%s4681_s10 + $0x20] sm:$0xf]  ;;  %285 = vst [vmem:[%s4688_s14] sm:$0xf] %v284_v0 }
  0x27   : > { %287 = vst [vmem:[%s4688_s14 + $0x4] sm:$0xf] %v286_v1  ;;  %289 = vst [vmem:[%s4688_s14 + $0x8] sm:$0xf] %v288_v2  ;;  %v294_v5 = vld [vmem:[%s4681_s10 + $0x28] sm:$0xf] }
  0x28   : > { %291 = vst [vmem:[%s4688_s14 + $0xc] sm:$0xf] %v290_v3  ;;  %293 = vst [vmem:[%s4688_s14 + $0x10] sm:$0xf] %v292_v4  ;;  %v296_v6 = vld [vmem:[%s4681_s10 + $0x30] sm:$0xf] }
  0x29   : > { %v298_v7 = vld [vmem:[%s4681_s10 + $0x38] sm:$0xf]  ;;  %295 = vst [vmem:[%s4688_s14 + $0x14] sm:$0xf] %v294_v5  ;;  %297 = vst [vmem:[%s4688_s14 + $0x18] sm:$0xf] %v296_v6 }
  0x2a   : > { %299 = vst [vmem:[%s4688_s14 + $0x1c] sm:$0xf] %v298_v7  ;;  %v300_v8 = vld [vmem:[%s4681_s10 + $0x40] sm:$0xf]  ;;  %v302_v9 = vld [vmem:[%s4681_s10 + $0x48] sm:$0xf] }
  0x2b   : > { %v304_v10 = vld [vmem:[%s4681_s10 + $0x50] sm:$0xf]  ;;  %301 = vst [vmem:[%s4688_s14 + $0x20] sm:$0xf] %v300_v8  ;;  %303 = vst [vmem:[%s4688_s14 + $0x24] sm:$0xf] %v302_v9 }
  0x2c   : > { %305 = vst [vmem:[%s4688_s14 + $0x28] sm:$0xf] %v304_v10  ;;  %v306_v11 = vld [vmem:[%s4681_s10 + $0x58] sm:$0xf]  ;;  %v308_v12 = vld [vmem:[%s4681_s10 + $0x60] sm:$0xf] }
  0x2d   : > { %v310_v13 = vld [vmem:[%s4681_s10 + $0x68] sm:$0xf]  ;;  %307 = vst [vmem:[%s4688_s14 + $0x2c] sm:$0xf] %v306_v11  ;;  %309 = vst [vmem:[%s4688_s14 + $0x30] sm:$0xf] %v308_v12 }
  0x2e   : > { %311 = vst [vmem:[%s4688_s14 + $0x34] sm:$0xf] %v310_v13  ;;  %v312_v14 = vld [vmem:[%s4681_s10 + $0x70] sm:$0xf]  ;;  %v314_v15 = vld [vmem:[%s4681_s10 + $0x78] sm:$0xf] }
  0x2f   : > { %v316_v16 = vld [vmem:[%s4681_s10 + $0x80] sm:$0xf]  ;;  %313 = vst [vmem:[%s4688_s14 + $0x38] sm:$0xf] %v312_v14  ;;  %315 = vst [vmem:[%s4688_s14 + $0x3c] sm:$0xf] %v314_v15 }
  0x30   : > { %317 = vst [vmem:[%s4688_s14 + $0x40] sm:$0xf] %v316_v16  ;;  %v318_v17 = vld [vmem:[%s4681_s10 + $0x88] sm:$0xf]  ;;  %v320_v18 = vld [vmem:[%s4681_s10 + $0x90] sm:$0xf] }
  0x31   : > { %v322_v19 = vld [vmem:[%s4681_s10 + $0x98] sm:$0xf]  ;;  %319 = vst [vmem:[%s4688_s14 + $0x44] sm:$0xf] %v318_v17  ;;  %321 = vst [vmem:[%s4688_s14 + $0x48] sm:$0xf] %v320_v18 }
  0x32   : > { %323 = vst [vmem:[%s4688_s14 + $0x4c] sm:$0xf] %v322_v19  ;;  %v324_v20 = vld [vmem:[%s4681_s10 + $0xa0] sm:$0xf]  ;;  %v326_v21 = vld [vmem:[%s4681_s10 + $0xa8] sm:$0xf] }
  0x33   : > { %v328_v22 = vld [vmem:[%s4681_s10 + $0xb0] sm:$0xf]  ;;  %325 = vst [vmem:[%s4688_s14 + $0x50] sm:$0xf] %v324_v20  ;;  %327 = vst [vmem:[%s4688_s14 + $0x54] sm:$0xf] %v326_v21 }
  0x34   : > { %329 = vst [vmem:[%s4688_s14 + $0x58] sm:$0xf] %v328_v22  ;;  %v330_v23 = vld [vmem:[%s4681_s10 + $0xb8] sm:$0xf]  ;;  %v332_v24 = vld [vmem:[%s4681_s10 + $0xc0] sm:$0xf] }
  0x35   : > { %v334_v25 = vld [vmem:[%s4681_s10 + $0xc8] sm:$0xf]  ;;  %331 = vst [vmem:[%s4688_s14 + $0x5c] sm:$0xf] %v330_v23  ;;  %333 = vst [vmem:[%s4688_s14 + $0x60] sm:$0xf] %v332_v24 }
  0x36   : > { %335 = vst [vmem:[%s4688_s14 + $0x64] sm:$0xf] %v334_v25  ;;  %v336_v26 = vld [vmem:[%s4681_s10 + $0xd0] sm:$0xf]  ;;  %v338_v27 = vld [vmem:[%s4681_s10 + $0xd8] sm:$0xf] }
  0x37   : > { %v340_v28 = vld [vmem:[%s4681_s10 + $0xe0] sm:$0xf]  ;;  %337 = vst [vmem:[%s4688_s14 + $0x68] sm:$0xf] %v336_v26  ;;  %339 = vst [vmem:[%s4688_s14 + $0x6c] sm:$0xf] %v338_v27 }
  0x38   : > { %341 = vst [vmem:[%s4688_s14 + $0x70] sm:$0xf] %v340_v28  ;;  %v342_v29 = vld [vmem:[%s4681_s10 + $0xe8] sm:$0xf]  ;;  %v344_v30 = vld [vmem:[%s4681_s10 + $0xf0] sm:$0xf] }
  0x39   : > { %v346_v31 = vld [vmem:[%s4681_s10 + $0xf8] sm:$0xf]  ;;  %343 = vst [vmem:[%s4688_s14 + $0x74] sm:$0xf] %v342_v29  ;;  %345 = vst [vmem:[%s4688_s14 + $0x78] sm:$0xf] %v344_v30 }
  0x3a   : > { %347 = vst [vmem:[%s4688_s14 + $0x7c] sm:$0xf] %v346_v31  ;;  %v348_v32 = vld [vmem:[%s4681_s10 + $0x100] sm:$0xf]  ;;  %v350_v33 = vld [vmem:[%s4681_s10 + $0x108] sm:$0xf] }
  0x3b   : > { %v352_v34 = vld [vmem:[%s4681_s10 + $0x110] sm:$0xf]  ;;  %349 = vst [vmem:[%s4688_s14 + $0x80] sm:$0xf] %v348_v32  ;;  %351 = vst [vmem:[%s4688_s14 + $0x84] sm:$0xf] %v350_v33 }
  0x3c   : > { %353 = vst [vmem:[%s4688_s14 + $0x88] sm:$0xf] %v352_v34  ;;  %v354_v35 = vld [vmem:[%s4681_s10 + $0x118] sm:$0xf]  ;;  %v356_v36 = vld [vmem:[%s4681_s10 + $0x120] sm:$0xf] }
  0x3d   : > { %v358_v37 = vld [vmem:[%s4681_s10 + $0x128] sm:$0xf]  ;;  %355 = vst [vmem:[%s4688_s14 + $0x8c] sm:$0xf] %v354_v35  ;;  %357 = vst [vmem:[%s4688_s14 + $0x90] sm:$0xf] %v356_v36 }
  0x3e   : > { %359 = vst [vmem:[%s4688_s14 + $0x94] sm:$0xf] %v358_v37  ;;  %v360_v38 = vld [vmem:[%s4681_s10 + $0x130] sm:$0xf]  ;;  %v362_v39 = vld [vmem:[%s4681_s10 + $0x138] sm:$0xf] }
  0x3f   : > { %v364_v40 = vld [vmem:[%s4681_s10 + $0x140] sm:$0xf]  ;;  %361 = vst [vmem:[%s4688_s14 + $0x98] sm:$0xf] %v360_v38  ;;  %363 = vst [vmem:[%s4688_s14 + $0x9c] sm:$0xf] %v362_v39 }
  0x40   : > { %365 = vst [vmem:[%s4688_s14 + $0xa0] sm:$0xf] %v364_v40  ;;  %v366_v41 = vld [vmem:[%s4681_s10 + $0x148] sm:$0xf]  ;;  %v368_v42 = vld [vmem:[%s4681_s10 + $0x150] sm:$0xf] }
  0x41   : > { %v370_v43 = vld [vmem:[%s4681_s10 + $0x158] sm:$0xf]  ;;  %367 = vst [vmem:[%s4688_s14 + $0xa4] sm:$0xf] %v366_v41  ;;  %369 = vst [vmem:[%s4688_s14 + $0xa8] sm:$0xf] %v368_v42 }
  0x42   : > { %371 = vst [vmem:[%s4688_s14 + $0xac] sm:$0xf] %v370_v43  ;;  %v372_v44 = vld [vmem:[%s4681_s10 + $0x160] sm:$0xf]  ;;  %v374_v45 = vld [vmem:[%s4681_s10 + $0x168] sm:$0xf] }
  0x43   : > { %v376_v46 = vld [vmem:[%s4681_s10 + $0x170] sm:$0xf]  ;;  %373 = vst [vmem:[%s4688_s14 + $0xb0] sm:$0xf] %v372_v44  ;;  %375 = vst [vmem:[%s4688_s14 + $0xb4] sm:$0xf] %v374_v45 }
  0x44   : > { %377 = vst [vmem:[%s4688_s14 + $0xb8] sm:$0xf] %v376_v46  ;;  %v378_v47 = vld [vmem:[%s4681_s10 + $0x178] sm:$0xf]  ;;  %v380_v48 = vld [vmem:[%s4681_s10 + $0x180] sm:$0xf] }
  0x45   : > { %v382_v49 = vld [vmem:[%s4681_s10 + $0x188] sm:$0xf]  ;;  %379 = vst [vmem:[%s4688_s14 + $0xbc] sm:$0xf] %v378_v47  ;;  %381 = vst [vmem:[%s4688_s14 + $0xc0] sm:$0xf] %v380_v48 }
  0x46   : > { %383 = vst [vmem:[%s4688_s14 + $0xc4] sm:$0xf] %v382_v49  ;;  %v384_v50 = vld [vmem:[%s4681_s10 + $0x190] sm:$0xf]  ;;  %v386_v51 = vld [vmem:[%s4681_s10 + $0x198] sm:$0xf] }
  0x47   : > { %v388_v52 = vld [vmem:[%s4681_s10 + $0x1a0] sm:$0xf]  ;;  %385 = vst [vmem:[%s4688_s14 + $0xc8] sm:$0xf] %v384_v50  ;;  %387 = vst [vmem:[%s4688_s14 + $0xcc] sm:$0xf] %v386_v51 }
  0x48   : > { %389 = vst [vmem:[%s4688_s14 + $0xd0] sm:$0xf] %v388_v52  ;;  %v390_v53 = vld [vmem:[%s4681_s10 + $0x1a8] sm:$0xf]  ;;  %v392_v54 = vld [vmem:[%s4681_s10 + $0x1b0] sm:$0xf] }
  0x49   : > { %v394_v55 = vld [vmem:[%s4681_s10 + $0x1b8] sm:$0xf]  ;;  %391 = vst [vmem:[%s4688_s14 + $0xd4] sm:$0xf] %v390_v53  ;;  %393 = vst [vmem:[%s4688_s14 + $0xd8] sm:$0xf] %v392_v54 }
  0x4a   : > { %395 = vst [vmem:[%s4688_s14 + $0xdc] sm:$0xf] %v394_v55  ;;  %v396_v56 = vld [vmem:[%s4681_s10 + $0x1c0] sm:$0xf]  ;;  %v398_v57 = vld [vmem:[%s4681_s10 + $0x1c8] sm:$0xf] }
  0x4b   : > { %v400_v58 = vld [vmem:[%s4681_s10 + $0x1d0] sm:$0xf]  ;;  %397 = vst [vmem:[%s4688_s14 + $0xe0] sm:$0xf] %v396_v56  ;;  %399 = vst [vmem:[%s4688_s14 + $0xe4] sm:$0xf] %v398_v57 }
  0x4c   : > { %401 = vst [vmem:[%s4688_s14 + $0xe8] sm:$0xf] %v400_v58  ;;  %v402_v59 = vld [vmem:[%s4681_s10 + $0x1d8] sm:$0xf]  ;;  %v404_v60 = vld [vmem:[%s4681_s10 + $0x1e0] sm:$0xf] }
  0x4d   : > { %v406_v61 = vld [vmem:[%s4681_s10 + $0x1e8] sm:$0xf]  ;;  %403 = vst [vmem:[%s4688_s14 + $0xec] sm:$0xf] %v402_v59  ;;  %405 = vst [vmem:[%s4688_s14 + $0xf0] sm:$0xf] %v404_v60 }
  0x4e   : > { %407 = vst [vmem:[%s4688_s14 + $0xf4] sm:$0xf] %v406_v61  ;;  %v408_v62 = vld [vmem:[%s4681_s10 + $0x1f0] sm:$0xf]  ;;  %v410_v63 = vld [vmem:[%s4681_s10 + $0x1f8] sm:$0xf] }
  0x4f   : > { %v412_v0 = vld [vmem:[%s4681_s10 + $0x200] sm:$0xf]  ;;  %409 = vst [vmem:[%s4688_s14 + $0xf8] sm:$0xf] %v408_v62  ;;  %411 = vst [vmem:[%s4688_s14 + $0xfc] sm:$0xf] %v410_v63 }
  0x50   : > { %413 = vst [vmem:[%s4688_s14 + $0x100] sm:$0xf] %v412_v0  ;;  %v414_v1 = vld [vmem:[%s4681_s10 + $0x208] sm:$0xf]  ;;  %v416_v2 = vld [vmem:[%s4681_s10 + $0x210] sm:$0xf] }
  0x51   : > { %v418_v3 = vld [vmem:[%s4681_s10 + $0x218] sm:$0xf]  ;;  %415 = vst [vmem:[%s4688_s14 + $0x104] sm:$0xf] %v414_v1  ;;  %417 = vst [vmem:[%s4688_s14 + $0x108] sm:$0xf] %v416_v2 }
  0x52   : > { %419 = vst [vmem:[%s4688_s14 + $0x10c] sm:$0xf] %v418_v3  ;;  %v420_v4 = vld [vmem:[%s4681_s10 + $0x220] sm:$0xf]  ;;  %v422_v5 = vld [vmem:[%s4681_s10 + $0x228] sm:$0xf] }
  0x53   : > { %v424_v6 = vld [vmem:[%s4681_s10 + $0x230] sm:$0xf]  ;;  %421 = vst [vmem:[%s4688_s14 + $0x110] sm:$0xf] %v420_v4  ;;  %423 = vst [vmem:[%s4688_s14 + $0x114] sm:$0xf] %v422_v5 }
  0x54   : > { %425 = vst [vmem:[%s4688_s14 + $0x118] sm:$0xf] %v424_v6  ;;  %v426_v7 = vld [vmem:[%s4681_s10 + $0x238] sm:$0xf] }
  0x55   : > { %427 = vst [vmem:[%s4688_s14 + $0x11c] sm:$0xf] %v426_v7 }
  0x56 PF: > { %p3747_p11 = scmp.ge.s32.totalorder %s4555_s9, 1  ;;  %p600_p12 = scmp.lt.s32.totalorder %s4555_s9, 5 }
  0x58   : > { %p601_p13 = pnand %p3747_p11, %p600_p12 }
  0x59   : > { %s607_s12 = sand.u32 (!%p601_p13), 1, %s4531_s26   ;;  %s638_s15 = sand.u32 (!%p601_p13), 1, %s4523_s24  }
  0x5a   : > { %604 = sbr.rel (%p601_p13) target bundleno = 958 (0x3be), region = 77  ;;  %s3748_s18 = sshll.u32 (!%p601_p13), %s638_s15, 7 }
  0x5b   : > { %s4300_s17 = smul.u32 (!%p601_p13), 288, %s607_s12  ;;  %p653_p0 = scmp.lt.s32.totalorder (!%p601_p13), %s4543_s29, 1 }
  0x5c   : > { %p658_p1 = scmp.lt.s32.totalorder (!%p601_p13), %s4539_s28, 1  ;;  %s4860_s20 = scalar_lea.vmem (!%p601_p13), [#allocation4], %s3748_s18 }
  0x5d   : > { %p3753_p2 = scmp.ne.s32.totalorder (!%p601_p13), %s4539_s28, 0 }
  0x5f   : > { %s654_s21 = scalar_select %p653_p0, %s4543_s29, 1 }
  0x60   : > { %s4837_s22 = scalar_select %p658_p1, %s4539_s28, 1 }
  0x61   : > { %s4089_s23 = sshll.u32 %s654_s21, 7  ;;  %s3751_s13 = sshll.u32 %s654_s21, 1 }
  0x62   : > { %s4842_s3 = scalar_lea.vmem %s5829_s0, %s4089_s23  ;;  %s660_s26 = scalar_lea.vmem %s5833_s4, %s4837_s22 }
  0x63   : > { %s4851_s15 = scalar_lea.vmem %s5835_s6, %s3751_s13  ;;  %s4856_s27 = scalar_lea.vmem %s5836_s7, %s3751_s13 }
  0x64   : > { %s4858_s21 = scalar_lea.vmem [#allocation3], %s4300_s17  ;;  %673 = sbr.rel (%p3753_p2) target bundleno = 472 (0x1d8), region = 85 }
  0x69   : > { %v4377_v8 = vld [vmem:[%s5830_s1 + $0x8] sm:$0x3f]   ;;  %vm857_vm0 = vcmask 1044480   ;;  %vm858_vm1 = vcmask 1045504   ;;  %v4557_v9 = vmov 65535   ;;  %v4379_v11 = vld [vmem:[%s4842_s3] sm:$0xff]  }
  0x6a   : > { %v859_v10 = vsel %vm857_vm0, 4294967295, %v4557_v9  ;;  %vm808_vm2 = vcmask 220160   ;;  %v4378_v14 = vld [vmem:[%s5830_s1] sm:$0xff]   ;;  %v4381_v16 = vld [vmem:[%s4842_s3 + $0x8] sm:$0xff]   ;;  %v4383_v18 = vld [vmem:[%s4842_s3 + $0x10] sm:$0xff]   ;;  %vm1384_vm3 = vcmask 1043456  }
  0x6b   : > { %v860_v12 = vsel %vm858_vm1, %v859_v10, 0  ;;  %4239 = vmatprep.mubr.msk.bf16.mxu0 %vm808_vm2, %v4379_v11  ;;  %v4380_v15 = vld [vmem:[%s4842_s3 + $0x40] sm:$0xff]   ;;  %v4382_v17 = vld [vmem:[%s4842_s3 + $0x48] sm:$0xff]   ;;  %v4384_v19 = vld [vmem:[%s4842_s3 + $0x50] sm:$0xff]   ;;  %vm1385_vm4 = vcmask 523268   ;;  %vm1201_vm6 = vcmask 1040384  }
  0x6c   : > { %v862_v13 = vand.u32 %v4377_v8, %v860_v12  ;;  %4255 = vmatprep.mubr.msk.bf16.mxu1 %vm808_vm2, %v4380_v15  ;;  %v4385_v20 = vld [vmem:[%s4842_s3 + $0x18] sm:$0xff]   ;;  %v4387_v22 = vld [vmem:[%s4842_s3 + $0x20] sm:$0xff]   ;;  %v4389_v24 = vld [vmem:[%s4842_s3 + $0x28] sm:$0xff]   ;;  %vm1202_vm7 = vsmask.f32 256  ;;  %vm1268_vm8 = vcmask 1047552  }
  0x6d   : > { %v4386_v21 = vld [vmem:[%s4842_s3 + $0x58] sm:$0xff]   ;;  %v4388_v23 = vld [vmem:[%s4842_s3 + $0x60] sm:$0xff]   ;;  %v4390_v25 = vld [vmem:[%s4842_s3 + $0x68] sm:$0xff]   ;;  %vm1269_vm9 = vsmask.f32 7424  ;;  %vm1335_vm11 = vcmask 523264  }
  0x6e   : > { %4235 = vmatprep.subr.bf16.mxu0 %v862_v13  ;;  %4271 = vmatprep.subr.bf16.mxu1 %v862_v13  ;;  %v4391_v26 = vld [vmem:[%s4842_s3 + $0x30] sm:$0xff]   ;;  %v4393_v28 = vld [vmem:[%s4842_s3 + $0x38] sm:$0xff]   ;;  %v4906_v30 = vld [vmem:[%s5831_s2] ss:$0 sm:$0xff] }
  0x6f   : > { %4236 = vmatpush3.bf16.msra.mxu0 %v862_v13  ;;  %4273 = vmatpush3.bf16.msra.mxu1 %v862_v13  ;;  %v4392_v27 = vld [vmem:[%s4842_s3 + $0x70] sm:$0xff]   ;;  %v4394_v29 = vld [vmem:[%s4842_s3 + $0x78] sm:$0xff]   ;;  %s4558_s3 = smov 64   ;;  %vm5004_vm5 = vmor %vm1385_vm4, %vm1384_vm3 }
  0x70   : > { %4237 = vmatprep.subr.bf16.mxu0 %v4378_v14  ;;  %4272 = vmatprep.subr.bf16.mxu1 %v4378_v14  ;;  %vm5020_vm10 = vmand %vm1201_vm6, %vm1202_vm7 }
  0x71   : > { %vm5028_vm12 = vmand %vm1268_vm8, %vm1269_vm9 }
  0x73   : > { %4238 = vmatpush3.bf16.msra.mxu0 %v4378_v14  ;;  %4274 = vmatpush3.bf16.msra.mxu1 %v4378_v14 }
  0x76   : > { %4240 = vmatmul.mubr.msk.bf16.vlgmr.msra.gmra.mxu0 %vm808_vm2, %v4381_v16  ;;  %4256 = vmatmul.mubr.msk.bf16.vlgmr.msra.gmra.mxu1 %vm808_vm2, %v4382_v17 }
  0x77   : > { %4243 = vmatprep.mubr.msk.bf16.mxu0 %vm808_vm2, %v4383_v18  ;;  %4259 = vmatprep.mubr.msk.bf16.mxu1 %vm808_vm2, %v4384_v19 }
  0x7e   : > { %4244 = vmatmul.mubr.msk.bf16.gmra.mxu0 %vm808_vm2, %v4385_v20  ;;  %4260 = vmatmul.mubr.msk.bf16.gmra.mxu1 %vm808_vm2, %v4386_v21 }
  0x7f   : > { %4247 = vmatprep.mubr.msk.bf16.mxu0 %vm808_vm2, %v4387_v22  ;;  %4263 = vmatprep.mubr.msk.bf16.mxu1 %vm808_vm2, %v4388_v23 }
  0x86   : > { %4248 = vmatmul.mubr.msk.bf16.gmra.mxu0 %vm808_vm2, %v4389_v24  ;;  %4264 = vmatmul.mubr.msk.bf16.gmra.mxu1 %vm808_vm2, %v4390_v25 }
  0x87   : > { %4251 = vmatprep.mubr.msk.bf16.mxu0 %vm808_vm2, %v4391_v26  ;;  %4267 = vmatprep.mubr.msk.bf16.mxu1 %vm808_vm2, %v4392_v27 }
  0x8e   : > { %4252 = vmatmul.mubr.msk.bf16.gmra.mxu0 %vm808_vm2, %v4393_v28  ;;  %4268 = vmatmul.mubr.msk.bf16.gmra.mxu1 %vm808_vm2, %v4394_v29 }
 0x136   : > { %v4241_v31 = vpop.f32.mrf.mxu0  ;;  %v4257_v32 = vpop.f32.mrf.mxu1 }
 0x137   : > { %v971_v33 = vadd.f32 %v4257_v32, %v4906_v30  ;;  %v907_v34 = vadd.f32 %v4241_v31, %v4906_v30 }
 0x138   : > { %v898_v35 = vpop.f32.mrf.mxu0  ;;  %v962_v36 = vpop.f32.mrf.mxu1 }
 0x139   : > { %v1043_v39 = vmax.f32 %v971_v33, 0.0  ;;  %v1027_v42 = vmax.f32 %v907_v34, 0.0  ;;  %v899_v45 = vadd.f32 %v4906_v30, %v898_v35  ;;  %v963_v55 = vadd.f32 %v4906_v30, %v962_v36 }
 0x13a   : > { %v4242_v37 = vpop.f32.mrf.mxu0  ;;  %v4258_v38 = vpop.f32.mrf.mxu1 }
 0x13b   : > { %v910_v40 = vadd.f32 %v4242_v37, %v4906_v30  ;;  %v974_v41 = vadd.f32 %v4258_v38, %v4906_v30  ;;  %v1025_v58 = vmax.f32 %v899_v45, 0.0  ;;  %v1041_v3 = vmax.f32 %v963_v55, 0.0 }
 0x13c   : > { %v901_v43 = vpop.f32.mrf.mxu0  ;;  %v965_v44 = vpop.f32.mrf.mxu1 }
 0x13d   : > { %v1028_v46 = vmax.f32 %v910_v40, 0.0  ;;  %v1044_v47 = vmax.f32 %v974_v41, 0.0  ;;  %v902_v48 = vadd.f32 %v4906_v30, %v901_v43  ;;  %v966_v49 = vadd.f32 %v4906_v30, %v965_v44 }
 0x13e   : > { %v4245_v50 = vpop.f32.mrf.mxu0  ;;  %v4261_v51 = vpop.f32.mrf.mxu1 }
 0x13f   : > { %v4915_v52 = vpack.c.bf16 %v1028_v46, %v1027_v42  ;;  %v4917_v53 = vpack.c.bf16 %v1044_v47, %v1043_v39  ;;  %v1026_v54 = vmax.f32 %v902_v48, 0.0  ;;  %v923_v59 = vadd.f32 %v4245_v50, %v4906_v30 }
 0x140   : > { %v914_v56 = vpop.f32.mrf.mxu0  ;;  %v978_v57 = vpop.f32.mrf.mxu1  ;;  %v1042_v60 = vmax.f32 %v966_v49, 0.0  ;;  %v987_v0 = vadd.f32 %v4261_v51, %v4906_v30 }
 0x141   : > { %1321 = vrot.lane.b32.xlu1 %v4917_v53, %s4558_s3  ;;  %1305 = vrot.lane.b32.xlu0 %v4915_v52, %s4558_s3  ;;  %v4925_v63 = vpack.c.bf16 %v1026_v54, %v1025_v58  ;;  %v1031_v6 = vmax.f32 %v923_v59, 0.0  ;;  %v979_v7 = vadd.f32 %v4906_v30, %v978_v57  ;;  %v915_v20 = vadd.f32 %v4906_v30, %v914_v56 }
 0x142   : > { %v4246_v61 = vpop.f32.mrf.mxu0  ;;  %v4262_v62 = vpop.f32.mrf.mxu1  ;;  %v4933_v9 = vpack.c.bf16 %v1042_v60, %v1041_v3  ;;  %v1047_v13 = vmax.f32 %v987_v0, 0.0 }
 0x143   : > { %v926_v1 = vadd.f32 %v4246_v61, %v4906_v30  ;;  %v990_v2 = vadd.f32 %v4262_v62, %v4906_v30  ;;  %v1045_v21 = vmax.f32 %v979_v7, 0.0  ;;  %v1029_v32 = vmax.f32 %v915_v20, 0.0 }
 0x144   : > { %v917_v4 = vpop.f32.mrf.mxu0  ;;  %v981_v5 = vpop.f32.mrf.mxu1 }
 0x145   : > { %v1032_v8 = vmax.f32 %v926_v1, 0.0  ;;  %1303 = vrot.lane.b32.xlu0 %v4925_v63, %s4558_s3  ;;  %v982_v10 = vadd.f32 %v4906_v30, %v981_v5  ;;  %v1048_v15 = vmax.f32 %v990_v2, 0.0  ;;  %v918_v16 = vadd.f32 %v4906_v30, %v917_v4 }
 0x146   : > { %v4249_v11 = vpop.f32.mrf.mxu0  ;;  %v4265_v12 = vpop.f32.mrf.mxu1 }
 0x147   : > { %v4936_v14 = vpack.c.bf16 %v1032_v8, %v1031_v6  ;;  %v1046_v17 = vmax.f32 %v982_v10, 0.0  ;;  %v4944_v24 = vpack.c.bf16 %v1048_v15, %v1047_v13  ;;  %v1030_v25 = vmax.f32 %v918_v16, 0.0 }
 0x148   : > { %v930_v18 = vpop.f32.mrf.mxu0  ;;  %v994_v19 = vpop.f32.mrf.mxu1  ;;  %v939_v33 = vadd.f32 %v4249_v11, %v4906_v30  ;;  %v1003_v40 = vadd.f32 %v4265_v12, %v4906_v30 }
 0x149   : > { %1309 = vrot.lane.b32.xlu1 %v4936_v14, %s4558_s3  ;;  %1319 = vrot.lane.b32.xlu0 %v4933_v9, %s4558_s3  ;;  %v4946_v26 = vpack.c.bf16 %v1046_v17, %v1045_v21  ;;  %v931_v28 = vadd.f32 %v4906_v30, %v930_v18  ;;  %v995_v34 = vadd.f32 %v4906_v30, %v994_v19  ;;  %v4559_v21 = vmov 0  }
 0x14a   : > { %v4250_v22 = vpop.f32.mrf.mxu0  ;;  %v4266_v23 = vpop.f32.mrf.mxu1  ;;  %v4958_v39 = vpack.c.bf16 %v1030_v25, %v1029_v32  ;;  %v1035_v47 = vmax.f32 %v939_v33, 0.0  ;;  %v1051_v55 = vmax.f32 %v1003_v40, 0.0  ;;  %1387 = vst.msk [vmem:[#allocation2] sm:$0xff] %vm5004_vm5, %v4559_v21  ;;  %1388 = vst.msk [vmem:[#allocation2 + $0x8] sm:$0xff] %vm5004_vm5, %v4559_v21  ;;  %v1081_v25 = vshrl.u32 %v4915_v52, 16 }
 0x14b   : > { %v942_v27 = vadd.f32 %v4250_v22, %v4906_v30  ;;  %v1006_v42 = vadd.f32 %v4266_v23, %v4906_v30  ;;  %v1033_v43 = vmax.f32 %v931_v28, 0.0  ;;  %v1049_v48 = vmax.f32 %v995_v34, 0.0  ;;  %1390 = vst.msk [vmem:[#allocation2 + $0x110] sm:$0xff] %vm5004_vm5, %v4559_v21  ;;  %1391 = vst.msk [vmem:[#allocation2 + $0x118] sm:$0xff] %vm5004_vm5, %v4559_v21 }
 0x14c   : > { %v933_v29 = vpop.f32.mrf.mxu0  ;;  %v997_v31 = vpop.f32.mrf.mxu1  ;;  %v1137_v22 = vshrl.u32 %v4917_v53, 16  ;;  %v1140_v23 = vshll.u32 %v4917_v53, 16  ;;  %v1083_v34 = vrot.slane %v1081_v25, 7  ;;  %v1074_v53 = vshrl.u32 %v4925_v63, 16 }
 0x14d   : > { %1325 = vrot.lane.b32.xlu1 %v4944_v24, %s4558_s3  ;;  %1323 = vrot.lane.b32.xlu0 %v4946_v26, %s4558_s3  ;;  %v934_v35 = vadd.f32 %v4906_v30, %v933_v29  ;;  %v998_v36 = vadd.f32 %v4906_v30, %v997_v31  ;;  %v1036_v41 = vmax.f32 %v942_v27, 0.0  ;;  %v1052_v57 = vmax.f32 %v1006_v42, 0.0 }
 0x14e   : > { %v4253_v37 = vpop.f32.mrf.mxu0  ;;  %v4269_v38 = vpop.f32.mrf.mxu1  ;;  %v1084_v27 = vshll.u32 %v4915_v52, 16  ;;  %v1139_v28 = vrot.slane %v1137_v22, 7  ;;  %v1238_v29 = vrot.slane %v1140_v23, 1  ;;  %v1130_v52 = vshrl.u32 %v4933_v9, 16 }
 0x14f   : > { %v1034_v44 = vmax.f32 %v934_v35, 0.0  ;;  %v1050_v50 = vmax.f32 %v998_v36, 0.0  ;;  %v4966_v56 = vpack.c.bf16 %v1036_v41, %v1035_v47  ;;  %v955_v62 = vadd.f32 %v4253_v37, %v4906_v30 }
 0x150   : > { %v946_v45 = vpop.f32.mrf.mxu0  ;;  %v1010_v46 = vpop.f32.mrf.mxu1  ;;  %v4980_v4 = vpack.c.bf16 %v1052_v57, %v1051_v55  ;;  %v1019_v5 = vadd.f32 %v4269_v38, %v4906_v30  ;;  %v1142_v32 = vor.u32 %v1140_v23, %v1139_v28  ;;  %v1239_v33 = vor.u32 %v1238_v29, %v1137_v22 }
 0x151   : > { %1307 = vrot.lane.b32.xlu1 %v4958_v39, %s4558_s3  ;;  %v4964_v49 = vpack.c.bf16 %v1034_v44, %v1033_v43  ;;  %v947_v59 = vadd.f32 %v4906_v30, %v946_v45  ;;  %v4975_v0 = vpack.c.bf16 %v1050_v50, %v1049_v48  ;;  %v1011_v1 = vadd.f32 %v4906_v30, %v1010_v46 }
 0x152   : > { %v4254_v51 = vpop.f32.mrf.mxu0  ;;  %v4270_v54 = vpop.f32.mrf.mxu1  ;;  %v1039_v11 = vmax.f32 %v955_v62, 0.0  ;;  %v1055_v16 = vmax.f32 %v1019_v5, 0.0  ;;  %v1222_v35 = vrot.slane %v1084_v27, 1  ;;  %v1077_v36 = vshll.u32 %v4925_v63, 16 }
 0x153   : > { %v958_v58 = vadd.f32 %v4254_v51, %v4906_v30  ;;  %1311 = vrot.lane.b32.xlu0 %v4964_v49, %s4558_s3  ;;  %v1022_v7 = vadd.f32 %v4270_v54, %v4906_v30  ;;  %v1037_v8 = vmax.f32 %v947_v59, 0.0  ;;  %v1053_v12 = vmax.f32 %v1011_v1, 0.0 }
 0x154   : > { %v949_v60 = vpop.f32.mrf.mxu0  ;;  %v1013_v61 = vpop.f32.mrf.mxu1  ;;  %v1133_v37 = vshll.u32 %v4933_v9, 16  ;;  %v1095_v40 = vshrl.u32 %v4936_v14, 16  ;;  %v1098_v41 = vshll.u32 %v4936_v14, 16  ;;  %v1151_v42 = vshrl.u32 %v4944_v24, 16 }
 0x155   : > { %1313 = vrot.lane.b32.xlu1 %v4966_v56, %s4558_s3  ;;  %v950_v2 = vadd.f32 %v4906_v30, %v949_v60  ;;  %v1014_v3 = vadd.f32 %v4906_v30, %v1013_v61  ;;  %v1040_v6 = vmax.f32 %v958_v58, 0.0  ;;  %v1056_v18 = vmax.f32 %v1022_v7, 0.0 }
 0x156   : > { %v1154_v43 = vshll.u32 %v4944_v24, 16  ;;  %v1088_v44 = vshrl.u32 %v4958_v39, 16  ;;  %v1091_v63 = vshll.u32 %v4958_v39, 16  ;;  %v1144_v45 = vshrl.u32 %v4946_v26, 16 }
 0x157   : > { %v1038_v10 = vmax.f32 %v950_v2, 0.0  ;;  %1327 = vrot.lane.b32.xlu0 %v4975_v0, %s4558_s3  ;;  %v1054_v15 = vmax.f32 %v1014_v3, 0.0  ;;  %v4990_v17 = vpack.c.bf16 %v1040_v6, %v1039_v11  ;;  %v4998_v19 = vpack.c.bf16 %v1056_v18, %v1055_v16 }
 0x158   : > { %v1147_v9 = vshll.u32 %v4946_v26, 16  ;;  %v1213_v46 = vsel %vm5020_vm10, 0, %v1142_v32  ;;  %v1280_v47 = vsel %vm5028_vm12, %v1239_v33, 0  ;;  %v1086_v48 = vor.u32 %v1084_v27, %v1083_v34 }
 0x159   : > { %1329 = vrot.lane.b32.xlu1 %v4980_v4, %s4558_s3  ;;  %v4988_v13 = vpack.c.bf16 %v1038_v10, %v1037_v8  ;;  %v4996_v30 = vpack.c.bf16 %v1054_v15, %v1053_v12  ;;  %v1223_v14 = vor.u32 %v1222_v35, %v1081_v25  ;;  %v1109_v50 = vshrl.u32 %v4966_v56, 16 }
 0x15a   : > { %v1112_v24 = vshll.u32 %v4966_v56, 16  ;;  %v1165_v51 = vshrl.u32 %v4980_v4, 16  ;;  %v1168_v54 = vshll.u32 %v4980_v4, 16  ;;  %v1102_v55 = vshrl.u32 %v4964_v49, 16 }
 0x15b   : > { %1315 = vrot.lane.b32.xlu0 %v4988_v13, %s4558_s3  ;;  %v1076_v57 = vrot.slane %v1074_v53, 7  ;;  %v1220_v58 = vrot.slane %v1077_v36, 1  ;;  %v1097_v59 = vrot.slane %v1095_v40, 7  ;;  %v1105_v60 = vshll.u32 %v4964_v49, 16 }
 0x15c   : > { %v1158_v61 = vshrl.u32 %v4975_v0, 16  ;;  %v1161_v62 = vshll.u32 %v4975_v0, 16  ;;  %v1226_v1 = vrot.slane %v1098_v41, 1  ;;  %v1123_v2 = vshrl.u32 %v4990_v17, 16 }
 0x15d   : > { %1317 = vrot.lane.b32.xlu1 %v4990_v17, %s4558_s3  ;;  %v1126_v3 = vshll.u32 %v4990_v17, 16  ;;  %v1205_v5 = vsel %vm5020_vm10, 0, %v1086_v48  ;;  %v1272_v6 = vsel %vm5028_vm12, %v1223_v14, 0  ;;  %v1179_v7 = vshrl.u32 %v4998_v19, 16 }
 0x15e   : > { %v1132_v10 = vrot.slane %v1130_v52, 7  ;;  %v1236_v11 = vrot.slane %v1133_v37, 1  ;;  %v1079_v16 = vor.u32 %v1077_v36, %v1076_v57  ;;  %v1221_v18 = vor.u32 %v1220_v58, %v1074_v53 }
 0x15f   : > { %1331 = vrot.lane.b32.xlu0 %v4996_v30, %s4558_s3  ;;  %v1100_v21 = vor.u32 %v1098_v41, %v1097_v59  ;;  %v1153_v22 = vrot.slane %v1151_v42, 7  ;;  %v1227_v27 = vor.u32 %v1226_v1, %v1095_v40  ;;  %v1242_v28 = vrot.slane %v1154_v43, 1 }
 0x160   : > { %v1135_v35 = vor.u32 %v1133_v37, %v1132_v10  ;;  %v1237_v48 = vor.u32 %v1236_v11, %v1130_v52  ;;  %v1146_v14 = vrot.slane %v1144_v45, 7  ;;  %v1240_v8 = vrot.slane %v1147_v9, 1 }
 0x161   : > { %1333 = vrot.lane.b32.xlu1 %v4998_v19, %s4558_s3  ;;  %v1116_v53 = vshrl.u32 %v4988_v13, 16  ;;  %v1119_v36 = vshll.u32 %v4988_v13, 16  ;;  %v1204_v37 = vsel %vm5020_vm10, 0, %v1079_v16  ;;  %v1156_v40 = vor.u32 %v1154_v43, %v1153_v22 }
 0x162   : > { %v1172_v41 = vshrl.u32 %v4996_v30, 16  ;;  %v1243_v57 = vor.u32 %v1242_v28, %v1151_v42  ;;  %v1207_v1 = vsel %vm5020_vm10, 0, %v1100_v21  ;;  %v1279_v43 = vsel %vm5028_vm12, %v1237_v48, 0 }
 0x163   : > { %v1149_v10 = vor.u32 %v1147_v9, %v1146_v14  ;;  %v1241_v11 = vor.u32 %v1240_v8, %v1144_v45  ;;  %v1090_v16 = vrot.slane %v1088_v44, 7  ;;  %v1224_v9 = vrot.slane %v1091_v63, 1 }
 0x164   : > { %v1104_v26 = vrot.slane %v1102_v55, 7  ;;  %v1228_v21 = vrot.slane %v1105_v60, 1  ;;  %v1246_v49 = vrot.slane %v1168_v54, 1 }
 0x165   : > { %v1214_v28 = vsel %vm5020_vm10, 0, %v1149_v10  ;;  %v1093_v48 = vor.u32 %v1091_v63, %v1090_v16  ;;  %v1225_v14 = vor.u32 %v1224_v9, %v1088_v44  ;;  %v1232_v16 = vrot.slane %v1119_v36, 1 }
 0x166   : > { %v1247_v0 = vor.u32 %v1246_v49, %v1165_v51 }
 0x1b3   : > { %v1322_v12 = vpop.permute.xlu1 %1321  ;;  %v1306_v15 = vpop.permute.xlu0 %1305 }
 0x1b4   : > { %v1365_v23 = vsel %vm1335_vm11, %v1213_v46, %v1322_v12  ;;  %v1341_v25 = vsel %vm1335_vm11, %v1205_v5, %v1306_v15  ;;  %v1271_v46 = vsel %vm5028_vm12, %v1221_v18, 0  ;;  %v1274_v5 = vsel %vm5028_vm12, %v1227_v27, 0 }
 0x1b5   : > { %v3807_v29 = vcombine.low %v1365_v23, %v1280_v47  ;;  %v3808_v32 = vcombine.high %v1365_v23, %v1280_v47  ;;  %v3791_v33 = vcombine.low %v1341_v25, %v1272_v6  ;;  %v3792_v34 = vcombine.high %v1341_v25, %v1272_v6 }
 0x1b6   : > { %v1212_v6 = vsel %vm5020_vm10, 0, %v1135_v35  ;;  %v1215_v15 = vsel %vm5020_vm10, 0, %v1156_v40  ;;  %v1282_v18 = vsel %vm5028_vm12, %v1243_v57, 0  ;;  %v1244_v57 = vrot.slane %v1161_v62, 1 }
 0x1b7   : > { %1571 = vst.msk [vmem:[#allocation2 + $0xa0] sm:$0xff] %vm5004_vm5, %v3807_v29  ;;  %1572 = vst.msk [vmem:[#allocation2 + $0xa8] sm:$0xff] %vm5004_vm5, %v3808_v32  ;;  %v1304_v52 = vpop.permute.xlu0 %1303  ;;  %v1281_v29 = vsel %vm5028_vm12, %v1241_v11, 0  ;;  %v1111_v32 = vrot.slane %v1109_v50, 7 }
 0x1b8   : > { %1555 = vst.msk [vmem:[#allocation2 + $0x20] sm:$0xff] %vm5004_vm5, %v3791_v33  ;;  %1556 = vst.msk [vmem:[#allocation2 + $0x28] sm:$0xff] %vm5004_vm5, %v3792_v34  ;;  %v1338_v47 = vsel %vm1335_vm11, %v1204_v37, %v1304_v52  ;;  %v1230_v33 = vrot.slane %v1112_v24, 1  ;;  %v1107_v52 = vor.u32 %v1105_v60, %v1104_v26  ;;  %v1160_v37 = vrot.slane %v1158_v61, 7 }
 0x1b9   : > { %v3789_v58 = vcombine.low %v1338_v47, %v1271_v46  ;;  %v3790_v59 = vcombine.high %v1338_v47, %v1271_v46  ;;  %v1229_v47 = vor.u32 %v1228_v21, %v1102_v55  ;;  %v1114_v60 = vor.u32 %v1112_v24, %v1111_v32 }
 0x1ba   : > { %v1175_v55 = vshll.u32 %v4996_v30, 16  ;;  %v1273_v24 = vsel %vm5028_vm12, %v1225_v14, 0  ;;  %v1245_v11 = vor.u32 %v1244_v57, %v1158_v61  ;;  %v1125_v21 = vrot.slane %v1123_v2, 7 }
 0x1bb   : > { %1553 = vst.msk [vmem:[#allocation2 + $0x10] sm:$0xff] %vm5004_vm5, %v3789_v58  ;;  %1554 = vst.msk [vmem:[#allocation2 + $0x18] sm:$0xff] %vm5004_vm5, %v3790_v59  ;;  %v1310_v42 = vpop.permute.xlu1 %1309  ;;  %v1320_v12 = vpop.permute.xlu0 %1319  ;;  %v1231_v59 = vor.u32 %v1230_v33, %v1109_v50  ;;  %v1206_v50 = vsel %vm5020_vm10, 0, %v1093_v48  ;;  %v1275_v10 = vsel %vm5028_vm12, %v1229_v47, 0  ;;  %v1209_v9 = vsel %vm5020_vm10, 0, %v1114_v60 }
 0x1bc   : > { %v1347_v45 = vsel %vm1335_vm11, %v1207_v1, %v1310_v42  ;;  %v1362_v8 = vsel %vm1335_vm11, %v1212_v6, %v1320_v12  ;;  %v1167_v1 = vrot.slane %v1165_v51, 7  ;;  %v1128_v48 = vor.u32 %v1126_v3, %v1125_v21 }
 0x1bd   : > { %v3795_v22 = vcombine.low %v1347_v45, %v1274_v5  ;;  %v3796_v23 = vcombine.high %v1347_v45, %v1274_v5  ;;  %v3805_v25 = vcombine.low %v1362_v8, %v1279_v43  ;;  %v3806_v27 = vcombine.high %v1362_v8, %v1279_v43 }
 0x1be   : > { %v1163_v5 = vor.u32 %v1161_v62, %v1160_v37  ;;  %v1208_v43 = vsel %vm5020_vm10, 0, %v1107_v52  ;;  %v1276_v26 = vsel %vm5028_vm12, %v1231_v59, 0  ;;  %v1170_v45 = vor.u32 %v1168_v54, %v1167_v1 }
 0x1bf   : > { %1559 = vst.msk [vmem:[#allocation2 + $0x40] sm:$0xff] %vm5004_vm5, %v3795_v22  ;;  %1560 = vst.msk [vmem:[#allocation2 + $0x48] sm:$0xff] %vm5004_vm5, %v3796_v23  ;;  %v1326_v34 = vpop.permute.xlu1 %1325  ;;  %v1324_v35 = vpop.permute.xlu0 %1323  ;;  %v1234_v54 = vrot.slane %v1126_v3, 1  ;;  %v1283_v23 = vsel %vm5028_vm12, %v1245_v11, 0  ;;  %v1181_v52 = vrot.slane %v1179_v7, 7  ;;  %v5858_v47 = vshll.u32 %v4998_v19, 16 }
 0x1c0   : > { %1569 = vst.msk [vmem:[#allocation2 + $0x90] sm:$0xff] %vm5004_vm5, %v3805_v25  ;;  %1570 = vst.msk [vmem:[#allocation2 + $0x98] sm:$0xff] %vm5004_vm5, %v3806_v27  ;;  %v1371_v40 = vsel %vm1335_vm11, %v1215_v15, %v1326_v34  ;;  %v1368_v46 = vsel %vm1335_vm11, %v1214_v28, %v1324_v35  ;;  %v1118_v15 = vrot.slane %v1116_v53, 7  ;;  %v1217_v33 = vsel %vm5020_vm10, 0, %v1170_v45 }
 0x1c1   : > { %v3811_v63 = vcombine.low %v1371_v40, %v1282_v18  ;;  %v3812_v58 = vcombine.high %v1371_v40, %v1282_v18  ;;  %v3809_v39 = vcombine.low %v1368_v46, %v1281_v29  ;;  %v3810_v44 = vcombine.high %v1368_v46, %v1281_v29 }
 0x1c2   : > { %v1216_v18 = vsel %vm5020_vm10, 0, %v1163_v5  ;;  %v1121_v28 = vor.u32 %v1119_v36, %v1118_v15  ;;  %v1233_v29 = vor.u32 %v1232_v16, %v1116_v53  ;;  %v1284_v34 = vsel %vm5028_vm12, %v1247_v0, 0 }
 0x1c3   : > { %1575 = vst.msk [vmem:[#allocation2 + $0xc0] sm:$0xff] %vm5004_vm5, %v3811_v63  ;;  %1576 = vst.msk [vmem:[#allocation2 + $0xc8] sm:$0xff] %vm5004_vm5, %v3812_v58  ;;  %v1308_v56 = vpop.permute.xlu1 %1307  ;;  %v1174_v35 = vrot.slane %v1172_v41, 7  ;;  %v1248_v36 = vrot.slane %v1175_v55, 1  ;;  %v1235_v14 = vor.u32 %v1234_v54, %v1123_v2  ;;  %v1250_v57 = vrot.slane %v5858_v47, 1 }
 0x1c4   : > { %1573 = vst.msk [vmem:[#allocation2 + $0xb0] sm:$0xff] %vm5004_vm5, %v3809_v39  ;;  %1574 = vst.msk [vmem:[#allocation2 + $0xb8] sm:$0xff] %vm5004_vm5, %v3810_v44  ;;  %v1344_v6 = vsel %vm1335_vm11, %v1206_v50, %v1308_v56  ;;  %v1210_v17 = vsel %vm5020_vm10, 0, %v1121_v28  ;;  %v1277_v2 = vsel %vm5028_vm12, %v1233_v29, 0  ;;  %v1211_v59 = vsel %vm5020_vm10, 0, %v1128_v48 }
 0x1c5   : > { %v3793_v42 = vcombine.low %v1344_v6, %v1273_v24  ;;  %v3794_v12 = vcombine.high %v1344_v6, %v1273_v24  ;;  %v1312_v62 = vpop.permute.xlu0 %1311  ;;  %v1177_v39 = vor.u32 %v1175_v55, %v1174_v35  ;;  %v1249_v44 = vor.u32 %v1248_v36, %v1172_v41 }
 0x1c6   : > { %v1350_v61 = vsel %vm1335_vm11, %v1208_v43, %v1312_v62  ;;  %v1278_v1 = vsel %vm5028_vm12, %v1235_v14, 0  ;;  %v5859_v55 = vmov %v5858_v47  ;;  %v1251_v24 = vor.u32 %v1250_v57, %v1179_v7 }
 0x1c7   : > { %1557 = vst.msk [vmem:[#allocation2 + $0x30] sm:$0xff] %vm5004_vm5, %v3793_v42  ;;  %1558 = vst.msk [vmem:[#allocation2 + $0x38] sm:$0xff] %vm5004_vm5, %v3794_v12  ;;  %v1314_v8 = vpop.permute.xlu1 %1313  ;;  %v3797_v4 = vcombine.low %v1350_v61, %v1275_v10  ;;  %v3798_v51 = vcombine.high %v1350_v61, %v1275_v10  ;;  %v1184_v56 = vor.u32 %v5859_v55, %v1181_v52  ;;  %v1218_v43 = vsel %vm5020_vm10, 0, %v1177_v39 }
 0x1c8   : > { %v1353_v22 = vsel %vm1335_vm11, %v1209_v9, %v1314_v8  ;;  %v1285_v19 = vsel %vm5028_vm12, %v1249_v44, 0  ;;  %v1286_v16 = vsel %vm5028_vm12, %v1251_v24, 0 }
 0x1c9   : > { %v3799_v25 = vcombine.low %v1353_v22, %v1276_v26  ;;  %v3800_v27 = vcombine.high %v1353_v22, %v1276_v26  ;;  %1561 = vst.msk [vmem:[#allocation2 + $0x50] sm:$0xff] %vm5004_vm5, %v3797_v4  ;;  %1562 = vst.msk [vmem:[#allocation2 + $0x58] sm:$0xff] %vm5004_vm5, %v3798_v51  ;;  %v1328_v32 = vpop.permute.xlu0 %1327  ;;  %v1219_v11 = vsel %vm5020_vm10, 0, %v1184_v56 }
 0x1ca   : > { %v1374_v13 = vsel %vm1335_vm11, %v1216_v18, %v1328_v32 }
 0x1cb   : > { %1563 = vst.msk [vmem:[#allocation2 + $0x60] sm:$0xff] %vm5004_vm5, %v3799_v25  ;;  %1564 = vst.msk [vmem:[#allocation2 + $0x68] sm:$0xff] %vm5004_vm5, %v3800_v27  ;;  %v1330_v53 = vpop.permute.xlu1 %1329  ;;  %v3813_v37 = vcombine.low %v1374_v13, %v1283_v23  ;;  %v3814_v40 = vcombine.high %v1374_v13, %v1283_v23 }
 0x1cc   : > { %v1377_v46 = vsel %vm1335_vm11, %v1217_v33, %v1330_v53 }
 0x1cd   : > { %v3815_v63 = vcombine.low %v1377_v46, %v1284_v34  ;;  %v3816_v58 = vcombine.high %v1377_v46, %v1284_v34  ;;  %1577 = vst.msk [vmem:[#allocation2 + $0xd0] sm:$0xff] %vm5004_vm5, %v3813_v37  ;;  %1578 = vst.msk [vmem:[#allocation2 + $0xd8] sm:$0xff] %vm5004_vm5, %v3814_v40  ;;  %v1316_v3 = vpop.permute.xlu0 %1315 }
 0x1ce   : > { %v1356_v60 = vsel %vm1335_vm11, %v1210_v17, %v1316_v3 }
 0x1cf   : > { %1579 = vst.msk [vmem:[#allocation2 + $0xe0] sm:$0xff] %vm5004_vm5, %v3815_v63  ;;  %1580 = vst.msk [vmem:[#allocation2 + $0xe8] sm:$0xff] %vm5004_vm5, %v3816_v58  ;;  %v1318_v49 = vpop.permute.xlu1 %1317  ;;  %v3801_v30 = vcombine.low %v1356_v60, %v1277_v2  ;;  %v3802_v41 = vcombine.high %v1356_v60, %v1277_v2 }
 0x1d0   : > { %v1359_v50 = vsel %vm1335_vm11, %v1211_v59, %v1318_v49 }
 0x1d1   : > { %v3803_v5 = vcombine.low %v1359_v50, %v1278_v1  ;;  %v3804_v6 = vcombine.high %v1359_v50, %v1278_v1  ;;  %1565 = vst.msk [vmem:[#allocation2 + $0x70] sm:$0xff] %vm5004_vm5, %v3801_v30  ;;  %1566 = vst.msk [vmem:[#allocation2 + $0x78] sm:$0xff] %vm5004_vm5, %v3802_v41  ;;  %v1332_v10 = vpop.permute.xlu0 %1331 }
 0x1d2   : > { %v1380_v7 = vsel %vm1335_vm11, %v1218_v43, %v1332_v10 }
 0x1d3   : > { %1567 = vst.msk [vmem:[#allocation2 + $0x80] sm:$0xff] %vm5004_vm5, %v3803_v5  ;;  %1568 = vst.msk [vmem:[#allocation2 + $0x88] sm:$0xff] %vm5004_vm5, %v3804_v6  ;;  %v1334_v42 = vpop.permute.xlu1 %1333  ;;  %v3817_v12 = vcombine.low %v1380_v7, %v1285_v19  ;;  %v3818_v15 = vcombine.high %v1380_v7, %v1285_v19 }
 0x1d4   : > { %v1383_v62 = vsel %vm1335_vm11, %v1219_v11, %v1334_v42 }
 0x1d5   : > { %v3819_v9 = vcombine.low %v1383_v62, %v1286_v16  ;;  %v3820_v26 = vcombine.high %v1383_v62, %v1286_v16  ;;  %1581 = vst.msk [vmem:[#allocation2 + $0xf0] sm:$0xff] %vm5004_vm5, %v3817_v12  ;;  %1582 = vst.msk [vmem:[#allocation2 + $0xf8] sm:$0xff] %vm5004_vm5, %v3818_v15 }
 0x1d7   : > { %1583 = vst.msk [vmem:[#allocation2 + $0x100] sm:$0xff] %vm5004_vm5, %v3819_v9  ;;  %1584 = vst.msk [vmem:[#allocation2 + $0x108] sm:$0xff] %vm5004_vm5, %v3820_v26 }
 0x1d8 PF: > { %v4395_v31 = vld [vmem:[%s4858_s21 + $0x98] sm:$0xff]   ;;  %v4560_v38 = vmov 0   ;;  %v4396_v45 = vld [vmem:[%s4858_s21 + $0x90] sm:$0xff]   ;;  %v4397_v20 = vld [vmem:[%s4858_s21 + $0x88] sm:$0xff]   ;;  %vm1915_vm13 = vcmask 523264  }
 0x1d9   : > { %1964 = vmatprep.subr.bf16.mxu0 %v4560_v38  ;;  %4275 = vmatprep.subr.bf16.mxu1 %v4560_v38  ;;  %v4398_v0 = vld [vmem:[%s4858_s21 + $0x80] sm:$0xff]   ;;  %v5284_v61 = vld [vmem:[#allocation2 + $0x14] ss:$8 sps:$4 sm:$0xff]   ;;  %v4401_v54 = vld [vmem:[%s4858_s21 + $0x68] sm:$0xff]  }
 0x1da   : > { %1965 = vmatpush1.bf16.msra.mxu0 %v4395_v31  ;;  %4287 = vmatpush1.bf16.msra.mxu1 %v4395_v31  ;;  %v4399_v8 = vld [vmem:[%s4858_s21 + $0x78] sm:$0xff]   ;;  %v4400_v21 = vld [vmem:[%s4858_s21 + $0x70] sm:$0xff]   ;;  %v4402_v4 = vld [vmem:[%s4858_s21 + $0x60] sm:$0xff]  }
 0x1db   : > { %1966 = vmatprep.subr.bf16.mxu0 %v4560_v38  ;;  %4276 = vmatprep.subr.bf16.mxu1 %v4560_v38  ;;  %v5287_v18 = vld [vmem:[#allocation2 + $0x94] ss:$8 sps:$4 sm:$0xff]   ;;  %v4405_v23 = vld [vmem:[%s4858_s21 + $0xa8] sm:$0xff]   ;;  %v4406_v25 = vld [vmem:[%s4858_s21 + $0xa0] sm:$0xff]  }
 0x1dc   : > { %3889 = vmatprep.mubr.msk.bf16.mxu0 %vm1915_vm13, %v5284_v61  ;;  %3897 = vmatprep.mubr.msk.bf16.mxu1 %vm1915_vm13, %v5287_v18  ;;  %v4403_v51 = vld [vmem:[%s4858_s21 + $0xb8] sm:$0xff]   ;;  %v4404_v22 = vld [vmem:[%s4858_s21 + $0xb0] sm:$0xff]   ;;  %v5324_v33 = vld [vmem:[#allocation2 + $0x24] ss:$8 sps:$4 sm:$0xff]  }
 0x1dd   : > { %v5316_v27 = vld [vmem:[#allocation2 + $0x10] ss:$8 sps:$4 sm:$0xff]   ;;  %v5326_v34 = vld [vmem:[#allocation2 + $0xa4] ss:$8 sps:$4 sm:$0xff]   ;;  %v5335_v13 = vld [vmem:[#allocation2 + $0x20] ss:$8 sps:$4 sm:$0xff]  }
 0x1de   : > { %1967 = vmatpush1.bf16.msra.mxu0 %v4396_v45  ;;  %4288 = vmatpush1.bf16.msra.mxu1 %v4396_v45  ;;  %v5318_v28 = vld [vmem:[#allocation2 + $0x90] ss:$8 sps:$4 sm:$0xff]   ;;  %v5339_v53 = vld [vmem:[#allocation2 + $0xa0] ss:$8 sps:$4 sm:$0xff]   ;;  %v5344_v52 = vld [vmem:[#allocation2 + $0x34] ss:$8 sps:$4 sm:$0xff]  }
 0x1df   : > { %1968 = vmatprep.subr.bf16.mxu0 %v4560_v38  ;;  %4277 = vmatprep.subr.bf16.mxu1 %v4560_v38  ;;  %v4413_v29 = vld [vmem:[%s4858_s21 + $0x38] sm:$0xff]   ;;  %v4419_v35 = vld [vmem:[%s4858_s21 + $0x30] sm:$0xff]   ;;  %v4423_v48 = vld [vmem:[%s4858_s21 + $0x28] sm:$0xff]  }
 0x1e0   : > { %v4414_v32 = vld [vmem:[%s4858_s21 + $0xf8] sm:$0xff]   ;;  %v4422_v36 = vld [vmem:[%s4858_s21 + $0xf0] sm:$0xff]   ;;  %v4424_v14 = vld [vmem:[%s4858_s21 + $0xe8] sm:$0xff]  }
 0x1e1   : > { %v5348_v37 = vld [vmem:[#allocation2 + $0xb4] ss:$8 sps:$4 sm:$0xff]   ;;  %v4431_v40 = vld [vmem:[%s4858_s21 + $0x20] sm:$0xff]   ;;  %v5360_v47 = vld [vmem:[#allocation2 + $0x30] ss:$8 sps:$4 sm:$0xff]  }
 0x1e2   : > { %1969 = vmatpush1.bf16.msra.mxu0 %v4397_v20  ;;  %4289 = vmatpush1.bf16.msra.mxu1 %v4397_v20  ;;  %v4432_v46 = vld [vmem:[%s4858_s21 + $0xe0] sm:$0xff]   ;;  %v5362_v57 = vld [vmem:[#allocation2 + $0xb0] ss:$8 sps:$4 sm:$0xff]   ;;  %v5386_v59 = vld [vmem:[#allocation2 + $0x54] ss:$8 sps:$4 sm:$0xff]  }
 0x1e3   : > { %1970 = vmatprep.subr.bf16.mxu0 %v4560_v38  ;;  %4278 = vmatprep.subr.bf16.mxu1 %v4560_v38  ;;  %v5364_v63 = vld [vmem:[#allocation2 + $0x44] ss:$8 sps:$4 sm:$0xff]   ;;  %v4437_v17 = vld [vmem:[%s4858_s21 + $0x18] sm:$0xff]   ;;  %v4441_v3 = vld [vmem:[%s4858_s21 + $0x10] sm:$0xff]  }
 0x1e4   : > { %v5366_v58 = vld [vmem:[#allocation2 + $0xc4] ss:$8 sps:$4 sm:$0xff]   ;;  %v4440_v2 = vld [vmem:[%s4858_s21 + $0xd8] sm:$0xff]   ;;  %v4442_v39 = vld [vmem:[%s4858_s21 + $0xd0] sm:$0xff]  }
 0x1e5   : > { %v5382_v44 = vld [vmem:[#allocation2 + $0x40] ss:$8 sps:$4 sm:$0xff]   ;;  %v5388_v1 = vld [vmem:[#allocation2 + $0xd4] ss:$8 sps:$4 sm:$0xff]   ;;  %v5404_v41 = vld [vmem:[#allocation2 + $0x50] ss:$8 sps:$4 sm:$0xff]  }
 0x1e6   : > { %1971 = vmatpush1.bf16.msra.mxu0 %v4398_v0  ;;  %4290 = vmatpush1.bf16.msra.mxu1 %v4398_v0  ;;  %v5384_v60 = vld [vmem:[#allocation2 + $0xc0] ss:$8 sps:$4 sm:$0xff]   ;;  %v5406_v50 = vld [vmem:[#allocation2 + $0xd0] ss:$8 sps:$4 sm:$0xff]   ;;  %v5408_v24 = vld [vmem:[#allocation2 + $0x64] ss:$8 sps:$4 sm:$0xff]  }
 0x1e7   : > { %1972 = vmatprep.subr.bf16.mxu0 %v4560_v38  ;;  %4279 = vmatprep.subr.bf16.mxu1 %v4560_v38  ;;  %v4449_v49 = vld [vmem:[%s4858_s21 + $0x8] sm:$0xff]   ;;  %v4455_v56 = vld [vmem:[%s4858_s21] sm:$0xff]   ;;  %v4459_v6 = vld [vmem:[%s4858_s21 + $0x58] sm:$0xff]  }
 0x1e8   : > { %v4450_v55 = vld [vmem:[%s4858_s21 + $0xc8] sm:$0xff]   ;;  %v4458_v30 = vld [vmem:[%s4858_s21 + $0xc0] sm:$0xff]   ;;  %v4460_v43 = vld [vmem:[%s4858_s21 + $0x118] sm:$0xff]  }
 0x1e9   : > { %v5410_v5 = vld [vmem:[#allocation2 + $0xe4] ss:$8 sps:$4 sm:$0xff]   ;;  %v4467_v10 = vld [vmem:[%s4858_s21 + $0x50] sm:$0xff]   ;;  %v4456_v7 = vld [vmem:[#allocation2 + $0x60] ss:$8 sps:$4 sm:$0xff]  }
 0x1ea   : > { %1973 = vmatpush1.bf16.msra.mxu0 %v4399_v8  ;;  %4291 = vmatpush1.bf16.msra.mxu1 %v4399_v8  ;;  %v4468_v19 = vld [vmem:[%s4858_s21 + $0x110] sm:$0xff]   ;;  %v5426_v11 = vld [vmem:[#allocation2 + $0xe0] ss:$8 sps:$4 sm:$0xff]   ;;  %v4469_v45 = vld [vmem:[#allocation2 + $0x84] ss:$8 sps:$4 sm:$0xff]  }
 0x1eb   : > { %1974 = vmatprep.subr.bf16.mxu0 %v4560_v38  ;;  %4280 = vmatprep.subr.bf16.mxu1 %v4560_v38  ;;  %v4461_v42 = vld [vmem:[#allocation2 + $0x74] ss:$8 sps:$4 sm:$0xff]   ;;  %v4473_v15 = vld [vmem:[%s4858_s21 + $0x48] sm:$0xff]   ;;  %v4477_v62 = vld [vmem:[%s4858_s21 + $0x40] sm:$0xff]  }
 0x1ec   : > { %v5428_v12 = vld [vmem:[#allocation2 + $0xf4] ss:$8 sps:$4 sm:$0xff]   ;;  %v4476_v16 = vld [vmem:[%s4858_s21 + $0x108] sm:$0xff]   ;;  %v4478_v9 = vld [vmem:[%s4858_s21 + $0x100] sm:$0xff]  }
 0x1ed   : > { %v4465_v26 = vld [vmem:[#allocation2 + $0x70] ss:$8 sps:$4 sm:$0xff]   ;;  %v5444_v20 = vld [vmem:[#allocation2 + $0x104] ss:$8 sps:$4 sm:$0xff]   ;;  %v4474_v0 = vld [vmem:[#allocation2 + $0x80] ss:$8 sps:$4 sm:$0xff]  }
 0x1ee   : > { %1975 = vmatpush1.bf16.msra.mxu0 %v4400_v21  ;;  %4292 = vmatpush1.bf16.msra.mxu1 %v4400_v21  ;;  %v5442_v31 = vld [vmem:[#allocation2 + $0xf0] ss:$8 sps:$4 sm:$0xff]   ;;  %v5450_v8 = vld [vmem:[#allocation2 + $0x100] ss:$8 sps:$4 sm:$0xff]  }
 0x1ef   : > { %1976 = vmatprep.subr.bf16.mxu0 %v4560_v38  ;;  %4281 = vmatprep.subr.bf16.mxu1 %v4560_v38  ;;  %v4479_v21 = vld [vmem:[#allocation2] ss:$8 sps:$4 sm:$0xff]  }
 0x1f2   : > { %1977 = vmatpush1.bf16.msra.mxu0 %v4401_v54  ;;  %4293 = vmatpush1.bf16.msra.mxu1 %v4401_v54 }
 0x1f3   : > { %1978 = vmatprep.subr.bf16.mxu0 %v4560_v38  ;;  %4282 = vmatprep.subr.bf16.mxu1 %v4560_v38 }
 0x1f6   : > { %1979 = vmatpush1.bf16.msra.mxu0 %v4402_v4  ;;  %4294 = vmatpush1.bf16.msra.mxu1 %v4402_v4 }
 0x1f7   : > { %1988 = vmatprep.subr.bf16.mxu0 %v4560_v38  ;;  %4283 = vmatprep.subr.bf16.mxu1 %v4560_v38 }
 0x1fa   : > { %1989 = vmatpush2.bf16.msra.mxu0 %v4403_v51  ;;  %4295 = vmatpush2.bf16.msra.mxu1 %v4403_v51 }
 0x1fb   : > { %1990 = vmatprep.subr.bf16.mxu0 %v4560_v38  ;;  %4284 = vmatprep.subr.bf16.mxu1 %v4560_v38 }
 0x1fe   : > { %1991 = vmatpush2.bf16.msra.mxu0 %v4404_v22  ;;  %4296 = vmatpush2.bf16.msra.mxu1 %v4404_v22 }
 0x1ff   : > { %1992 = vmatprep.subr.bf16.mxu0 %v4560_v38  ;;  %4285 = vmatprep.subr.bf16.mxu1 %v4560_v38 }
 0x202   : > { %1993 = vmatpush2.bf16.msra.mxu0 %v4405_v23  ;;  %4297 = vmatpush2.bf16.msra.mxu1 %v4405_v23 }
 0x203   : > { %1994 = vmatprep.subr.bf16.mxu0 %v4560_v38  ;;  %4286 = vmatprep.subr.bf16.mxu1 %v4560_v38 }
 0x206   : > { %1995 = vmatpush2.bf16.msra.mxu0 %v4406_v25  ;;  %4298 = vmatpush2.bf16.msra.mxu1 %v4406_v25 }
 0x207   : > { %2389 = vmatprep.subr.bf16.mxu1 %v4560_v38  ;;  %2872 = vmatprep.subr.bf16.mxu0 %v4560_v38 }
 0x209   : > { %1997 = vmatmul.mubr.bf16.vlgmr.msra.gmra.mxu0 %v5316_v27  ;;  %2061 = vmatmul.mubr.bf16.vlgmr.msra.gmra.mxu1 %v5318_v28 }
 0x20a   : > { %2390 = vmatpush1.bf16.msra.mxu1 %v4413_v29  ;;  %2873 = vmatpush1.bf16.msra.mxu0 %v4414_v32 }
 0x20b   : > { %2391 = vmatprep.subr.bf16.mxu1 %v4560_v38  ;;  %3890 = vmatprep.mubr.msk.bf16.mxu0 %vm1915_vm13, %v5324_v33 }
 0x20c   : > { %3898 = vmatprep.mubr.msk.bf16.mxu1 %vm1915_vm13, %v5326_v34  ;;  %2874 = vmatprep.subr.bf16.mxu0 %v4560_v38 }
 0x20e   : > { %2392 = vmatpush1.bf16.msra.mxu1 %v4419_v35  ;;  %2875 = vmatpush1.bf16.msra.mxu0 %v4422_v36 }
 0x20f   : > { %2393 = vmatprep.subr.bf16.mxu1 %v4560_v38  ;;  %2876 = vmatprep.subr.bf16.mxu0 %v4560_v38 }
 0x211   : > { %2005 = vmatmul.mubr.bf16.gmra.mxu0 %v5335_v13  ;;  %2069 = vmatmul.mubr.bf16.gmra.mxu1 %v5339_v53 }
 0x212   : > { %2394 = vmatpush1.bf16.msra.mxu1 %v4423_v48  ;;  %2877 = vmatpush1.bf16.msra.mxu0 %v4424_v14 }
 0x213   : > { %3891 = vmatprep.mubr.msk.bf16.mxu0 %vm1915_vm13, %v5344_v52  ;;  %3899 = vmatprep.mubr.msk.bf16.mxu1 %vm1915_vm13, %v5348_v37 }
 0x214   : > { %2395 = vmatprep.subr.bf16.mxu1 %v4560_v38  ;;  %2878 = vmatprep.subr.bf16.mxu0 %v4560_v38 }
 0x216   : > { %2396 = vmatpush1.bf16.msra.mxu1 %v4431_v40  ;;  %2879 = vmatpush1.bf16.msra.mxu0 %v4432_v46 }
 0x217   : > { %2397 = vmatprep.subr.bf16.mxu1 %v4560_v38  ;;  %2880 = vmatprep.subr.bf16.mxu0 %v4560_v38 }
 0x219   : > { %2013 = vmatmul.mubr.bf16.gmra.mxu0 %v5360_v47  ;;  %2077 = vmatmul.mubr.bf16.gmra.mxu1 %v5362_v57 }
 0x21a   : > { %3892 = vmatprep.mubr.msk.bf16.mxu0 %vm1915_vm13, %v5364_v63  ;;  %3900 = vmatprep.mubr.msk.bf16.mxu1 %vm1915_vm13, %v5366_v58 }
 0x21b   : > { %2398 = vmatpush1.bf16.msra.mxu1 %v4437_v17  ;;  %2881 = vmatpush1.bf16.msra.mxu0 %v4440_v2 }
 0x21c   : > { %2399 = vmatprep.subr.bf16.mxu1 %v4560_v38  ;;  %2882 = vmatprep.subr.bf16.mxu0 %v4560_v38 }
 0x21f   : > { %2400 = vmatpush1.bf16.msra.mxu1 %v4441_v3  ;;  %2883 = vmatpush1.bf16.msra.mxu0 %v4442_v39 }
 0x220   : > { %2401 = vmatprep.subr.bf16.mxu1 %v4560_v38  ;;  %2884 = vmatprep.subr.bf16.mxu0 %v4560_v38 }
 0x221   : > { %2021 = vmatmul.mubr.bf16.gmra.mxu0 %v5382_v44  ;;  %2085 = vmatmul.mubr.bf16.gmra.mxu1 %v5384_v60 }
 0x222   : > { %3893 = vmatprep.mubr.msk.bf16.mxu0 %vm1915_vm13, %v5386_v59  ;;  %3901 = vmatprep.mubr.msk.bf16.mxu1 %vm1915_vm13, %v5388_v1 }
 0x223   : > { %2402 = vmatpush1.bf16.msra.mxu1 %v4449_v49  ;;  %2885 = vmatpush1.bf16.msra.mxu0 %v4450_v55 }
 0x224   : > { %2403 = vmatprep.subr.bf16.mxu1 %v4560_v38  ;;  %2886 = vmatprep.subr.bf16.mxu0 %v4560_v38 }
 0x227   : > { %2404 = vmatpush1.bf16.msra.mxu1 %v4455_v56  ;;  %2887 = vmatpush1.bf16.msra.mxu0 %v4458_v30 }
 0x228   : > { %2413 = vmatprep.subr.bf16.mxu1 %v4560_v38  ;;  %2896 = vmatprep.subr.bf16.mxu0 %v4560_v38 }
 0x229   : > { %2029 = vmatmul.mubr.bf16.gmra.mxu0 %v5404_v41  ;;  %2093 = vmatmul.mubr.bf16.gmra.mxu1 %v5406_v50 }
 0x22a   : > { %3894 = vmatprep.mubr.msk.bf16.mxu0 %vm1915_vm13, %v5408_v24  ;;  %3902 = vmatprep.mubr.msk.bf16.mxu1 %vm1915_vm13, %v5410_v5 }
 0x22b   : > { %2414 = vmatpush2.bf16.msra.mxu1 %v4459_v6  ;;  %2897 = vmatpush2.bf16.msra.mxu0 %v4460_v43 }
 0x22c   : > { %2415 = vmatprep.subr.bf16.mxu1 %v4560_v38  ;;  %2898 = vmatprep.subr.bf16.mxu0 %v4560_v38 }
 0x22f   : > { %2416 = vmatpush2.bf16.msra.mxu1 %v4467_v10  ;;  %2899 = vmatpush2.bf16.msra.mxu0 %v4468_v19 }
 0x230   : > { %2417 = vmatprep.subr.bf16.mxu1 %v4560_v38  ;;  %2900 = vmatprep.subr.bf16.mxu0 %v4560_v38 }
 0x231   : > { %2037 = vmatmul.mubr.bf16.gmra.mxu0 %v4456_v7  ;;  %2101 = vmatmul.mubr.bf16.gmra.mxu1 %v5426_v11 }
 0x232   : > { %3895 = vmatprep.mubr.msk.bf16.mxu0 %vm1915_vm13, %v4461_v42  ;;  %3903 = vmatprep.mubr.msk.bf16.mxu1 %vm1915_vm13, %v5428_v12 }
 0x233   : > { %2418 = vmatpush2.bf16.msra.mxu1 %v4473_v15  ;;  %2901 = vmatpush2.bf16.msra.mxu0 %v4476_v16 }
 0x234   : > { %2419 = vmatprep.subr.bf16.mxu1 %v4560_v38  ;;  %2902 = vmatprep.subr.bf16.mxu0 %v4560_v38  ;;  %v4481_v38 = vld [vmem:[#allocation2 + $0x4] ss:$8 sps:$4 sm:$0xff]  }
 0x237   : > { %2420 = vmatpush2.bf16.msra.mxu1 %v4477_v62  ;;  %2903 = vmatpush2.bf16.msra.mxu0 %v4478_v9 }
 0x239   : > { %2045 = vmatmul.mubr.bf16.gmra.mxu0 %v4465_v26  ;;  %2109 = vmatmul.mubr.bf16.gmra.mxu1 %v5442_v31 }
 0x23a   : > { %3896 = vmatprep.mubr.msk.bf16.mxu0 %vm1915_vm13, %v4469_v45  ;;  %3904 = vmatprep.mubr.msk.bf16.mxu1 %vm1915_vm13, %v5444_v20 }
 0x241   : > { %2053 = vmatmul.mubr.bf16.gmra.mxu0 %v4474_v0  ;;  %2117 = vmatmul.mubr.bf16.gmra.mxu1 %v5450_v8 }
 0x242   : > { %3949 = vmatprep.mubr.msk.bf16.mxu1 %vm1915_vm13, %v4481_v38  ;;  %4033 = vmatprep.mubr.msk.bf16.mxu0 %vm1915_vm13, %v5324_v33 }
 0x249   : > { %2422 = vmatmul.mubr.bf16.vlgmr.msra.gmra.mxu1 %v4479_v21  ;;  %2905 = vmatmul.mubr.bf16.vlgmr.msra.gmra.mxu0 %v5335_v13 }
 0x24a   : > { %3950 = vmatprep.mubr.msk.bf16.mxu1 %vm1915_vm13, %v5284_v61  ;;  %4034 = vmatprep.mubr.msk.bf16.mxu0 %vm1915_vm13, %v5344_v52  ;;  %v4482_v61 = vld [vmem:[#allocation2 + $0x114] ss:$8 sps:$4 sm:$0xff]  }
 0x251   : > { %2430 = vmatmul.mubr.bf16.gmra.mxu1 %v5316_v27  ;;  %2913 = vmatmul.mubr.bf16.gmra.mxu0 %v5360_v47 }
 0x252   : > { %3951 = vmatprep.mubr.msk.bf16.mxu1 %vm1915_vm13, %v5324_v33  ;;  %4035 = vmatprep.mubr.msk.bf16.mxu0 %vm1915_vm13, %v5364_v63 }
 0x259   : > { %2438 = vmatmul.mubr.bf16.gmra.mxu1 %v5335_v13  ;;  %2921 = vmatmul.mubr.bf16.gmra.mxu0 %v5382_v44 }
 0x25a   : > { %3952 = vmatprep.mubr.msk.bf16.mxu1 %vm1915_vm13, %v5344_v52  ;;  %4036 = vmatprep.mubr.msk.bf16.mxu0 %vm1915_vm13, %v5386_v59 }
 0x261   : > { %2446 = vmatmul.mubr.bf16.gmra.mxu1 %v5360_v47  ;;  %2929 = vmatmul.mubr.bf16.gmra.mxu0 %v5404_v41 }
 0x262   : > { %3953 = vmatprep.mubr.msk.bf16.mxu1 %vm1915_vm13, %v5364_v63  ;;  %4037 = vmatprep.mubr.msk.bf16.mxu0 %vm1915_vm13, %v5408_v24 }
 0x269   : > { %2454 = vmatmul.mubr.bf16.gmra.mxu1 %v5382_v44  ;;  %2937 = vmatmul.mubr.bf16.gmra.mxu0 %v4456_v7 }
 0x26a   : > { %3954 = vmatprep.mubr.msk.bf16.mxu1 %vm1915_vm13, %v5386_v59  ;;  %4038 = vmatprep.mubr.msk.bf16.mxu0 %vm1915_vm13, %v4461_v42 }
 0x271   : > { %2462 = vmatmul.mubr.bf16.gmra.mxu1 %v5404_v41  ;;  %2945 = vmatmul.mubr.bf16.gmra.mxu0 %v4465_v26 }
 0x272   : > { %3955 = vmatprep.mubr.msk.bf16.mxu1 %vm1915_vm13, %v5408_v24  ;;  %4039 = vmatprep.mubr.msk.bf16.mxu0 %vm1915_vm13, %v4469_v45 }
 0x279   : > { %2470 = vmatmul.mubr.bf16.gmra.mxu1 %v4456_v7  ;;  %2953 = vmatmul.mubr.bf16.gmra.mxu0 %v4474_v0 }
 0x27a   : > { %3956 = vmatprep.mubr.msk.bf16.mxu1 %vm1915_vm13, %v4461_v42  ;;  %4040 = vmatprep.mubr.msk.bf16.mxu0 %vm1915_vm13, %v5287_v18 }
 0x281   : > { %2478 = vmatmul.mubr.bf16.gmra.mxu1 %v4465_v26  ;;  %2961 = vmatmul.mubr.bf16.gmra.mxu0 %v5318_v28 }
 0x282   : > { %3957 = vmatprep.mubr.msk.bf16.mxu1 %vm1915_vm13, %v4469_v45  ;;  %4041 = vmatprep.mubr.msk.bf16.mxu0 %vm1915_vm13, %v5326_v34 }
 0x289   : > { %2486 = vmatmul.mubr.bf16.gmra.mxu1 %v4474_v0  ;;  %2969 = vmatmul.mubr.bf16.gmra.mxu0 %v5339_v53 }
 0x28a   : > { %3958 = vmatprep.mubr.msk.bf16.mxu1 %vm1915_vm13, %v5287_v18  ;;  %4042 = vmatprep.mubr.msk.bf16.mxu0 %vm1915_vm13, %v5348_v37  ;;  %v4484_v18 = vld [vmem:[#allocation2 + $0x110] ss:$8 sps:$4 sm:$0xff]  }
 0x291   : > { %2494 = vmatmul.mubr.bf16.gmra.mxu1 %v5318_v28  ;;  %2977 = vmatmul.mubr.bf16.gmra.mxu0 %v5362_v57 }
 0x292   : > { %3959 = vmatprep.mubr.msk.bf16.mxu1 %vm1915_vm13, %v5326_v34  ;;  %4043 = vmatprep.mubr.msk.bf16.mxu0 %vm1915_vm13, %v5366_v58 }
 0x299   : > { %2502 = vmatmul.mubr.bf16.gmra.mxu1 %v5339_v53  ;;  %2985 = vmatmul.mubr.bf16.gmra.mxu0 %v5384_v60 }
 0x29a   : > { %3960 = vmatprep.mubr.msk.bf16.mxu1 %vm1915_vm13, %v5348_v37  ;;  %4044 = vmatprep.mubr.msk.bf16.mxu0 %vm1915_vm13, %v5388_v1 }
 0x2a1   : > { %2510 = vmatmul.mubr.bf16.gmra.mxu1 %v5362_v57  ;;  %2993 = vmatmul.mubr.bf16.gmra.mxu0 %v5406_v50 }
 0x2a2   : > { %3961 = vmatprep.mubr.msk.bf16.mxu1 %vm1915_vm13, %v5366_v58  ;;  %4045 = vmatprep.mubr.msk.bf16.mxu0 %vm1915_vm13, %v5410_v5 }
 0x2a9   : > { %2518 = vmatmul.mubr.bf16.gmra.mxu1 %v5384_v60  ;;  %3001 = vmatmul.mubr.bf16.gmra.mxu0 %v5426_v11 }
 0x2aa   : > { %3962 = vmatprep.mubr.msk.bf16.mxu1 %vm1915_vm13, %v5388_v1  ;;  %4046 = vmatprep.mubr.msk.bf16.mxu0 %vm1915_vm13, %v5428_v12 }
 0x2b1   : > { %2526 = vmatmul.mubr.bf16.gmra.mxu1 %v5406_v50  ;;  %3009 = vmatmul.mubr.bf16.gmra.mxu0 %v5442_v31 }
 0x2b2   : > { %3963 = vmatprep.mubr.msk.bf16.mxu1 %vm1915_vm13, %v5410_v5  ;;  %4047 = vmatprep.mubr.msk.bf16.mxu0 %vm1915_vm13, %v5444_v20 }
 0x2b9   : > { %2534 = vmatmul.mubr.bf16.gmra.mxu1 %v5426_v11  ;;  %3017 = vmatmul.mubr.bf16.gmra.mxu0 %v5450_v8 }
 0x2ba   : > { %3964 = vmatprep.mubr.msk.bf16.mxu1 %vm1915_vm13, %v5428_v12  ;;  %4048 = vmatprep.mubr.msk.bf16.mxu0 %vm1915_vm13, %v4482_v61 }
 0x2c1   : > { %2542 = vmatmul.mubr.bf16.gmra.mxu1 %v5442_v31  ;;  %3025 = vmatmul.mubr.bf16.gmra.mxu0 %v4484_v18 }
 0x2c9   : > { %v5535_v54 = vpop.f32.mrf.mxu0  ;;  %v5537_v4 = vpop.f32.mrf.mxu1 }
 0x2cb   : > { %v2000_v51 = vpop.f32.mrf.mxu0  ;;  %v2064_v22 = vpop.f32.mrf.mxu1 }
 0x2cd   : > { %v5539_v23 = vpop.f32.mrf.mxu0  ;;  %v5541_v25 = vpop.f32.mrf.mxu1 }
 0x2cf   : > { %v2003_v27 = vpop.f32.mrf.mxu0  ;;  %v2067_v28 = vpop.f32.mrf.mxu1 }
 0x2d0   : > { %v5605_v28 = vld [vmem:[%s660_s26] ss:$0 sm:$0xff] }
 0x2d1   : > { %v5543_v29 = vpop.f32.mrf.mxu0  ;;  %v5545_v32 = vpop.f32.mrf.mxu1 }
 0x2d3   : > { %v2008_v33 = vpop.f32.mrf.mxu0  ;;  %v2072_v34 = vpop.f32.mrf.mxu1 }
 0x2d5   : > { %v5547_v35 = vpop.f32.mrf.mxu0  ;;  %v5549_v36 = vpop.f32.mrf.mxu1 }
 0x2d7   : > { %v2011_v13 = vpop.f32.mrf.mxu0  ;;  %v2075_v53 = vpop.f32.mrf.mxu1 }
 0x2d9   : > { %v5551_v48 = vpop.f32.mrf.mxu0  ;;  %v5553_v14 = vpop.f32.mrf.mxu1 }
 0x2db   : > { %v2016_v52 = vpop.f32.mrf.mxu0  ;;  %v2080_v37 = vpop.f32.mrf.mxu1 }
 0x2dd   : > { %v5555_v40 = vpop.f32.mrf.mxu0  ;;  %v5557_v46 = vpop.f32.mrf.mxu1 }
 0x2df   : > { %v2019_v47 = vpop.f32.mrf.mxu0  ;;  %v2083_v57 = vpop.f32.mrf.mxu1 }
 0x2e1   : > { %v5559_v63 = vpop.f32.mrf.mxu0  ;;  %v5561_v58 = vpop.f32.mrf.mxu1 }
 0x2e3   : > { %v2024_v17 = vpop.f32.mrf.mxu0  ;;  %v2088_v2 = vpop.f32.mrf.mxu1 }
 0x2e5   : > { %v5563_v3 = vpop.f32.mrf.mxu0  ;;  %v5565_v39 = vpop.f32.mrf.mxu1 }
 0x2e7   : > { %v2027_v44 = vpop.f32.mrf.mxu0  ;;  %v2091_v60 = vpop.f32.mrf.mxu1 }
 0x2e9   : > { %v5567_v59 = vpop.f32.mrf.mxu0  ;;  %v5569_v1 = vpop.f32.mrf.mxu1 }
 0x2eb   : > { %v2032_v49 = vpop.f32.mrf.mxu0  ;;  %v2096_v55 = vpop.f32.mrf.mxu1 }
 0x2ed   : > { %v5571_v56 = vpop.f32.mrf.mxu0  ;;  %v5573_v30 = vpop.f32.mrf.mxu1 }
 0x2ef   : > { %v2035_v41 = vpop.f32.mrf.mxu0  ;;  %v2099_v50 = vpop.f32.mrf.mxu1 }
 0x2f1   : > { %v5575_v24 = vpop.f32.mrf.mxu0  ;;  %v5577_v5 = vpop.f32.mrf.mxu1 }
 0x2f3   : > { %v2040_v6 = vpop.f32.mrf.mxu0  ;;  %v2104_v43 = vpop.f32.mrf.mxu1 }
 0x2f5   : > { %v5579_v10 = vpop.f32.mrf.mxu0  ;;  %v5581_v19 = vpop.f32.mrf.mxu1 }
 0x2f7   : > { %v2043_v7 = vpop.f32.mrf.mxu0  ;;  %v2107_v11 = vpop.f32.mrf.mxu1 }
 0x2f9   : > { %v5583_v42 = vpop.f32.mrf.mxu0  ;;  %v5585_v12 = vpop.f32.mrf.mxu1 }
 0x2fb   : > { %v2048_v15 = vpop.f32.mrf.mxu0  ;;  %v2112_v16 = vpop.f32.mrf.mxu1 }
 0x2fd   : > { %v5587_v62 = vpop.f32.mrf.mxu0  ;;  %v5589_v9 = vpop.f32.mrf.mxu1 }
 0x2ff   : > { %v2051_v26 = vpop.f32.mrf.mxu0  ;;  %v2115_v31 = vpop.f32.mrf.mxu1 }
 0x301   : > { %v5591_v45 = vpop.f32.mrf.mxu0  ;;  %v5593_v20 = vpop.f32.mrf.mxu1 }
 0x303   : > { %v2056_v0 = vpop.f32.mrf.mxu0  ;;  %v2120_v8 = vpop.f32.mrf.mxu1 }
 0x305   : > { %v5595_v38 = vpop.f32.mrf.mxu0  ;;  %v5597_v21 = vpop.f32.mrf.mxu1 }
 0x307   : > { %v2059_v61 = vpop.f32.mrf.mxu0  ;;  %v2123_v18 = vpop.f32.mrf.mxu1 }
 0x309   : > { %v2423_v51 = vpop.f32.mrf.mxu1  ;;  %v2906_v22 = vpop.f32.mrf.mxu0 }
 0x30a   : > { %v2424_v27 = vadd.f32 %v2423_v51, %v5535_v54 }
 0x30b   : > { %v2425_v33 = vpop.f32.mrf.mxu1  ;;  %v2908_v34 = vpop.f32.mrf.mxu0 }
 0x30c   : > { %v3033_v13 = vadd.f32 %v2906_v22, %v2424_v27 }
 0x30d   : > { %v2426_v53 = vpop.f32.mrf.mxu1  ;;  %v2909_v52 = vpop.f32.mrf.mxu0 }
 0x30e   : > { %v3072_v37 = vadd.f32 %v5605_v28, %v3033_v13  ;;  %v2427_v47 = vadd.f32 %v2426_v53, %v5539_v23 }
 0x30f   : > { %v2428_v57 = vpop.f32.mrf.mxu1  ;;  %v2911_v17 = vpop.f32.mrf.mxu0 }
 0x310   : > { %v3034_v2 = vadd.f32 %v2909_v52, %v2427_v47  ;;  %v3104_v44 = vmax.f32 %v3072_v37, 0.0 }
 0x311   : > { %v2431_v54 = vpop.f32.mrf.mxu1  ;;  %v2914_v60 = vpop.f32.mrf.mxu0 }
 0x312   : > { %v3073_v49 = vadd.f32 %v5605_v28, %v3034_v2  ;;  %v2432_v55 = vadd.f32 %v2431_v54, %v5543_v29  ;;  %v3333_v7 = vmul.f32 %v3104_v44, %v3104_v44 }
 0x313   : > { %v2433_v41 = vpop.f32.mrf.mxu1  ;;  %v2916_v50 = vpop.f32.mrf.mxu0 }
 0x314   : > { %v3105_v6 = vmax.f32 %v3073_v49, 0.0  ;;  %v3035_v43 = vadd.f32 %v2914_v60, %v2432_v55 }
 0x315   : > { %v2434_v11 = vpop.f32.mrf.mxu1  ;;  %v2917_v15 = vpop.f32.mrf.mxu0 }
 0x316   : > { %v4125_v16 = vpack.c.bf16 %v3105_v6, %v3104_v44  ;;  %v3296_v23 = vadd.f32 %v3105_v6, %v3104_v44  ;;  %v3334_v26 = vmul.f32 %v3105_v6, %v3105_v6  ;;  %v3074_v31 = vadd.f32 %v5605_v28, %v3035_v43 }
 0x317   : > { %v2435_v0 = vadd.f32 %v2434_v11, %v5547_v35  ;;  %v2436_v8 = vpop.f32.mrf.mxu1  ;;  %v2919_v61 = vpop.f32.mrf.mxu0 }
 0x318   : > { %4126 = vst [vmem:[%s4860_s20] sm:$0xff] %v4125_v16   ;;  %v3365_v18 = vadd.f32 %v3334_v26, %v3333_v7  ;;  %v3106_v51 = vmax.f32 %v3074_v31, 0.0 }
 0x319   : > { %v3036_v29 = vadd.f32 %v2917_v15, %v2435_v0  ;;  %v2439_v22 = vpop.f32.mrf.mxu1  ;;  %v2922_v27 = vpop.f32.mrf.mxu0 }
 0x31a   : > { %v3297_v33 = vadd.f32 %v3296_v23, %v3106_v51  ;;  %v3335_v34 = vmul.f32 %v3106_v51, %v3106_v51  ;;  %v2440_v13 = vadd.f32 %v2439_v22, %v5551_v48 }
 0x31b   : > { %v3075_v53 = vadd.f32 %v5605_v28, %v3036_v29  ;;  %v2441_v52 = vpop.f32.mrf.mxu1  ;;  %v2924_v37 = vpop.f32.mrf.mxu0 }
 0x31c   : > { %v3366_v47 = vadd.f32 %v3365_v18, %v3335_v34  ;;  %v3037_v57 = vadd.f32 %v2922_v27, %v2440_v13 }
 0x31d   : > { %v3107_v35 = vmax.f32 %v3075_v53, 0.0  ;;  %v2442_v17 = vpop.f32.mrf.mxu1  ;;  %v2925_v2 = vpop.f32.mrf.mxu0 }
 0x31e   : > { %v3076_v44 = vadd.f32 %v5605_v28, %v3037_v57  ;;  %v2443_v54 = vadd.f32 %v2442_v17, %v5555_v40 }
 0x31f   : > { %v4130_v60 = vpack.c.bf16 %v3107_v35, %v3106_v51  ;;  %v3298_v49 = vadd.f32 %v3297_v33, %v3107_v35  ;;  %v3336_v55 = vmul.f32 %v3107_v35, %v3107_v35  ;;  %v2444_v41 = vpop.f32.mrf.mxu1  ;;  %v2927_v50 = vpop.f32.mrf.mxu0 }
 0x320   : > { %v3108_v48 = vmax.f32 %v3076_v44, 0.0  ;;  %v3038_v6 = vadd.f32 %v2925_v2, %v2443_v54 }
 0x321   : > { %4202 = vst [vmem:[%s4860_s20 + $0x8] sm:$0xff] %v4130_v60   ;;  %v3367_v43 = vadd.f32 %v3366_v47, %v3336_v55  ;;  %v2447_v7 = vpop.f32.mrf.mxu1  ;;  %v2930_v11 = vpop.f32.mrf.mxu0 }
 0x322   : > { %v3299_v15 = vadd.f32 %v3298_v49, %v3108_v48  ;;  %v3337_v16 = vmul.f32 %v3108_v48, %v3108_v48  ;;  %v3077_v23 = vadd.f32 %v5605_v28, %v3038_v6  ;;  %v2448_v26 = vadd.f32 %v2447_v7, %v5559_v63 }
 0x323   : > { %v2449_v31 = vpop.f32.mrf.mxu1  ;;  %v2932_v40 = vpop.f32.mrf.mxu0 }
 0x324   : > { %v3368_v0 = vadd.f32 %v3367_v43, %v3337_v16  ;;  %v3109_v8 = vmax.f32 %v3077_v23, 0.0  ;;  %v3039_v61 = vadd.f32 %v2930_v11, %v2448_v26 }
 0x325   : > { %v2450_v18 = vpop.f32.mrf.mxu1  ;;  %v2933_v51 = vpop.f32.mrf.mxu0 }
 0x326   : > { %v4135_v29 = vpack.c.bf16 %v3109_v8, %v3108_v48  ;;  %v3300_v22 = vadd.f32 %v3299_v15, %v3109_v8  ;;  %v3338_v27 = vmul.f32 %v3109_v8, %v3109_v8  ;;  %v3078_v33 = vadd.f32 %v5605_v28, %v3039_v61 }
 0x327   : > { %v2451_v34 = vadd.f32 %v2450_v18, %v5563_v3  ;;  %v2452_v13 = vpop.f32.mrf.mxu1  ;;  %v2935_v53 = vpop.f32.mrf.mxu0 }
 0x328   : > { %4203 = vst [vmem:[%s4860_s20 + $0x10] sm:$0xff] %v4135_v29   ;;  %v3369_v52 = vadd.f32 %v3368_v0, %v3338_v27  ;;  %v3110_v37 = vmax.f32 %v3078_v33, 0.0 }
 0x329   : > { %v3040_v63 = vadd.f32 %v2933_v51, %v2451_v34  ;;  %v2455_v47 = vpop.f32.mrf.mxu1  ;;  %v2938_v57 = vpop.f32.mrf.mxu0 }
 0x32a   : > { %v3301_v35 = vadd.f32 %v3300_v22, %v3110_v37  ;;  %v3339_v17 = vmul.f32 %v3110_v37, %v3110_v37  ;;  %v2456_v2 = vadd.f32 %v2455_v47, %v5567_v59 }
 0x32b   : > { %v3079_v44 = vadd.f32 %v5605_v28, %v3040_v63  ;;  %v2457_v54 = vpop.f32.mrf.mxu1  ;;  %v2940_v60 = vpop.f32.mrf.mxu0 }
 0x32c   : > { %v3370_v49 = vadd.f32 %v3369_v52, %v3339_v17  ;;  %v3041_v55 = vadd.f32 %v2938_v57, %v2456_v2 }
 0x32d   : > { %v3111_v3 = vmax.f32 %v3079_v44, 0.0  ;;  %v2458_v41 = vpop.f32.mrf.mxu1  ;;  %v2941_v50 = vpop.f32.mrf.mxu0 }
 0x32e   : > { %v3080_v48 = vadd.f32 %v5605_v28, %v3041_v55  ;;  %v2459_v6 = vadd.f32 %v2458_v41, %v5571_v56 }
 0x32f   : > { %v4140_v43 = vpack.c.bf16 %v3111_v3, %v3110_v37  ;;  %v3302_v7 = vadd.f32 %v3301_v35, %v3111_v3  ;;  %v3340_v11 = vmul.f32 %v3111_v3, %v3111_v3  ;;  %v2460_v15 = vpop.f32.mrf.mxu1  ;;  %v2943_v16 = vpop.f32.mrf.mxu0 }
 0x330   : > { %v3112_v59 = vmax.f32 %v3080_v48, 0.0  ;;  %v3042_v23 = vadd.f32 %v2941_v50, %v2459_v6 }
 0x331   : > { %4204 = vst [vmem:[%s4860_s20 + $0x18] sm:$0xff] %v4140_v43   ;;  %v3371_v26 = vadd.f32 %v3370_v49, %v3340_v11  ;;  %v2463_v31 = vpop.f32.mrf.mxu1  ;;  %v2946_v40 = vpop.f32.mrf.mxu0 }
 0x332   : > { %v3303_v0 = vadd.f32 %v3302_v7, %v3112_v59  ;;  %v3341_v8 = vmul.f32 %v3112_v59, %v3112_v59  ;;  %v3081_v61 = vadd.f32 %v5605_v28, %v3042_v23  ;;  %v2464_v18 = vadd.f32 %v2463_v31, %v5575_v24 }
 0x333   : > { %v2465_v51 = vpop.f32.mrf.mxu1  ;;  %v2948_v56 = vpop.f32.mrf.mxu0 }
 0x334   : > { %v3372_v29 = vadd.f32 %v3371_v26, %v3341_v8  ;;  %v3113_v22 = vmax.f32 %v3081_v61, 0.0  ;;  %v3043_v27 = vadd.f32 %v2946_v40, %v2464_v18 }
 0x335   : > { %v2466_v33 = vpop.f32.mrf.mxu1  ;;  %v2949_v34 = vpop.f32.mrf.mxu0 }
 0x336   : > { %v4145_v13 = vpack.c.bf16 %v3113_v22, %v3112_v59  ;;  %v3304_v53 = vadd.f32 %v3303_v0, %v3113_v22  ;;  %v3342_v52 = vmul.f32 %v3113_v22, %v3113_v22  ;;  %v3082_v37 = vadd.f32 %v5605_v28, %v3043_v27 }
 0x337   : > { %v2467_v63 = vadd.f32 %v2466_v33, %v5579_v10  ;;  %v2468_v47 = vpop.f32.mrf.mxu1  ;;  %v2951_v57 = vpop.f32.mrf.mxu0 }
 0x338   : > { %4205 = vst [vmem:[%s4860_s20 + $0x20] sm:$0xff] %v4145_v13   ;;  %v3373_v35 = vadd.f32 %v3372_v29, %v3342_v52  ;;  %v3114_v17 = vmax.f32 %v3082_v37, 0.0 }
 0x339   : > { %v3044_v24 = vadd.f32 %v2949_v34, %v2467_v63  ;;  %v2471_v2 = vpop.f32.mrf.mxu1  ;;  %v2954_v44 = vpop.f32.mrf.mxu0 }
 0x33a   : > { %v3305_v54 = vadd.f32 %v3304_v53, %v3114_v17  ;;  %v3343_v60 = vmul.f32 %v3114_v17, %v3114_v17  ;;  %v2472_v49 = vadd.f32 %v2471_v2, %v5583_v42 }
 0x33b   : > { %v3083_v55 = vadd.f32 %v5605_v28, %v3044_v24  ;;  %v2473_v3 = vpop.f32.mrf.mxu1  ;;  %v2956_v41 = vpop.f32.mrf.mxu0 }
 0x33c   : > { %v3374_v50 = vadd.f32 %v3373_v35, %v3343_v60  ;;  %v3045_v48 = vadd.f32 %v2954_v44, %v2472_v49 }
 0x33d   : > { %v3115_v10 = vmax.f32 %v3083_v55, 0.0  ;;  %v2474_v6 = vpop.f32.mrf.mxu1  ;;  %v2957_v43 = vpop.f32.mrf.mxu0 }
 0x33e   : > { %v3084_v7 = vadd.f32 %v5605_v28, %v3045_v48  ;;  %v2475_v11 = vadd.f32 %v2474_v6, %v5587_v62 }
 0x33f   : > { %v4150_v15 = vpack.c.bf16 %v3115_v10, %v3114_v17  ;;  %v3306_v16 = vadd.f32 %v3305_v54, %v3115_v10  ;;  %v3344_v59 = vmul.f32 %v3115_v10, %v3115_v10  ;;  %v2476_v23 = vpop.f32.mrf.mxu1  ;;  %v2959_v26 = vpop.f32.mrf.mxu0 }
 0x340   : > { %v3116_v42 = vmax.f32 %v3084_v7, 0.0  ;;  %v3046_v31 = vadd.f32 %v2957_v43, %v2475_v11 }
 0x341   : > { %4206 = vst [vmem:[%s4860_s20 + $0x28] sm:$0xff] %v4150_v15   ;;  %v3375_v40 = vadd.f32 %v3374_v50, %v3344_v59  ;;  %v2479_v0 = vpop.f32.mrf.mxu1  ;;  %v2962_v8 = vpop.f32.mrf.mxu0 }
 0x342   : > { %v3307_v61 = vadd.f32 %v3306_v16, %v3116_v42  ;;  %v3345_v18 = vmul.f32 %v3116_v42, %v3116_v42  ;;  %v3085_v51 = vadd.f32 %v5605_v28, %v3046_v31  ;;  %v2480_v56 = vadd.f32 %v2479_v0, %v5591_v45 }
 0x343   : > { %v2481_v29 = vpop.f32.mrf.mxu1  ;;  %v2964_v62 = vpop.f32.mrf.mxu0 }
 0x344   : > { %v3376_v22 = vadd.f32 %v3375_v40, %v3345_v18  ;;  %v3117_v27 = vmax.f32 %v3085_v51, 0.0  ;;  %v3047_v33 = vadd.f32 %v2962_v8, %v2480_v56 }
 0x345   : > { %v2482_v34 = vpop.f32.mrf.mxu1  ;;  %v2965_v13 = vpop.f32.mrf.mxu0 }
 0x346   : > { %v4155_v53 = vpack.c.bf16 %v3117_v27, %v3116_v42  ;;  %v3308_v52 = vadd.f32 %v3307_v61, %v3117_v27  ;;  %v3346_v37 = vmul.f32 %v3117_v27, %v3117_v27  ;;  %v3086_v63 = vadd.f32 %v5605_v28, %v3047_v33 }
 0x347   : > { %v2483_v47 = vadd.f32 %v2482_v34, %v5595_v38  ;;  %v2484_v57 = vpop.f32.mrf.mxu1  ;;  %v2967_v35 = vpop.f32.mrf.mxu0 }
 0x348   : > { %4207 = vst [vmem:[%s4860_s20 + $0x30] sm:$0xff] %v4155_v53   ;;  %v3377_v17 = vadd.f32 %v3376_v22, %v3346_v37  ;;  %v3118_v24 = vmax.f32 %v3086_v63, 0.0 }
 0x349   : > { %v3048_v45 = vadd.f32 %v2965_v13, %v2483_v47  ;;  %v2487_v2 = vpop.f32.mrf.mxu1  ;;  %v2970_v44 = vpop.f32.mrf.mxu0 }
 0x34a   : > { %v3309_v54 = vadd.f32 %v3308_v52, %v3118_v24  ;;  %v3347_v60 = vmul.f32 %v3118_v24, %v3118_v24  ;;  %v2488_v49 = vadd.f32 %v2487_v2, %v5537_v4 }
 0x34b   : > { %v3087_v55 = vadd.f32 %v5605_v28, %v3048_v45  ;;  %v2489_v3 = vpop.f32.mrf.mxu1  ;;  %v2972_v41 = vpop.f32.mrf.mxu0 }
 0x34c   : > { %v3378_v50 = vadd.f32 %v3377_v17, %v3347_v60  ;;  %v3049_v48 = vadd.f32 %v2970_v44, %v2488_v49 }
 0x34d   : > { %v3119_v38 = vmax.f32 %v3087_v55, 0.0  ;;  %v2490_v10 = vpop.f32.mrf.mxu1  ;;  %v2973_v6 = vpop.f32.mrf.mxu0 }
 0x34e   : > { %v2491_v43 = vadd.f32 %v2490_v10, %v5541_v25  ;;  %v3088_v4 = vadd.f32 %v5605_v28, %v3049_v48 }
 0x34f   : > { %v4160_v7 = vpack.c.bf16 %v3119_v38, %v3118_v24  ;;  %v5647_v11 = vadd.f32 %v3309_v54, %v3119_v38  ;;  %v3348_v15 = vmul.f32 %v3119_v38, %v3119_v38  ;;  %v2492_v16 = vpop.f32.mrf.mxu1  ;;  %v2975_v59 = vpop.f32.mrf.mxu0 }
 0x350   : > { %v3050_v23 = vadd.f32 %v2973_v6, %v2491_v43  ;;  %v5655_v61 = vmax.f32 %v3088_v4, 0.0 }
 0x351   : > { %4208 = vst [vmem:[%s4860_s20 + $0x38] sm:$0xff] %v4160_v7   ;;  %v5651_v26 = vadd.f32 %v3378_v50, %v3348_v15  ;;  %v2495_v42 = vpop.f32.mrf.mxu1  ;;  %v2978_v31 = vpop.f32.mrf.mxu0 }
 0x352   : > { %v3089_v40 = vadd.f32 %v5605_v28, %v3050_v23  ;;  %v2496_v0 = vadd.f32 %v2495_v42, %v5545_v32 }
 0x353   : > { %v2497_v25 = vpop.f32.mrf.mxu1  ;;  %v2980_v8 = vpop.f32.mrf.mxu0 }
 0x354   : > { %v5657_v18 = vmax.f32 %v3089_v40, 0.0  ;;  %v3051_v51 = vadd.f32 %v2978_v31, %v2496_v0 }
 0x355   : > { %v2498_v56 = vpop.f32.mrf.mxu1  ;;  %v2981_v29 = vpop.f32.mrf.mxu0 }
 0x356   : > { %v4165_v62 = vpack.c.bf16 %v5657_v18, %v5655_v61  ;;  %v2499_v22 = vadd.f32 %v2498_v56, %v5549_v36  ;;  %v3090_v34 = vadd.f32 %v5605_v28, %v3051_v51 }
 0x357   : > { %v2500_v27 = vpop.f32.mrf.mxu1  ;;  %v2983_v33 = vpop.f32.mrf.mxu0 }
 0x358   : > { %4209 = vst [vmem:[%s4860_s20 + $0x40] sm:$0xff] %v4165_v62   ;;  %v3052_v32 = vadd.f32 %v2981_v29, %v2499_v22  ;;  %v5666_v35 = vmax.f32 %v3090_v34, 0.0  ;;  %v3349_v62 = vmul.f32 %v5655_v61, %v5655_v61 }
 0x359   : > { %v2503_v13 = vpop.f32.mrf.mxu1  ;;  %v2986_v53 = vpop.f32.mrf.mxu0 }
 0x35a   : > { %v2504_v52 = vadd.f32 %v2503_v13, %v5553_v14  ;;  %v3091_v37 = vadd.f32 %v5605_v28, %v3052_v32 }
 0x35b   : > { %v2505_v63 = vpop.f32.mrf.mxu1  ;;  %v2988_v47 = vpop.f32.mrf.mxu0 }
 0x35c   : > { %v3053_v57 = vadd.f32 %v2986_v53, %v2504_v52  ;;  %v5668_v17 = vmax.f32 %v3091_v37, 0.0  ;;  %v3311_v53 = vadd.f32 %v5647_v11, %v5655_v61  ;;  %v3380_v63 = vadd.f32 %v5651_v26, %v3349_v62 }
 0x35d   : > { %v2506_v36 = vpop.f32.mrf.mxu1  ;;  %v2989_v24 = vpop.f32.mrf.mxu0 }
 0x35e   : > { %v2507_v45 = vadd.f32 %v2506_v36, %v5557_v46  ;;  %v4170_v2 = vpack.c.bf16 %v5668_v17, %v5666_v35  ;;  %v3092_v14 = vadd.f32 %v5605_v28, %v3053_v57  ;;  %v3312_v36 = vadd.f32 %v3311_v53, %v5657_v18 }
 0x35f   : > { %v2508_v44 = vpop.f32.mrf.mxu1  ;;  %v2991_v54 = vpop.f32.mrf.mxu0  ;;  %v3352_v11 = vmul.f32 %v5668_v17, %v5668_v17 }
 0x360   : > { %v3054_v60 = vadd.f32 %v2989_v24, %v2507_v45  ;;  %4210 = vst [vmem:[%s4860_s20 + $0x48] sm:$0xff] %v4170_v2   ;;  %v3124_v38 = vmax.f32 %v3092_v14, 0.0  ;;  %v3313_v26 = vadd.f32 %v3312_v36, %v5666_v35 }
 0x361   : > { %v2511_v49 = vpop.f32.mrf.mxu1  ;;  %v2994_v55 = vpop.f32.mrf.mxu0 }
 0x362   : > { %v3093_v3 = vadd.f32 %v5605_v28, %v3054_v60  ;;  %v2512_v41 = vadd.f32 %v2511_v49, %v5561_v58 }
 0x363   : > { %v2513_v50 = vpop.f32.mrf.mxu1  ;;  %v2996_v48 = vpop.f32.mrf.mxu0 }
 0x364   : > { %v5677_v46 = vmax.f32 %v3093_v3, 0.0  ;;  %v3055_v10 = vadd.f32 %v2994_v55, %v2512_v41  ;;  %v3353_v55 = vmul.f32 %v3124_v38, %v3124_v38 }
 0x365   : > { %v2514_v6 = vpop.f32.mrf.mxu1  ;;  %v2997_v43 = vpop.f32.mrf.mxu0 }
 0x366   : > { %v4175_v7 = vpack.c.bf16 %v5677_v46, %v3124_v38  ;;  %v2515_v15 = vadd.f32 %v2514_v6, %v5565_v39  ;;  %v3094_v4 = vadd.f32 %v5605_v28, %v3055_v10  ;;  %v3354_v10 = vmul.f32 %v5677_v46, %v5677_v46 }
 0x367   : > { %v2516_v16 = vpop.f32.mrf.mxu1  ;;  %v2999_v59 = vpop.f32.mrf.mxu0 }
 0x368   : > { %4211 = vst [vmem:[%s4860_s20 + $0x50] sm:$0xff] %v4175_v7   ;;  %v3056_v23 = vadd.f32 %v2997_v43, %v2515_v15  ;;  %v3126_v51 = vmax.f32 %v3094_v4, 0.0 }
 0x369   : > { %v2519_v42 = vpop.f32.mrf.mxu1  ;;  %v3002_v58 = vpop.f32.mrf.mxu0 }
 0x36a   : > { %v2520_v31 = vadd.f32 %v2519_v42, %v5569_v1  ;;  %v3095_v40 = vadd.f32 %v5605_v28, %v3056_v23  ;;  %v3350_v1 = vmul.f32 %v5657_v18, %v5657_v18  ;;  %v3355_v59 = vmul.f32 %v3126_v51, %v3126_v51 }
 0x36b   : > { %v2521_v0 = vpop.f32.mrf.mxu1  ;;  %v3004_v25 = vpop.f32.mrf.mxu0 }
 0x36c   : > { %v3057_v8 = vadd.f32 %v3002_v58, %v2520_v31  ;;  %v3127_v56 = vmax.f32 %v3095_v40, 0.0  ;;  %v3381_v2 = vadd.f32 %v3380_v63, %v3350_v1 }
 0x36d   : > { %v2522_v29 = vpop.f32.mrf.mxu1  ;;  %v3005_v39 = vpop.f32.mrf.mxu0 }
 0x36e   : > { %v2523_v22 = vadd.f32 %v2522_v29, %v5573_v30  ;;  %v4180_v27 = vpack.c.bf16 %v3127_v56, %v3126_v51  ;;  %v3096_v32 = vadd.f32 %v5605_v28, %v3057_v8  ;;  %v3351_v30 = vmul.f32 %v5666_v35, %v5666_v35 }
 0x36f   : > { %v2524_v33 = vpop.f32.mrf.mxu1  ;;  %v3007_v34 = vpop.f32.mrf.mxu0  ;;  %v3356_v0 = vmul.f32 %v3127_v56, %v3127_v56 }
 0x370   : > { %v3058_v13 = vadd.f32 %v3005_v39, %v2523_v22  ;;  %4212 = vst [vmem:[%s4860_s20 + $0x58] sm:$0xff] %v4180_v27   ;;  %v3128_v61 = vmax.f32 %v3096_v32, 0.0  ;;  %v3382_v49 = vadd.f32 %v3381_v2, %v3351_v30 }
 0x371   : > { %v2527_v52 = vpop.f32.mrf.mxu1  ;;  %v3010_v37 = vpop.f32.mrf.mxu0 }
 0x372   : > { %v3097_v47 = vadd.f32 %v5605_v28, %v3058_v13  ;;  %v2528_v57 = vadd.f32 %v2527_v52, %v5577_v5  ;;  %v3314_v5 = vadd.f32 %v3313_v26, %v5668_v17  ;;  %v3383_v48 = vadd.f32 %v3382_v49, %v3352_v11 }
 0x373   : > { %v2529_v24 = vpop.f32.mrf.mxu1  ;;  %v3012_v45 = vpop.f32.mrf.mxu0 }
 0x374   : > { %v3129_v44 = vmax.f32 %v3097_v47, 0.0  ;;  %v3059_v54 = vadd.f32 %v3010_v37, %v2528_v57  ;;  %v3315_v6 = vadd.f32 %v3314_v5, %v3124_v38  ;;  %v3384_v16 = vadd.f32 %v3383_v48, %v3353_v55 }
 0x375   : > { %v2530_v14 = vpop.f32.mrf.mxu1  ;;  %v3013_v60 = vpop.f32.mrf.mxu0 }
 0x376   : > { %v4185_v3 = vpack.c.bf16 %v3129_v44, %v3128_v61  ;;  %v2531_v18 = vadd.f32 %v2530_v14, %v5581_v19  ;;  %v3098_v35 = vadd.f32 %v5605_v28, %v3059_v54  ;;  %v3316_v17 = vadd.f32 %v3315_v6, %v5677_v46 }
 0x377   : > { %v2532_v41 = vpop.f32.mrf.mxu1  ;;  %v3015_v50 = vpop.f32.mrf.mxu0  ;;  %v3385_v58 = vadd.f32 %v3384_v16, %v3354_v10 }
 0x378   : > { %4213 = vst [vmem:[%s4860_s20 + $0x60] sm:$0xff] %v4185_v3   ;;  %v3060_v43 = vadd.f32 %v3013_v60, %v2531_v18  ;;  %v3317_v40 = vadd.f32 %v3316_v17, %v3126_v51  ;;  %v3130_v38 = vmax.f32 %v3098_v35, 0.0  ;;  %v3358_v51 = vmul.f32 %v3129_v44, %v3129_v44 }
 0x379   : > { %v2535_v7 = vpop.f32.mrf.mxu1  ;;  %v3018_v15 = vpop.f32.mrf.mxu0  ;;  %v3386_v39 = vadd.f32 %v3385_v58, %v3355_v59 }
 0x37a   : > { %v2536_v4 = vadd.f32 %v2535_v7, %v5585_v12  ;;  %v3099_v19 = vadd.f32 %v5605_v28, %v3060_v43  ;;  %v3318_v22 = vadd.f32 %v3317_v40, %v3127_v56  ;;  %v3357_v12 = vmul.f32 %v3128_v61, %v3128_v61 }
 0x37b   : > { %v2537_v23 = vpop.f32.mrf.mxu1  ;;  %v3020_v42 = vpop.f32.mrf.mxu0  ;;  %v3387_v32 = vadd.f32 %v3386_v39, %v3356_v0  ;;  %v3359_v56 = vmul.f32 %v3130_v38, %v3130_v38 }
 0x37c   : > { %v3061_v31 = vadd.f32 %v3018_v15, %v2536_v4  ;;  %v3131_v25 = vmax.f32 %v3099_v19, 0.0  ;;  %v3319_v13 = vadd.f32 %v3318_v22, %v3128_v61 }
 0x37d   : > { %v2538_v8 = vpop.f32.mrf.mxu1  ;;  %v3021_v29 = vpop.f32.mrf.mxu0  ;;  %v3388_v30 = vadd.f32 %v3387_v32, %v3357_v12 }
 0x37e   : > { %v2539_v62 = vadd.f32 %v2538_v8, %v5589_v9  ;;  %v4190_v27 = vpack.c.bf16 %v3131_v25, %v3130_v38  ;;  %v3100_v46 = vadd.f32 %v5605_v28, %v3061_v31  ;;  %v3320_v9 = vadd.f32 %v3319_v13, %v3129_v44 }
 0x37f   : > { %v2540_v33 = vpop.f32.mrf.mxu1  ;;  %v3023_v34 = vpop.f32.mrf.mxu0  ;;  %v3389_v2 = vadd.f32 %v3388_v30, %v3358_v51  ;;  %v3360_v61 = vmul.f32 %v3131_v25, %v3131_v25 }
 0x380   : > { %v3062_v1 = vadd.f32 %v3021_v29, %v2539_v62  ;;  %4214 = vst [vmem:[%s4860_s20 + $0x68] sm:$0xff] %v4190_v27   ;;  %v3132_v47 = vmax.f32 %v3100_v46, 0.0  ;;  %v3321_v11 = vadd.f32 %v3320_v9, %v3130_v38 }
 0x381   : > { %v2543_v53 = vpop.f32.mrf.mxu1  ;;  %v3026_v52 = vpop.f32.mrf.mxu0  ;;  %v3390_v49 = vadd.f32 %v3389_v2, %v3359_v56 }
 0x382   : > { %v3101_v37 = vadd.f32 %v5605_v28, %v3062_v1  ;;  %v2544_v63 = vadd.f32 %v2543_v53, %v5593_v20  ;;  %v3322_v55 = vadd.f32 %v3321_v11, %v3131_v25  ;;  %v3361_v20 = vmul.f32 %v3132_v47, %v3132_v47 }
 0x383   : > { %v2545_v57 = vpop.f32.mrf.mxu1  ;;  %v3028_v36 = vpop.f32.mrf.mxu0  ;;  %v3391_v41 = vadd.f32 %v3390_v49, %v3360_v61 }
 0x384   : > { %v3133_v24 = vmax.f32 %v3101_v37, 0.0  ;;  %v3063_v45 = vadd.f32 %v3026_v52, %v2544_v63  ;;  %v3323_v50 = vadd.f32 %v3322_v55, %v3132_v47 }
 0x385   : > { %v2546_v26 = vpop.f32.mrf.mxu1  ;;  %v3029_v54 = vpop.f32.mrf.mxu0  ;;  %v3392_v6 = vadd.f32 %v3391_v41, %v3361_v20 }
 0x386   : > { %v4195_v14 = vpack.c.bf16 %v3133_v24, %v3132_v47  ;;  %v3102_v60 = vadd.f32 %v5605_v28, %v3063_v45  ;;  %v2547_v44 = vadd.f32 %v2546_v26, %v5597_v21  ;;  %v3362_v48 = vmul.f32 %v3133_v24, %v3133_v24 }
 0x387   : > { %v2548_v3 = vpop.f32.mrf.mxu1  ;;  %v3031_v5 = vpop.f32.mrf.mxu0  ;;  %v3324_v35 = vadd.f32 %v3323_v50, %v3133_v24 }
 0x388   : > { %4215 = vst [vmem:[%s4860_s20 + $0x70] sm:$0xff] %v4195_v14   ;;  %v3134_v18 = vmax.f32 %v3102_v60, 0.0  ;;  %v3064_v10 = vadd.f32 %v3029_v54, %v2547_v44  ;;  %v3393_v15 = vadd.f32 %v3392_v6, %v3362_v48 }
 0x38a   : > { %v3363_v43 = vmul.f32 %v3134_v18, %v3134_v18  ;;  %v3103_v7 = vadd.f32 %v5605_v28, %v3064_v10  ;;  %v3325_v16 = vadd.f32 %v3324_v35, %v3134_v18 }
 0x38c   : > { %v3135_v59 = vmax.f32 %v3103_v7, 0.0  ;;  %v3394_v4 = vadd.f32 %v3393_v15, %v3363_v43 }
 0x38e   : > { %v4200_v17 = vpack.c.bf16 %v3135_v59, %v3134_v18  ;;  %v3326_v21 = vadd.f32 %v3325_v16, %v3135_v59  ;;  %v3364_v19 = vmul.f32 %v3135_v59, %v3135_v59 }
 0x390   : > { %4216 = vst [vmem:[%s4860_s20 + $0x78] sm:$0xff] %v4200_v17   ;;  %v3327_v23 = vrot.slane %v3326_v21, 4  ;;  %v3395_v42 = vadd.f32 %v3394_v4, %v3364_v19 }
 0x392   : > { %v3328_v58 = vadd.f32 %v3327_v23, %v3326_v21  ;;  %v3396_v31 = vrot.slane %v3395_v42, 4 }
 0x394   : > { %v3329_v40 = vrot.slane %v3328_v58, 2  ;;  %v3397_v0 = vadd.f32 %v3396_v31, %v3395_v42 }
 0x396   : > { %v3330_v38 = vadd.f32 %v3329_v40, %v3328_v58  ;;  %v3398_v25 = vrot.slane %v3397_v0, 2 }
 0x398   : > { %v3331_v8 = vrot.slane %v3330_v38, 1  ;;  %v3399_v29 = vadd.f32 %v3398_v25, %v3397_v0  ;;  %3404 = sbr.rel (%p3753_p2) target bundleno = 927 (0x39f), region = 89 }
 0x39a   : > { %v3332_v39 = vadd.f32 %v3331_v8, %v3330_v38  ;;  %v3400_v28 = vrot.slane %v3399_v29, 1 }
 0x39c   : > { %v3401_v62 = vadd.f32 %v3400_v28, %v3399_v29 }
 0x39d   : > { %3405 = vst [vmem:[%s4851_s15] sm:$0x1] %v3332_v39 }
 0x39e   : > { %3406 = vst [vmem:[%s4856_s27] sm:$0x1] %v3401_v62 }
 0x39f PF: > { %p4083_p3 = scmp.ne.s32.totalorder %s4539_s28, 1 }
 0x3a1   : > { %3410 = sbr.rel (%p4083_p3) target bundleno = 935 (0x3a7), region = 93 }
 0x3a6   : > { %3411 = vst [vmem:[%s4851_s15 + $0x1] sm:$0x1] %v3332_v39  ;;  %3412 = vst [vmem:[%s4856_s27 + $0x1] sm:$0x1] %v3401_v62 }
 0x3a7 PF: > { %3427 = sbr.rel (!%p4668_p9) target bundleno = 958 (0x3be), region = 97  ;;  %s4085_s22 = sshll.u32 (%p4668_p9), %s4543_s29, 6  ;;  %v3448_v22 = vld [vmem:[%s4860_s20] sm:$0xf] (%p4668_p9)  ;;  %v3450_v12 = vld [vmem:[%s4860_s20 + $0x4] sm:$0xf] (%p4668_p9) }
 0x3a8   : > { %s3429_s27 = sadd.s32 (%p4668_p9), %s4539_s28, %s4085_s22  ;;  %v3452_v27 = vld [vmem:[%s4860_s20 + $0x8] sm:$0xf] (%p4668_p9)  ;;  %v3454_v46 = vld [vmem:[%s4860_s20 + $0xc] sm:$0xf] (%p4668_p9)  ;;  %v3456_v33 = vld [vmem:[%s4860_s20 + $0x10] sm:$0xf] (%p4668_p9) }
 0x3a9   : > { %s4086_s19 = sshll.u32 (%p4668_p9), %s3429_s27, 2  ;;  %v3458_v34 = vld [vmem:[%s4860_s20 + $0x14] sm:$0xf] (%p4668_p9)  ;;  %v3460_v1 = vld [vmem:[%s4860_s20 + $0x18] sm:$0xf] (%p4668_p9) }
 0x3aa   : > { %s5743_s26 = scalar_lea.vmem (%p4668_p9), %s5834_s5, %s4086_s19  ;;  %v3462_v32 = vld [vmem:[%s4860_s20 + $0x1c] sm:$0xf] (%p4668_p9)  ;;  %v3464_v13 = vld [vmem:[%s4860_s20 + $0x20] sm:$0xf] (%p4668_p9)  ;;  %v3466_v51 = vld [vmem:[%s4860_s20 + $0x24] sm:$0xf] (%p4668_p9) }
 0x3ab   : > { %3449 = vst [vmem:[%s5743_s26] sm:$0xf] (%p4668_p9), %v3448_v22  ;;  %3451 = vst [vmem:[%s5743_s26 + $0x8] sm:$0xf] (%p4668_p9), %v3450_v12  ;;  %v3468_v53 = vld [vmem:[%s4860_s20 + $0x28] sm:$0xf] (%p4668_p9) }
 0x3ac   : > { %3453 = vst [vmem:[%s5743_s26 + $0x10] sm:$0xf] %v3452_v27  ;;  %3455 = vst [vmem:[%s5743_s26 + $0x18] sm:$0xf] %v3454_v46  ;;  %v3470_v52 = vld [vmem:[%s4860_s20 + $0x2c] sm:$0xf] }
 0x3ad   : > { %3457 = vst [vmem:[%s5743_s26 + $0x20] sm:$0xf] %v3456_v33  ;;  %3459 = vst [vmem:[%s5743_s26 + $0x28] sm:$0xf] %v3458_v34  ;;  %v3472_v37 = vld [vmem:[%s4860_s20 + $0x30] sm:$0xf] }
 0x3ae   : > { %3461 = vst [vmem:[%s5743_s26 + $0x30] sm:$0xf] %v3460_v1  ;;  %3463 = vst [vmem:[%s5743_s26 + $0x38] sm:$0xf] %v3462_v32  ;;  %v3474_v63 = vld [vmem:[%s4860_s20 + $0x34] sm:$0xf] }
 0x3af   : > { %3465 = vst [vmem:[%s5743_s26 + $0x40] sm:$0xf] %v3464_v13  ;;  %3467 = vst [vmem:[%s5743_s26 + $0x48] sm:$0xf] %v3466_v51  ;;  %v3476_v30 = vld [vmem:[%s4860_s20 + $0x38] sm:$0xf] }
 0x3b0   : > { %3469 = vst [vmem:[%s5743_s26 + $0x50] sm:$0xf] %v3468_v53  ;;  %3471 = vst [vmem:[%s5743_s26 + $0x58] sm:$0xf] %v3470_v52  ;;  %v3478_v9 = vld [vmem:[%s4860_s20 + $0x3c] sm:$0xf] }
 0x3b1   : > { %3473 = vst [vmem:[%s5743_s26 + $0x60] sm:$0xf] %v3472_v37  ;;  %3475 = vst [vmem:[%s5743_s26 + $0x68] sm:$0xf] %v3474_v63  ;;  %v3480_v56 = vld [vmem:[%s4860_s20 + $0x40] sm:$0xf] }
 0x3b2   : > { %3477 = vst [vmem:[%s5743_s26 + $0x70] sm:$0xf] %v3476_v30  ;;  %3479 = vst [vmem:[%s5743_s26 + $0x78] sm:$0xf] %v3478_v9  ;;  %v3482_v47 = vld [vmem:[%s4860_s20 + $0x44] sm:$0xf] }
 0x3b3   : > { %v3484_v57 = vld [vmem:[%s4860_s20 + $0x48] sm:$0xf]  ;;  %3481 = vst [vmem:[%s5743_s26 + $0x80] sm:$0xf] %v3480_v56  ;;  %3483 = vst [vmem:[%s5743_s26 + $0x88] sm:$0xf] %v3482_v47 }
 0x3b4   : > { %3485 = vst [vmem:[%s5743_s26 + $0x90] sm:$0xf] %v3484_v57  ;;  %v3486_v36 = vld [vmem:[%s4860_s20 + $0x4c] sm:$0xf]  ;;  %v3488_v24 = vld [vmem:[%s4860_s20 + $0x50] sm:$0xf] }
 0x3b5   : > { %v3490_v45 = vld [vmem:[%s4860_s20 + $0x54] sm:$0xf]  ;;  %3487 = vst [vmem:[%s5743_s26 + $0x98] sm:$0xf] %v3486_v36  ;;  %3489 = vst [vmem:[%s5743_s26 + $0xa0] sm:$0xf] %v3488_v24 }
 0x3b6   : > { %3491 = vst [vmem:[%s5743_s26 + $0xa8] sm:$0xf] %v3490_v45  ;;  %v3492_v2 = vld [vmem:[%s4860_s20 + $0x58] sm:$0xf]  ;;  %v3494_v11 = vld [vmem:[%s4860_s20 + $0x5c] sm:$0xf] }
 0x3b7   : > { %v3496_v61 = vld [vmem:[%s4860_s20 + $0x60] sm:$0xf]  ;;  %3493 = vst [vmem:[%s5743_s26 + $0xb0] sm:$0xf] %v3492_v2  ;;  %3495 = vst [vmem:[%s5743_s26 + $0xb8] sm:$0xf] %v3494_v11 }
 0x3b8   : > { %3497 = vst [vmem:[%s5743_s26 + $0xc0] sm:$0xf] %v3496_v61  ;;  %v3498_v26 = vld [vmem:[%s4860_s20 + $0x64] sm:$0xf]  ;;  %v3500_v54 = vld [vmem:[%s4860_s20 + $0x68] sm:$0xf] }
 0x3b9   : > { %v3502_v14 = vld [vmem:[%s4860_s20 + $0x6c] sm:$0xf]  ;;  %3499 = vst [vmem:[%s5743_s26 + $0xc8] sm:$0xf] %v3498_v26  ;;  %3501 = vst [vmem:[%s5743_s26 + $0xd0] sm:$0xf] %v3500_v54 }
 0x3ba   : > { %3503 = vst [vmem:[%s5743_s26 + $0xd8] sm:$0xf] %v3502_v14  ;;  %v3504_v60 = vld [vmem:[%s4860_s20 + $0x70] sm:$0xf]  ;;  %v3506_v49 = vld [vmem:[%s4860_s20 + $0x74] sm:$0xf] }
 0x3bb   : > { %v3508_v55 = vld [vmem:[%s4860_s20 + $0x78] sm:$0xf]  ;;  %3505 = vst [vmem:[%s5743_s26 + $0xe0] sm:$0xf] %v3504_v60  ;;  %3507 = vst [vmem:[%s5743_s26 + $0xe8] sm:$0xf] %v3506_v49 }
 0x3bc   : > { %3509 = vst [vmem:[%s5743_s26 + $0xf0] sm:$0xf] %v3508_v55  ;;  %v3510_v20 = vld [vmem:[%s4860_s20 + $0x7c] sm:$0xf] }
 0x3bd   : > { %3511 = vst [vmem:[%s5743_s26 + $0xf8] sm:$0xf] %v3510_v20 }
 0x3be PF: > { %s18_s9 = sadd.s32 1, %s4555_s9   ;;  %s5860_s28 = sld [smem:[#allocation11_spill]] }
 0x3bf   : > { %p15_p4 = scmp.ge.s32.totalorder %s18_s9, 6   ;;  %s5861_s26 = sld [smem:[#allocation5_spill]] }
 0x3c0   : > { %s5862_s27 = sld [smem:[#allocation10_spill]]  ;;  %s5867_s24 = smov %s4527_s25 }
 0x3c1   : > { %s5863_s29 = sld [smem:[#allocation6_spill]] }
 0x3c2   : > { %s5864_s12 = sld [smem:[#allocation7_spill]] }
 0x3c3   : > { %s5865_s30 = sld [smem:[#allocation8_spill]] }
 0x3c4   : > { %s5866_s8 = sld [smem:[#allocation9_spill]]  ;;  %s5868_s25 = smov %s5860_s28 }
 0x3c5   :  { %17 = sbr.rel (!%p15_p4) target bundleno = 7 (0x7), region = 205 }
 0x3c7   : > { %s5869_s28 = smov %s5863_s29 }
 0x3c8   : > { %s5870_s29 = smov %s5864_s12 }

// kernel: custom_cnn_1_forward.3
= control target key start
LH: loop header
LB: loop body
LE: loop exit
PB: predicated region body
PF: predicated region fallthrough
CT: control target
= control target key end

     0   :  { %10 = vsyncpa [#allocation4], 0  ;;  %s10507_s0 = inlined_call_operand.vmem [shape: bf16[2,16,16,256], index: 0, kind: input, shape index: {}]   ;;  %s10508_s1 = inlined_call_operand.vmem [shape: f32[1,256], index: 1, kind: input, shape index: {}]   ;;  %s10509_s2 = inlined_call_operand.vmem [shape: f32[1,256], index: 2, kind: input, shape index: {}]   ;;  %s10510_s3 = inlined_call_operand.vmem [shape: bf16[3,768,64], index: 3, kind: input, shape index: {}]   ;;  %s10511_s4 = inlined_call_operand.vmem [shape: f32[1,64], index: 4, kind: input, shape index: {}]   ;;  %s10512_s5 = inlined_call_operand.hbm [shape: f32[2,16,16,64], index: 5, kind: output, shape index: {}]  }
   0x1   :  { %12 = vsyncpa [#allocation4 + $0x1], 0  ;;  %s8163_s18 = smov 0   ;;  %s8165_s19 = smov 0  }
   0x2   :  { %s8167_s20 = smov 0   ;;  %s8169_s21 = smov 0  }
   0x3 LB: > { %s8184_s22 = sadd.s32 4294967295, %s8127_s21   ;;  %s6034_s23 = sadd.s32 4294967294, %s8127_s21   ;;  %s8127_s21 = sphi %s8169_s21, %s11091_s21   ;;  %s8123_s20 = sphi %s8167_s20, %s11090_s20   ;;  %s8119_s19 = sphi %s8165_s19, %s11089_s19   ;;  %s8115_s18 = sphi %s8163_s18, %s11088_s18  }
   0x4   : > { %s8188_s24 = sadd.s32 1, %s8127_s21   ;;  %s135_s25 = sadd.s32 1, %s8123_s20 }
   0x5   : > { %s132_s26 = ssub.s32 %s8127_s21, %s8188_s24  ;;  %p145_p0 = scmp.ne.s32.totalorder %s8123_s20, %s8119_s19 }
   0x6   : > { %p133_p1 = scmp.eq.s32.totalorder %s132_s26, 0  ;;  %p146_p2 = scmp.eq.s32.totalorder %s8184_s22, 1 }
   0x7   : > { %p151_p3 = scmp.ne.s32.totalorder %s8119_s19, %s8115_s18  ;;  %p152_p4 = scmp.eq.s32.totalorder %s6034_s23, 1 }
   0x8   : > { %s8199_s27 = scalar_select %p133_p1, %s8123_s20, %s135_s25  }
   0x9   : > { %p8201_p5 = por %p146_p2, %p145_p0  ;;  %p8205_p6 = por %p152_p4, %p151_p3 }
   0xa   : > { %p6037_p7 = scmp.ge.s32.totalorder %s8127_s21, 1  ;;  %p190_p8 = scmp.lt.s32.totalorder %s8127_s21, 3 }
   0xc   : > { %p191_p9 = pnand %p6037_p7, %p190_p8 }
   0xe   : > { %194 = sbr.rel (%p191_p9) target bundleno = 873 (0x369), region = 40 }
  0x13   : > { %v7923_v0 = vld [vmem:[%s10510_s3 + $0x1f8] sm:$0xff]   ;;  %v7925_v2 = vld [vmem:[%s10510_s3 + $0x1f0] sm:$0xff]   ;;  %p218_p10 = scmp.lt.s32.totalorder %s8184_s22, 1  ;;  %v7927_v4 = vld [vmem:[%s10510_s3 + $0x1e8] sm:$0xff]   ;;  %v264_v5 = vlaneseq  ;;  %vm389_vm0 = vcmask 1040384   ;;  %vm424_vm3 = vcmask 1047552  }
  0x14   : > { %v7924_v1 = vld [vmem:[%s10510_s3 + $0x1b8] sm:$0xff]   ;;  %6857 = vmatprep.subr.bf16.mxu0 %v7923_v0  ;;  %7865 = vmatprep.subr.bf16.mxu1 %v7923_v0  ;;  %v7926_v3 = vld [vmem:[%s10510_s3 + $0x1b0] sm:$0xff]   ;;  %v7928_v6 = vld [vmem:[%s10510_s3 + $0x1a8] sm:$0xff]   ;;  %vm390_vm1 = vsmask.f32 256  ;;  %s215_s25 = sand.u32 1, %s8119_s19  }
  0x15   : > { %6858 = vmatpush3.bf16.msra.mxu0 %v7924_v1  ;;  %7873 = vmatpush3.bf16.msra.mxu1 %v7924_v1  ;;  %s219_s15 = scalar_select %p218_p10, %s8184_s22, 1  ;;  %v7929_v7 = vld [vmem:[%s10510_s3 + $0x1e0] sm:$0xff]   ;;  %v265_v8 = vshrl.u32 %v264_v5, 7  ;;  %v7931_v10 = vld [vmem:[%s10510_s3 + $0x1d8] sm:$0xff]   ;;  %v7933_v13 = vld [vmem:[%s10510_s3 + $0x1d0] sm:$0xff]   ;;  %vm5925_vm6 = vcmask 523264  }
  0x16   : > { %6859 = vmatprep.subr.bf16.mxu0 %v7925_v2  ;;  %7866 = vmatprep.subr.bf16.mxu1 %v7925_v2  ;;  %v7930_v9 = vld [vmem:[%s10510_s3 + $0x1a0] sm:$0xff]   ;;  %v7932_v12 = vld [vmem:[%s10510_s3 + $0x198] sm:$0xff]   ;;  %v7934_v28 = vld [vmem:[%s10510_s3 + $0x190] sm:$0xff]   ;;  %vm425_vm4 = vsmask.f32 7424  ;;  %s6824_s7 = sshll.u32 %s8184_s22, 12 }
  0x17   : > { %s6791_s26 = sshll.u32 %s219_s15, 8  ;;  %v270_v11 = vsub.s32 1, %v265_v8  ;;  %v266_v14 = vsub.s32 0, %v265_v8  ;;  %v237_v15 = vld [vmem:[%s10508_s1] sm:$0x3]  ;;  %v7935_v33 = vld [vmem:[%s10510_s3 + $0x1c8] sm:$0xff]   ;;  %vm8345_vm2 = vmand %vm389_vm0, %vm390_vm1  ;;  %s10458_s12 = scalar_lea.hbm %s10512_s5, %s6824_s7 }
  0x18   : > { %s8243_s11 = scalar_lea.vmem %s10507_s0, %s6791_s26  ;;  %v238_v16 = vld [vmem:[%s10509_s2] sm:$0x3]  ;;  %v7936_v48 = vld [vmem:[%s10510_s3 + $0x188] sm:$0xff]   ;;  %vm9020_vm5 = vmand %vm424_vm3, %vm425_vm4  ;;  %s6038_s26 = sshll.u32 %s215_s25, 8 }
  0x19   : > { %6860 = vmatpush3.bf16.msra.mxu0 %v7926_v3  ;;  %7874 = vmatpush3.bf16.msra.mxu1 %v7926_v3  ;;  %v239_v17 = vld [vmem:[%s8243_s11] sm:$0xff]  ;;  %v240_v18 = vld [vmem:[%s8243_s11 + $0x8] sm:$0xff]  ;;  %v8259_v20 = vrot.slane %v237_v15, %v270_v11  ;;  %v8261_v21 = vrot.slane %v238_v16, %v270_v11  ;;  %v8269_v31 = vrot.slane %v237_v15, %v266_v14  ;;  %v8287_v46 = vld [vmem:[%s8243_s11 + $0x10] sm:$0xff]  ;;  %s10467_s22 = scalar_lea.sflag [#allocation4], %s215_s25  ;;  %s8130_s14 = smov [#allocation3]  }
  0x1a   : > { %6861 = vmatprep.subr.bf16.mxu0 %v7927_v4  ;;  %7867 = vmatprep.subr.bf16.mxu1 %v7927_v4  ;;  %v248_v19 = vunpack.c.h.bf16 %v239_v17  ;;  %v6097_v22 = vld [vmem:[%s8243_s11 + $0x80] sm:$0xff]  ;;  %v6098_v23 = vld [vmem:[%s8243_s11 + $0x88] sm:$0xff]  ;;  %v250_v24 = vunpack.c.h.bf16 %v240_v18  ;;  %v247_v27 = vunpack.c.l.bf16 %v239_v17  ;;  %v249_v30 = vunpack.c.l.bf16 %v240_v18  ;;  %v8290_v47 = vld [vmem:[%s8243_s11 + $0x18] sm:$0xff]  ;;  %s8071_s15 = sshll.u32 %s8130_s14, 4  ;;  %s8072_s15 = int_to_ptr.vmem [resolvable:$false] %s8071_s15 }
  0x1b   : > { %v904_v25 = vunpack.c.h.bf16 %v6097_v22  ;;  %v906_v26 = vunpack.c.h.bf16 %v6098_v23  ;;  %v8271_v32 = vrot.slane %v238_v16, %v266_v14  ;;  %v903_v37 = vunpack.c.l.bf16 %v6097_v22  ;;  %v8300_v53 = vld [vmem:[%s8243_s11 + $0x90] sm:$0xff]  ;;  %v7937_v54 = vld [vmem:[%s10510_s3 + $0x1c0] sm:$0xff]   ;;  %v8316_v62 = vld [vmem:[%s8243_s11 + $0x98] sm:$0xff]  ;;  %s8073_s16 = scalar_lea.vmem %s8072_s15, 8192 }
  0x1c   : > { %v275_v29 = vmul.f32 %v8259_v20, %v248_v19  ;;  %v277_v34 = vmul.f32 %v8259_v20, %v250_v24  ;;  %v274_v39 = vmul.f32 %v8269_v31, %v247_v27  ;;  %v276_v40 = vmul.f32 %v8269_v31, %v249_v30  ;;  %v7938_v4 = vld [vmem:[%s10510_s3 + $0x180] sm:$0xff]   ;;  %v7939_v11 = vld [vmem:[%s10510_s3 + $0x278] sm:$0xff]  }
  0x1d   : > { %6862 = vmatpush3.bf16.msra.mxu0 %v7928_v6  ;;  %7875 = vmatpush3.bf16.msra.mxu1 %v7928_v6  ;;  %v920_v35 = vmul.f32 %v904_v25, %v8259_v20  ;;  %v922_v36 = vmul.f32 %v906_v26, %v8259_v20  ;;  %v905_v41 = vunpack.c.l.bf16 %v6098_v23  ;;  %v919_v45 = vmul.f32 %v903_v37, %v8269_v31  ;;  %v7942_v23 = vld [vmem:[%s10510_s3 + $0x2b8] sm:$0xff]  }
  0x1e   : > { %6863 = vmatprep.subr.bf16.mxu0 %v7929_v7  ;;  %7868 = vmatprep.subr.bf16.mxu1 %v7929_v7  ;;  %v302_v38 = vadd.f32 %v8261_v21, %v275_v29  ;;  %v304_v42 = vadd.f32 %v8261_v21, %v277_v34  ;;  %v301_v49 = vadd.f32 %v8271_v32, %v274_v39  ;;  %v252_v52 = vunpack.c.h.bf16 %v8287_v46 }
  0x1f   : > { %v936_v43 = vadd.f32 %v920_v35, %v8261_v21  ;;  %v938_v44 = vadd.f32 %v922_v36, %v8261_v21  ;;  %v303_v50 = vadd.f32 %v8271_v32, %v276_v40  ;;  %v921_v51 = vmul.f32 %v905_v41, %v8269_v31 }
  0x20   : > { %v8305_v55 = vpack.c.bf16 %v304_v42, %v302_v38  ;;  %v935_v57 = vadd.f32 %v919_v45, %v8271_v32  ;;  %v254_v58 = vunpack.c.h.bf16 %v8290_v47  ;;  %v279_v61 = vmul.f32 %v8259_v20, %v252_v52  ;;  %v8396_v42 = vld [vmem:[%s8243_s11 + $0x20] sm:$0xff] }
  0x21   : > { %6864 = vmatpush3.bf16.msra.mxu0 %v7930_v9  ;;  %7876 = vmatpush3.bf16.msra.mxu1 %v7930_v9  ;;  %v8307_v56 = vpack.c.bf16 %v938_v44, %v936_v43  ;;  %v8311_v59 = vpack.c.bf16 %v303_v50, %v301_v49  ;;  %v937_v60 = vadd.f32 %v921_v51, %v8271_v32  ;;  %v908_v63 = vunpack.c.h.bf16 %v8300_v53 }
  0x22   : > { %6865 = vmatprep.subr.bf16.mxu0 %v7931_v10  ;;  %7869 = vmatprep.subr.bf16.mxu1 %v7931_v10  ;;  %10727 = vst [vmem:[#allocation6_spill] sm:$0xff] %v8305_v55  ;;  %v10548_v0 = vshrl.u32 %v8305_v55, 16  ;;  %v10549_v1 = vshll.u32 %v8305_v55, 16  ;;  %v281_v8 = vmul.f32 %v8259_v20, %v254_v58  ;;  %v910_v14 = vunpack.c.h.bf16 %v8316_v62 }
  0x23   : > { %10728 = vst [vmem:[#allocation7_spill] sm:$0xff] %v8307_v56  ;;  %10729 = vst [vmem:[#allocation8_spill] sm:$0xff] %v8311_v59  ;;  %v10523_v2 = vshrl.u32 %v8307_v56, 16  ;;  %v10524_v3 = vshll.u32 %v8307_v56, 16  ;;  %v10531_v5 = vshrl.u32 %v8311_v59, 16  ;;  %v10543_v6 = vshll.u32 %v8311_v59, 16 }
  0x24   : > { %v8328_v7 = vpack.c.bf16 %v937_v60, %v935_v57  ;;  %v335_v9 = vrot.slane %v10548_v0, 7  ;;  %v308_v24 = vadd.f32 %v8261_v21, %v281_v8  ;;  %v924_v25 = vmul.f32 %v908_v63, %v8259_v20  ;;  %v8424_v57 = vld [vmem:[%s8243_s11 + $0xa0] sm:$0xff]  ;;  %v7949_v63 = vld [vmem:[%s10510_s3 + $0x2e8] sm:$0xff]  }
  0x25   : > { %6866 = vmatpush3.bf16.msra.mxu0 %v7932_v12  ;;  %7877 = vmatpush3.bf16.msra.mxu1 %v7932_v12  ;;  %v969_v10 = vrot.slane %v10523_v2, 7  ;;  %v7941_v12 = vld [vmem:[%s10510_s3 + $0x2f8] sm:$0xff]   ;;  %v328_v16 = vrot.slane %v10531_v5, 7  ;;  %v926_v29 = vmul.f32 %v910_v14, %v8259_v20  ;;  %v251_v30 = vunpack.c.l.bf16 %v8287_v46  ;;  %v8670_v2 = vld [vmem:[%s8243_s11 + $0xc8] sm:$0xff] }
  0x26   : > { %6867 = vmatprep.subr.bf16.mxu0 %v7933_v13  ;;  %7870 = vmatprep.subr.bf16.mxu1 %v7933_v13  ;;  %10730 = vst [vmem:[#allocation9_spill] sm:$0xff] %v8328_v7  ;;  %v306_v13 = vadd.f32 %v8261_v21, %v279_v61  ;;  %v10518_v17 = vshrl.u32 %v8328_v7, 16  ;;  %v10521_v18 = vshll.u32 %v8328_v7, 16  ;;  %v338_v19 = vor.u32 %v10549_v1, %v335_v9 }
  0x27   : > { %v972_v22 = vor.u32 %v10524_v3, %v969_v10  ;;  %v331_v26 = vor.u32 %v10543_v6, %v328_v16  ;;  %v940_v37 = vadd.f32 %v924_v25, %v8261_v21  ;;  %v942_v40 = vadd.f32 %v926_v29, %v8261_v21 }
  0x28   : > { %v962_v27 = vrot.slane %v10518_v17, 7  ;;  %v8376_v34 = vsel %vm8345_vm2, 0, %v338_v19  ;;  %v8382_v36 = vpack.c.bf16 %v308_v24, %v306_v13  ;;  %v253_v41 = vunpack.c.l.bf16 %v8290_v47  ;;  %v7946_v47 = vld [vmem:[%s10510_s3 + $0x2b0] sm:$0xff]  }
  0x29   : > { %6868 = vmatpush3.bf16.msra.mxu0 %v7934_v28  ;;  %7878 = vmatpush3.bf16.msra.mxu1 %v7934_v28  ;;  %v7940_v28 = vld [vmem:[%s10510_s3 + $0x238] sm:$0xff]   ;;  %10733 = vst [vmem:[#allocation10_spill] sm:$0xff] %v8376_v34  ;;  %v8380_v35 = vsel %vm8345_vm2, 0, %v972_v22  ;;  %v8389_v38 = vsel %vm8345_vm2, 0, %v331_v26  ;;  %v278_v45 = vmul.f32 %v8269_v31, %v251_v30  ;;  %v907_v46 = vunpack.c.l.bf16 %v8300_v53  ;;  %v7944_v53 = vld [vmem:[%s10510_s3 + $0x230] sm:$0xff]   ;;  %v7950_v26 = vld [vmem:[%s10510_s3 + $0x2a8] sm:$0xff]  }
  0x2a   : > { %6869 = vmatprep.subr.bf16.mxu0 %v7935_v33  ;;  %7871 = vmatprep.subr.bf16.mxu1 %v7935_v33  ;;  %v7945_v33 = vld [vmem:[%s10510_s3 + $0x2f0] sm:$0xff]   ;;  %10734 = vst [vmem:[#allocation11_spill] sm:$0xff] %v8380_v35  ;;  %10735 = vst [vmem:[#allocation12_spill] sm:$0xff] %v8382_v36  ;;  %v965_v39 = vor.u32 %v10521_v18, %v962_v27  ;;  %v10529_v43 = vshrl.u32 %v8382_v36, 16  ;;  %v10538_v44 = vshll.u32 %v8382_v36, 16  ;;  %v909_v52 = vunpack.c.l.bf16 %v8316_v62 }
  0x2b   : > { %2707 = vmatprep.mubr.bf16.mxu0 %v8376_v34  ;;  %2771 = vmatprep.mubr.bf16.mxu1 %v8380_v35  ;;  %10736 = vst [vmem:[#allocation13_spill] sm:$0xff] %v8389_v38  ;;  %v8413_v50 = vpack.c.bf16 %v942_v40, %v940_v37  ;;  %v280_v51 = vmul.f32 %v8269_v31, %v253_v41  ;;  %v256_v62 = vunpack.c.h.bf16 %v8396_v42  ;;  %v912_v25 = vunpack.c.h.bf16 %v8424_v57  ;;  %v7953_v37 = vld [vmem:[%s10510_s3 + $0x2e0] sm:$0xff]  }
  0x2c   : > { %v8411_v49 = vsel %vm8345_vm2, 0, %v965_v39  ;;  %v349_v58 = vrot.slane %v10529_v43, 7  ;;  %v305_v60 = vadd.f32 %v8271_v32, %v278_v45  ;;  %v923_v61 = vmul.f32 %v907_v46, %v8269_v31 }
  0x2d   : > { %6870 = vmatpush3.bf16.msra.mxu0 %v7936_v48  ;;  %7879 = vmatpush3.bf16.msra.mxu1 %v7936_v48  ;;  %v7943_v48 = vld [vmem:[%s10510_s3 + $0x270] sm:$0xff]   ;;  %10737 = vst [vmem:[#allocation14_spill] sm:$0xff] %v8411_v49  ;;  %10738 = vst [vmem:[#allocation15_spill] sm:$0xff] %v8413_v50  ;;  %v10519_v8 = vshll.u32 %v8413_v50, 16  ;;  %v307_v9 = vadd.f32 %v8271_v32, %v280_v51  ;;  %v925_v10 = vmul.f32 %v909_v52, %v8269_v31  ;;  %v7951_v52 = vld [vmem:[%s10510_s3 + $0x260] sm:$0xff]  }
  0x2e   : > { %6871 = vmatprep.subr.bf16.mxu0 %v7937_v54  ;;  %7872 = vmatprep.subr.bf16.mxu1 %v7937_v54  ;;  %v8421_v54 = vld [vmem:[%s8243_s11 + $0x28] sm:$0xff]  ;;  %v352_v13 = vor.u32 %v10538_v44, %v349_v58  ;;  %v939_v14 = vadd.f32 %v923_v61, %v8271_v32  ;;  %v283_v19 = vmul.f32 %v8259_v20, %v256_v62  ;;  %v255_v51 = vunpack.c.l.bf16 %v8396_v42  ;;  %v7954_v42 = vld [vmem:[%s10510_s3 + $0x2a0] sm:$0xff]   ;;  %v7957_v62 = vld [vmem:[%s10510_s3 + $0x2d8] sm:$0xff]  }
  0x2f   : > { %v258_v16 = vunpack.c.h.bf16 %v8421_v54  ;;  %v941_v24 = vadd.f32 %v925_v10, %v8271_v32  ;;  %v1220_v5 = vunpack.c.h.bf16 %v8670_v2  ;;  %v6132_v44 = vld [vmem:[%s8243_s11 + $0xd8] sm:$0xff] }
  0x30   : > { %v8461_v27 = vsel %vm8345_vm2, 0, %v352_v13  ;;  %v310_v29 = vadd.f32 %v8261_v21, %v283_v19  ;;  %v911_v19 = vunpack.c.l.bf16 %v8424_v57  ;;  %v7955_v57 = vld [vmem:[%s10510_s3 + $0x258] sm:$0xff]  }
  0x31   : > { %6872 = vmatpush3.bf16.msra.mxu0 %v7938_v4  ;;  %7880 = vmatpush3.bf16.msra.mxu1 %v7938_v4  ;;  %v10517_v4 = vshrl.u32 %v8413_v50, 16  ;;  %10740 = vst [vmem:[#allocation17_spill] sm:$0xff] %v8461_v27  ;;  %v8477_v45 = vpack.c.bf16 %v941_v24, %v939_v14  ;;  %v7952_v24 = vld [vmem:[%s10510_s3 + $0x220] sm:$0xff]  }
  0x32   : > { %6969 = vmatprep.subr.bf16.mxu1 %v7939_v11  ;;  %7081 = vmatprep.subr.bf16.mxu0 %v7941_v12  ;;  %v8440_v11 = vld [vmem:[%s8243_s11 + $0xa8] sm:$0xff] }
  0x33   : > { %v7947_v12 = vld [vmem:[%s10510_s3 + $0x268] sm:$0xff]   ;;  %v983_v22 = vrot.slane %v10517_v4, 7  ;;  %v914_v30 = vunpack.c.h.bf16 %v8440_v11  ;;  %10741 = vst [vmem:[#allocation18_spill] sm:$0xff] %v8477_v45  ;;  %v10515_v61 = vshll.u32 %v8477_v45, 16 }
  0x34   : > { %2708 = vmatmul.mubr.bf16.vlgmr.msra.gmra.mxu0 %v8389_v38  ;;  %2772 = vmatmul.mubr.bf16.vlgmr.msra.gmra.mxu1 %v8411_v49 }
  0x35   : > { %7082 = vmatpush3.bf16.msra.mxu0 %v7942_v23  ;;  %6970 = vmatpush3.bf16.msra.mxu1 %v7940_v28  ;;  %v8452_v23 = vpack.c.bf16 %v307_v9, %v305_v60  ;;  %v285_v28 = vmul.f32 %v8259_v20, %v258_v16  ;;  %v986_v39 = vor.u32 %v10519_v8, %v983_v22  ;;  %v10513_v60 = vshrl.u32 %v8477_v45, 16  ;;  %v8513_v22 = vld [vmem:[%s8243_s11 + $0x30] sm:$0xff]  ;;  %v7966_v8 = vld [vmem:[%s10510_s3 + $0x288] sm:$0xff]  }
  0x36   : > { %7083 = vmatprep.subr.bf16.mxu0 %v7945_v33  ;;  %6971 = vmatprep.subr.bf16.mxu1 %v7943_v48  ;;  %v7948_v33 = vld [vmem:[%s10510_s3 + $0x228] sm:$0xff]   ;;  %v928_v48 = vmul.f32 %v912_v25, %v8259_v20  ;;  %v282_v16 = vmul.f32 %v8269_v31, %v255_v51  ;;  %v259_v4 = vunpack.c.l.bf16 %v8513_v22 }
  0x37   : > { %10739 = vst [vmem:[#allocation16_spill] sm:$0xff] %v8452_v23  ;;  %2715 = vmatprep.mubr.bf16.mxu0 %v8461_v27  ;;  %v10526_v40 = vshrl.u32 %v8452_v23, 16  ;;  %v10528_v41 = vshll.u32 %v8452_v23, 16  ;;  %v312_v46 = vadd.f32 %v8261_v21, %v285_v28  ;;  %v8488_v58 = vsel %vm8345_vm2, 0, %v986_v39 }
  0x38   : > { %10742 = vst [vmem:[#allocation19_spill] sm:$0xff] %v8488_v58  ;;  %2779 = vmatprep.mubr.bf16.mxu1 %v8488_v58  ;;  %v944_v9 = vadd.f32 %v928_v48, %v8261_v21  ;;  %v976_v14 = vrot.slane %v10513_v60, 7  ;;  %v309_v39 = vadd.f32 %v8271_v32, %v282_v16  ;;  %v7958_v48 = vld [vmem:[%s10510_s3 + $0x298] sm:$0xff]   ;;  %v286_v17 = vmul.f32 %v8269_v31, %v259_v4  ;;  %v7964_v4 = vld [vmem:[%s10510_s3 + $0x208] sm:$0xff]  }
  0x39   : > { %7084 = vmatpush3.bf16.msra.mxu0 %v7946_v47  ;;  %6972 = vmatpush3.bf16.msra.mxu1 %v7944_v53  ;;  %v930_v47 = vmul.f32 %v914_v30, %v8259_v20  ;;  %v342_v53 = vrot.slane %v10526_v40, 7  ;;  %v8527_v30 = vld [vmem:[%s8243_s11 + $0xb0] sm:$0xff]  ;;  %v8891_v58 = vld [vmem:[%s8243_s11 + $0x78] sm:$0xff] }
  0x3a   : > { %7085 = vmatprep.subr.bf16.mxu0 %v7949_v63  ;;  %6973 = vmatprep.subr.bf16.mxu1 %v7947_v12  ;;  %v8501_v63 = vpack.c.bf16 %v312_v46, %v310_v29  ;;  %v257_v12 = vunpack.c.l.bf16 %v8421_v54  ;;  %v8524_v29 = vld [vmem:[%s8243_s11 + $0x38] sm:$0xff]  ;;  %v913_v46 = vunpack.c.l.bf16 %v8440_v11 }
  0x3b   : > { %v946_v10 = vadd.f32 %v930_v47, %v8261_v21  ;;  %v345_v13 = vor.u32 %v10528_v41, %v342_v53  ;;  %v7956_v11 = vld [vmem:[%s10510_s3 + $0x218] sm:$0xff]  }
  0x3c   : > { %10743 = vst [vmem:[#allocation20_spill] sm:$0xff] %v8501_v63  ;;  %v10525_v54 = vshrl.u32 %v8501_v63, 16  ;;  %v10527_v25 = vshll.u32 %v8501_v63, 16  ;;  %v284_v28 = vmul.f32 %v8269_v31, %v257_v12  ;;  %v929_v12 = vmul.f32 %v913_v46, %v8269_v31 }
  0x3d   : > { %7086 = vmatpush3.bf16.msra.mxu0 %v7950_v26  ;;  %6974 = vmatpush3.bf16.msra.mxu1 %v7948_v33  ;;  %v8520_v26 = vpack.c.bf16 %v946_v10, %v944_v9  ;;  %v8534_v33 = vsel %vm8345_vm2, 0, %v345_v13  ;;  %v8550_v9 = vld [vmem:[%s8243_s11 + $0xb8] sm:$0xff]  ;;  %v927_v10 = vmul.f32 %v911_v19, %v8269_v31  ;;  %v260_v13 = vunpack.c.h.bf16 %v8513_v22 }
  0x3e   : > { %7087 = vmatprep.subr.bf16.mxu0 %v7953_v37  ;;  %6975 = vmatprep.subr.bf16.mxu1 %v7951_v52  ;;  %10745 = vst [vmem:[#allocation22_spill] sm:$0xff] %v8534_v33  ;;  %v979_v37 = vor.u32 %v10515_v61, %v976_v14  ;;  %v363_v47 = vrot.slane %v10525_v54, 7  ;;  %v311_v53 = vadd.f32 %v8271_v32, %v284_v28  ;;  %v7961_v14 = vld [vmem:[%s10510_s3 + $0x2d0] sm:$0xff]   ;;  %v262_v19 = vunpack.c.h.bf16 %v8524_v29 }
  0x3f   : > { %10744 = vst [vmem:[#allocation21_spill] sm:$0xff] %v8520_v26  ;;  %2716 = vmatmul.mubr.bf16.gmra.mxu0 %v8534_v33  ;;  %v10514_v51 = vshrl.u32 %v8520_v26, 16  ;;  %v10516_v52 = vshll.u32 %v8520_v26, 16  ;;  %v945_v46 = vadd.f32 %v929_v12, %v8271_v32  ;;  %v287_v60 = vmul.f32 %v8259_v20, %v260_v13  ;;  %v7960_v13 = vld [vmem:[%s10510_s3 + $0x210] sm:$0xff]  }
  0x40   : > { %v8570_v28 = vpack.c.bf16 %v311_v53, %v309_v39  ;;  %v7962_v39 = vld [vmem:[%s10510_s3 + $0x290] sm:$0xff]   ;;  %v918_v61 = vunpack.c.h.bf16 %v8550_v9 }
  0x41   : > { %7088 = vmatpush3.bf16.msra.mxu0 %v7954_v42  ;;  %v8557_v42 = vsel %vm8345_vm2, 0, %v979_v37  ;;  %6976 = vmatpush3.bf16.msra.mxu1 %v7952_v24  ;;  %v997_v16 = vrot.slane %v10514_v51, 7  ;;  %v7959_v24 = vld [vmem:[%s10510_s3 + $0x250] sm:$0xff]   ;;  %v943_v37 = vadd.f32 %v927_v10, %v8271_v32  ;;  %v289_v51 = vmul.f32 %v8259_v20, %v262_v19  ;;  %v7963_v19 = vld [vmem:[%s10510_s3 + $0x248] sm:$0xff]  }
  0x42   : > { %7089 = vmatprep.subr.bf16.mxu0 %v7957_v62  ;;  %10746 = vst [vmem:[#allocation23_spill] sm:$0xff] %v8557_v42  ;;  %2780 = vmatmul.mubr.bf16.gmra.mxu1 %v8557_v42  ;;  %v366_v62 = vor.u32 %v10527_v25, %v363_v47  ;;  %10747 = vst [vmem:[#allocation24_spill] sm:$0xff] %v8570_v28  ;;  %v916_v47 = vunpack.c.h.bf16 %v8527_v30  ;;  %v10537_v10 = vshrl.u32 %v8570_v28, 16  ;;  %v10542_v12 = vshll.u32 %v8570_v28, 16 }
  0x43   : > { %6977 = vmatprep.subr.bf16.mxu1 %v7955_v57  ;;  %v1000_v53 = vor.u32 %v10516_v52, %v997_v16  ;;  %v934_v22 = vmul.f32 %v918_v61, %v8259_v20 }
  0x44   : > { %v8585_v57 = vsel %vm8345_vm2, 0, %v366_v62  ;;  %v314_v62 = vadd.f32 %v8261_v21, %v287_v60  ;;  %v356_v52 = vrot.slane %v10537_v10, 7  ;;  %v7965_v60 = vld [vmem:[%s10510_s3 + $0x2c8] sm:$0xff]   ;;  %v6131_v10 = vld [vmem:[%s8243_s11 + $0xd0] sm:$0xff] }
  0x45   : > { %7090 = vmatpush3.bf16.msra.mxu0 %v7958_v48  ;;  %10748 = vst [vmem:[#allocation25_spill] sm:$0xff] %v8585_v57  ;;  %2723 = vmatprep.mubr.bf16.mxu0 %v8585_v57  ;;  %v8595_v48 = vpack.c.bf16 %v945_v46, %v943_v37  ;;  %v8602_v16 = vsel %vm8345_vm2, 0, %v1000_v53  ;;  %v316_v46 = vadd.f32 %v8261_v21, %v289_v51  ;;  %v261_v53 = vunpack.c.l.bf16 %v8524_v29  ;;  %v8637_v29 = vld [vmem:[%s8243_s11 + $0x48] sm:$0xff] }
  0x46   : > { %7091 = vmatprep.subr.bf16.mxu0 %v7961_v14  ;;  %6978 = vmatpush3.bf16.msra.mxu1 %v7956_v11  ;;  %10750 = vst [vmem:[#allocation27_spill] sm:$0xff] %v8602_v16  ;;  %v932_v14 = vmul.f32 %v916_v47, %v8259_v20  ;;  %v592_v40 = vunpack.c.h.bf16 %v8637_v29  ;;  %v1222_v6 = vunpack.c.h.bf16 %v6131_v10  ;;  %v1221_v0 = vunpack.c.l.bf16 %v6131_v10 }
  0x47   : > { %10749 = vst [vmem:[#allocation26_spill] sm:$0xff] %v8595_v48  ;;  %6979 = vmatprep.subr.bf16.mxu1 %v7959_v24  ;;  %2787 = vmatprep.mubr.bf16.mxu1 %v8602_v16  ;;  %v10520_v11 = vshrl.u32 %v8595_v48, 16  ;;  %v10522_v37 = vshll.u32 %v8595_v48, 16  ;;  %v359_v24 = vor.u32 %v10542_v12, %v356_v52  ;;  %v8629_v61 = vpack.c.bf16 %v316_v46, %v314_v62 }
  0x48   : > { %v948_v47 = vadd.f32 %v932_v14, %v8261_v21  ;;  %v915_v52 = vunpack.c.l.bf16 %v8527_v30  ;;  %v8634_v14 = vld [vmem:[%s8243_s11 + $0x40] sm:$0xff]  ;;  %v288_v62 = vmul.f32 %v8269_v31, %v261_v53  ;;  %v313_v46 = vadd.f32 %v8271_v32, %v286_v17 }
  0x49   : > { %7092 = vmatpush3.bf16.msra.mxu0 %v7962_v39  ;;  %v990_v51 = vrot.slane %v10520_v11, 7  ;;  %10751 = vst [vmem:[#allocation28_spill] sm:$0xff] %v8629_v61  ;;  %v950_v39 = vadd.f32 %v934_v22, %v8261_v21  ;;  %v917_v30 = vunpack.c.l.bf16 %v8550_v9  ;;  %v8650_v22 = vld [vmem:[%s8243_s11 + $0xc0] sm:$0xff]  ;;  %v10536_v11 = vshrl.u32 %v8629_v61, 16 }
  0x4a   : > { %7093 = vmatprep.subr.bf16.mxu0 %v7965_v60  ;;  %6980 = vmatpush3.bf16.msra.mxu1 %v7960_v13  ;;  %v8644_v60 = vsel %vm8345_vm2, 0, %v359_v24  ;;  %v10541_v24 = vshll.u32 %v8629_v61, 16  ;;  %v7967_v17 = vld [vmem:[%s10510_s3 + $0x240] sm:$0xff]   ;;  %v931_v53 = vmul.f32 %v915_v52, %v8269_v31  ;;  %v1218_v43 = vunpack.c.h.bf16 %v8650_v22 }
  0x4b   : > { %10752 = vst [vmem:[#allocation29_spill] sm:$0xff] %v8644_v60  ;;  %6981 = vmatprep.subr.bf16.mxu1 %v7963_v19  ;;  %2724 = vmatmul.mubr.bf16.gmra.mxu0 %v8644_v60  ;;  %v993_v13 = vor.u32 %v10522_v37, %v990_v51  ;;  %v8657_v18 = vpack.c.bf16 %v950_v39, %v948_v47  ;;  %v7968_v9 = vld [vmem:[%s10510_s3 + $0x200] sm:$0xff]   ;;  %v590_v37 = vunpack.c.h.bf16 %v8634_v14  ;;  %v377_v39 = vrot.slane %v10536_v11, 7 }
  0x4c   : > { %v315_v19 = vadd.f32 %v8271_v32, %v288_v62  ;;  %v933_v51 = vmul.f32 %v917_v30, %v8269_v31  ;;  %v7969_v52 = vld [vmem:[%s10510_s3 + $0x2c0] sm:$0xff]   ;;  %v1223_v10 = vunpack.c.l.bf16 %v6132_v44 }
  0x4d   : > { %10753 = vst [vmem:[#allocation30_spill] sm:$0xff] %v8657_v18  ;;  %7094 = vmatpush3.bf16.msra.mxu0 %v7966_v8  ;;  %v8674_v47 = vsel %vm8345_vm2, 0, %v993_v13  ;;  %v10530_v3 = vshrl.u32 %v8657_v18, 16  ;;  %v10532_v62 = vshll.u32 %v8657_v18, 16  ;;  %v7970_v8 = vld [vmem:[%s10510_s3 + $0x280] sm:$0xff]   ;;  %v947_v13 = vadd.f32 %v931_v53, %v8271_v32 }
  0x4e   : > { %10754 = vst [vmem:[#allocation31_spill] sm:$0xff] %v8674_v47  ;;  %6982 = vmatpush3.bf16.msra.mxu1 %v7964_v4  ;;  %v8687_v30 = vpack.c.bf16 %v315_v19, %v313_v46  ;;  %v949_v54 = vadd.f32 %v933_v51, %v8271_v32  ;;  %v380_v4 = vor.u32 %v10541_v24, %v377_v39  ;;  %v7971_v46 = vld [vmem:[%s10510_s3 + $0x78] sm:$0xff]  }
  0x4f   : > { %2788 = vmatmul.mubr.bf16.gmra.mxu1 %v8674_v47  ;;  %6983 = vmatprep.subr.bf16.mxu1 %v7967_v17  ;;  %v1011_v25 = vrot.slane %v10530_v3, 7  ;;  %v606_v41 = vmul.f32 %v590_v37, %v8259_v20  ;;  %v608_v51 = vmul.f32 %v592_v40, %v8259_v20  ;;  %v7973_v37 = vld [vmem:[%s10510_s3 + $0xf8] sm:$0xff]  }
  0x50   : > { %10755 = vst [vmem:[#allocation32_spill] sm:$0xff] %v8687_v30  ;;  %7095 = vmatprep.subr.bf16.mxu0 %v7969_v52  ;;  %v10533_v19 = vshrl.u32 %v8687_v30, 16  ;;  %v10540_v53 = vshll.u32 %v8687_v30, 16  ;;  %v8703_v17 = vpack.c.bf16 %v949_v54, %v947_v13  ;;  %v8711_v39 = vsel %vm8345_vm2, 0, %v380_v4 }
  0x51   : > { %7096 = vmatpush3.bf16.msra.mxu0 %v7970_v8  ;;  %10757 = vst [vmem:[#allocation34_spill] sm:$0xff] %v8711_v39  ;;  %v1014_v52 = vor.u32 %v10532_v62, %v1011_v25  ;;  %v622_v3 = vadd.f32 %v606_v41, %v8261_v21  ;;  %2731 = vmatprep.mubr.bf16.mxu0 %v8711_v39  ;;  %v589_v4 = vunpack.c.l.bf16 %v8634_v14  ;;  %v10837_v39 = vshrl.u32 %v8657_v18, 16 }
  0x52   : > { %10756 = vst [vmem:[#allocation33_spill] sm:$0xff] %v8703_v17  ;;  %6984 = vmatpush3.bf16.msra.mxu1 %v7968_v9  ;;  %v370_v40 = vrot.slane %v10533_v19, 7  ;;  %v10534_v54 = vshrl.u32 %v8703_v17, 16  ;;  %v10535_v8 = vshll.u32 %v8703_v17, 16  ;;  %v624_v13 = vadd.f32 %v608_v51, %v8261_v21  ;;  %7305 = vmatprep.subr.bf16.mxu0 %v7973_v37  ;;  %v6067_v19 = vld [vmem:[%s8243_s11 + $0x50] sm:$0xff] }
  0x53   : > { %7193 = vmatprep.subr.bf16.mxu1 %v7971_v46  ;;  %v8725_v25 = vsel %vm8345_vm2, 0, %v1014_v52  ;;  %v1234_v41 = vmul.f32 %v1218_v43, %v8259_v20  ;;  %v1236_v9 = vmul.f32 %v1220_v5, %v8259_v20  ;;  %v591_v52 = vunpack.c.l.bf16 %v8637_v29 }
  0x54   : > { %10758 = vst [vmem:[#allocation35_spill] sm:$0xff] %v8725_v25  ;;  %2795 = vmatprep.mubr.bf16.mxu1 %v8725_v25  ;;  %v373_v62 = vor.u32 %v10540_v53, %v370_v40  ;;  %v1004_v46 = vrot.slane %v10534_v54, 7  ;;  %v8735_v51 = vpack.c.bf16 %v624_v13, %v622_v3  ;;  %v605_v14 = vmul.f32 %v589_v4, %v8269_v31 }
  0x55   : > { %v1250_v43 = vadd.f32 %v1234_v41, %v8261_v21  ;;  %v1252_v5 = vadd.f32 %v1236_v9, %v8261_v21  ;;  %v1217_v37 = vunpack.c.l.bf16 %v8650_v22  ;;  %v6068_v41 = vld [vmem:[%s8243_s11 + $0x58] sm:$0xff]  ;;  %v607_v4 = vmul.f32 %v591_v52, %v8269_v31 }
  0x56   : > { %10759 = vst [vmem:[#allocation36_spill] sm:$0xff] %v8735_v51  ;;  %v8745_v40 = vsel %vm8345_vm2, 0, %v373_v62  ;;  %v1007_v3 = vor.u32 %v10535_v8, %v1004_v46  ;;  %v10539_v29 = vshrl.u32 %v8735_v51, 16  ;;  %v10545_v13 = vshll.u32 %v8735_v51, 16 }
  0x57   : > { %10760 = vst [vmem:[#allocation37_spill] sm:$0xff] %v8745_v40  ;;  %2732 = vmatmul.mubr.bf16.gmra.mxu0 %v8745_v40  ;;  %v8753_v9 = vpack.c.bf16 %v1252_v5, %v1250_v43  ;;  %v621_v22 = vadd.f32 %v605_v14, %v8271_v32  ;;  %v1219_v54 = vunpack.c.l.bf16 %v8670_v2  ;;  %v1233_v8 = vmul.f32 %v1217_v37, %v8269_v31 }
  0x58   : > { %v8760_v62 = vsel %vm8345_vm2, 0, %v1007_v3  ;;  %v655_v46 = vrot.slane %v10539_v29, 7  ;;  %v594_v11 = vunpack.c.h.bf16 %v6067_v19  ;;  %v623_v2 = vadd.f32 %v607_v4, %v8271_v32 }
  0x59   : > { %10761 = vst [vmem:[#allocation38_spill] sm:$0xff] %v8753_v9  ;;  %10762 = vst [vmem:[#allocation39_spill] sm:$0xff] %v8760_v62  ;;  %2796 = vmatmul.mubr.bf16.gmra.mxu1 %v8760_v62  ;;  %v10544_v52 = vshrl.u32 %v8753_v9, 16  ;;  %v10546_v43 = vshll.u32 %v8753_v9, 16  ;;  %v1235_v5 = vmul.f32 %v1219_v54, %v8269_v31  ;;  %v1249_v3 = vadd.f32 %v1233_v8, %v8271_v32  ;;  %v6134_v62 = vld [vmem:[%s8243_s11 + $0xe8] sm:$0xff] }
  0x5a   : > { %v658_v14 = vor.u32 %v10545_v13, %v655_v46  ;;  %v596_v29 = vunpack.c.h.bf16 %v6068_v41  ;;  %v610_v37 = vmul.f32 %v594_v11, %v8259_v20  ;;  %v8778_v24 = vpack.c.bf16 %v623_v2, %v621_v22 }
  0x5b   : > { %v1283_v53 = vrot.slane %v10544_v52, 7  ;;  %v1251_v12 = vadd.f32 %v1235_v5, %v8271_v32  ;;  %v1224_v8 = vunpack.c.h.bf16 %v6132_v44  ;;  %v593_v13 = vunpack.c.l.bf16 %v6067_v19 }
  0x5c   : > { %10763 = vst [vmem:[#allocation40_spill] sm:$0xff] %v8778_v24  ;;  %v8783_v4 = vsel %vm8345_vm2, 0, %v658_v14  ;;  %v612_v54 = vmul.f32 %v596_v29, %v8259_v20  ;;  %v626_v46 = vadd.f32 %v610_v37, %v8261_v21  ;;  %v10547_v22 = vshrl.u32 %v8778_v24, 16 }
  0x5d   : > { %10764 = vst [vmem:[#allocation41_spill] sm:$0xff] %v8783_v4  ;;  %2739 = vmatprep.mubr.bf16.mxu0 %v8783_v4  ;;  %v1286_v11 = vor.u32 %v10546_v43, %v1283_v53  ;;  %v10551_v2 = vshll.u32 %v8778_v24, 16  ;;  %v8792_v5 = vpack.c.bf16 %v1251_v12, %v1249_v3  ;;  %v1238_v14 = vmul.f32 %v1222_v6, %v8259_v20 }
  0x5e   : > { %v628_v52 = vadd.f32 %v612_v54, %v8261_v21  ;;  %v1240_v29 = vmul.f32 %v1224_v8, %v8259_v20  ;;  %v648_v53 = vrot.slane %v10547_v22, 7  ;;  %v595_v54 = vunpack.c.l.bf16 %v6068_v41 }
  0x5f   : > { %10765 = vst [vmem:[#allocation42_spill] sm:$0xff] %v8792_v5  ;;  %v8799_v37 = vsel %vm8345_vm2, 0, %v1286_v11  ;;  %v10550_v43 = vshrl.u32 %v8792_v5, 16  ;;  %v10552_v12 = vshll.u32 %v8792_v5, 16  ;;  %v1254_v6 = vadd.f32 %v1238_v14, %v8261_v21 }
  0x60   : > { %10766 = vst [vmem:[#allocation43_spill] sm:$0xff] %v8799_v37  ;;  %2803 = vmatprep.mubr.bf16.mxu1 %v8799_v37  ;;  %v8806_v3 = vpack.c.bf16 %v628_v52, %v626_v46  ;;  %v1256_v19 = vadd.f32 %v1240_v29, %v8261_v21  ;;  %v651_v8 = vor.u32 %v10551_v2, %v648_v53  ;;  %v6069_v29 = vld [vmem:[%s8243_s11 + $0x60] sm:$0xff]  ;;  %v10833_v4 = vshll.u32 %v8657_v18, 16 }
  0x61   : > { %v1276_v11 = vrot.slane %v10550_v43, 7  ;;  %v609_v22 = vmul.f32 %v593_v13, %v8269_v31  ;;  %v611_v14 = vmul.f32 %v595_v54, %v8269_v31  ;;  %v6070_v43 = vld [vmem:[%s8243_s11 + $0x68] sm:$0xff]  ;;  %v6133_v2 = vld [vmem:[%s8243_s11 + $0xe0] sm:$0xff]  ;;  %v1237_v44 = vmul.f32 %v1221_v0, %v8269_v31 }
  0x62   : > { %10767 = vst [vmem:[#allocation44_spill] sm:$0xff] %v8806_v3  ;;  %v10553_v1 = vshrl.u32 %v8806_v3, 16  ;;  %v10562_v52 = vshll.u32 %v8806_v3, 16  ;;  %v8817_v46 = vpack.c.bf16 %v1256_v19, %v1254_v6  ;;  %v8823_v41 = vsel %vm8345_vm2, 0, %v651_v8 }
  0x63   : > { %10769 = vst [vmem:[#allocation46_spill] sm:$0xff] %v8823_v41  ;;  %v1279_v53 = vor.u32 %v10552_v12, %v1276_v11  ;;  %v625_v13 = vadd.f32 %v609_v22, %v8271_v32  ;;  %2740 = vmatmul.mubr.bf16.gmra.mxu0 %v8823_v41  ;;  %v627_v8 = vadd.f32 %v611_v14, %v8271_v32  ;;  %v598_v12 = vunpack.c.h.bf16 %v6069_v29 }
  0x64   : > { %10768 = vst [vmem:[#allocation45_spill] sm:$0xff] %v8817_v46  ;;  %v669_v6 = vrot.slane %v10553_v1, 7  ;;  %v10563_v19 = vshrl.u32 %v8817_v46, 16  ;;  %v1239_v22 = vmul.f32 %v1223_v10, %v8269_v31  ;;  %v600_v14 = vunpack.c.h.bf16 %v6070_v43 }
  0x65   : > { %v8838_v11 = vsel %vm8345_vm2, 0, %v1279_v53  ;;  %v8847_v37 = vpack.c.bf16 %v627_v8, %v625_v13  ;;  %v1253_v53 = vadd.f32 %v1237_v44, %v8271_v32  ;;  %v614_v0 = vmul.f32 %v598_v12, %v8259_v20 }
  0x66   : > { %10770 = vst [vmem:[#allocation47_spill] sm:$0xff] %v8838_v11  ;;  %2804 = vmatmul.mubr.bf16.gmra.mxu1 %v8838_v11  ;;  %v672_v1 = vor.u32 %v10562_v52, %v669_v6  ;;  %v1297_v54 = vrot.slane %v10563_v19, 7  ;;  %v1255_v25 = vadd.f32 %v1239_v22, %v8271_v32  ;;  %v1226_v10 = vunpack.c.h.bf16 %v6133_v2 }
  0x67   : > { %10771 = vst [vmem:[#allocation48_spill] sm:$0xff] %v8847_v37  ;;  %v10773_v6 = vshll.u32 %v8817_v46, 16  ;;  %v10566_v19 = vshrl.u32 %v8847_v37, 16  ;;  %v616_v44 = vmul.f32 %v600_v14, %v8259_v20  ;;  %v630_v12 = vadd.f32 %v614_v0, %v8261_v21 }
  0x68   : > { %v8855_v11 = vsel %vm8345_vm2, 0, %v672_v1  ;;  %v8862_v8 = vpack.c.bf16 %v1255_v25, %v1253_v53  ;;  %v1228_v22 = vunpack.c.h.bf16 %v6134_v62  ;;  %v597_v13 = vunpack.c.l.bf16 %v6069_v29 }
  0x69   : > { %10772 = vst [vmem:[#allocation49_spill] sm:$0xff] %v8855_v11  ;;  %v1300_v52 = vor.u32 %v10773_v6, %v1297_v54  ;;  %2747 = vmatprep.mubr.bf16.mxu0 %v8855_v11  ;;  %v662_v54 = vrot.slane %v10566_v19, 7  ;;  %v1242_v6 = vmul.f32 %v1226_v10, %v8259_v20  ;;  %v632_v53 = vadd.f32 %v616_v44, %v8261_v21 }
  0x6a   : > { %10774 = vst [vmem:[#allocation50_spill] sm:$0xff] %v8862_v8  ;;  %v10575_v25 = vshrl.u32 %v8862_v8, 16  ;;  %v1244_v0 = vmul.f32 %v1228_v22, %v8259_v20  ;;  %v10776_v47 = vshll.u32 %v8847_v37, 16  ;;  %v599_v16 = vunpack.c.l.bf16 %v6070_v43 }
  0x6b   : > { %v8868_v1 = vsel %vm8345_vm2, 0, %v1300_v52  ;;  %v8879_v52 = vld [vmem:[%s8243_s11 + $0x70] sm:$0xff]  ;;  %v1258_v10 = vadd.f32 %v1242_v6, %v8261_v21  ;;  %v613_v29 = vmul.f32 %v597_v13, %v8269_v31  ;;  %v8887_v42 = vpack.c.bf16 %v632_v53, %v630_v12  ;;  %v6136_v53 = vld [vmem:[%s8243_s11 + $0xf8] sm:$0xff] }
  0x6c   : > { %10775 = vst [vmem:[#allocation51_spill] sm:$0xff] %v8868_v1  ;;  %2811 = vmatprep.mubr.bf16.mxu1 %v8868_v1  ;;  %v665_v19 = vor.u32 %v10776_v47, %v662_v54  ;;  %v1290_v1 = vrot.slane %v10575_v25, 7  ;;  %v1260_v44 = vadd.f32 %v1244_v0, %v8261_v21  ;;  %v1225_v14 = vunpack.c.l.bf16 %v6133_v2  ;;  %v8900_v13 = vld [vmem:[%s8243_s11 + $0xf0] sm:$0xff]  ;;  %s10298_s11 = scalar_lea.vmem [#allocation3], %s6038_s26 }
  0x6d   : > { %10777 = vst [vmem:[#allocation52_spill] sm:$0xff] %v8887_v42  ;;  %v615_v47 = vmul.f32 %v599_v16, %v8269_v31  ;;  %v629_v43 = vadd.f32 %v613_v29, %v8271_v32  ;;  %v1227_v54 = vunpack.c.l.bf16 %v6134_v62  ;;  %v10779_v12 = vshll.u32 %v8862_v8, 16  ;;  %s5972_s8 = sshll.u32 %s10298_s11, 4  ;;  %s10460_s8 = int_to_ptr.vmem [resolvable:$true] %s5972_s8 }
  0x6e   : > { %v8895_v22 = vsel %vm8345_vm2, 0, %v665_v19  ;;  %v10578_v2 = vshrl.u32 %v8887_v42, 16  ;;  %v8907_v0 = vpack.c.bf16 %v1260_v44, %v1258_v10  ;;  %v1241_v16 = vmul.f32 %v1225_v14, %v8269_v31  ;;  %s8067_s13 = scalar_lea.vmem %s10460_s8, 4096  ;;  %p8074_p0 = scmp.lt.s32.totalorder %s10460_s8, %s8072_s15 }
  0x6f   : > { %10778 = vst [vmem:[#allocation53_spill] sm:$0xff] %v8895_v22  ;;  %2748 = vmatmul.mubr.bf16.gmra.mxu0 %v8895_v22  ;;  %v1293_v6 = vor.u32 %v10779_v12, %v1290_v1  ;;  %v631_v19 = vadd.f32 %v615_v47, %v8271_v32  ;;  %v1243_v62 = vmul.f32 %v1227_v54, %v8269_v31  ;;  %v602_v29 = vunpack.c.h.bf16 %v8879_v52  ;;  %p8068_p11 = scmp.ne.s32.totalorder %s10460_s8, %s8067_s13  ;;  %p8075_p1 = scmp.lt.s32.totalorder %s8073_s16, %s8067_s13 }
  0x70   : > { %10780 = vst [vmem:[#allocation54_spill] sm:$0xff] %v8907_v0  ;;  %v683_v1 = vrot.slane %v10578_v2, 7  ;;  %v10583_v12 = vshrl.u32 %v8907_v0, 16  ;;  %v1257_v14 = vadd.f32 %v1241_v16, %v8271_v32  ;;  %v604_v54 = vunpack.c.h.bf16 %v8891_v58 }
  0x71   : > { %v8915_v25 = vsel %vm8345_vm2, 0, %v1293_v6  ;;  %v8922_v44 = vpack.c.bf16 %v631_v19, %v629_v43  ;;  %v1259_v47 = vadd.f32 %v1243_v62, %v8271_v32  ;;  %v10783_v6 = vshll.u32 %v8887_v42, 16  ;;  %p8069_p12 = pnand %p8068_p11, %p8201_p5  ;;  %p8076_p2 = por %p8075_p1, %p8074_p0 }
  0x72   : > { %10781 = vst [vmem:[#allocation55_spill] sm:$0xff] %v8915_v25  ;;  %2812 = vmatmul.mubr.bf16.gmra.mxu1 %v8915_v25  ;;  %v1311_v2 = vrot.slane %v10583_v12, 7  ;;  %v618_v35 = vmul.f32 %v602_v29, %v8259_v20  ;;  %v1230_v10 = vunpack.c.h.bf16 %v8900_v13  ;;  %v620_v62 = vmul.f32 %v604_v54, %v8259_v20 }
  0x73   : > { %10782 = vst [vmem:[#allocation56_spill] sm:$0xff] %v8922_v44  ;;  %v686_v49 = vor.u32 %v10783_v6, %v683_v1  ;;  %v10586_v43 = vshrl.u32 %v8922_v44, 16  ;;  %v10589_v19 = vshll.u32 %v8922_v44, 16  ;;  %v8936_v16 = vpack.c.bf16 %v1259_v47, %v1257_v14  ;;  %p8070_p13 = pneg %p8069_p12 }
  0x74   : > { %v10786_v1 = vshll.u32 %v8907_v0, 16  ;;  %v634_v12 = vadd.f32 %v618_v35, %v8261_v21  ;;  %v1232_v29 = vunpack.c.h.bf16 %v6136_v53  ;;  %v636_v54 = vadd.f32 %v620_v62, %v8261_v21 }
  0x75   : > { %10784 = vst [vmem:[#allocation57_spill] sm:$0xff] %v8936_v16  ;;  %v8941_v25 = vsel %vm8345_vm2, 0, %v686_v49  ;;  %v676_v22 = vrot.slane %v10586_v43, 7  ;;  %v10591_v14 = vshrl.u32 %v8936_v16, 16  ;;  %v10822_v15 = vshll.u32 %v8887_v42, 16  ;;  %p8077_p3 = pnand %p8076_p2, %p8070_p13 }
  0x76   : > { %10785 = vst [vmem:[#allocation58_spill] sm:$0xff] %v8941_v25  ;;  %v1314_v6 = vor.u32 %v10786_v1, %v1311_v2  ;;  %2755 = vmatprep.mubr.bf16.mxu0 %v8941_v25  ;;  %v1246_v2 = vmul.f32 %v1230_v10, %v8259_v20  ;;  %v1248_v35 = vmul.f32 %v1232_v29, %v8259_v20  ;;  %v601_v1 = vunpack.c.l.bf16 %v8879_v52 }
  0x77   : > { %v679_v43 = vor.u32 %v10589_v19, %v676_v22  ;;  %v1304_v47 = vrot.slane %v10591_v14, 7  ;;  %v8964_v62 = vpack.c.bf16 %v636_v54, %v634_v12  ;;  %v603_v25 = vunpack.c.l.bf16 %v8891_v58 }
  0x78   : > { %v8954_v49 = vsel %vm8345_vm2, 0, %v1314_v6  ;;  %v1262_v6 = vadd.f32 %v1246_v2, %v8261_v21  ;;  %v1264_v10 = vadd.f32 %v1248_v35, %v8261_v21  ;;  %v617_v20 = vmul.f32 %v601_v1, %v8269_v31 }
  0x79   : > { %10787 = vst [vmem:[#allocation59_spill] sm:$0xff] %v8954_v49  ;;  %2819 = vmatprep.mubr.bf16.mxu1 %v8954_v49  ;;  %10788 = vst [vmem:[#allocation60_spill] sm:$0xff] %v8964_v62  ;;  %v1229_v52 = vunpack.c.l.bf16 %v8900_v13  ;;  %v8973_v29 = vsel %vm8345_vm2, 0, %v679_v43  ;;  %v10790_v22 = vshll.u32 %v8936_v16, 16  ;;  %v10590_v12 = vshrl.u32 %v8964_v62, 16 }
  0x7a   : > { %10789 = vst [vmem:[#allocation61_spill] sm:$0xff] %v8973_v29  ;;  %v10592_v54 = vshll.u32 %v8964_v62, 16  ;;  %2756 = vmatmul.mubr.bf16.gmra.mxu0 %v8973_v29  ;;  %v8980_v58 = vpack.c.bf16 %v1264_v10, %v1262_v6  ;;  %v619_v21 = vmul.f32 %v603_v25, %v8269_v31  ;;  %v633_v2 = vadd.f32 %v617_v20, %v8271_v32 }
  0x7b   : > { %v1307_v19 = vor.u32 %v10790_v22, %v1304_v47  ;;  %v1231_v13 = vunpack.c.l.bf16 %v6136_v53  ;;  %v697_v47 = vrot.slane %v10590_v12, 7  ;;  %v1245_v35 = vmul.f32 %v1229_v52, %v8269_v31 }
  0x7c   : > { %10791 = vst [vmem:[#allocation62_spill] sm:$0xff] %v8980_v58  ;;  %v10793_v1 = vshll.u32 %v8305_v55, 16  ;;  %v10594_v6 = vshrl.u32 %v8980_v58, 16  ;;  %v10595_v25 = vshll.u32 %v8980_v58, 16  ;;  %v635_v53 = vadd.f32 %v619_v21, %v8271_v32 }
  0x7d   : > { %v8986_v43 = vsel %vm8345_vm2, 0, %v1307_v19  ;;  %v1247_v10 = vmul.f32 %v1231_v13, %v8269_v31  ;;  %v700_v19 = vor.u32 %v10592_v54, %v697_v47  ;;  %v1261_v20 = vadd.f32 %v1245_v35, %v8271_v32 }
  0x7e   : > { %10792 = vst [vmem:[#allocation63_spill] sm:$0xff] %v8986_v43  ;;  %v402_v22 = vrot.slane %v10793_v1, 1  ;;  %2820 = vmatmul.mubr.bf16.gmra.mxu1 %v8986_v43  ;;  %v1325_v52 = vrot.slane %v10594_v6, 7  ;;  %v9003_v1 = vpack.c.bf16 %v635_v53, %v633_v2  ;;  %v10796_v21 = vshrl.u32 %v8305_v55, 16 }
  0x7f   : > { %v1263_v12 = vadd.f32 %v1247_v10, %v8271_v32  ;;  %v9008_v14 = vsel %vm8345_vm2, 0, %v700_v19  ;;  %v10804_v6 = vshll.u32 %v8629_v61, 16  ;;  %v10812_v29 = vshrl.u32 %v8629_v61, 16 }
  0x80   : > { %10794 = vst [vmem:[#allocation64_spill] sm:$0xff] %v9003_v1  ;;  %10795 = vst [vmem:[#allocation65_spill] sm:$0xff] %v9008_v14  ;;  %v403_v31 = vor.u32 %v402_v22, %v10796_v21  ;;  %2763 = vmatprep.mubr.bf16.mxu0 %v9008_v14  ;;  %v1328_v13 = vor.u32 %v10595_v25, %v1325_v52  ;;  %v10593_v47 = vshrl.u32 %v9003_v1, 16  ;;  %v10603_v35 = vshll.u32 %v9003_v1, 16 }
  0x81   : > { %v9017_v2 = vpack.c.bf16 %v1263_v12, %v1261_v20  ;;  %v10801_v52 = vshll.u32 %v8311_v59, 16  ;;  %v10803_v21 = vshll.u32 %v8570_v28, 16  ;;  %v414_v25 = vrot.slane %v10804_v6, 1 }
  0x82   : > { %v9026_v53 = vsel %vm8345_vm2, 0, %v1328_v13  ;;  %v690_v22 = vrot.slane %v10593_v47, 7  ;;  %v9037_v20 = vsel %vm9020_vm5, %v403_v31, 0  ;;  %v10807_v31 = vshrl.u32 %v8570_v28, 16 }
  0x83   : > { %10797 = vst [vmem:[#allocation66_spill] sm:$0xff] %v9017_v2  ;;  %10800 = vst [vmem:[#allocation67_spill] sm:$0xff] %v9026_v53  ;;  %v10604_v10 = vshrl.u32 %v9017_v2, 16  ;;  %v400_v12 = vrot.slane %v10801_v52, 1  ;;  %2827 = vmatprep.mubr.bf16.mxu1 %v9026_v53  ;;  %v408_v13 = vrot.slane %v10803_v21, 1  ;;  %v10805_v52 = vshll.u32 %v8687_v30, 16 }
  0x84   : > { %10802 = vst [vmem:[#allocation68_spill] sm:$0xff] %v9037_v20  ;;  %v693_v54 = vor.u32 %v10603_v35, %v690_v22  ;;  %v10806_v53 = vshll.u32 %v8382_v36, 16  ;;  %v10808_v21 = vshll.u32 %v8735_v51, 16  ;;  %v10809_v22 = vshll.u32 %v8778_v24, 16 }
  0x85   : > { %v1318_v47 = vrot.slane %v10604_v10, 7  ;;  %v412_v19 = vrot.slane %v10805_v52, 1  ;;  %v9053_v49 = vor.u32 %v408_v13, %v10807_v31  ;;  %v10811_v6 = vshll.u32 %v9017_v2, 16 }
  0x86   : > { %v406_v43 = vrot.slane %v10806_v53, 1  ;;  %v719_v14 = vrot.slane %v10808_v21, 1  ;;  %v717_v35 = vrot.slane %v10809_v22, 1  ;;  %v9061_v10 = vsel %vm8345_vm2, 0, %v693_v54 }
  0x87   : > { %10810 = vst [vmem:[#allocation69_spill] sm:$0xff] %v9061_v10  ;;  %v1321_v52 = vor.u32 %v10811_v6, %v1318_v47  ;;  %v9067_v53 = vor.u32 %v414_v25, %v10812_v29  ;;  %v10813_v13 = vshrl.u32 %v8687_v30, 16  ;;  %2764 = vmatmul.mubr.bf16.gmra.mxu0 %v9061_v10  ;;  %v10814_v21 = vshrl.u32 %v8735_v51, 16 }
  0x88   : > { %v10815_v54 = vshrl.u32 %v8778_v24, 16  ;;  %v10816_v47 = vshll.u32 %v8806_v3, 16  ;;  %3029 = vmatprep.mubr.bf16.mxu0 %v9037_v20  ;;  %v10818_v25 = vshrl.u32 %v8311_v59, 16  ;;  %v10823_v20 = vshrl.u32 %v8847_v37, 16 }
  0x89   : > { %v9071_v31 = vor.u32 %v412_v19, %v10813_v13  ;;  %v9076_v22 = vor.u32 %v719_v14, %v10814_v21  ;;  %v9086_v29 = vsel %vm8345_vm2, 0, %v1321_v52  ;;  %v10819_v13 = vshll.u32 %v8847_v37, 16 }
  0x8a   : > { %v9080_v11 = vor.u32 %v717_v35, %v10815_v54  ;;  %v723_v6 = vrot.slane %v10816_v47, 1  ;;  %10817 = vst [vmem:[#allocation70_spill] sm:$0xff] %v9086_v29  ;;  %v401_v19 = vor.u32 %v400_v12, %v10818_v25  ;;  %2828 = vmatmul.mubr.bf16.gmra.mxu1 %v9086_v29  ;;  %v10820_v35 = vshrl.u32 %v8382_v36, 16 }
  0x8b   : > { %v721_v14 = vrot.slane %v10819_v13, 1  ;;  %v10821_v54 = vshrl.u32 %v8806_v3, 16  ;;  %v727_v52 = vrot.slane %v10822_v15, 1  ;;  %2868 = vmatprep.mubr.bf16.mxu1 %v8305_v55  ;;  %v10824_v25 = vshll.u32 %v8922_v44, 16 }
  0x8c   : > { %v407_v21 = vor.u32 %v406_v43, %v10820_v35  ;;  %v7974_v43 = vld [vmem:[%s10510_s3 + $0xb8] sm:$0xff]   ;;  %v10825_v35 = vshll.u32 %v8452_v23, 16  ;;  %v9120_v15 = vsel %vm9020_vm5, %v401_v19, 0  ;;  %v10834_v40 = vshll.u32 %v8703_v17, 16 }
  0x8d   : > { %v9098_v47 = vor.u32 %v723_v6, %v10821_v54  ;;  %v9105_v12 = vor.u32 %v721_v14, %v10823_v20  ;;  %v725_v13 = vrot.slane %v10824_v25, 1  ;;  %v10826_v54 = vshrl.u32 %v8887_v42, 16  ;;  %10827 = vst [vmem:[#allocation71_spill] sm:$0xff] %v9120_v15  ;;  %v7972_v19 = vld [vmem:[%s10510_s3 + $0x38] sm:$0xff]  }
  0x8e   : > { %v404_v6 = vrot.slane %v10825_v35, 1  ;;  %v10828_v20 = vshll.u32 %v8501_v63, 16  ;;  %v10829_v25 = vshrl.u32 %v8922_v44, 16  ;;  %v9130_v41 = vsel %vm9020_vm5, %v407_v21, 0 }
  0x8f   : > { %v9116_v29 = vor.u32 %v727_v52, %v10826_v54  ;;  %10830 = vst [vmem:[#allocation72_spill] sm:$0xff] %v9130_v41  ;;  %v7977_v52 = vld [vmem:[%s10510_s3 + $0xf0] sm:$0xff]   ;;  %3030 = vmatmul.mubr.bf16.vlgmr.msra.gmra.mxu0 %v9120_v15  ;;  %v10831_v35 = vshrl.u32 %v8452_v23, 16  ;;  %v10832_v21 = vshrl.u32 %v8501_v63, 16  ;;  %v1045_v15 = vrot.slane %v10833_v4, 1 }
  0x90   : > { %v410_v14 = vrot.slane %v10828_v20, 1  ;;  %v9126_v10 = vor.u32 %v725_v13, %v10829_v25  ;;  %v7975_v13 = vld [vmem:[%s10510_s3 + $0x70] sm:$0xff]   ;;  %7306 = vmatpush3.bf16.msra.mxu0 %v7974_v43  ;;  %3037 = vmatprep.mubr.bf16.mxu0 %v9130_v41  ;;  %v10836_v41 = vshll.u32 %v8792_v5, 16  ;;  %v10838_v57 = vshrl.u32 %v8703_v17, 16 }
  0x91   : > { %v405_v54 = vor.u32 %v404_v6, %v10831_v35  ;;  %v7978_v25 = vld [vmem:[%s10510_s3 + $0xb0] sm:$0xff]   ;;  %v1043_v6 = vrot.slane %v10834_v40, 1  ;;  %7307 = vmatprep.subr.bf16.mxu0 %v7977_v52  ;;  %v10835_v35 = vshll.u32 %v8753_v9, 16  ;;  %v7979_v40 = vld [vmem:[%s10510_s3 + $0x68] sm:$0xff]   ;;  %v1046_v60 = vor.u32 %v1045_v15, %v10837_v39 }
  0x92   : > { %v411_v20 = vor.u32 %v410_v14, %v10832_v21  ;;  %2869 = vmatmul.mubr.bf16.vlgmr.msra.gmra.mxu1 %v8311_v59  ;;  %v7976_v43 = vld [vmem:[%s10510_s3 + $0x30] sm:$0xff]   ;;  %v7981_v14 = vld [vmem:[%s10510_s3 + $0xe8] sm:$0xff]   ;;  %v1345_v4 = vrot.slane %v10836_v41, 1  ;;  %v10840_v27 = vshrl.u32 %v8792_v5, 16  ;;  %v10853_v55 = vshll.u32 %v9017_v2, 16 }
  0x93   : > { %v1347_v21 = vrot.slane %v10835_v35, 1  ;;  %7194 = vmatpush3.bf16.msra.mxu1 %v7972_v19  ;;  %2876 = vmatprep.mubr.bf16.mxu1 %v8382_v36  ;;  %v7982_v52 = vld [vmem:[%s10510_s3 + $0xa8] sm:$0xff]   ;;  %v1044_v35 = vor.u32 %v1043_v6, %v10838_v57  ;;  %v9178_v41 = vsel %vm9020_vm5, %v405_v54, 0  ;;  %v10839_v19 = vshrl.u32 %v8753_v9, 16 }
  0x94   : > { %7195 = vmatprep.subr.bf16.mxu1 %v7975_v13  ;;  %v1346_v38 = vor.u32 %v1345_v4, %v10840_v27  ;;  %v10841_v36 = vshll.u32 %v8817_v46, 16  ;;  %v9188_v39 = vsel %vm9020_vm5, %v411_v20, 0  ;;  %7308 = vmatpush3.bf16.msra.mxu0 %v7978_v25  ;;  %v7980_v57 = vld [vmem:[%s10510_s3 + $0x28] sm:$0xff]   ;;  %v9195_v15 = vsel %vm9020_vm5, %v1046_v60, 0  ;;  %v7985_v13 = vld [vmem:[%s10510_s3 + $0xe0] sm:$0xff]  }
  0x95   : > { %v1348_v33 = vor.u32 %v1347_v21, %v10839_v19  ;;  %10842 = vst [vmem:[#allocation73_spill] sm:$0xff] %v9188_v39  ;;  %10843 = vst [vmem:[#allocation74_spill] sm:$0xff] %v9195_v15  ;;  %v9199_v54 = vsel %vm9020_vm5, %v1044_v35, 0  ;;  %v10845_v27 = vshll.u32 %v8862_v8, 16  ;;  %7309 = vmatprep.subr.bf16.mxu0 %v7981_v14  ;;  %v10848_v25 = vshrl.u32 %v8817_v46, 16  ;;  %v7983_v14 = vld [vmem:[%s10510_s3 + $0x60] sm:$0xff]  }
  0x96   : > { %v1351_v59 = vrot.slane %v10841_v36, 1  ;;  %10844 = vst [vmem:[#allocation75_spill] sm:$0xff] %v9199_v54  ;;  %v9212_v60 = vsel %vm9020_vm5, %v1346_v38, 0  ;;  %v10849_v21 = vshll.u32 %v8907_v0, 16  ;;  %v10850_v35 = vshrl.u32 %v8862_v8, 16 }
  0x97   : > { %v1349_v36 = vrot.slane %v10845_v27, 1  ;;  %v9208_v20 = vsel %vm9020_vm5, %v1348_v33, 0  ;;  %10847 = vst [vmem:[#allocation77_spill] sm:$0xff] %v9212_v60  ;;  %7196 = vmatpush3.bf16.msra.mxu1 %v7976_v43  ;;  %v10851_v33 = vshll.u32 %v8936_v16, 16  ;;  %v10852_v38 = vshll.u32 %v8980_v58, 16  ;;  %3038 = vmatmul.mubr.bf16.gmra.mxu0 %v9178_v41  ;;  %v7986_v43 = vld [vmem:[%s10510_s3 + $0xa0] sm:$0xff]  }
  0x98   : > { %10846 = vst [vmem:[#allocation76_spill] sm:$0xff] %v9208_v20  ;;  %v1352_v6 = vor.u32 %v1351_v59, %v10848_v25  ;;  %v1355_v4 = vrot.slane %v10849_v21, 1  ;;  %v1357_v59 = vrot.slane %v10853_v55, 1  ;;  %7197 = vmatprep.subr.bf16.mxu1 %v7979_v40  ;;  %3045 = vmatprep.mubr.bf16.mxu0 %v9188_v39  ;;  %v7984_v55 = vld [vmem:[%s10510_s3 + $0x20] sm:$0xff]   ;;  %v7989_v40 = vld [vmem:[%s10510_s3 + $0xd8] sm:$0xff]   ;;  %v9260_v39 = vsel %vm9020_vm5, %v9053_v49, 0 }
  0x99   : > { %v1350_v19 = vor.u32 %v1349_v36, %v10850_v35  ;;  %v1353_v27 = vrot.slane %v10851_v33, 1  ;;  %v1359_v34 = vrot.slane %v10852_v38, 1  ;;  %v10855_v36 = vshrl.u32 %v8907_v0, 16  ;;  %7310 = vmatpush3.bf16.msra.mxu0 %v7982_v52  ;;  %10860 = vst [vmem:[#allocation80_spill] sm:$0xff] %v9260_v39  ;;  %v7990_v49 = vld [vmem:[%s10510_s3 + $0x98] sm:$0xff]  }
  0x9a   : > { %v9235_v25 = vsel %vm9020_vm5, %v1352_v6, 0  ;;  %v10857_v6 = vshrl.u32 %v8936_v16, 16  ;;  %v10859_v52 = vshrl.u32 %v9017_v2, 16  ;;  %2877 = vmatmul.mubr.bf16.gmra.mxu1 %v8452_v23  ;;  %7311 = vmatprep.subr.bf16.mxu0 %v7985_v13 }
  0x9b   : > { %10854 = vst [vmem:[#allocation78_spill] sm:$0xff] %v9235_v25  ;;  %v1356_v21 = vor.u32 %v1355_v4, %v10855_v36  ;;  %v9248_v35 = vsel %vm9020_vm5, %v1350_v19, 0  ;;  %v10858_v4 = vshrl.u32 %v8980_v58, 16  ;;  %v7987_v19 = vld [vmem:[%s10510_s3 + $0x58] sm:$0xff]   ;;  %2884 = vmatprep.mubr.bf16.mxu1 %v8501_v63  ;;  %7198 = vmatpush3.bf16.msra.mxu1 %v7980_v57 }
  0x9c   : > { %10856 = vst [vmem:[#allocation79_spill] sm:$0xff] %v9248_v35  ;;  %v1354_v33 = vor.u32 %v1353_v27, %v10857_v6  ;;  %v1358_v36 = vor.u32 %v1357_v59, %v10859_v52  ;;  %7199 = vmatprep.subr.bf16.mxu1 %v7983_v14  ;;  %v7988_v57 = vld [vmem:[%s10510_s3 + $0x18] sm:$0xff]   ;;  %v7991_v6 = vld [vmem:[%s10510_s3 + $0x50] sm:$0xff]   ;;  %v9308_v14 = vsel %vm9020_vm5, %v9071_v31, 0  ;;  %v9328_v31 = vsel %vm9020_vm5, %v9080_v11, 0  ;;  %v8001_v52 = vld [vmem:[%s10510_s3 + $0xc0] sm:$0xff]  }
  0x9d   : > { %v1360_v38 = vor.u32 %v1359_v34, %v10858_v4  ;;  %v9267_v27 = vsel %vm9020_vm5, %v1356_v21, 0  ;;  %v9273_v34 = vsel %vm9020_vm5, %v9067_v53, 0  ;;  %v7993_v53 = vld [vmem:[%s10510_s3 + $0xd0] sm:$0xff]   ;;  %7312 = vmatpush3.bf16.msra.mxu0 %v7986_v43  ;;  %10866 = vst [vmem:[#allocation86_spill] sm:$0xff] %v9308_v14  ;;  %v9313_v43 = vsel %vm9020_vm5, %v9076_v22, 0  ;;  %v7997_v4 = vld [vmem:[%s10510_s3 + $0xc8] sm:$0xff]  }
  0x9e   : > { %10861 = vst [vmem:[#allocation81_spill] sm:$0xff] %v9267_v27  ;;  %10862 = vst [vmem:[#allocation82_spill] sm:$0xff] %v9273_v34  ;;  %v9280_v13 = vsel %vm9020_vm5, %v1354_v33, 0  ;;  %v9288_v21 = vsel %vm9020_vm5, %v1358_v36, 0  ;;  %7313 = vmatprep.subr.bf16.mxu0 %v7989_v40  ;;  %v7994_v33 = vld [vmem:[%s10510_s3 + $0x90] sm:$0xff]   ;;  %v7995_v40 = vld [vmem:[%s10510_s3 + $0x48] sm:$0xff]  }
  0x9f   : > { %10863 = vst [vmem:[#allocation83_spill] sm:$0xff] %v9280_v13  ;;  %v9284_v59 = vsel %vm9020_vm5, %v1360_v38, 0  ;;  %10865 = vst [vmem:[#allocation85_spill] sm:$0xff] %v9288_v21  ;;  %7200 = vmatpush3.bf16.msra.mxu1 %v7984_v55  ;;  %3046 = vmatmul.mubr.bf16.gmra.mxu0 %v9260_v39  ;;  %v7992_v55 = vld [vmem:[%s10510_s3 + $0x10] sm:$0xff]   ;;  %v9333_v22 = vsel %vm9020_vm5, %v9098_v47, 0  ;;  %v7998_v38 = vld [vmem:[%s10510_s3 + $0x88] sm:$0xff]  }
  0xa0   : > { %10864 = vst [vmem:[#allocation84_spill] sm:$0xff] %v9284_v59  ;;  %7201 = vmatprep.subr.bf16.mxu1 %v7987_v19  ;;  %3053 = vmatprep.mubr.bf16.mxu0 %v9273_v34  ;;  %10867 = vst [vmem:[#allocation87_spill] sm:$0xff] %v9313_v43  ;;  %v7996_v11 = vld [vmem:[%s10510_s3 + $0x8] sm:$0xff]   ;;  %v7999_v47 = vld [vmem:[%s10510_s3 + $0x40] sm:$0xff]  }
  0xa1   : > { %7314 = vmatpush3.bf16.msra.mxu0 %v7990_v49  ;;  %10868 = vst [vmem:[#allocation88_spill] sm:$0xff] %v9328_v31  ;;  %10869 = vst [vmem:[#allocation89_spill] sm:$0xff] %v9333_v22  ;;  %v8002_v36 = vld [vmem:[%s10510_s3 + $0x80] sm:$0xff]   ;;  %v8005_v19 = vld [vmem:[%s10510_s3 + $0x378] sm:$0xff]  }
  0xa2   : > { %2885 = vmatmul.mubr.bf16.gmra.mxu1 %v8570_v28  ;;  %7315 = vmatprep.subr.bf16.mxu0 %v7993_v53  ;;  %v8000_v49 = vld [vmem:[%s10510_s3] sm:$0xff]   ;;  %v8003_v53 = vld [vmem:[%s10510_s3 + $0x178] sm:$0xff]  }
  0xa3   : > { %2892 = vmatprep.mubr.bf16.mxu1 %v8629_v61  ;;  %7202 = vmatpush3.bf16.msra.mxu1 %v7988_v57  ;;  %v9370_v57 = vsel %vm9020_vm5, %v9105_v12, 0  ;;  %v9388_v12 = vsel %vm9020_vm5, %v9126_v10, 0  ;;  %v10879_v10 = vshrl.u32 %v8307_v56, 16 }
  0xa4   : > { %7203 = vmatprep.subr.bf16.mxu1 %v7991_v6  ;;  %10870 = vst [vmem:[#allocation90_spill] sm:$0xff] %v9370_v57  ;;  %v9375_v6 = vsel %vm9020_vm5, %v9116_v29, 0  ;;  %10874 = vst [vmem:[#allocation92_spill] sm:$0xff] %v9388_v12  ;;  %v10875_v29 = vshll.u32 %v9003_v1, 16 }
  0xa5   : > { %7316 = vmatpush3.bf16.msra.mxu0 %v7994_v33  ;;  %10871 = vst [vmem:[#allocation91_spill] sm:$0xff] %v9375_v6  ;;  %v10872_v33 = vshll.u32 %v8964_v62, 16 }
  0xa6   : > { %7317 = vmatprep.subr.bf16.mxu0 %v7997_v4 }
  0xa7   : > { %7204 = vmatpush3.bf16.msra.mxu1 %v7992_v55  ;;  %3054 = vmatmul.mubr.bf16.gmra.mxu0 %v9308_v14  ;;  %v731_v55 = vrot.slane %v10872_v33, 1  ;;  %v10881_v33 = vshll.u32 %v8328_v7, 16 }
  0xa8   : > { %7205 = vmatprep.subr.bf16.mxu1 %v7995_v40  ;;  %3061 = vmatprep.mubr.bf16.mxu0 %v9313_v43  ;;  %v10873_v40 = vshrl.u32 %v8964_v62, 16  ;;  %v10912_v43 = vld [vmem:[#allocation34_spill] sm:$0xff] }
  0xa9   : > { %7318 = vmatpush3.bf16.msra.mxu0 %v7998_v38  ;;  %v729_v38 = vrot.slane %v10875_v29, 1 }
  0xaa   : > { %2893 = vmatmul.mubr.bf16.gmra.mxu1 %v8687_v30  ;;  %7319 = vmatprep.subr.bf16.mxu0 %v8001_v52  ;;  %v732_v4 = vor.u32 %v731_v55, %v10873_v40  ;;  %v1031_v55 = vrot.slane %v10881_v33, 1 }
  0xab   : > { %2900 = vmatprep.mubr.bf16.mxu1 %v8735_v51  ;;  %7206 = vmatpush3.bf16.msra.mxu1 %v7996_v11  ;;  %v10877_v11 = vshll.u32 %v8307_v56, 16 }
  0xac   : > { %7207 = vmatprep.subr.bf16.mxu1 %v7999_v47  ;;  %v9394_v52 = vsel %vm9020_vm5, %v732_v4, 0  ;;  %v10883_v4 = vshll.u32 %v8413_v50, 16 }
  0xad   : > { %7320 = vmatpush3.bf16.msra.mxu0 %v8002_v36  ;;  %10876 = vst [vmem:[#allocation93_spill] sm:$0xff] %v9394_v52  ;;  %v1033_v47 = vrot.slane %v10877_v11, 1  ;;  %v10878_v36 = vshrl.u32 %v9003_v1, 16 }
  0xae   : > { %7529 = vmatprep.subr.bf16.mxu0 %v8005_v19  ;;  %v1037_v29 = vrot.slane %v10883_v4, 1 }
  0xaf   : > { %7208 = vmatpush3.bf16.msra.mxu1 %v8000_v49  ;;  %3062 = vmatmul.mubr.bf16.gmra.mxu0 %v9328_v31  ;;  %v730_v19 = vor.u32 %v729_v38, %v10878_v36  ;;  %v1034_v49 = vor.u32 %v1033_v47, %v10879_v10  ;;  %v10884_v38 = vshrl.u32 %v8328_v7, 16  ;;  %v10885_v47 = vshrl.u32 %v8413_v50, 16 }
  0xb0   : > { %7417 = vmatprep.subr.bf16.mxu1 %v8003_v53  ;;  %3069 = vmatprep.mubr.bf16.mxu0 %v9333_v22  ;;  %v10887_v10 = vshll.u32 %v8477_v45, 16 }
  0xb1   : > { %v9408_v53 = vsel %vm9020_vm5, %v730_v19, 0  ;;  %v9414_v40 = vsel %vm9020_vm5, %v1034_v49, 0  ;;  %v1032_v11 = vor.u32 %v1031_v55, %v10884_v38  ;;  %v1038_v36 = vor.u32 %v1037_v29, %v10885_v47 }
  0xb2   : > { %2901 = vmatmul.mubr.bf16.gmra.mxu1 %v8778_v24  ;;  %10880 = vst [vmem:[#allocation94_spill] sm:$0xff] %v9408_v53  ;;  %10882 = vst [vmem:[#allocation95_spill] sm:$0xff] %v9414_v40  ;;  %v1035_v49 = vrot.slane %v10887_v10, 1  ;;  %v10889_v55 = vshll.u32 %v8520_v26, 16  ;;  %v10890_v29 = vshrl.u32 %v8477_v45, 16  ;;  %v10893_v10 = vshll.u32 %v8595_v48, 16 }
  0xb3   : > { %2908 = vmatprep.mubr.bf16.mxu1 %v8806_v3  ;;  %v9428_v19 = vsel %vm9020_vm5, %v1032_v11, 0  ;;  %v9434_v33 = vsel %vm9020_vm5, %v1038_v36, 0  ;;  %v10891_v11 = vshrl.u32 %v8520_v26, 16 }
  0xb4   : > { %10886 = vst [vmem:[#allocation96_spill] sm:$0xff] %v9428_v19  ;;  %10888 = vst [vmem:[#allocation97_spill] sm:$0xff] %v9434_v33  ;;  %v1041_v4 = vrot.slane %v10889_v55, 1  ;;  %v1036_v38 = vor.u32 %v1035_v49, %v10890_v29  ;;  %v1039_v55 = vrot.slane %v10893_v10, 1  ;;  %v10895_v49 = vshrl.u32 %v8595_v48, 16 }
  0xb6   : > { %v1042_v47 = vor.u32 %v1041_v4, %v10891_v11  ;;  %v9448_v36 = vsel %vm9020_vm5, %v1036_v38, 0  ;;  %v1040_v4 = vor.u32 %v1039_v55, %v10895_v49 }
  0xb7   : > { %3070 = vmatmul.mubr.bf16.gmra.mxu0 %v9370_v57  ;;  %10892 = vst [vmem:[#allocation98_spill] sm:$0xff] %v9448_v36 }
  0xb8   : > { %3077 = vmatprep.mubr.bf16.mxu0 %v9375_v6  ;;  %v9464_v29 = vsel %vm9020_vm5, %v1040_v4, 0 }
  0xb9   : > { %10896 = vst [vmem:[#allocation100_spill] sm:$0xff] %v9464_v29 }
  0xba   : > { %2909 = vmatmul.mubr.bf16.gmra.mxu1 %v8847_v37 }
  0xbb   : > { %2916 = vmatprep.mubr.bf16.mxu1 %v8887_v42 }
  0xbf   : > { %3078 = vmatmul.mubr.bf16.gmra.mxu0 %v9388_v12 }
  0xc0   : > { %3085 = vmatprep.mubr.bf16.mxu0 %v9394_v52 }
  0xc2   : > { %2917 = vmatmul.mubr.bf16.gmra.mxu1 %v8922_v44 }
  0xc3   : > { %2924 = vmatprep.mubr.bf16.mxu1 %v8964_v62 }
  0xc7   : > { %3086 = vmatmul.mubr.bf16.gmra.mxu0 %v9408_v53  ;;  %v10904_v53 = vld [vmem:[#allocation13_spill] sm:$0xff] }
  0xc8   : > { %3093 = vmatprep.mubr.bf16.mxu0 %v9414_v40  ;;  %v8013_v40 = vld [vmem:[%s10510_s3 + $0x368] sm:$0xff]  }
  0xca   : > { %2925 = vmatmul.mubr.bf16.gmra.mxu1 %v9003_v1 }
  0xcb   : > { %2932 = vmatprep.mubr.bf16.mxu1 %v8307_v56 }
  0xcf   : > { %3094 = vmatmul.mubr.bf16.gmra.mxu0 %v9428_v19 }
  0xd0   : > { %3101 = vmatprep.mubr.bf16.mxu0 %v9434_v33  ;;  %v9454_v33 = vsel %vm9020_vm5, %v1042_v47, 0 }
  0xd1   : > { %10894 = vst [vmem:[#allocation99_spill] sm:$0xff] %v9454_v33 }
  0xd2   : > { %2933 = vmatmul.mubr.bf16.gmra.mxu1 %v8328_v7 }
  0xd3   : > { %2940 = vmatprep.mubr.bf16.mxu1 %v8413_v50 }
  0xd7   : > { %3102 = vmatmul.mubr.bf16.gmra.mxu0 %v9448_v36 }
  0xd8   : > { %3109 = vmatprep.mubr.bf16.mxu0 %v9454_v33 }
  0xda   : > { %2941 = vmatmul.mubr.bf16.gmra.mxu1 %v8477_v45 }
  0xdb   : > { %2948 = vmatprep.mubr.bf16.mxu1 %v8520_v26 }
  0xdf   : > { %3110 = vmatmul.mubr.bf16.gmra.mxu0 %v9464_v29 }
  0xe0   : > { %3117 = vmatprep.mubr.bf16.mxu0 %v9195_v15 }
  0xe2   : > { %2949 = vmatmul.mubr.bf16.gmra.mxu1 %v8595_v48 }
  0xe3   : > { %2956 = vmatprep.mubr.bf16.mxu1 %v8657_v18 }
  0xe7   : > { %3118 = vmatmul.mubr.bf16.gmra.mxu0 %v9199_v54 }
  0xe8   : > { %3125 = vmatprep.mubr.bf16.mxu0 %v9208_v20 }
  0xea   : > { %2957 = vmatmul.mubr.bf16.gmra.mxu1 %v8703_v17 }
  0xeb   : > { %2964 = vmatprep.mubr.bf16.mxu1 %v8753_v9 }
  0xef   : > { %3126 = vmatmul.mubr.bf16.gmra.mxu0 %v9212_v60 }
  0xf0   : > { %3133 = vmatprep.mubr.bf16.mxu0 %v9235_v25 }
  0xf2   : > { %2965 = vmatmul.mubr.bf16.gmra.mxu1 %v8792_v5 }
  0xf3   : > { %2972 = vmatprep.mubr.bf16.mxu1 %v8817_v46 }
  0xf4   : > { %v6873_v32 = vpop.f32.mrf.mxu0  ;;  %v6921_v38 = vpop.f32.mrf.mxu1 }
  0xf6   : > { %v6874_v11 = vpop.f32.mrf.mxu0  ;;  %v6922_v10 = vpop.f32.mrf.mxu1 }
  0xf7   : > { %v9478_v47 = vadd.f32 %v6874_v11, %v6873_v32  ;;  %v9480_v49 = vadd.f32 %v6922_v10, %v6921_v38  ;;  %3134 = vmatmul.mubr.bf16.gmra.mxu0 %v9248_v35 }
  0xf8   : > { %v6876_v55 = vpop.f32.mrf.mxu0  ;;  %v6924_v4 = vpop.f32.mrf.mxu1  ;;  %3141 = vmatprep.mubr.bf16.mxu0 %v9267_v27  ;;  %v8129_v27 = vmov 0  }
  0xf9   : > { %v9496_v35 = vcombine.high %v8129_v27, %v8129_v27 }
  0xfa   : > { %v6877_v20 = vpop.f32.mrf.mxu0  ;;  %2973 = vmatmul.mubr.bf16.gmra.mxu1 %v8862_v8  ;;  %v6925_v60 = vpop.f32.mrf.mxu1 }
  0xfb   : > { %v9484_v25 = vadd.f32 %v6877_v20, %v6876_v55  ;;  %2980 = vmatprep.mubr.bf16.mxu1 %v8907_v0  ;;  %v9488_v54 = vadd.f32 %v6925_v60, %v6924_v4  ;;  %10897 = vst [vmem:[#allocation101_spill] sm:$0xff] %v9496_v35 }
  0xff   : > { %3142 = vmatmul.mubr.bf16.gmra.mxu0 %v9280_v13  ;;  %v6879_v32 = vpop.f32.mrf.mxu0 }
 0x100   : > { %3149 = vmatprep.mubr.bf16.mxu0 %v9284_v59 }
 0x101   : > { %v6880_v11 = vpop.f32.mrf.mxu0 }
 0x102   : > { %2981 = vmatmul.mubr.bf16.gmra.mxu1 %v8936_v16  ;;  %v6927_v38 = vpop.f32.mrf.mxu1  ;;  %v9494_v20 = vadd.f32 %v6880_v11, %v6879_v32  ;;  %v9508_v11 = vcombine.low %v8129_v27, %v8129_v27  ;;  %v8007_v27 = vld [vmem:[%s10510_s3 + $0x170] sm:$0xff]  }
 0x103   : > { %2988 = vmatprep.mubr.bf16.mxu1 %v8980_v58  ;;  %v6882_v55 = vpop.f32.mrf.mxu0  ;;  %v10899_v58 = vld [vmem:[#allocation6_spill] sm:$0xff] }
 0x104   : > { %v6928_v10 = vpop.f32.mrf.mxu1  ;;  %10898 = vst [vmem:[#allocation102_spill] sm:$0xff] %v9508_v11 }
 0x105   : > { %v9498_v60 = vadd.f32 %v6928_v10, %v6927_v38  ;;  %v6883_v13 = vpop.f32.mrf.mxu0  ;;  %v8006_v38 = vld [vmem:[%s10510_s3 + $0x338] sm:$0xff]  }
 0x106   : > { %v6930_v4 = vpop.f32.mrf.mxu1  ;;  %v9500_v15 = vadd.f32 %v6883_v13, %v6882_v55 }
 0x107   : > { %3150 = vmatmul.mubr.bf16.gmra.mxu0 %v9288_v21 }
 0x108   : > { %v6931_v59 = vpop.f32.mrf.mxu1  ;;  %4119 = vmatprep.mubr.bf16.mxu0 %v9496_v35 }
 0x109   : > { %v9504_v29 = vadd.f32 %v6931_v59, %v6930_v4  ;;  %v8009_v59 = vld [vmem:[%s10510_s3 + $0x370] sm:$0xff]   ;;  %v8004_v4 = vld [vmem:[%s10510_s3 + $0x138] sm:$0xff]  }
 0x10a   : > { %2989 = vmatmul.mubr.bf16.gmra.mxu1 %v9017_v2 }
 0x10b   : > { %3958 = vmatprep.mubr.bf16.mxu1 %v9496_v35  ;;  %v6885_v32 = vpop.f32.mrf.mxu0 }
 0x10d   : > { %v6886_v13 = vpop.f32.mrf.mxu0 }
 0x10e   : > { %v9513_v55 = vadd.f32 %v6886_v13, %v6885_v32  ;;  %v8010_v13 = vld [vmem:[%s10510_s3 + $0x330] sm:$0xff]  }
 0x10f   : > { %v6933_v10 = vpop.f32.mrf.mxu1  ;;  %v6888_v2 = vpop.f32.mrf.mxu0  ;;  %4120 = vmatmul.mubr.bf16.vlgmr.msra.gmra.mxu0 %v9508_v11 }
 0x110   : > { %7530 = vmatpush3.bf16.msra.mxu0 %v8006_v38  ;;  %4127 = vmatprep.mubr.bf16.mxu0 %v10899_v58  ;;  %v10900_v38 = vld [vmem:[#allocation10_spill] sm:$0xff]  ;;  %v8008_v58 = vld [vmem:[%s10510_s3 + $0x130] sm:$0xff]  }
 0x111   : > { %v6934_v21 = vpop.f32.mrf.mxu1  ;;  %v6889_v33 = vpop.f32.mrf.mxu0  ;;  %7531 = vmatprep.subr.bf16.mxu0 %v8009_v59  ;;  %v8017_v59 = vld [vmem:[%s10510_s3 + $0x360] sm:$0xff]  }
 0x112   : > { %v9526_v32 = vadd.f32 %v6934_v21, %v6933_v10  ;;  %3959 = vmatmul.mubr.bf16.vlgmr.msra.gmra.mxu1 %v9508_v11  ;;  %v9532_v19 = vadd.f32 %v6889_v33, %v6888_v2  ;;  %v8011_v10 = vld [vmem:[%s10510_s3 + $0x168] sm:$0xff]  }
 0x113   : > { %v6936_v36 = vpop.f32.mrf.mxu1  ;;  %7418 = vmatpush3.bf16.msra.mxu1 %v8004_v4  ;;  %3966 = vmatprep.mubr.bf16.mxu1 %v10900_v38  ;;  %v8014_v33 = vld [vmem:[%s10510_s3 + $0x328] sm:$0xff]   ;;  %v10902_v38 = vld [vmem:[#allocation8_spill] sm:$0xff] }
 0x114   : > { %7419 = vmatprep.subr.bf16.mxu1 %v8007_v27  ;;  %7532 = vmatpush3.bf16.msra.mxu0 %v8010_v13  ;;  %v8012_v27 = vld [vmem:[%s10510_s3 + $0x128] sm:$0xff]   ;;  %v10903_v13 = vld [vmem:[#allocation12_spill] sm:$0xff] }
 0x115   : > { %v6937_v21 = vpop.f32.mrf.mxu1  ;;  %7533 = vmatprep.subr.bf16.mxu0 %v8013_v40 }
 0x116   : > { %v9544_v2 = vadd.f32 %v6937_v21, %v6936_v36  ;;  %v8015_v36 = vld [vmem:[%s10510_s3 + $0x160] sm:$0xff]  }
 0x117   : > { %7420 = vmatpush3.bf16.msra.mxu1 %v8008_v58  ;;  %v6891_v4 = vpop.f32.mrf.mxu0  ;;  %4128 = vmatmul.mubr.bf16.gmra.mxu0 %v10902_v38  ;;  %v8018_v58 = vld [vmem:[%s10510_s3 + $0x320] sm:$0xff]   ;;  %v10905_v38 = vld [vmem:[#allocation17_spill] sm:$0xff] }
 0x118   : > { %10901 = vst [vmem:[#allocation6_spill] sm:$0xff] %v9544_v2  ;;  %7421 = vmatprep.subr.bf16.mxu1 %v8011_v10  ;;  %4135 = vmatprep.mubr.bf16.mxu0 %v10903_v13  ;;  %v8021_v10 = vld [vmem:[%s10510_s3 + $0x358] sm:$0xff]  }
 0x119   : > { %v6939_v40 = vpop.f32.mrf.mxu1  ;;  %v6892_v21 = vpop.f32.mrf.mxu0  ;;  %7534 = vmatpush3.bf16.msra.mxu0 %v8014_v33  ;;  %v8016_v33 = vld [vmem:[%s10510_s3 + $0x120] sm:$0xff]  }
 0x11a   : > { %3967 = vmatmul.mubr.bf16.gmra.mxu1 %v10904_v53  ;;  %v9564_v52 = vadd.f32 %v6892_v21, %v6891_v4  ;;  %7535 = vmatprep.subr.bf16.mxu0 %v8017_v59  ;;  %v8019_v53 = vld [vmem:[%s10510_s3 + $0x158] sm:$0xff]  }
 0x11b   : > { %3974 = vmatprep.mubr.bf16.mxu1 %v10905_v38  ;;  %v6940_v12 = vpop.f32.mrf.mxu1  ;;  %v6894_v13 = vpop.f32.mrf.mxu0  ;;  %7422 = vmatpush3.bf16.msra.mxu1 %v8012_v27  ;;  %v8022_v21 = vld [vmem:[%s10510_s3 + $0x318] sm:$0xff]  }
 0x11c   : > { %v9573_v6 = vadd.f32 %v6940_v12, %v6939_v40  ;;  %7423 = vmatprep.subr.bf16.mxu1 %v8015_v36  ;;  %v8025_v12 = vld [vmem:[%s10510_s3 + $0x350] sm:$0xff]   ;;  %v8020_v36 = vld [vmem:[%s10510_s3 + $0x118] sm:$0xff]  }
 0x11d   : > { %v6942_v59 = vpop.f32.mrf.mxu1  ;;  %v6895_v4 = vpop.f32.mrf.mxu0  ;;  %7536 = vmatpush3.bf16.msra.mxu0 %v8018_v58  ;;  %v8026_v58 = vld [vmem:[%s10510_s3 + $0x310] sm:$0xff]  }
 0x11e   : > { %10906 = vst [vmem:[#allocation10_spill] sm:$0xff] %v9573_v6  ;;  %v9581_v57 = vadd.f32 %v6895_v4, %v6894_v13  ;;  %7537 = vmatprep.subr.bf16.mxu0 %v8021_v10  ;;  %v8023_v13 = vld [vmem:[%s10510_s3 + $0x150] sm:$0xff]   ;;  %v10908_v10 = vld [vmem:[#allocation22_spill] sm:$0xff] }
 0x11f   : > { %v6943_v27 = vpop.f32.mrf.mxu1  ;;  %7424 = vmatpush3.bf16.msra.mxu1 %v8016_v33  ;;  %4136 = vmatmul.mubr.bf16.gmra.mxu0 %v8452_v23  ;;  %v8029_v33 = vld [vmem:[%s10510_s3 + $0x348] sm:$0xff]  }
 0x120   : > { %v9590_v40 = vadd.f32 %v6943_v27, %v6942_v59  ;;  %7425 = vmatprep.subr.bf16.mxu1 %v8019_v53  ;;  %4143 = vmatprep.mubr.bf16.mxu0 %v8501_v63  ;;  %v10909_v59 = vld [vmem:[#allocation25_spill] sm:$0xff]  ;;  %v8024_v53 = vld [vmem:[%s10510_s3 + $0x110] sm:$0xff]  }
 0x121   : > { %7538 = vmatpush3.bf16.msra.mxu0 %v8022_v21  ;;  %v8027_v21 = vld [vmem:[%s10510_s3 + $0x148] sm:$0xff]  }
 0x122   : > { %10907 = vst [vmem:[#allocation8_spill] sm:$0xff] %v9590_v40  ;;  %3975 = vmatmul.mubr.bf16.gmra.mxu1 %v10908_v10  ;;  %7539 = vmatprep.subr.bf16.mxu0 %v8025_v12  ;;  %v8030_v12 = vld [vmem:[%s10510_s3 + $0x308] sm:$0xff]  }
 0x123   : > { %3982 = vmatprep.mubr.bf16.mxu1 %v10909_v59  ;;  %7426 = vmatpush3.bf16.msra.mxu1 %v8020_v36  ;;  %v6897_v4 = vpop.f32.mrf.mxu0  ;;  %v8033_v36 = vld [vmem:[%s10510_s3 + $0x340] sm:$0xff]  }
 0x124   : > { %7427 = vmatprep.subr.bf16.mxu1 %v8023_v13  ;;  %v8028_v13 = vld [vmem:[%s10510_s3 + $0x108] sm:$0xff]  }
 0x125   : > { %7540 = vmatpush3.bf16.msra.mxu0 %v8026_v58  ;;  %v6898_v63 = vpop.f32.mrf.mxu0 }
 0x126   : > { %v6945_v27 = vpop.f32.mrf.mxu1  ;;  %7541 = vmatprep.subr.bf16.mxu0 %v8029_v33  ;;  %v9616_v23 = vadd.f32 %v6898_v63, %v6897_v4  ;;  %v8031_v33 = vld [vmem:[%s10510_s3 + $0x140] sm:$0xff]  }
 0x127   : > { %7428 = vmatpush3.bf16.msra.mxu1 %v8024_v53  ;;  %4144 = vmatmul.mubr.bf16.gmra.mxu0 %v8570_v28  ;;  %v6900_v22 = vpop.f32.mrf.mxu0  ;;  %v8034_v63 = vld [vmem:[%s10510_s3 + $0x300] sm:$0xff]   ;;  %v10911_v53 = vld [vmem:[#allocation29_spill] sm:$0xff] }
 0x128   : > { %v6946_v58 = vpop.f32.mrf.mxu1  ;;  %7429 = vmatprep.subr.bf16.mxu1 %v8027_v21  ;;  %4151 = vmatprep.mubr.bf16.mxu0 %v8629_v61  ;;  %v8037_v21 = vld [vmem:[%s10510_s3 + $0x478] sm:$0xff]  }
 0x129   : > { %v9626_v31 = vadd.f32 %v6946_v58, %v6945_v27  ;;  %7542 = vmatpush3.bf16.msra.mxu0 %v8030_v12  ;;  %v6901_v28 = vpop.f32.mrf.mxu0  ;;  %v8032_v12 = vld [vmem:[%s10510_s3 + $0x100] sm:$0xff]   ;;  %v8035_v58 = vld [vmem:[%s10510_s3 + $0x3f8] sm:$0xff]  }
 0x12a   : > { %3983 = vmatmul.mubr.bf16.gmra.mxu1 %v10911_v53  ;;  %v6948_v4 = vpop.f32.mrf.mxu1  ;;  %7543 = vmatprep.subr.bf16.mxu0 %v8033_v36  ;;  %v9636_v40 = vadd.f32 %v6901_v28, %v6900_v22  ;;  %v10914_v22 = vld [vmem:[#allocation37_spill] sm:$0xff] }
 0x12b   : > { %10910 = vst [vmem:[#allocation13_spill] sm:$0xff] %v9626_v31  ;;  %3990 = vmatprep.mubr.bf16.mxu1 %v10912_v43  ;;  %7430 = vmatpush3.bf16.msra.mxu1 %v8028_v13  ;;  %v10915_v31 = vld [vmem:[#allocation41_spill] sm:$0xff] }
 0x12c   : > { %v6949_v27 = vpop.f32.mrf.mxu1  ;;  %7431 = vmatprep.subr.bf16.mxu1 %v8031_v33 }
 0x12d   : > { %v9644_v36 = vadd.f32 %v6949_v27, %v6948_v4  ;;  %7544 = vmatpush3.bf16.msra.mxu0 %v8034_v63 }
 0x12e   : > { %7753 = vmatprep.subr.bf16.mxu0 %v8037_v21 }
 0x12f   : > { %10913 = vst [vmem:[#allocation17_spill] sm:$0xff] %v9644_v36  ;;  %v6903_v61 = vpop.f32.mrf.mxu0  ;;  %7432 = vmatpush3.bf16.msra.mxu1 %v8032_v12  ;;  %4152 = vmatmul.mubr.bf16.gmra.mxu0 %v8687_v30  ;;  %v10918_v30 = vld [vmem:[#allocation46_spill] sm:$0xff] }
 0x130   : > { %7641 = vmatprep.subr.bf16.mxu1 %v8035_v58  ;;  %4159 = vmatprep.mubr.bf16.mxu0 %v8735_v51 }
 0x131   : > { %v6904_v28 = vpop.f32.mrf.mxu0 }
 0x132   : > { %3991 = vmatmul.mubr.bf16.gmra.mxu1 %v10914_v22  ;;  %v6951_v13 = vpop.f32.mrf.mxu1  ;;  %v9649_v33 = vadd.f32 %v6904_v28, %v6903_v61  ;;  %v10919_v61 = vld [vmem:[#allocation49_spill] sm:$0xff] }
 0x133   : > { %3998 = vmatprep.mubr.bf16.mxu1 %v10915_v31  ;;  %v6906_v14 = vpop.f32.mrf.mxu0 }
 0x134   : > { %v6952_v4 = vpop.f32.mrf.mxu1 }
 0x135   : > { %v9652_v27 = vadd.f32 %v6952_v4, %v6951_v13  ;;  %v6907_v63 = vpop.f32.mrf.mxu0 }
 0x136   : > { %v6954_v21 = vpop.f32.mrf.mxu1  ;;  %v9654_v12 = vadd.f32 %v6907_v63, %v6906_v14 }
 0x137   : > { %10916 = vst [vmem:[#allocation22_spill] sm:$0xff] %v9652_v27  ;;  %4160 = vmatmul.mubr.bf16.gmra.mxu0 %v8778_v24 }
 0x138   : > { %v6955_v58 = vpop.f32.mrf.mxu1  ;;  %4167 = vmatprep.mubr.bf16.mxu0 %v8806_v3 }
 0x139   : > { %v9657_v51 = vadd.f32 %v6955_v58, %v6954_v21  ;;  %v10921_v58 = vld [vmem:[#allocation53_spill] sm:$0xff] }
 0x13a   : > { %3999 = vmatmul.mubr.bf16.gmra.mxu1 %v10918_v30  ;;  %v6909_v28 = vpop.f32.mrf.mxu0 }
 0x13b   : > { %10917 = vst [vmem:[#allocation25_spill] sm:$0xff] %v9657_v51  ;;  %4006 = vmatprep.mubr.bf16.mxu1 %v10919_v61  ;;  %v10922_v51 = vld [vmem:[#allocation58_spill] sm:$0xff] }
 0x13c   : > { %v6910_v6 = vpop.f32.mrf.mxu0 }
 0x13d   : > { %v9662_v13 = vadd.f32 %v6910_v6, %v6909_v28  ;;  %v10924_v28 = vld [vmem:[#allocation61_spill] sm:$0xff] }
 0x13e   : > { %v6957_v36 = vpop.f32.mrf.mxu1  ;;  %v6912_v27 = vpop.f32.mrf.mxu0 }
 0x13f   : > { %4168 = vmatmul.mubr.bf16.gmra.mxu0 %v8847_v37 }
 0x140   : > { %v6958_v4 = vpop.f32.mrf.mxu1  ;;  %v6913_v21 = vpop.f32.mrf.mxu0  ;;  %4175 = vmatprep.mubr.bf16.mxu0 %v8887_v42  ;;  %v10925_v42 = vld [vmem:[#allocation65_spill] sm:$0xff] }
 0x141   : > { %v9665_v14 = vadd.f32 %v6958_v4, %v6957_v36  ;;  %v9669_v3 = vadd.f32 %v6913_v21, %v6912_v27 }
 0x142   : > { %v6960_v63 = vpop.f32.mrf.mxu1  ;;  %4007 = vmatmul.mubr.bf16.gmra.mxu1 %v10921_v58  ;;  %v10929_v58 = vld [vmem:[#allocation11_spill] sm:$0xff] }
 0x143   : > { %10920 = vst [vmem:[#allocation29_spill] sm:$0xff] %v9665_v14  ;;  %4014 = vmatprep.mubr.bf16.mxu1 %v10922_v51 }
 0x144   : > { %v6961_v24 = vpop.f32.mrf.mxu1 }
 0x145   : > { %v9672_v34 = vadd.f32 %v6961_v24, %v6960_v63 }
 0x147   : > { %10923 = vst [vmem:[#allocation34_spill] sm:$0xff] %v9672_v34  ;;  %v6915_v6 = vpop.f32.mrf.mxu0  ;;  %4176 = vmatmul.mubr.bf16.gmra.mxu0 %v8922_v44 }
 0x148   : > { %4183 = vmatprep.mubr.bf16.mxu0 %v8964_v62 }
 0x149   : > { %v6916_v4 = vpop.f32.mrf.mxu0 }
 0x14a   : > { %v6963_v36 = vpop.f32.mrf.mxu1  ;;  %4015 = vmatmul.mubr.bf16.gmra.mxu1 %v10924_v28  ;;  %v9677_v37 = vadd.f32 %v6916_v4, %v6915_v6  ;;  %v10928_v4 = vld [vmem:[#allocation69_spill] sm:$0xff] }
 0x14b   : > { %4022 = vmatprep.mubr.bf16.mxu1 %v10925_v42  ;;  %v6918_v21 = vpop.f32.mrf.mxu0 }
 0x14c   : > { %v6964_v27 = vpop.f32.mrf.mxu1 }
 0x14d   : > { %v9680_v14 = vadd.f32 %v6964_v27, %v6963_v36  ;;  %v6919_v24 = vpop.f32.mrf.mxu0 }
 0x14e   : > { %v6966_v51 = vpop.f32.mrf.mxu1  ;;  %v9682_v63 = vadd.f32 %v6919_v24, %v6918_v21 }
 0x14f   : > { %10926 = vst [vmem:[#allocation37_spill] sm:$0xff] %v9680_v14  ;;  %v7097_v44 = vpop.f32.mrf.mxu0  ;;  %4184 = vmatmul.mubr.bf16.gmra.mxu0 %v9003_v1 }
 0x150   : > { %v6967_v34 = vpop.f32.mrf.mxu1  ;;  %4191 = vmatprep.mubr.bf16.mxu0 %v8307_v56 }
 0x151   : > { %v9685_v62 = vadd.f32 %v6967_v34, %v6966_v51  ;;  %v7098_v42 = vpop.f32.mrf.mxu0 }
 0x152   : > { %v6985_v6 = vpop.f32.mrf.mxu1  ;;  %4023 = vmatmul.mubr.bf16.gmra.mxu1 %v10928_v4  ;;  %v7099_v28 = vadd.f32 %v7098_v42, %v7097_v44  ;;  %v10931_v44 = vld [vmem:[#allocation14_spill] sm:$0xff] }
 0x153   : > { %10927 = vst [vmem:[#allocation41_spill] sm:$0xff] %v9685_v62  ;;  %4030 = vmatprep.mubr.bf16.mxu1 %v10929_v58  ;;  %v7100_v27 = vpop.f32.mrf.mxu0  ;;  %v10932_v58 = vld [vmem:[#allocation19_spill] sm:$0xff] }
 0x154   : > { %v6986_v36 = vpop.f32.mrf.mxu1 }
 0x155   : > { %v6987_v14 = vadd.f32 %v6986_v36, %v6985_v6  ;;  %v7101_v24 = vpop.f32.mrf.mxu0 }
 0x156   : > { %v6988_v21 = vpop.f32.mrf.mxu1  ;;  %v7102_v39 = vadd.f32 %v7101_v24, %v7100_v27 }
 0x157   : > { %v2871_v2 = vadd.f32 %v6987_v14, %v9478_v47  ;;  %v7103_v51 = vpop.f32.mrf.mxu0  ;;  %4192 = vmatmul.mubr.bf16.gmra.mxu0 %v8328_v7 }
 0x158   : > { %v6989_v1 = vpop.f32.mrf.mxu1  ;;  %4199 = vmatprep.mubr.bf16.mxu0 %v8413_v50 }
 0x159   : > { %v9692_v34 = vadd.f32 %v7099_v28, %v2871_v2  ;;  %v6990_v56 = vadd.f32 %v6989_v1, %v6988_v21  ;;  %v7104_v62 = vpop.f32.mrf.mxu0 }
 0x15a   : > { %v6991_v42 = vpop.f32.mrf.mxu1  ;;  %4031 = vmatmul.mubr.bf16.gmra.mxu1 %v10931_v44  ;;  %v7105_v36 = vadd.f32 %v7104_v62, %v7103_v51 }
 0x15b   : > { %10930 = vst [vmem:[#allocation46_spill] sm:$0xff] %v9692_v34  ;;  %v2874_v6 = vadd.f32 %v6990_v56, %v9484_v25  ;;  %4038 = vmatprep.mubr.bf16.mxu1 %v10932_v58  ;;  %v7106_v14 = vpop.f32.mrf.mxu0  ;;  %v10933_v25 = vld [vmem:[#allocation23_spill] sm:$0xff] }
 0x15c   : > { %v6992_v47 = vpop.f32.mrf.mxu1 }
 0x15d   : > { %v9698_v27 = vadd.f32 %v7102_v39, %v2874_v6  ;;  %v6993_v24 = vadd.f32 %v6992_v47, %v6991_v42  ;;  %v7107_v2 = vpop.f32.mrf.mxu0  ;;  %v10934_v6 = vld [vmem:[#allocation27_spill] sm:$0xff] }
 0x15e   : > { %v6994_v7 = vpop.f32.mrf.mxu1  ;;  %v7108_v28 = vadd.f32 %v7107_v2, %v7106_v14 }
 0x15f   : > { %v2879_v1 = vadd.f32 %v6993_v24, %v9494_v20  ;;  %v7109_v50 = vpop.f32.mrf.mxu0  ;;  %4200 = vmatmul.mubr.bf16.gmra.mxu0 %v8477_v45 }
 0x160   : > { %v6995_v21 = vpop.f32.mrf.mxu1  ;;  %4207 = vmatprep.mubr.bf16.mxu0 %v8520_v26 }
 0x161   : > { %v9702_v34 = vadd.f32 %v7105_v36, %v2879_v1  ;;  %v6996_v56 = vadd.f32 %v6995_v21, %v6994_v7  ;;  %v7110_v39 = vpop.f32.mrf.mxu0 }
 0x162   : > { %v6997_v62 = vpop.f32.mrf.mxu1  ;;  %4039 = vmatmul.mubr.bf16.gmra.mxu1 %v10933_v25  ;;  %v7111_v42 = vadd.f32 %v7110_v39, %v7109_v50 }
 0x163   : > { %v2882_v51 = vadd.f32 %v6996_v56, %v9500_v15  ;;  %4046 = vmatprep.mubr.bf16.mxu1 %v10934_v6  ;;  %v7112_v47 = vpop.f32.mrf.mxu0  ;;  %v10935_v56 = vld [vmem:[#allocation31_spill] sm:$0xff] }
 0x164   : > { %v6998_v20 = vpop.f32.mrf.mxu1 }
 0x165   : > { %v9708_v14 = vadd.f32 %v7108_v28, %v2882_v51  ;;  %v6999_v24 = vadd.f32 %v6998_v20, %v6997_v62  ;;  %v7113_v36 = vpop.f32.mrf.mxu0  ;;  %v10936_v51 = vld [vmem:[#allocation35_spill] sm:$0xff] }
 0x166   : > { %v7000_v2 = vpop.f32.mrf.mxu1  ;;  %v7114_v1 = vadd.f32 %v7113_v36, %v7112_v47 }
 0x167   : > { %v2887_v7 = vadd.f32 %v6999_v24, %v9513_v55  ;;  %v7115_v26 = vpop.f32.mrf.mxu0  ;;  %4208 = vmatmul.mubr.bf16.gmra.mxu0 %v8595_v48 }
 0x168   : > { %v7001_v21 = vpop.f32.mrf.mxu1  ;;  %4215 = vmatprep.mubr.bf16.mxu0 %v8657_v18 }
 0x169   : > { %v9712_v45 = vadd.f32 %v7111_v42, %v2887_v7  ;;  %v7002_v15 = vadd.f32 %v7001_v21, %v7000_v2  ;;  %v7116_v28 = vpop.f32.mrf.mxu0 }
 0x16a   : > { %v7003_v50 = vpop.f32.mrf.mxu1  ;;  %4047 = vmatmul.mubr.bf16.gmra.mxu1 %v10935_v56  ;;  %v7117_v39 = vadd.f32 %v7116_v28, %v7115_v26 }
 0x16b   : > { %v2890_v62 = vadd.f32 %v7002_v15, %v9532_v19  ;;  %4054 = vmatprep.mubr.bf16.mxu1 %v10936_v51  ;;  %v7118_v20 = vpop.f32.mrf.mxu0  ;;  %v10937_v15 = vld [vmem:[#allocation39_spill] sm:$0xff] }
 0x16c   : > { %v7004_v55 = vpop.f32.mrf.mxu1 }
 0x16d   : > { %v9718_v47 = vadd.f32 %v7114_v1, %v2890_v62  ;;  %v7005_v24 = vadd.f32 %v7004_v55, %v7003_v50  ;;  %v7119_v42 = vpop.f32.mrf.mxu0  ;;  %v10938_v62 = vld [vmem:[#allocation43_spill] sm:$0xff] }
 0x16e   : > { %v7006_v36 = vpop.f32.mrf.mxu1  ;;  %v7120_v7 = vadd.f32 %v7119_v42, %v7118_v20 }
 0x16f   : > { %v2895_v2 = vadd.f32 %v7005_v24, %v9564_v52  ;;  %v7121_v18 = vpop.f32.mrf.mxu0  ;;  %4216 = vmatmul.mubr.bf16.gmra.mxu0 %v8703_v17 }
 0x170   : > { %v7007_v21 = vpop.f32.mrf.mxu1  ;;  %4223 = vmatprep.mubr.bf16.mxu0 %v8753_v9 }
 0x171   : > { %v9722_v48 = vadd.f32 %v7117_v39, %v2895_v2  ;;  %v7008_v19 = vadd.f32 %v7007_v21, %v7006_v36  ;;  %v7122_v1 = vpop.f32.mrf.mxu0 }
 0x172   : > { %v7009_v26 = vpop.f32.mrf.mxu1  ;;  %4055 = vmatmul.mubr.bf16.gmra.mxu1 %v10937_v15  ;;  %v7123_v28 = vadd.f32 %v7122_v1, %v7121_v18 }
 0x173   : > { %v2898_v50 = vadd.f32 %v7008_v19, %v9581_v57  ;;  %4062 = vmatprep.mubr.bf16.mxu1 %v10938_v62  ;;  %v7124_v55 = vpop.f32.mrf.mxu0  ;;  %v10939_v19 = vld [vmem:[#allocation47_spill] sm:$0xff] }
 0x174   : > { %v7010_v52 = vpop.f32.mrf.mxu1 }
 0x175   : > { %v9728_v20 = vadd.f32 %v7120_v7, %v2898_v50  ;;  %v7011_v24 = vadd.f32 %v7010_v52, %v7009_v26  ;;  %v7125_v39 = vpop.f32.mrf.mxu0  ;;  %v10940_v50 = vld [vmem:[#allocation51_spill] sm:$0xff] }
 0x176   : > { %v7012_v42 = vpop.f32.mrf.mxu1  ;;  %v7126_v2 = vadd.f32 %v7125_v39, %v7124_v55 }
 0x177   : > { %v2903_v36 = vadd.f32 %v7011_v24, %v9616_v23  ;;  %v7127_v9 = vpop.f32.mrf.mxu0  ;;  %4224 = vmatmul.mubr.bf16.gmra.mxu0 %v8792_v5 }
 0x178   : > { %v7013_v21 = vpop.f32.mrf.mxu1  ;;  %4231 = vmatprep.mubr.bf16.mxu0 %v8817_v46 }
 0x179   : > { %v9732_v17 = vadd.f32 %v7123_v28, %v2903_v36  ;;  %v7014_v57 = vadd.f32 %v7013_v21, %v7012_v42  ;;  %v7128_v7 = vpop.f32.mrf.mxu0 }
 0x17a   : > { %v7015_v18 = vpop.f32.mrf.mxu1  ;;  %4063 = vmatmul.mubr.bf16.gmra.mxu1 %v10939_v19  ;;  %v7129_v1 = vadd.f32 %v7128_v7, %v7127_v9 }
 0x17b   : > { %v2906_v26 = vadd.f32 %v7014_v57, %v9636_v40  ;;  %4070 = vmatprep.mubr.bf16.mxu1 %v10940_v50  ;;  %v7130_v52 = vpop.f32.mrf.mxu0  ;;  %v10941_v57 = vld [vmem:[#allocation55_spill] sm:$0xff] }
 0x17c   : > { %v7016_v23 = vpop.f32.mrf.mxu1 }
 0x17d   : > { %v9738_v55 = vadd.f32 %v7126_v2, %v2906_v26  ;;  %v7017_v24 = vadd.f32 %v7016_v23, %v7015_v18  ;;  %v7131_v28 = vpop.f32.mrf.mxu0  ;;  %v10942_v26 = vld [vmem:[#allocation59_spill] sm:$0xff] }
 0x17e   : > { %v7018_v39 = vpop.f32.mrf.mxu1  ;;  %v7132_v36 = vadd.f32 %v7131_v28, %v7130_v52 }
 0x17f   : > { %v2911_v42 = vadd.f32 %v7017_v24, %v9649_v33  ;;  %v7133_v46 = vpop.f32.mrf.mxu0  ;;  %4232 = vmatmul.mubr.bf16.gmra.mxu0 %v8862_v8 }
 0x180   : > { %v7019_v21 = vpop.f32.mrf.mxu1  ;;  %4239 = vmatprep.mubr.bf16.mxu0 %v8907_v0 }
 0x181   : > { %v9742_v5 = vadd.f32 %v7129_v1, %v2911_v42  ;;  %v7020_v40 = vadd.f32 %v7019_v21, %v7018_v39  ;;  %v7134_v2 = vpop.f32.mrf.mxu0 }
 0x182   : > { %v7021_v9 = vpop.f32.mrf.mxu1  ;;  %4071 = vmatmul.mubr.bf16.gmra.mxu1 %v10941_v57  ;;  %v7135_v7 = vadd.f32 %v7134_v2, %v7133_v46 }
 0x183   : > { %v2914_v18 = vadd.f32 %v7020_v40, %v9654_v12  ;;  %4078 = vmatprep.mubr.bf16.mxu1 %v10942_v26  ;;  %v7136_v23 = vpop.f32.mrf.mxu0  ;;  %v10943_v40 = vld [vmem:[#allocation63_spill] sm:$0xff] }
 0x184   : > { %v7022_v33 = vpop.f32.mrf.mxu1 }
 0x185   : > { %v9748_v52 = vadd.f32 %v7132_v36, %v2914_v18  ;;  %v7023_v24 = vadd.f32 %v7022_v33, %v7021_v9  ;;  %v7137_v1 = vpop.f32.mrf.mxu0 }
 0x186   : > { %v7024_v28 = vpop.f32.mrf.mxu1  ;;  %v7138_v42 = vadd.f32 %v7137_v1, %v7136_v23  ;;  %v8036_v1 = vld [vmem:[%s10510_s3 + $0x3b8] sm:$0xff]  }
 0x187   : > { %v2919_v39 = vadd.f32 %v7023_v24, %v9662_v13  ;;  %v7139_v0 = vpop.f32.mrf.mxu0  ;;  %4240 = vmatmul.mubr.bf16.gmra.mxu0 %v8936_v16  ;;  %v10958_v16 = vld [vmem:[#allocation87_spill] sm:$0xff] }
 0x188   : > { %v7025_v21 = vpop.f32.mrf.mxu1  ;;  %5403 = vmatprep.mubr.bf16.mxu0 %v10905_v38 }
 0x189   : > { %v9752_v8 = vadd.f32 %v7135_v7, %v2919_v39  ;;  %v7026_v12 = vadd.f32 %v7025_v21, %v7024_v28  ;;  %v7140_v36 = vpop.f32.mrf.mxu0  ;;  %v8038_v7 = vld [vmem:[%s10510_s3 + $0x438] sm:$0xff]   ;;  %v8041_v28 = vld [vmem:[%s10510_s3 + $0x470] sm:$0xff]  }
 0x18a   : > { %v7027_v46 = vpop.f32.mrf.mxu1  ;;  %4079 = vmatmul.mubr.bf16.gmra.mxu1 %v10943_v40  ;;  %v7141_v2 = vadd.f32 %v7140_v36, %v7139_v0  ;;  %v8039_v21 = vld [vmem:[%s10510_s3 + $0x3f0] sm:$0xff]  }
 0x18b   : > { %v2922_v9 = vadd.f32 %v7026_v12, %v9669_v3  ;;  %4280 = vmatprep.mubr.bf16.mxu1 %v9496_v35  ;;  %v7142_v18 = vpop.f32.mrf.mxu0 }
 0x18c   : > { %v7028_v13 = vpop.f32.mrf.mxu1 }
 0x18d   : > { %v9758_v33 = vadd.f32 %v7138_v42, %v2922_v9  ;;  %v7029_v23 = vadd.f32 %v7028_v13, %v7027_v46  ;;  %v7143_v38 = vpop.f32.mrf.mxu0 }
 0x18e   : > { %v7030_v24 = vpop.f32.mrf.mxu1  ;;  %v7144_v0 = vadd.f32 %v7143_v38, %v7142_v18  ;;  %v10944_v18 = vld [vmem:[#allocation68_spill] sm:$0xff] }
 0x18f   : > { %v2927_v3 = vadd.f32 %v7029_v23, %v9677_v37  ;;  %v7145_v42 = vpop.f32.mrf.mxu0  ;;  %5404 = vmatmul.mubr.bf16.vlgmr.msra.gmra.mxu0 %v10908_v10  ;;  %v8042_v37 = vld [vmem:[%s10510_s3 + $0x430] sm:$0xff]   ;;  %v8045_v10 = vld [vmem:[%s10510_s3 + $0x468] sm:$0xff]  }
 0x190   : > { %v7031_v39 = vpop.f32.mrf.mxu1  ;;  %7754 = vmatpush3.bf16.msra.mxu0 %v8038_v7  ;;  %5411 = vmatprep.mubr.bf16.mxu0 %v10909_v59  ;;  %v8040_v59 = vld [vmem:[%s10510_s3 + $0x3b0] sm:$0xff]  }
 0x191   : > { %v9774_v12 = vadd.f32 %v7141_v2, %v2927_v3  ;;  %v7032_v46 = vadd.f32 %v7031_v39, %v7030_v24  ;;  %v7146_v9 = vpop.f32.mrf.mxu0  ;;  %7755 = vmatprep.subr.bf16.mxu0 %v8041_v28  ;;  %v8043_v24 = vld [vmem:[%s10510_s3 + $0x3e8] sm:$0xff]   ;;  %v8049_v39 = vld [vmem:[%s10510_s3 + $0x460] sm:$0xff]  }
 0x192   : > { %v7033_v36 = vpop.f32.mrf.mxu1  ;;  %4281 = vmatmul.mubr.bf16.vlgmr.msra.gmra.mxu1 %v9508_v11  ;;  %v7147_v13 = vadd.f32 %v7146_v9, %v7145_v42 }
 0x193   : > { %v2930_v2 = vadd.f32 %v7032_v46, %v9682_v63  ;;  %7642 = vmatpush3.bf16.msra.mxu1 %v8036_v1  ;;  %4288 = vmatprep.mubr.bf16.mxu1 %v10944_v18  ;;  %v7148_v7 = vpop.f32.mrf.mxu0  ;;  %v8046_v63 = vld [vmem:[%s10510_s3 + $0x428] sm:$0xff]  }
 0x194   : > { %v7034_v23 = vpop.f32.mrf.mxu1  ;;  %7643 = vmatprep.subr.bf16.mxu1 %v8039_v21  ;;  %7756 = vmatpush3.bf16.msra.mxu0 %v8042_v37  ;;  %v10945_v18 = vld [vmem:[#allocation71_spill] sm:$0xff] }
 0x195   : > { %v9792_v38 = vadd.f32 %v7144_v0, %v2930_v2  ;;  %v7035_v28 = vadd.f32 %v7034_v23, %v7033_v36  ;;  %v7149_v1 = vpop.f32.mrf.mxu0  ;;  %7757 = vmatprep.subr.bf16.mxu0 %v8045_v10  ;;  %v8044_v0 = vld [vmem:[%s10510_s3 + $0x3a8] sm:$0xff]   ;;  %v8047_v36 = vld [vmem:[%s10510_s3 + $0x3e0] sm:$0xff]  }
 0x196   : > { %v7036_v3 = vpop.f32.mrf.mxu1  ;;  %v7150_v21 = vadd.f32 %v7149_v1, %v7148_v7  ;;  %v10946_v7 = vld [vmem:[#allocation72_spill] sm:$0xff] }
 0x197   : > { %v2935_v42 = vadd.f32 %v7035_v28, %v9480_v49  ;;  %7644 = vmatpush3.bf16.msra.mxu1 %v8040_v59  ;;  %v7151_v37 = vpop.f32.mrf.mxu0  ;;  %5412 = vmatmul.mubr.bf16.gmra.mxu0 %v10911_v53  ;;  %v8050_v49 = vld [vmem:[%s10510_s3 + $0x420] sm:$0xff]   ;;  %v8053_v53 = vld [vmem:[%s10510_s3 + $0x458] sm:$0xff]  }
 0x198   : > { %v7037_v46 = vpop.f32.mrf.mxu1  ;;  %7645 = vmatprep.subr.bf16.mxu1 %v8043_v24  ;;  %5419 = vmatprep.mubr.bf16.mxu0 %v10912_v43  ;;  %v8048_v43 = vld [vmem:[%s10510_s3 + $0x3a0] sm:$0xff]  }
 0x199   : > { %v9808_v9 = vadd.f32 %v7147_v13, %v2935_v42  ;;  %v7038_v10 = vadd.f32 %v7037_v46, %v7036_v3  ;;  %7758 = vmatpush3.bf16.msra.mxu0 %v8046_v63  ;;  %v7152_v59 = vpop.f32.mrf.mxu0  ;;  %v8051_v63 = vld [vmem:[%s10510_s3 + $0x3d8] sm:$0xff]  }
 0x19a   : > { %v7039_v2 = vpop.f32.mrf.mxu1  ;;  %4289 = vmatmul.mubr.bf16.gmra.mxu1 %v10945_v18  ;;  %7759 = vmatprep.subr.bf16.mxu0 %v8049_v39  ;;  %v7153_v23 = vadd.f32 %v7152_v59, %v7151_v37 }
 0x19b   : > { %v2938_v13 = vadd.f32 %v7038_v10, %v9488_v54  ;;  %4296 = vmatprep.mubr.bf16.mxu1 %v10946_v7  ;;  %7646 = vmatpush3.bf16.msra.mxu1 %v8044_v0  ;;  %v7154_v28 = vpop.f32.mrf.mxu0  ;;  %v8054_v54 = vld [vmem:[%s10510_s3 + $0x418] sm:$0xff]   ;;  %v8057_v0 = vld [vmem:[%s10510_s3 + $0x450] sm:$0xff]  }
 0x19c   : > { %v7040_v24 = vpop.f32.mrf.mxu1  ;;  %7647 = vmatprep.subr.bf16.mxu1 %v8047_v36 }
 0x19d   : > { %v9826_v3 = vadd.f32 %v7150_v21, %v2938_v13  ;;  %v7041_v1 = vadd.f32 %v7040_v24, %v7039_v2  ;;  %7760 = vmatpush3.bf16.msra.mxu0 %v8050_v49  ;;  %v7155_v42 = vpop.f32.mrf.mxu0  ;;  %v8052_v21 = vld [vmem:[%s10510_s3 + $0x398] sm:$0xff]   ;;  %v8055_v49 = vld [vmem:[%s10510_s3 + $0x3d0] sm:$0xff]  }
 0x19e   : > { %v7042_v39 = vpop.f32.mrf.mxu1  ;;  %7761 = vmatprep.subr.bf16.mxu0 %v8053_v53  ;;  %v7156_v37 = vadd.f32 %v7155_v42, %v7154_v28 }
 0x19f   : > { %v2943_v46 = vadd.f32 %v7041_v1, %v9498_v60  ;;  %7648 = vmatpush3.bf16.msra.mxu1 %v8048_v43  ;;  %v7157_v10 = vpop.f32.mrf.mxu0  ;;  %5420 = vmatmul.mubr.bf16.gmra.mxu0 %v10914_v22  ;;  %v8058_v60 = vld [vmem:[%s10510_s3 + $0x410] sm:$0xff]   ;;  %v8061_v22 = vld [vmem:[%s10510_s3 + $0x448] sm:$0xff]   ;;  %v10947_v43 = vld [vmem:[#allocation73_spill] sm:$0xff] }
 0x1a0   : > { %v7043_v36 = vpop.f32.mrf.mxu1  ;;  %7649 = vmatprep.subr.bf16.mxu1 %v8051_v63  ;;  %5427 = vmatprep.mubr.bf16.mxu0 %v10915_v31  ;;  %v8056_v31 = vld [vmem:[%s10510_s3 + $0x390] sm:$0xff]   ;;  %v8059_v63 = vld [vmem:[%s10510_s3 + $0x3c8] sm:$0xff]  }
 0x1a1   : > { %v9842_v2 = vadd.f32 %v7153_v23, %v2943_v46  ;;  %v7044_v18 = vadd.f32 %v7043_v36, %v7042_v39  ;;  %7762 = vmatpush3.bf16.msra.mxu0 %v8054_v54  ;;  %v7158_v53 = vpop.f32.mrf.mxu0 }
 0x1a2   : > { %v7045_v59 = vpop.f32.mrf.mxu1  ;;  %4297 = vmatmul.mubr.bf16.gmra.mxu1 %v9178_v41  ;;  %7763 = vmatprep.subr.bf16.mxu0 %v8057_v0  ;;  %v7159_v23 = vadd.f32 %v7158_v53, %v7157_v10  ;;  %v8065_v0 = vld [vmem:[%s10510_s3 + $0x440] sm:$0xff]   ;;  %v10948_v53 = vld [vmem:[#allocation80_spill] sm:$0xff] }
 0x1a3   : > { %v2946_v13 = vadd.f32 %v7044_v18, %v9504_v29  ;;  %4304 = vmatprep.mubr.bf16.mxu1 %v10947_v43  ;;  %7650 = vmatpush3.bf16.msra.mxu1 %v8052_v21  ;;  %v7160_v28 = vpop.f32.mrf.mxu0  ;;  %v8062_v29 = vld [vmem:[%s10510_s3 + $0x408] sm:$0xff]  }
 0x1a4   : > { %v7046_v24 = vpop.f32.mrf.mxu1  ;;  %7651 = vmatprep.subr.bf16.mxu1 %v8055_v49  ;;  %v8063_v49 = vld [vmem:[%s10510_s3 + $0x3c0] sm:$0xff]  }
 0x1a5   : > { %v9860_v1 = vadd.f32 %v7156_v37, %v2946_v13  ;;  %v7047_v54 = vadd.f32 %v7046_v24, %v7045_v59  ;;  %7764 = vmatpush3.bf16.msra.mxu0 %v8058_v60  ;;  %v7161_v42 = vpop.f32.mrf.mxu0  ;;  %v8060_v37 = vld [vmem:[%s10510_s3 + $0x388] sm:$0xff]   ;;  %v10950_v24 = vld [vmem:[#allocation82_spill] sm:$0xff] }
 0x1a6   : > { %v7048_v39 = vpop.f32.mrf.mxu1  ;;  %7765 = vmatprep.subr.bf16.mxu0 %v8061_v22  ;;  %v7162_v21 = vadd.f32 %v7161_v42, %v7160_v28  ;;  %v10952_v42 = vld [vmem:[#allocation10_spill] sm:$0xff] }
 0x1a7   : > { %v2951_v46 = vadd.f32 %v7047_v54, %v9526_v32  ;;  %7652 = vmatpush3.bf16.msra.mxu1 %v8056_v31  ;;  %v7163_v10 = vpop.f32.mrf.mxu0  ;;  %5428 = vmatmul.mubr.bf16.gmra.mxu0 %v10918_v30  ;;  %v8066_v32 = vld [vmem:[%s10510_s3 + $0x400] sm:$0xff]  }
 0x1a8   : > { %v7049_v36 = vpop.f32.mrf.mxu1  ;;  %7653 = vmatprep.subr.bf16.mxu1 %v8059_v63  ;;  %5435 = vmatprep.mubr.bf16.mxu0 %v10919_v61  ;;  %v10949_v30 = vld [vmem:[#allocation6_spill] sm:$0xff] }
 0x1a9   : > { %v9876_v18 = vadd.f32 %v7159_v23, %v2951_v46  ;;  %v7050_v60 = vadd.f32 %v7049_v36, %v7048_v39  ;;  %7766 = vmatpush3.bf16.msra.mxu0 %v8062_v29  ;;  %v7164_v22 = vpop.f32.mrf.mxu0  ;;  %v8064_v61 = vld [vmem:[%s10510_s3 + $0x380] sm:$0xff]  }
 0x1aa   : > { %v7051_v59 = vpop.f32.mrf.mxu1  ;;  %4305 = vmatmul.mubr.bf16.gmra.mxu1 %v10948_v53  ;;  %7767 = vmatprep.subr.bf16.mxu0 %v8065_v0  ;;  %v7165_v31 = vadd.f32 %v7164_v22, %v7163_v10 }
 0x1ab   : > { %v2954_v13 = vadd.f32 %v7050_v60, %v10949_v30  ;;  %4312 = vmatprep.mubr.bf16.mxu1 %v10950_v24  ;;  %7654 = vmatpush3.bf16.msra.mxu1 %v8060_v37  ;;  %v7166_v28 = vpop.f32.mrf.mxu0  ;;  %v10953_v37 = vld [vmem:[#allocation53_spill] sm:$0xff]  ;;  %v10955_v30 = vld [vmem:[#allocation58_spill] sm:$0xff] }
 0x1ac   : > { %v7052_v23 = vpop.f32.mrf.mxu1  ;;  %7655 = vmatprep.subr.bf16.mxu1 %v8063_v49 }
 0x1ad   : > { %v9888_v63 = vadd.f32 %v7162_v21, %v2954_v13  ;;  %v7053_v54 = vadd.f32 %v7052_v23, %v7051_v59  ;;  %7768 = vmatpush3.bf16.msra.mxu0 %v8066_v32  ;;  %v7167_v39 = vpop.f32.mrf.mxu0  ;;  %v10956_v21 = vld [vmem:[#allocation86_spill] sm:$0xff]  ;;  %v10957_v32 = vld [vmem:[#allocation8_spill] sm:$0xff] }
 0x1ae   : > { %v7054_v29 = vpop.f32.mrf.mxu1  ;;  %v7168_v46 = vadd.f32 %v7167_v39, %v7166_v28 }
 0x1af   : > { %10951 = vst [vmem:[#allocation49_spill] sm:$0xff] %v9888_v63  ;;  %v2959_v0 = vadd.f32 %v7053_v54, %v10952_v42  ;;  %7656 = vmatpush3.bf16.msra.mxu1 %v8064_v61  ;;  %v7169_v10 = vpop.f32.mrf.mxu0  ;;  %5436 = vmatmul.mubr.bf16.gmra.mxu0 %v10953_v37 }
 0x1b0   : > { %v7055_v36 = vpop.f32.mrf.mxu1  ;;  %5443 = vmatprep.mubr.bf16.mxu0 %v10955_v30 }
 0x1b1   : > { %v9892_v60 = vadd.f32 %v7165_v31, %v2959_v0  ;;  %v7056_v22 = vadd.f32 %v7055_v36, %v7054_v29  ;;  %v7170_v59 = vpop.f32.mrf.mxu0  ;;  %v10960_v0 = vld [vmem:[#allocation13_spill] sm:$0xff] }
 0x1b2   : > { %v7057_v49 = vpop.f32.mrf.mxu1  ;;  %4313 = vmatmul.mubr.bf16.gmra.mxu1 %v10956_v21  ;;  %v7171_v23 = vadd.f32 %v7170_v59, %v7169_v10  ;;  %v10963_v10 = vld [vmem:[#allocation65_spill] sm:$0xff] }
 0x1b3   : > { %10954 = vst [vmem:[#allocation69_spill] sm:$0xff] %v9892_v60  ;;  %v2962_v13 = vadd.f32 %v7056_v22, %v10957_v32  ;;  %4320 = vmatprep.mubr.bf16.mxu1 %v10958_v16  ;;  %v7172_v61 = vpop.f32.mrf.mxu0  ;;  %v10961_v60 = vld [vmem:[#allocation61_spill] sm:$0xff]  ;;  %v10964_v32 = vld [vmem:[#allocation88_spill] sm:$0xff] }
 0x1b4   : > { %v7058_v28 = vpop.f32.mrf.mxu1 }
 0x1b5   : > { %v9898_v54 = vadd.f32 %v7168_v46, %v2962_v13  ;;  %v7059_v39 = vadd.f32 %v7058_v28, %v7057_v49  ;;  %v7173_v31 = vpop.f32.mrf.mxu0  ;;  %v10965_v13 = vld [vmem:[#allocation17_spill] sm:$0xff] }
 0x1b6   : > { %v7060_v42 = vpop.f32.mrf.mxu1  ;;  %v7174_v36 = vadd.f32 %v7173_v31, %v7172_v61 }
 0x1b7   : > { %10959 = vst [vmem:[#allocation14_spill] sm:$0xff] %v9898_v54  ;;  %v2967_v29 = vadd.f32 %v7059_v39, %v10960_v0  ;;  %v7175_v30 = vpop.f32.mrf.mxu0  ;;  %5444 = vmatmul.mubr.bf16.gmra.mxu0 %v10961_v60  ;;  %v10966_v54 = vld [vmem:[#allocation89_spill] sm:$0xff] }
 0x1b8   : > { %v7061_v37 = vpop.f32.mrf.mxu1  ;;  %5451 = vmatprep.mubr.bf16.mxu0 %v10963_v10 }
 0x1b9   : > { %v9902_v63 = vadd.f32 %v7171_v23, %v2967_v29  ;;  %v7062_v22 = vadd.f32 %v7061_v37, %v7060_v42  ;;  %v7176_v46 = vpop.f32.mrf.mxu0  ;;  %v10968_v29 = vld [vmem:[#allocation22_spill] sm:$0xff] }
 0x1ba   : > { %v7063_v59 = vpop.f32.mrf.mxu1  ;;  %4321 = vmatmul.mubr.bf16.gmra.mxu1 %v10964_v32  ;;  %v7177_v28 = vadd.f32 %v7176_v46, %v7175_v30  ;;  %v10970_v30 = vld [vmem:[#allocation11_spill] sm:$0xff] }
 0x1bb   : > { %10962 = vst [vmem:[#allocation19_spill] sm:$0xff] %v9902_v63  ;;  %v2970_v49 = vadd.f32 %v7062_v22, %v10965_v13  ;;  %4328 = vmatprep.mubr.bf16.mxu1 %v10966_v54  ;;  %v7178_v61 = vpop.f32.mrf.mxu0  ;;  %v10971_v13 = vld [vmem:[#allocation90_spill] sm:$0xff] }
 0x1bc   : > { %v7064_v39 = vpop.f32.mrf.mxu1 }
 0x1bd   : > { %v9908_v31 = vadd.f32 %v7174_v36, %v2970_v49  ;;  %v7065_v0 = vadd.f32 %v7064_v39, %v7063_v59  ;;  %v7179_v23 = vpop.f32.mrf.mxu0  ;;  %v10972_v49 = vld [vmem:[#allocation25_spill] sm:$0xff] }
 0x1be   : > { %v7066_v60 = vpop.f32.mrf.mxu1  ;;  %v7180_v37 = vadd.f32 %v7179_v23, %v7178_v61 }
 0x1bf   : > { %10967 = vst [vmem:[#allocation23_spill] sm:$0xff] %v9908_v31  ;;  %v2975_v42 = vadd.f32 %v7065_v0, %v10968_v29  ;;  %v7181_v63 = vpop.f32.mrf.mxu0  ;;  %5452 = vmatmul.mubr.bf16.gmra.mxu0 %v10928_v4  ;;  %v10973_v31 = vld [vmem:[#allocation91_spill] sm:$0xff] }
 0x1c0   : > { %v7067_v10 = vpop.f32.mrf.mxu1  ;;  %5459 = vmatprep.mubr.bf16.mxu0 %v10970_v30 }
 0x1c1   : > { %v9912_v32 = vadd.f32 %v7177_v28, %v2975_v42  ;;  %v7068_v22 = vadd.f32 %v7067_v10, %v7066_v60  ;;  %v7182_v36 = vpop.f32.mrf.mxu0  ;;  %v10975_v42 = vld [vmem:[#allocation29_spill] sm:$0xff] }
 0x1c2   : > { %v7069_v46 = vpop.f32.mrf.mxu1  ;;  %4329 = vmatmul.mubr.bf16.gmra.mxu1 %v10971_v13  ;;  %v7183_v39 = vadd.f32 %v7182_v36, %v7181_v63  ;;  %v10977_v36 = vld [vmem:[#allocation92_spill] sm:$0xff] }
 0x1c3   : > { %10969 = vst [vmem:[#allocation27_spill] sm:$0xff] %v9912_v32  ;;  %v2978_v59 = vadd.f32 %v7068_v22, %v10972_v49  ;;  %4336 = vmatprep.mubr.bf16.mxu1 %v10973_v31  ;;  %v7184_v61 = vpop.f32.mrf.mxu0  ;;  %v10978_v49 = vld [vmem:[#allocation34_spill] sm:$0xff] }
 0x1c4   : > { %v7070_v0 = vpop.f32.mrf.mxu1 }
 0x1c5   : > { %v9918_v23 = vadd.f32 %v7180_v37, %v2978_v59  ;;  %v7071_v29 = vadd.f32 %v7070_v0, %v7069_v46  ;;  %v7185_v28 = vpop.f32.mrf.mxu0  ;;  %v10979_v0 = vld [vmem:[#allocation93_spill] sm:$0xff] }
 0x1c6   : > { %v7072_v4 = vpop.f32.mrf.mxu1  ;;  %v7186_v10 = vadd.f32 %v7185_v28, %v7184_v61 }
 0x1c7   : > { %10974 = vst [vmem:[#allocation31_spill] sm:$0xff] %v9918_v23  ;;  %v2983_v60 = vadd.f32 %v7071_v29, %v10975_v42  ;;  %v7187_v32 = vpop.f32.mrf.mxu0  ;;  %5460 = vmatmul.mubr.bf16.gmra.mxu0 %v10931_v44 }
 0x1c8   : > { %v7073_v30 = vpop.f32.mrf.mxu1  ;;  %5467 = vmatprep.mubr.bf16.mxu0 %v10932_v58 }
 0x1c9   : > { %v9922_v13 = vadd.f32 %v7183_v39, %v2983_v60  ;;  %v7074_v22 = vadd.f32 %v7073_v30, %v7072_v4  ;;  %v7188_v37 = vpop.f32.mrf.mxu0  ;;  %v10981_v60 = vld [vmem:[#allocation37_spill] sm:$0xff] }
 0x1ca   : > { %v7075_v63 = vpop.f32.mrf.mxu1  ;;  %4337 = vmatmul.mubr.bf16.gmra.mxu1 %v10977_v36  ;;  %v7189_v59 = vadd.f32 %v7188_v37, %v7187_v32  ;;  %v10983_v37 = vld [vmem:[#allocation94_spill] sm:$0xff] }
 0x1cb   : > { %10976 = vst [vmem:[#allocation35_spill] sm:$0xff] %v9922_v13  ;;  %v2986_v46 = vadd.f32 %v7074_v22, %v10978_v49  ;;  %4344 = vmatprep.mubr.bf16.mxu1 %v10979_v0  ;;  %v7190_v61 = vpop.f32.mrf.mxu0  ;;  %v10984_v49 = vld [vmem:[#allocation41_spill] sm:$0xff] }
 0x1cc   : > { %v7076_v29 = vpop.f32.mrf.mxu1 }
 0x1cd   : > { %v9928_v28 = vadd.f32 %v7186_v10, %v2986_v46  ;;  %v7077_v42 = vadd.f32 %v7076_v29, %v7075_v63  ;;  %v7191_v39 = vpop.f32.mrf.mxu0  ;;  %v10985_v29 = vld [vmem:[#allocation95_spill] sm:$0xff] }
 0x1ce   : > { %v7078_v44 = vpop.f32.mrf.mxu1  ;;  %v7192_v30 = vadd.f32 %v7191_v39, %v7190_v61 }
 0x1cf   : > { %10980 = vst [vmem:[#allocation39_spill] sm:$0xff] %v9928_v28  ;;  %v2991_v4 = vadd.f32 %v7077_v42, %v10981_v60  ;;  %v7321_v13 = vpop.f32.mrf.mxu0  ;;  %5468 = vmatmul.mubr.bf16.gmra.mxu0 %v10933_v25 }
 0x1d0   : > { %v7079_v58 = vpop.f32.mrf.mxu1  ;;  %5475 = vmatprep.mubr.bf16.mxu0 %v10934_v6 }
 0x1d1   : > { %v9932_v23 = vadd.f32 %v7189_v59, %v2991_v4  ;;  %v7080_v22 = vadd.f32 %v7079_v58, %v7078_v44  ;;  %v7322_v10 = vpop.f32.mrf.mxu0  ;;  %v10986_v4 = vld [vmem:[#allocation46_spill] sm:$0xff] }
 0x1d2   : > { %v7209_v32 = vpop.f32.mrf.mxu1  ;;  %4345 = vmatmul.mubr.bf16.gmra.mxu1 %v10983_v37  ;;  %v7323_v46 = vadd.f32 %v7322_v10, %v7321_v13  ;;  %v10987_v10 = vld [vmem:[#allocation96_spill] sm:$0xff] }
 0x1d3   : > { %10982 = vst [vmem:[#allocation43_spill] sm:$0xff] %v9932_v23  ;;  %v2994_v63 = vadd.f32 %v7080_v22, %v10984_v49  ;;  %4352 = vmatprep.mubr.bf16.mxu1 %v10985_v29  ;;  %v7324_v61 = vpop.f32.mrf.mxu0 }
 0x1d4   : > { %v7210_v42 = vpop.f32.mrf.mxu1 }
 0x1d5   : > { %v9938_v39 = vadd.f32 %v7192_v30, %v2994_v63  ;;  %v7211_v60 = vadd.f32 %v7210_v42, %v7209_v32  ;;  %v7325_v59 = vpop.f32.mrf.mxu0  ;;  %v10988_v63 = vld [vmem:[#allocation97_spill] sm:$0xff] }
 0x1d6   : > { %v7212_v25 = vpop.f32.mrf.mxu1  ;;  %v7326_v58 = vadd.f32 %v7325_v59, %v7324_v61 }
 0x1d7   : > { %v3961_v44 = vadd.f32 %v7211_v60, %v10986_v4  ;;  %v7327_v23 = vpop.f32.mrf.mxu0  ;;  %5476 = vmatmul.mubr.bf16.gmra.mxu0 %v10935_v56 }
 0x1d8   : > { %v7213_v6 = vpop.f32.mrf.mxu1  ;;  %5483 = vmatprep.mubr.bf16.mxu0 %v10936_v51 }
 0x1d9   : > { %v9942_v28 = vadd.f32 %v7323_v46, %v3961_v44  ;;  %v7214_v22 = vadd.f32 %v7213_v6, %v7212_v25  ;;  %v7328_v30 = vpop.f32.mrf.mxu0 }
 0x1da   : > { %v7215_v13 = vpop.f32.mrf.mxu1  ;;  %4353 = vmatmul.mubr.bf16.gmra.mxu1 %v10987_v10  ;;  %v7329_v49 = vadd.f32 %v7328_v30, %v7327_v23 }
 0x1db   : > { %v3964_v32 = vadd.f32 %v7214_v22, %v9698_v27  ;;  %4360 = vmatprep.mubr.bf16.mxu1 %v10988_v63  ;;  %v7330_v61 = vpop.f32.mrf.mxu0  ;;  %v10989_v22 = vld [vmem:[#allocation98_spill] sm:$0xff] }
 0x1dc   : > { %v7216_v42 = vpop.f32.mrf.mxu1 }
 0x1dd   : > { %v9948_v60 = vadd.f32 %v7326_v58, %v3964_v32  ;;  %v7217_v59 = vadd.f32 %v7216_v42, %v7215_v13  ;;  %v7331_v46 = vpop.f32.mrf.mxu0  ;;  %v10990_v32 = vld [vmem:[#allocation99_spill] sm:$0xff] }
 0x1de   : > { %v7218_v56 = vpop.f32.mrf.mxu1  ;;  %v7332_v4 = vadd.f32 %v7331_v46, %v7330_v61 }
 0x1df   : > { %v3969_v25 = vadd.f32 %v7217_v59, %v9702_v34  ;;  %v7333_v44 = vpop.f32.mrf.mxu0  ;;  %5484 = vmatmul.mubr.bf16.gmra.mxu0 %v10937_v15 }
 0x1e0   : > { %v7219_v51 = vpop.f32.mrf.mxu1  ;;  %5491 = vmatprep.mubr.bf16.mxu0 %v10938_v62 }
 0x1e1   : > { %v9952_v6 = vadd.f32 %v7329_v49, %v3969_v25  ;;  %v7220_v27 = vadd.f32 %v7219_v51, %v7218_v56  ;;  %v7334_v58 = vpop.f32.mrf.mxu0 }
 0x1e2   : > { %v7221_v23 = vpop.f32.mrf.mxu1  ;;  %4361 = vmatmul.mubr.bf16.gmra.mxu1 %v10989_v22  ;;  %v7335_v30 = vadd.f32 %v7334_v58, %v7333_v44 }
 0x1e3   : > { %v3972_v13 = vadd.f32 %v7220_v27, %v9708_v14  ;;  %4368 = vmatprep.mubr.bf16.mxu1 %v10990_v32  ;;  %v7336_v42 = vpop.f32.mrf.mxu0  ;;  %v10991_v27 = vld [vmem:[#allocation100_spill] sm:$0xff] }
 0x1e4   : > { %v7222_v34 = vpop.f32.mrf.mxu1 }
 0x1e5   : > { %v9958_v61 = vadd.f32 %v7332_v4, %v3972_v13  ;;  %v7223_v59 = vadd.f32 %v7222_v34, %v7221_v23  ;;  %v7337_v49 = vpop.f32.mrf.mxu0  ;;  %v10992_v13 = vld [vmem:[#allocation74_spill] sm:$0xff] }
 0x1e6   : > { %v7224_v15 = vpop.f32.mrf.mxu1  ;;  %v7338_v46 = vadd.f32 %v7337_v49, %v7336_v42 }
 0x1e7   : > { %v3977_v56 = vadd.f32 %v7223_v59, %v9712_v45  ;;  %v7339_v25 = vpop.f32.mrf.mxu0  ;;  %5492 = vmatmul.mubr.bf16.gmra.mxu0 %v10939_v19 }
 0x1e8   : > { %v7225_v62 = vpop.f32.mrf.mxu1  ;;  %5499 = vmatprep.mubr.bf16.mxu0 %v10940_v50 }
 0x1e9   : > { %v9962_v51 = vadd.f32 %v7335_v30, %v3977_v56  ;;  %v7226_v14 = vadd.f32 %v7225_v62, %v7224_v15  ;;  %v7340_v4 = vpop.f32.mrf.mxu0 }
 0x1ea   : > { %v7227_v44 = vpop.f32.mrf.mxu1  ;;  %4369 = vmatmul.mubr.bf16.gmra.mxu1 %v10991_v27  ;;  %v7341_v58 = vadd.f32 %v7340_v4, %v7339_v25 }
 0x1eb   : > { %v3980_v23 = vadd.f32 %v7226_v14, %v9718_v47  ;;  %4376 = vmatprep.mubr.bf16.mxu1 %v10992_v13  ;;  %v7342_v34 = vpop.f32.mrf.mxu0  ;;  %v10993_v14 = vld [vmem:[#allocation75_spill] sm:$0xff] }
 0x1ec   : > { %v7228_v45 = vpop.f32.mrf.mxu1 }
 0x1ed   : > { %v9968_v42 = vadd.f32 %v7338_v46, %v3980_v23  ;;  %v7229_v59 = vadd.f32 %v7228_v45, %v7227_v44  ;;  %v7343_v30 = vpop.f32.mrf.mxu0  ;;  %v10994_v23 = vld [vmem:[#allocation76_spill] sm:$0xff] }
 0x1ee   : > { %v7230_v19 = vpop.f32.mrf.mxu1  ;;  %v7344_v49 = vadd.f32 %v7343_v30, %v7342_v34 }
 0x1ef   : > { %v3985_v15 = vadd.f32 %v7229_v59, %v9722_v48  ;;  %v7345_v56 = vpop.f32.mrf.mxu0  ;;  %5500 = vmatmul.mubr.bf16.gmra.mxu0 %v10941_v57 }
 0x1f0   : > { %v7231_v50 = vpop.f32.mrf.mxu1  ;;  %5507 = vmatprep.mubr.bf16.mxu0 %v10942_v26 }
 0x1f1   : > { %v9972_v62 = vadd.f32 %v7341_v58, %v3985_v15  ;;  %v7232_v47 = vadd.f32 %v7231_v50, %v7230_v19  ;;  %v7346_v46 = vpop.f32.mrf.mxu0 }
 0x1f2   : > { %v7233_v25 = vpop.f32.mrf.mxu1  ;;  %4377 = vmatmul.mubr.bf16.gmra.mxu1 %v10993_v14  ;;  %v7347_v4 = vadd.f32 %v7346_v46, %v7345_v56  ;;  %v10997_v56 = vld [vmem:[#allocation67_spill] sm:$0xff]  ;;  %v10998_v46 = vld [vmem:[#allocation77_spill] sm:$0xff] }
 0x1f3   : > { %v3988_v44 = vadd.f32 %v7232_v47, %v9728_v20  ;;  %4384 = vmatprep.mubr.bf16.mxu1 %v10994_v23  ;;  %v7348_v45 = vpop.f32.mrf.mxu0 }
 0x1f4   : > { %v7234_v48 = vpop.f32.mrf.mxu1 }
 0x1f5   : > { %v9978_v34 = vadd.f32 %v7344_v49, %v3988_v44  ;;  %v7235_v59 = vadd.f32 %v7234_v48, %v7233_v25  ;;  %v7349_v58 = vpop.f32.mrf.mxu0  ;;  %v10999_v48 = vld [vmem:[#allocation78_spill] sm:$0xff] }
 0x1f6   : > { %v7236_v57 = vpop.f32.mrf.mxu1  ;;  %v7350_v30 = vadd.f32 %v7349_v58, %v7348_v45 }
 0x1f7   : > { %10995 = vst [vmem:[#allocation47_spill] sm:$0xff] %v9978_v34  ;;  %v3993_v19 = vadd.f32 %v7235_v59, %v9732_v17  ;;  %v7351_v15 = vpop.f32.mrf.mxu0  ;;  %5508 = vmatmul.mubr.bf16.gmra.mxu0 %v10943_v40 }
 0x1f8   : > { %v7237_v26 = vpop.f32.mrf.mxu1  ;;  %5515 = vmatprep.mubr.bf16.mxu0 %v10997_v56 }
 0x1f9   : > { %v9982_v50 = vadd.f32 %v7347_v4, %v3993_v19  ;;  %v7238_v20 = vadd.f32 %v7237_v26, %v7236_v57  ;;  %v7352_v49 = vpop.f32.mrf.mxu0 }
 0x1fa   : > { %v7239_v47 = vpop.f32.mrf.mxu1  ;;  %4385 = vmatmul.mubr.bf16.gmra.mxu1 %v10998_v46  ;;  %v7353_v44 = vadd.f32 %v7352_v49, %v7351_v15 }
 0x1fb   : > { %10996 = vst [vmem:[#allocation51_spill] sm:$0xff] %v9982_v50  ;;  %v3996_v25 = vadd.f32 %v7238_v20, %v9738_v55  ;;  %4392 = vmatprep.mubr.bf16.mxu1 %v10999_v48  ;;  %v7354_v45 = vpop.f32.mrf.mxu0  ;;  %v11000_v50 = vld [vmem:[#allocation70_spill] sm:$0xff]  ;;  %v11001_v20 = vld [vmem:[#allocation79_spill] sm:$0xff] }
 0x1fc   : > { %v7240_v17 = vpop.f32.mrf.mxu1 }
 0x1fd   : > { %v9988_v59 = vadd.f32 %v7350_v30, %v3996_v25  ;;  %v7241_v58 = vadd.f32 %v7240_v17, %v7239_v47  ;;  %v7355_v4 = vpop.f32.mrf.mxu0  ;;  %v11002_v25 = vld [vmem:[#allocation81_spill] sm:$0xff] }
 0x1fe   : > { %v7242_v40 = vpop.f32.mrf.mxu1  ;;  %v7356_v19 = vadd.f32 %v7355_v4, %v7354_v45 }
 0x1ff   : > { %v4001_v57 = vadd.f32 %v7241_v58, %v9742_v5  ;;  %v7357_v56 = vpop.f32.mrf.mxu0  ;;  %5516 = vmatmul.mubr.bf16.gmra.mxu0 %v11000_v50 }
 0x200   : > { %v7243_v26 = vpop.f32.mrf.mxu1  ;;  %5523 = vmatprep.mubr.bf16.mxu0 %v9496_v35 }
 0x201   : > { %v9992_v34 = vadd.f32 %v7353_v44, %v4001_v57  ;;  %v7244_v55 = vadd.f32 %v7243_v26, %v7242_v40  ;;  %v7358_v30 = vpop.f32.mrf.mxu0 }
 0x202   : > { %v7245_v15 = vpop.f32.mrf.mxu1  ;;  %4393 = vmatmul.mubr.bf16.gmra.mxu1 %v11001_v20  ;;  %v7359_v49 = vadd.f32 %v7358_v30, %v7357_v56 }
 0x203   : > { %v4004_v47 = vadd.f32 %v7244_v55, %v9748_v52  ;;  %4400 = vmatprep.mubr.bf16.mxu1 %v11002_v25  ;;  %v7360_v17 = vpop.f32.mrf.mxu0  ;;  %v11003_v55 = vld [vmem:[#allocation83_spill] sm:$0xff] }
 0x204   : > { %v7246_v5 = vpop.f32.mrf.mxu1 }
 0x205   : > { %v9998_v45 = vadd.f32 %v7356_v19, %v4004_v47  ;;  %v7247_v58 = vadd.f32 %v7246_v5, %v7245_v15  ;;  %v7361_v44 = vpop.f32.mrf.mxu0  ;;  %v11004_v47 = vld [vmem:[#allocation12_spill] sm:$0xff] }
 0x206   : > { %v7248_v50 = vpop.f32.mrf.mxu1  ;;  %v7362_v4 = vadd.f32 %v7361_v44, %v7360_v17 }
 0x207   : > { %v4009_v40 = vadd.f32 %v7247_v58, %v9752_v8  ;;  %v7363_v26 = vpop.f32.mrf.mxu0  ;;  %5524 = vmatmul.mubr.bf16.gmra.mxu0 %v9508_v11 }
 0x208   : > { %v7249_v57 = vpop.f32.mrf.mxu1  ;;  %5725 = vmatprep.mubr.bf16.mxu0 %v10946_v7 }
 0x209   : > { %v10002_v35 = vadd.f32 %v7359_v49, %v4009_v40  ;;  %v7250_v52 = vadd.f32 %v7249_v57, %v7248_v50  ;;  %v7364_v19 = vpop.f32.mrf.mxu0 }
 0x20a   : > { %v7251_v56 = vpop.f32.mrf.mxu1  ;;  %4401 = vmatmul.mubr.bf16.gmra.mxu1 %v11003_v55  ;;  %v7365_v30 = vadd.f32 %v7364_v19, %v7363_v26 }
 0x20b   : > { %v4012_v15 = vadd.f32 %v7250_v52, %v9758_v33  ;;  %5564 = vmatprep.mubr.bf16.mxu1 %v11004_v47  ;;  %v7366_v5 = vpop.f32.mrf.mxu0  ;;  %v11005_v52 = vld [vmem:[#allocation16_spill] sm:$0xff] }
 0x20c   : > { %v7252_v8 = vpop.f32.mrf.mxu1 }
 0x20d   : > { %v10008_v17 = vadd.f32 %v7362_v4, %v4012_v15  ;;  %v7253_v58 = vadd.f32 %v7252_v8, %v7251_v56  ;;  %v7367_v49 = vpop.f32.mrf.mxu0  ;;  %v11006_v15 = vld [vmem:[#allocation20_spill] sm:$0xff] }
 0x20e   : > { %v7254_v44 = vpop.f32.mrf.mxu1  ;;  %v7368_v40 = vadd.f32 %v7367_v49, %v7366_v5 }
 0x20f   : > { %v4017_v50 = vadd.f32 %v7253_v58, %v9774_v12  ;;  %v7369_v57 = vpop.f32.mrf.mxu0  ;;  %5726 = vmatmul.mubr.bf16.vlgmr.msra.gmra.mxu0 %v9178_v41 }
 0x210   : > { %v7255_v7 = vpop.f32.mrf.mxu1  ;;  %5733 = vmatprep.mubr.bf16.mxu0 %v10947_v43 }
 0x211   : > { %v10012_v11 = vadd.f32 %v7365_v30, %v4017_v50  ;;  %v7256_v33 = vadd.f32 %v7255_v7, %v7254_v44  ;;  %v7370_v4 = vpop.f32.mrf.mxu0 }
 0x212   : > { %v7257_v26 = vpop.f32.mrf.mxu1  ;;  %5565 = vmatmul.mubr.bf16.vlgmr.msra.gmra.mxu1 %v11005_v52  ;;  %v7371_v19 = vadd.f32 %v7370_v4, %v7369_v57  ;;  %v11007_v57 = vld [vmem:[#allocation24_spill] sm:$0xff] }
 0x213   : > { %v4020_v56 = vadd.f32 %v7256_v33, %v9792_v38  ;;  %5572 = vmatprep.mubr.bf16.mxu1 %v11006_v15  ;;  %v7372_v47 = vpop.f32.mrf.mxu0  ;;  %v11008_v52 = vld [vmem:[#allocation28_spill] sm:$0xff] }
 0x214   : > { %v7258_v12 = vpop.f32.mrf.mxu1 }
 0x215   : > { %v10018_v8 = vadd.f32 %v7368_v40, %v4020_v56  ;;  %v7259_v5 = vadd.f32 %v7258_v12, %v7257_v26  ;;  %v7373_v30 = vpop.f32.mrf.mxu0 }
 0x216   : > { %v7260_v41 = vpop.f32.mrf.mxu1  ;;  %v7374_v44 = vadd.f32 %v7373_v30, %v7372_v47 }
 0x217   : > { %v4025_v58 = vadd.f32 %v7259_v5, %v9808_v9  ;;  %v7375_v49 = vpop.f32.mrf.mxu0  ;;  %5734 = vmatmul.mubr.bf16.gmra.mxu0 %v10948_v53 }
 0x218   : > { %v7261_v43 = vpop.f32.mrf.mxu1  ;;  %5741 = vmatprep.mubr.bf16.mxu0 %v10950_v24 }
 0x219   : > { %v10022_v50 = vadd.f32 %v7371_v19, %v4025_v58  ;;  %v7262_v38 = vadd.f32 %v7261_v43, %v7260_v41  ;;  %v7376_v40 = vpop.f32.mrf.mxu0  ;;  %v11009_v58 = vld [vmem:[#allocation32_spill] sm:$0xff] }
 0x21a   : > { %v7263_v7 = vpop.f32.mrf.mxu1  ;;  %5573 = vmatmul.mubr.bf16.gmra.mxu1 %v11007_v57  ;;  %v7377_v26 = vadd.f32 %v7376_v40, %v7375_v49 }
 0x21b   : > { %v4028_v33 = vadd.f32 %v7262_v38, %v9826_v3  ;;  %5580 = vmatprep.mubr.bf16.mxu1 %v11008_v52  ;;  %v7378_v4 = vpop.f32.mrf.mxu0  ;;  %v11010_v38 = vld [vmem:[#allocation36_spill] sm:$0xff] }
 0x21c   : > { %v7264_v9 = vpop.f32.mrf.mxu1 }
 0x21d   : > { %v10028_v56 = vadd.f32 %v7374_v44, %v4028_v33  ;;  %v7265_v15 = vadd.f32 %v7264_v9, %v7263_v7  ;;  %v7379_v19 = vpop.f32.mrf.mxu0 }
 0x21e   : > { %v7266_v53 = vpop.f32.mrf.mxu1  ;;  %v7380_v47 = vadd.f32 %v7379_v19, %v7378_v4  ;;  %v11011_v4 = vld [vmem:[#allocation88_spill] sm:$0xff] }
 0x21f   : > { %v4033_v12 = vadd.f32 %v7265_v15, %v9842_v2  ;;  %v7381_v5 = vpop.f32.mrf.mxu0  ;;  %5742 = vmatmul.mubr.bf16.gmra.mxu0 %v10956_v21  ;;  %v11012_v19 = vld [vmem:[#allocation40_spill] sm:$0xff] }
 0x220   : > { %v7267_v24 = vpop.f32.mrf.mxu1  ;;  %5749 = vmatprep.mubr.bf16.mxu0 %v10958_v16 }
 0x221   : > { %v10032_v41 = vadd.f32 %v7377_v26, %v4033_v12  ;;  %v7268_v3 = vadd.f32 %v7267_v24, %v7266_v53  ;;  %v7382_v44 = vpop.f32.mrf.mxu0 }
 0x222   : > { %v7269_v30 = vpop.f32.mrf.mxu1  ;;  %5581 = vmatmul.mubr.bf16.gmra.mxu1 %v11009_v58  ;;  %v7383_v49 = vadd.f32 %v7382_v44, %v7381_v5 }
 0x223   : > { %v4036_v43 = vadd.f32 %v7268_v3, %v9860_v1  ;;  %5588 = vmatprep.mubr.bf16.mxu1 %v11010_v38  ;;  %v7384_v7 = vpop.f32.mrf.mxu0  ;;  %v11014_v3 = vld [vmem:[#allocation44_spill] sm:$0xff]  ;;  %v11015_v38 = vld [vmem:[#allocation69_spill] sm:$0xff] }
 0x224   : > { %v7270_v2 = vpop.f32.mrf.mxu1 }
 0x225   : > { %v10038_v57 = vadd.f32 %v7380_v47, %v4036_v43  ;;  %v7271_v40 = vadd.f32 %v7270_v2, %v7269_v30  ;;  %v7385_v33 = vpop.f32.mrf.mxu0  ;;  %v11013_v47 = vld [vmem:[#allocation49_spill] sm:$0xff] }
 0x226   : > { %v7272_v21 = vpop.f32.mrf.mxu1  ;;  %v7386_v52 = vadd.f32 %v7385_v33, %v7384_v7 }
 0x227   : > { %v4041_v26 = vadd.f32 %v7271_v40, %v9876_v18  ;;  %v7387_v9 = vpop.f32.mrf.mxu0  ;;  %5750 = vmatmul.mubr.bf16.gmra.mxu0 %v11011_v4  ;;  %v11018_v4 = vld [vmem:[#allocation14_spill] sm:$0xff] }
 0x228   : > { %v7273_v16 = vpop.f32.mrf.mxu1  ;;  %5757 = vmatprep.mubr.bf16.mxu0 %v10966_v54 }
 0x229   : > { %v10042_v15 = vadd.f32 %v7383_v49, %v4041_v26  ;;  %v7274_v1 = vadd.f32 %v7273_v16, %v7272_v21  ;;  %v7388_v12 = vpop.f32.mrf.mxu0  ;;  %v11016_v21 = vld [vmem:[#allocation90_spill] sm:$0xff] }
 0x22a   : > { %v7275_v53 = vpop.f32.mrf.mxu1  ;;  %5589 = vmatmul.mubr.bf16.gmra.mxu1 %v11012_v19  ;;  %v7389_v5 = vadd.f32 %v7388_v12, %v7387_v9  ;;  %v11017_v9 = vld [vmem:[#allocation48_spill] sm:$0xff] }
 0x22b   : > { %v4044_v24 = vadd.f32 %v7274_v1, %v11013_v47  ;;  %5596 = vmatprep.mubr.bf16.mxu1 %v11014_v3  ;;  %v7390_v30 = vpop.f32.mrf.mxu0  ;;  %v11019_v19 = vld [vmem:[#allocation52_spill] sm:$0xff] }
 0x22c   : > { %v7276_v18 = vpop.f32.mrf.mxu1 }
 0x22d   : > { %v10048_v58 = vadd.f32 %v7386_v52, %v4044_v24  ;;  %v7277_v44 = vadd.f32 %v7276_v18, %v7275_v53  ;;  %v7391_v49 = vpop.f32.mrf.mxu0 }
 0x22e   : > { %v7278_v43 = vpop.f32.mrf.mxu1  ;;  %v7392_v7 = vadd.f32 %v7391_v49, %v7390_v30  ;;  %v11020_v30 = vld [vmem:[#allocation19_spill] sm:$0xff] }
 0x22f   : > { %v4049_v2 = vadd.f32 %v7277_v44, %v11015_v38  ;;  %v7393_v40 = vpop.f32.mrf.mxu0  ;;  %5758 = vmatmul.mubr.bf16.gmra.mxu0 %v11016_v21  ;;  %v11022_v21 = vld [vmem:[#allocation23_spill] sm:$0xff] }
 0x230   : > { %v7279_v54 = vpop.f32.mrf.mxu1  ;;  %5765 = vmatprep.mubr.bf16.mxu0 %v10973_v31 }
 0x231   : > { %v10052_v33 = vadd.f32 %v7389_v5, %v4049_v2  ;;  %v7280_v26 = vadd.f32 %v7279_v54, %v7278_v43  ;;  %v7394_v52 = vpop.f32.mrf.mxu0 }
 0x232   : > { %v7281_v16 = vpop.f32.mrf.mxu1  ;;  %5597 = vmatmul.mubr.bf16.gmra.mxu1 %v11017_v9  ;;  %v7395_v53 = vadd.f32 %v7394_v52, %v7393_v40  ;;  %v11021_v40 = vld [vmem:[#allocation56_spill] sm:$0xff] }
 0x233   : > { %v4052_v1 = vadd.f32 %v7280_v26, %v11018_v4  ;;  %5604 = vmatprep.mubr.bf16.mxu1 %v11019_v19  ;;  %v7396_v47 = vpop.f32.mrf.mxu0  ;;  %v11023_v9 = vld [vmem:[#allocation60_spill] sm:$0xff] }
 0x234   : > { %v7282_v12 = vpop.f32.mrf.mxu1 }
 0x235   : > { %v10058_v24 = vadd.f32 %v7392_v7, %v4052_v1  ;;  %v7283_v3 = vadd.f32 %v7282_v12, %v7281_v16  ;;  %v7397_v5 = vpop.f32.mrf.mxu0  ;;  %v11024_v12 = vld [vmem:[#allocation27_spill] sm:$0xff] }
 0x236   : > { %v7284_v18 = vpop.f32.mrf.mxu1  ;;  %v7398_v43 = vadd.f32 %v7397_v5, %v7396_v47 }
 0x237   : > { %v4057_v44 = vadd.f32 %v7283_v3, %v11020_v30  ;;  %v7399_v49 = vpop.f32.mrf.mxu0  ;;  %5766 = vmatmul.mubr.bf16.gmra.mxu0 %v10977_v36 }
 0x238   : > { %v7285_v31 = vpop.f32.mrf.mxu1  ;;  %5773 = vmatprep.mubr.bf16.mxu0 %v10979_v0 }
 0x239   : > { %v10062_v38 = vadd.f32 %v7395_v53, %v4057_v44  ;;  %v7286_v2 = vadd.f32 %v7285_v31, %v7284_v18  ;;  %v7400_v7 = vpop.f32.mrf.mxu0  ;;  %v11025_v31 = vld [vmem:[#allocation64_spill] sm:$0xff] }
 0x23a   : > { %v7287_v54 = vpop.f32.mrf.mxu1  ;;  %5605 = vmatmul.mubr.bf16.gmra.mxu1 %v11021_v40  ;;  %v7401_v16 = vadd.f32 %v7400_v7, %v7399_v49  ;;  %v11026_v49 = vld [vmem:[#allocation31_spill] sm:$0xff] }
 0x23b   : > { %v4060_v26 = vadd.f32 %v7286_v2, %v11022_v21  ;;  %5612 = vmatprep.mubr.bf16.mxu1 %v11023_v9  ;;  %v7402_v4 = vpop.f32.mrf.mxu0  ;;  %v11027_v40 = vld [vmem:[#allocation7_spill] sm:$0xff] }
 0x23c   : > { %v7288_v52 = vpop.f32.mrf.mxu1 }
 0x23d   : > { %v10068_v1 = vadd.f32 %v7398_v43, %v4060_v26  ;;  %v7289_v19 = vadd.f32 %v7288_v52, %v7287_v54  ;;  %v7403_v53 = vpop.f32.mrf.mxu0  ;;  %v11028_v52 = vld [vmem:[#allocation35_spill] sm:$0xff] }
 0x23e   : > { %v7290_v36 = vpop.f32.mrf.mxu1  ;;  %v7404_v3 = vadd.f32 %v7403_v53, %v7402_v4 }
 0x23f   : > { %v4065_v47 = vadd.f32 %v7289_v19, %v11024_v12  ;;  %v7405_v18 = vpop.f32.mrf.mxu0  ;;  %5774 = vmatmul.mubr.bf16.gmra.mxu0 %v10983_v37 }
 0x240   : > { %v7291_v0 = vpop.f32.mrf.mxu1  ;;  %5781 = vmatprep.mubr.bf16.mxu0 %v10985_v29 }
 0x241   : > { %v10072_v5 = vadd.f32 %v7401_v16, %v4065_v47  ;;  %v7292_v30 = vadd.f32 %v7291_v0, %v7290_v36  ;;  %v7406_v43 = vpop.f32.mrf.mxu0  ;;  %v11029_v0 = vld [vmem:[#allocation9_spill] sm:$0xff] }
 0x242   : > { %v7293_v44 = vpop.f32.mrf.mxu1  ;;  %5613 = vmatmul.mubr.bf16.gmra.mxu1 %v11025_v31  ;;  %v7407_v54 = vadd.f32 %v7406_v43, %v7405_v18  ;;  %v11030_v18 = vld [vmem:[#allocation39_spill] sm:$0xff] }
 0x243   : > { %v4068_v2 = vadd.f32 %v7292_v30, %v11026_v49  ;;  %5620 = vmatprep.mubr.bf16.mxu1 %v11027_v40  ;;  %v7408_v21 = vpop.f32.mrf.mxu0  ;;  %v11031_v31 = vld [vmem:[#allocation15_spill] sm:$0xff] }
 0x244   : > { %v7294_v7 = vpop.f32.mrf.mxu1 }
 0x245   : > { %v10078_v26 = vadd.f32 %v7404_v3, %v4068_v2  ;;  %v7295_v9 = vadd.f32 %v7294_v7, %v7293_v44  ;;  %v7409_v16 = vpop.f32.mrf.mxu0  ;;  %v11032_v7 = vld [vmem:[#allocation43_spill] sm:$0xff] }
 0x246   : > { %v7296_v37 = vpop.f32.mrf.mxu1  ;;  %v7410_v19 = vadd.f32 %v7409_v16, %v7408_v21 }
 0x247   : > { %v4073_v4 = vadd.f32 %v7295_v9, %v11028_v52  ;;  %v7411_v36 = vpop.f32.mrf.mxu0  ;;  %5782 = vmatmul.mubr.bf16.gmra.mxu0 %v10987_v10 }
 0x248   : > { %v7297_v29 = vpop.f32.mrf.mxu1  ;;  %5789 = vmatprep.mubr.bf16.mxu0 %v10988_v63 }
 0x249   : > { %v10082_v53 = vadd.f32 %v7407_v54, %v4073_v4  ;;  %v7298_v12 = vadd.f32 %v7297_v29, %v7296_v37  ;;  %v7412_v3 = vpop.f32.mrf.mxu0  ;;  %v11033_v29 = vld [vmem:[#allocation18_spill] sm:$0xff] }
 0x24a   : > { %v7299_v47 = vpop.f32.mrf.mxu1  ;;  %5621 = vmatmul.mubr.bf16.gmra.mxu1 %v11029_v0  ;;  %v7413_v44 = vadd.f32 %v7412_v3, %v7411_v36 }
 0x24b   : > { %v4076_v30 = vadd.f32 %v7298_v12, %v11030_v18  ;;  %5628 = vmatprep.mubr.bf16.mxu1 %v11031_v31  ;;  %v7414_v49 = vpop.f32.mrf.mxu0 }
 0x24c   : > { %v7300_v43 = vpop.f32.mrf.mxu1 }
 0x24d   : > { %v10088_v2 = vadd.f32 %v7410_v19, %v4076_v30  ;;  %v7301_v40 = vadd.f32 %v7300_v43, %v7299_v47  ;;  %v7415_v54 = vpop.f32.mrf.mxu0  ;;  %v11034_v47 = vld [vmem:[#allocation21_spill] sm:$0xff] }
 0x24e   : > { %v7302_v10 = vpop.f32.mrf.mxu1  ;;  %v7416_v9 = vadd.f32 %v7415_v54, %v7414_v49 }
 0x24f   : > { %v4081_v21 = vadd.f32 %v7301_v40, %v11032_v7  ;;  %v7545_v37 = vpop.f32.mrf.mxu0  ;;  %5790 = vmatmul.mubr.bf16.gmra.mxu0 %v10989_v22 }
 0x250   : > { %v7303_v63 = vpop.f32.mrf.mxu1  ;;  %5797 = vmatprep.mubr.bf16.mxu0 %v10990_v32 }
 0x251   : > { %v10092_v16 = vadd.f32 %v7413_v44, %v4081_v21  ;;  %v7304_v52 = vadd.f32 %v7303_v63, %v7302_v10  ;;  %v7546_v19 = vpop.f32.mrf.mxu0  ;;  %v11035_v10 = vld [vmem:[#allocation26_spill] sm:$0xff] }
 0x252   : > { %v7433_v4 = vpop.f32.mrf.mxu1  ;;  %5629 = vmatmul.mubr.bf16.gmra.mxu1 %v11033_v29  ;;  %v10097_v12 = vadd.f32 %v7546_v19, %v7545_v37 }
 0x253   : > { %v4084_v36 = vadd.f32 %v7304_v52, %v9938_v39  ;;  %5636 = vmatprep.mubr.bf16.mxu1 %v11034_v47  ;;  %v7548_v3 = vpop.f32.mrf.mxu0  ;;  %v11037_v47 = vld [vmem:[#allocation33_spill] sm:$0xff] }
 0x254   : > { %v7434_v0 = vpop.f32.mrf.mxu1 }
 0x255   : > { %v10100_v18 = vadd.f32 %v7416_v9, %v4084_v36  ;;  %v7435_v22 = vadd.f32 %v7434_v0, %v7433_v4  ;;  %v7549_v44 = vpop.f32.mrf.mxu0 }
 0x256   : > { %v7436_v30 = vpop.f32.mrf.mxu1  ;;  %v10105_v32 = vadd.f32 %v7549_v44, %v7548_v3 }
 0x257   : > { %v10103_v31 = vadd.f32 %v7435_v22, %v9942_v28  ;;  %v7551_v49 = vpop.f32.mrf.mxu0  ;;  %5798 = vmatmul.mubr.bf16.gmra.mxu0 %v10991_v27  ;;  %v11036_v28 = vld [vmem:[#allocation30_spill] sm:$0xff] }
 0x258   : > { %v7437_v43 = vpop.f32.mrf.mxu1  ;;  %5805 = vmatprep.mubr.bf16.mxu0 %v10992_v13 }
 0x259   : > { %v7438_v39 = vadd.f32 %v7437_v43, %v7436_v30  ;;  %v7552_v54 = vpop.f32.mrf.mxu0 }
 0x25a   : > { %v7439_v40 = vpop.f32.mrf.mxu1  ;;  %5637 = vmatmul.mubr.bf16.gmra.mxu1 %v11035_v10  ;;  %v10113_v21 = vadd.f32 %v7552_v54, %v7551_v49 }
 0x25b   : > { %v10111_v7 = vadd.f32 %v7438_v39, %v9948_v60  ;;  %5644 = vmatprep.mubr.bf16.mxu1 %v11036_v28  ;;  %v7554_v63 = vpop.f32.mrf.mxu0  ;;  %v11039_v28 = vld [vmem:[#allocation42_spill] sm:$0xff] }
 0x25c   : > { %v7440_v9 = vpop.f32.mrf.mxu1 }
 0x25d   : > { %v7441_v37 = vadd.f32 %v7440_v9, %v7439_v40  ;;  %v7555_v4 = vpop.f32.mrf.mxu0 }
 0x25e   : > { %v7442_v52 = vpop.f32.mrf.mxu1  ;;  %v10119_v13 = vadd.f32 %v7555_v4, %v7554_v63 }
 0x25f   : > { %v10117_v27 = vadd.f32 %v7441_v37, %v9952_v6  ;;  %v7557_v19 = vpop.f32.mrf.mxu0  ;;  %5806 = vmatmul.mubr.bf16.gmra.mxu0 %v10993_v14  ;;  %v11038_v6 = vld [vmem:[#allocation38_spill] sm:$0xff] }
 0x260   : > { %v7443_v29 = vpop.f32.mrf.mxu1  ;;  %5813 = vmatprep.mubr.bf16.mxu0 %v10994_v23 }
 0x261   : > { %v7444_v60 = vadd.f32 %v7443_v29, %v7442_v52  ;;  %v7558_v0 = vpop.f32.mrf.mxu0 }
 0x262   : > { %v7445_v36 = vpop.f32.mrf.mxu1  ;;  %5645 = vmatmul.mubr.bf16.gmra.mxu1 %v11037_v47  ;;  %v10127_v22 = vadd.f32 %v7558_v0, %v7557_v19 }
 0x263   : > { %v10125_v3 = vadd.f32 %v7444_v60, %v9958_v61  ;;  %5652 = vmatprep.mubr.bf16.mxu1 %v11038_v6  ;;  %v7560_v44 = vpop.f32.mrf.mxu0  ;;  %v11041_v6 = vld [vmem:[#allocation50_spill] sm:$0xff] }
 0x264   : > { %v7446_v30 = vpop.f32.mrf.mxu1 }
 0x265   : > { %v7447_v43 = vadd.f32 %v7446_v30, %v7445_v36  ;;  %v7561_v39 = vpop.f32.mrf.mxu0 }
 0x266   : > { %v7448_v49 = vpop.f32.mrf.mxu1  ;;  %v10133_v23 = vadd.f32 %v7561_v39, %v7560_v44  ;;  %v11042_v44 = vld [vmem:[#allocation47_spill] sm:$0xff] }
 0x267   : > { %v10131_v14 = vadd.f32 %v7447_v43, %v9962_v51  ;;  %v7563_v10 = vpop.f32.mrf.mxu0  ;;  %5814 = vmatmul.mubr.bf16.gmra.mxu0 %v10998_v46  ;;  %v11040_v51 = vld [vmem:[#allocation45_spill] sm:$0xff] }
 0x268   : > { %v7449_v40 = vpop.f32.mrf.mxu1  ;;  %5821 = vmatprep.mubr.bf16.mxu0 %v10999_v48 }
 0x269   : > { %v7450_v61 = vadd.f32 %v7449_v40, %v7448_v49  ;;  %v7564_v9 = vpop.f32.mrf.mxu0 }
 0x26a   : > { %v7451_v54 = vpop.f32.mrf.mxu1  ;;  %5653 = vmatmul.mubr.bf16.gmra.mxu1 %v11039_v28  ;;  %v10141_v37 = vadd.f32 %v7564_v9, %v7563_v10 }
 0x26b   : > { %v10139_v63 = vadd.f32 %v7450_v61, %v9968_v42  ;;  %5660 = vmatprep.mubr.bf16.mxu1 %v11040_v51  ;;  %v7566_v4 = vpop.f32.mrf.mxu0 }
 0x26c   : > { %v7452_v52 = vpop.f32.mrf.mxu1 }
 0x26d   : > { %v7453_v29 = vadd.f32 %v7452_v52, %v7451_v54  ;;  %v7567_v60 = vpop.f32.mrf.mxu0 }
 0x26e   : > { %v7454_v19 = vpop.f32.mrf.mxu1  ;;  %v10147_v48 = vadd.f32 %v7567_v60, %v7566_v4  ;;  %v11045_v4 = vld [vmem:[#allocation84_spill] sm:$0xff] }
 0x26f   : > { %v10145_v46 = vadd.f32 %v7453_v29, %v9972_v62  ;;  %v7569_v47 = vpop.f32.mrf.mxu0  ;;  %5822 = vmatmul.mubr.bf16.gmra.mxu0 %v11001_v20  ;;  %v11043_v62 = vld [vmem:[#allocation54_spill] sm:$0xff]  ;;  %v11044_v20 = vld [vmem:[#allocation51_spill] sm:$0xff] }
 0x270   : > { %v7455_v36 = vpop.f32.mrf.mxu1  ;;  %5829 = vmatprep.mubr.bf16.mxu0 %v11002_v25 }
 0x271   : > { %v7456_v42 = vadd.f32 %v7455_v36, %v7454_v19  ;;  %v7570_v30 = vpop.f32.mrf.mxu0  ;;  %v11046_v19 = vld [vmem:[#allocation57_spill] sm:$0xff] }
 0x272   : > { %v7457_v0 = vpop.f32.mrf.mxu1  ;;  %5661 = vmatmul.mubr.bf16.gmra.mxu1 %v11041_v6  ;;  %v10155_v49 = vadd.f32 %v7570_v30, %v7569_v47 }
 0x273   : > { %v10153_v43 = vadd.f32 %v7456_v42, %v11042_v44  ;;  %5668 = vmatprep.mubr.bf16.mxu1 %v11043_v62  ;;  %v7572_v40 = vpop.f32.mrf.mxu0  ;;  %v11047_v42 = vld [vmem:[#allocation62_spill] sm:$0xff] }
 0x274   : > { %v7458_v39 = vpop.f32.mrf.mxu1 }
 0x275   : > { %v7459_v10 = vadd.f32 %v7458_v39, %v7457_v0  ;;  %v7573_v54 = vpop.f32.mrf.mxu0 }
 0x276   : > { %v7460_v61 = vpop.f32.mrf.mxu1  ;;  %v10161_v25 = vadd.f32 %v7573_v54, %v7572_v40  ;;  %v11049_v54 = vld [vmem:[#allocation101_spill] sm:$0xff] }
 0x277   : > { %v10159_v28 = vadd.f32 %v7459_v10, %v11044_v20  ;;  %v7575_v51 = vpop.f32.mrf.mxu0  ;;  %5830 = vmatmul.mubr.bf16.gmra.mxu0 %v11003_v55 }
 0x278   : > { %v7461_v9 = vpop.f32.mrf.mxu1  ;;  %5837 = vmatprep.mubr.bf16.mxu0 %v11045_v4 }
 0x279   : > { %v7462_v52 = vadd.f32 %v7461_v9, %v7460_v61  ;;  %v7576_v60 = vpop.f32.mrf.mxu0  ;;  %v11048_v61 = vld [vmem:[#allocation85_spill] sm:$0xff]  ;;  %v11050_v9 = vld [vmem:[#allocation66_spill] sm:$0xff] }
 0x27a   : > { %v7463_v29 = vpop.f32.mrf.mxu1  ;;  %5669 = vmatmul.mubr.bf16.gmra.mxu1 %v11046_v19  ;;  %v10169_v47 = vadd.f32 %v7576_v60, %v7575_v51 }
 0x27b   : > { %v10167_v36 = vadd.f32 %v7462_v52, %v9988_v59  ;;  %5676 = vmatprep.mubr.bf16.mxu1 %v11047_v42  ;;  %v7578_v6 = vpop.f32.mrf.mxu0 }
 0x27c   : > { %v7464_v0 = vpop.f32.mrf.mxu1 }
 0x27d   : > { %v7465_v30 = vadd.f32 %v7464_v0, %v7463_v29  ;;  %v7579_v62 = vpop.f32.mrf.mxu0 }
 0x27e   : > { %v7466_v44 = vpop.f32.mrf.mxu1  ;;  %v10175_v39 = vadd.f32 %v7579_v62, %v7578_v6  ;;  %v11051_v62 = vld [vmem:[#allocation102_spill] sm:$0xff] }
 0x27f   : > { %v10173_v55 = vadd.f32 %v7465_v30, %v9992_v34  ;;  %v7581_v10 = vpop.f32.mrf.mxu0  ;;  %5838 = vmatmul.mubr.bf16.gmra.mxu0 %v11048_v61 }
 0x280   : > { %v7467_v40 = vpop.f32.mrf.mxu1  ;;  %5845 = vmatprep.mubr.bf16.mxu0 %v11049_v54 }
 0x281   : > { %v7468_v59 = vadd.f32 %v7467_v40, %v7466_v44  ;;  %v7582_v51 = vpop.f32.mrf.mxu0 }
 0x282   : > { %v7469_v20 = vpop.f32.mrf.mxu1  ;;  %5677 = vmatmul.mubr.bf16.gmra.mxu1 %v11050_v9  ;;  %v10183_v4 = vadd.f32 %v7582_v51, %v7581_v10 }
 0x283   : > { %v10181_v52 = vadd.f32 %v7468_v59, %v9998_v45  ;;  %5684 = vmatprep.mubr.bf16.mxu1 %v11049_v54  ;;  %v7584_v29 = vpop.f32.mrf.mxu0 }
 0x284   : > { %v7470_v34 = vpop.f32.mrf.mxu1 }
 0x285   : > { %v7471_v19 = vadd.f32 %v7470_v34, %v7469_v20  ;;  %v7585_v42 = vpop.f32.mrf.mxu0 }
 0x286   : > { %v7472_v60 = vpop.f32.mrf.mxu1  ;;  %v10189_v6 = vadd.f32 %v7585_v42, %v7584_v29 }
 0x287   : > { %v10187_v0 = vadd.f32 %v7471_v19, %v10002_v35  ;;  %v7587_v44 = vpop.f32.mrf.mxu0  ;;  %5846 = vmatmul.mubr.bf16.gmra.mxu0 %v11051_v62 }
 0x288   : > { %v7473_v30 = vpop.f32.mrf.mxu1 }
 0x289   : > { %v7474_v45 = vadd.f32 %v7473_v30, %v7472_v60  ;;  %v7588_v10 = vpop.f32.mrf.mxu0 }
 0x28a   : > { %v7475_v40 = vpop.f32.mrf.mxu1  ;;  %5685 = vmatmul.mubr.bf16.gmra.mxu1 %v11051_v62  ;;  %v10196_v59 = vadd.f32 %v7588_v10, %v7587_v44 }
 0x28b   : > { %v10194_v61 = vadd.f32 %v7474_v45, %v10008_v17  ;;  %v7590_v20 = vpop.f32.mrf.mxu0 }
 0x28c   : > { %11052 = vst [vmem:[#allocation55_spill] sm:$0xff] %v10196_v59  ;;  %v7476_v54 = vpop.f32.mrf.mxu1 }
 0x28d   : > { %v7477_v35 = vadd.f32 %v7476_v54, %v7475_v40  ;;  %v7591_v51 = vpop.f32.mrf.mxu0 }
 0x28e   : > { %v7478_v9 = vpop.f32.mrf.mxu1  ;;  %v10201_v29 = vadd.f32 %v7591_v51, %v7590_v20 }
 0x28f   : > { %v10199_v34 = vadd.f32 %v7477_v35, %v10012_v11  ;;  %v7593_v60 = vpop.f32.mrf.mxu0 }
 0x290   : > { %11053 = vst [vmem:[#allocation59_spill] sm:$0xff] %v10201_v29  ;;  %v7479_v19 = vpop.f32.mrf.mxu1 }
 0x291   : > { %v7480_v42 = vadd.f32 %v7479_v19, %v7478_v9  ;;  %v7594_v62 = vpop.f32.mrf.mxu0 }
 0x292   : > { %v7481_v30 = vpop.f32.mrf.mxu1  ;;  %v10206_v44 = vadd.f32 %v7594_v62, %v7593_v60 }
 0x293   : > { %v10204_v17 = vadd.f32 %v7480_v42, %v10018_v8  ;;  %v7596_v10 = vpop.f32.mrf.mxu0 }
 0x294   : > { %11054 = vst [vmem:[#allocation63_spill] sm:$0xff] %v10206_v44  ;;  %v7482_v45 = vpop.f32.mrf.mxu1 }
 0x295   : > { %v7483_v40 = vadd.f32 %v7482_v45, %v7481_v30  ;;  %v7597_v59 = vpop.f32.mrf.mxu0 }
 0x296   : > { %v7484_v54 = vpop.f32.mrf.mxu1  ;;  %v10211_v20 = vadd.f32 %v7597_v59, %v7596_v10 }
 0x297   : > { %v10209_v11 = vadd.f32 %v7483_v40, %v10022_v50  ;;  %v7599_v51 = vpop.f32.mrf.mxu0 }
 0x298   : > { %11055 = vst [vmem:[#allocation68_spill] sm:$0xff] %v10211_v20  ;;  %v7485_v35 = vpop.f32.mrf.mxu1 }
 0x299   : > { %v7486_v9 = vadd.f32 %v7485_v35, %v7484_v54  ;;  %v7600_v29 = vpop.f32.mrf.mxu0 }
 0x29a   : > { %v7487_v19 = vpop.f32.mrf.mxu1  ;;  %v10216_v60 = vadd.f32 %v7600_v29, %v7599_v51 }
 0x29b   : > { %v10214_v8 = vadd.f32 %v7486_v9, %v10028_v56  ;;  %v7602_v62 = vpop.f32.mrf.mxu0 }
 0x29c   : > { %11056 = vst [vmem:[#allocation71_spill] sm:$0xff] %v10216_v60  ;;  %v7488_v42 = vpop.f32.mrf.mxu1 }
 0x29d   : > { %v7489_v30 = vadd.f32 %v7488_v42, %v7487_v19  ;;  %v7603_v44 = vpop.f32.mrf.mxu0 }
 0x29e   : > { %v7490_v45 = vpop.f32.mrf.mxu1  ;;  %v10221_v59 = vadd.f32 %v7603_v44, %v7602_v62 }
 0x29f   : > { %v10219_v50 = vadd.f32 %v7489_v30, %v10032_v41  ;;  %v7605_v40 = vpop.f32.mrf.mxu0 }
 0x2a0   : > { %11057 = vst [vmem:[#allocation72_spill] sm:$0xff] %v10221_v59  ;;  %v7491_v10 = vpop.f32.mrf.mxu1 }
 0x2a1   : > { %v7492_v54 = vadd.f32 %v7491_v10, %v7490_v45  ;;  %v7606_v20 = vpop.f32.mrf.mxu0 }
 0x2a2   : > { %v7493_v35 = vpop.f32.mrf.mxu1  ;;  %v10226_v29 = vadd.f32 %v7606_v20, %v7605_v40 }
 0x2a3   : > { %v10224_v56 = vadd.f32 %v7492_v54, %v10038_v57  ;;  %v7608_v9 = vpop.f32.mrf.mxu0 }
 0x2a4   : > { %11058 = vst [vmem:[#allocation73_spill] sm:$0xff] %v10226_v29  ;;  %v7494_v51 = vpop.f32.mrf.mxu1 }
 0x2a5   : > { %v7495_v19 = vadd.f32 %v7494_v51, %v7493_v35  ;;  %v7609_v60 = vpop.f32.mrf.mxu0 }
 0x2a6   : > { %v7496_v42 = vpop.f32.mrf.mxu1  ;;  %v10231_v44 = vadd.f32 %v7609_v60, %v7608_v9 }
 0x2a7   : > { %v10229_v41 = vadd.f32 %v7495_v19, %v10042_v15  ;;  %v7611_v30 = vpop.f32.mrf.mxu0 }
 0x2a8   : > { %11059 = vst [vmem:[#allocation80_spill] sm:$0xff] %v10231_v44  ;;  %v7497_v62 = vpop.f32.mrf.mxu1 }
 0x2a9   : > { %v7498_v45 = vadd.f32 %v7497_v62, %v7496_v42  ;;  %v7612_v59 = vpop.f32.mrf.mxu0 }
 0x2aa   : > { %v7499_v10 = vpop.f32.mrf.mxu1  ;;  %v10236_v20 = vadd.f32 %v7612_v59, %v7611_v30 }
 0x2ab   : > { %v10234_v57 = vadd.f32 %v7498_v45, %v10048_v58  ;;  %v7614_v54 = vpop.f32.mrf.mxu0 }
 0x2ac   : > { %11060 = vst [vmem:[#allocation6_spill] sm:$0xff] %v10236_v20  ;;  %v7500_v40 = vpop.f32.mrf.mxu1 }
 0x2ad   : > { %v7501_v35 = vadd.f32 %v7500_v40, %v7499_v10  ;;  %v7615_v29 = vpop.f32.mrf.mxu0 }
 0x2ae   : > { %v7502_v51 = vpop.f32.mrf.mxu1  ;;  %v10241_v60 = vadd.f32 %v7615_v29, %v7614_v54 }
 0x2af   : > { %v10239_v15 = vadd.f32 %v7501_v35, %v10052_v33  ;;  %v7617_v19 = vpop.f32.mrf.mxu0 }
 0x2b0   : > { %11061 = vst [vmem:[#allocation82_spill] sm:$0xff] %v10241_v60  ;;  %v7503_v9 = vpop.f32.mrf.mxu1 }
 0x2b1   : > { %v7504_v42 = vadd.f32 %v7503_v9, %v7502_v51  ;;  %v7618_v44 = vpop.f32.mrf.mxu0 }
 0x2b2   : > { %v7505_v62 = vpop.f32.mrf.mxu1  ;;  %v10246_v59 = vadd.f32 %v7618_v44, %v7617_v19 }
 0x2b3   : > { %v10244_v58 = vadd.f32 %v7504_v42, %v10058_v24  ;;  %v7620_v45 = vpop.f32.mrf.mxu0 }
 0x2b4   : > { %11062 = vst [vmem:[#allocation10_spill] sm:$0xff] %v10246_v59  ;;  %v7506_v30 = vpop.f32.mrf.mxu1 }
 0x2b5   : > { %v7507_v10 = vadd.f32 %v7506_v30, %v7505_v62  ;;  %v7621_v20 = vpop.f32.mrf.mxu0 }
 0x2b6   : > { %v7508_v40 = vpop.f32.mrf.mxu1  ;;  %v10251_v29 = vadd.f32 %v7621_v20, %v7620_v45 }
 0x2b7   : > { %v10249_v33 = vadd.f32 %v7507_v10, %v10062_v38  ;;  %v7623_v35 = vpop.f32.mrf.mxu0 }
 0x2b8   : > { %11063 = vst [vmem:[#allocation53_spill] sm:$0xff] %v10251_v29  ;;  %v7509_v54 = vpop.f32.mrf.mxu1 }
 0x2b9   : > { %v7510_v51 = vadd.f32 %v7509_v54, %v7508_v40  ;;  %v7624_v60 = vpop.f32.mrf.mxu0 }
 0x2ba   : > { %v7511_v9 = vpop.f32.mrf.mxu1  ;;  %v10256_v44 = vadd.f32 %v7624_v60, %v7623_v35 }
 0x2bb   : > { %v10254_v24 = vadd.f32 %v7510_v51, %v10068_v1  ;;  %v7626_v42 = vpop.f32.mrf.mxu0 }
 0x2bc   : > { %11064 = vst [vmem:[#allocation58_spill] sm:$0xff] %v10256_v44  ;;  %v7512_v19 = vpop.f32.mrf.mxu1 }
 0x2bd   : > { %v7513_v62 = vadd.f32 %v7512_v19, %v7511_v9  ;;  %v7627_v59 = vpop.f32.mrf.mxu0 }
 0x2be   : > { %v7514_v30 = vpop.f32.mrf.mxu1  ;;  %v10261_v20 = vadd.f32 %v7627_v59, %v7626_v42 }
 0x2bf   : > { %v10259_v38 = vadd.f32 %v7513_v62, %v10072_v5  ;;  %v7629_v10 = vpop.f32.mrf.mxu0 }
 0x2c0   : > { %11065 = vst [vmem:[#allocation86_spill] sm:$0xff] %v10261_v20  ;;  %v7515_v45 = vpop.f32.mrf.mxu1 }
 0x2c1   : > { %v7516_v40 = vadd.f32 %v7515_v45, %v7514_v30  ;;  %v7630_v29 = vpop.f32.mrf.mxu0 }
 0x2c2   : > { %v7517_v54 = vpop.f32.mrf.mxu1  ;;  %v10266_v60 = vadd.f32 %v7630_v29, %v7629_v10 }
 0x2c3   : > { %v10264_v1 = vadd.f32 %v7516_v40, %v10078_v26  ;;  %v7632_v51 = vpop.f32.mrf.mxu0 }
 0x2c4   : > { %11066 = vst [vmem:[#allocation8_spill] sm:$0xff] %v10266_v60  ;;  %v7518_v35 = vpop.f32.mrf.mxu1 }
 0x2c5   : > { %v7519_v9 = vadd.f32 %v7518_v35, %v7517_v54  ;;  %v7633_v44 = vpop.f32.mrf.mxu0 }
 0x2c6   : > { %v7520_v19 = vpop.f32.mrf.mxu1  ;;  %v10271_v59 = vadd.f32 %v7633_v44, %v7632_v51 }
 0x2c7   : > { %v10269_v5 = vadd.f32 %v7519_v9, %v10082_v53  ;;  %v7635_v62 = vpop.f32.mrf.mxu0 }
 0x2c8   : > { %v7521_v42 = vpop.f32.mrf.mxu1 }
 0x2c9   : > { %v7522_v30 = vadd.f32 %v7521_v42, %v7520_v19  ;;  %v7636_v20 = vpop.f32.mrf.mxu0 }
 0x2ca   : > { %v7523_v45 = vpop.f32.mrf.mxu1  ;;  %v10276_v29 = vadd.f32 %v7636_v20, %v7635_v62 }
 0x2cb   : > { %v10274_v26 = vadd.f32 %v7522_v30, %v10088_v2  ;;  %v7638_v40 = vpop.f32.mrf.mxu0 }
 0x2cc   : > { %11067 = vst [vmem:[#allocation87_spill] sm:$0xff] %v10276_v29  ;;  %v7524_v10 = vpop.f32.mrf.mxu1 }
 0x2cd   : > { %v7525_v54 = vadd.f32 %v7524_v10, %v7523_v45  ;;  %v7639_v60 = vpop.f32.mrf.mxu0 }
 0x2ce   : > { %v7526_v35 = vpop.f32.mrf.mxu1  ;;  %v10281_v44 = vadd.f32 %v7639_v60, %v7638_v40 }
 0x2cf   : > { %v10279_v53 = vadd.f32 %v7525_v54, %v10092_v16  ;;  %v7769_v9 = vpop.f32.mrf.mxu0 }
 0x2d0   : > { %11068 = vst [vmem:[#allocation13_spill] sm:$0xff] %v10281_v44  ;;  %v7527_v51 = vpop.f32.mrf.mxu1 }
 0x2d1   : > { %v7528_v19 = vadd.f32 %v7527_v51, %v7526_v35  ;;  %v7770_v2 = vpop.f32.mrf.mxu0 }
 0x2d2   : > { %v7657_v42 = vpop.f32.mrf.mxu1  ;;  %v7771_v54 = vadd.f32 %v7770_v2, %v7769_v9 }
 0x2d3   : > { %v10284_v20 = vadd.f32 %v7528_v19, %v10100_v18  ;;  %v7772_v30 = vpop.f32.mrf.mxu0  ;;  %v10293_v18 = vld [vmem:[%s10511_s4] ss:$0 sm:$0xff] }
 0x2d4   : > { %v7658_v62 = vpop.f32.mrf.mxu1 }
 0x2d5   : > { %11069 = vst [vmem:[#allocation61_spill] sm:$0xff] %v10284_v20  ;;  %v7659_v29 = vadd.f32 %v7658_v62, %v7657_v42  ;;  %v7773_v10 = vpop.f32.mrf.mxu0 }
 0x2d6   : > { %v7660_v45 = vpop.f32.mrf.mxu1  ;;  %v7774_v20 = vadd.f32 %v7773_v10, %v7772_v30 }
 0x2d7   : > { %v5567_v16 = vadd.f32 %v7659_v29, %v10097_v12  ;;  %v7775_v40 = vpop.f32.mrf.mxu0 }
 0x2d8   : > { %v7661_v60 = vpop.f32.mrf.mxu1 }
 0x2d9   : > { %v5728_v44 = vadd.f32 %v7771_v54, %v5567_v16  ;;  %v7662_v35 = vadd.f32 %v7661_v60, %v7660_v45  ;;  %v7776_v19 = vpop.f32.mrf.mxu0 }
 0x2da   : > { %v7663_v51 = vpop.f32.mrf.mxu1 }
 0x2db   : > { %v5854_v42 = vadd.f32 %v5728_v44, %v10103_v31  ;;  %v5570_v62 = vadd.f32 %v7662_v35, %v10105_v32  ;;  %v7778_v29 = vpop.f32.mrf.mxu0  ;;  %v7777_v44 = vadd.f32 %v7776_v19, %v7775_v40 }
 0x2dc   : > { %v7664_v12 = vpop.f32.mrf.mxu1 }
 0x2dd   : > { %v5893_v9 = vadd.f32 %v10293_v18, %v5854_v42  ;;  %v5731_v2 = vadd.f32 %v7774_v20, %v5570_v62  ;;  %v7665_v16 = vadd.f32 %v7664_v12, %v7663_v51  ;;  %v7779_v54 = vpop.f32.mrf.mxu0 }
 0x2de   : > { %v7666_v45 = vpop.f32.mrf.mxu1 }
 0x2df   : > { %5926 = vst.msk [vmem:[%s10298_s11] sm:$0xff] %vm5925_vm6, %v5893_v9  ;;  %v5855_v31 = vadd.f32 %v5731_v2, %v10111_v7  ;;  %v5575_v32 = vadd.f32 %v7665_v16, %v10113_v21  ;;  %v7781_v10 = vpop.f32.mrf.mxu0  ;;  %v7780_v9 = vadd.f32 %v7779_v54, %v7778_v29 }
 0x2e0   : > { %v7667_v30 = vpop.f32.mrf.mxu1 }
 0x2e1   : > { %v5894_v60 = vadd.f32 %v10293_v18, %v5855_v31  ;;  %v5736_v20 = vadd.f32 %v7777_v44, %v5575_v32  ;;  %v7668_v35 = vadd.f32 %v7667_v30, %v7666_v45  ;;  %v7782_v42 = vpop.f32.mrf.mxu0 }
 0x2e2   : > { %v7669_v51 = vpop.f32.mrf.mxu1  ;;  %v7783_v44 = vadd.f32 %v7782_v42, %v7781_v10 }
 0x2e3   : > { %5927 = vst.msk [vmem:[%s10298_s11 + $0x8] sm:$0xff] %vm5925_vm6, %v5894_v60  ;;  %v5856_v62 = vadd.f32 %v5736_v20, %v10117_v27  ;;  %v5578_v12 = vadd.f32 %v7668_v35, %v10119_v13  ;;  %v7784_v2 = vpop.f32.mrf.mxu0 }
 0x2e4   : > { %v7670_v7 = vpop.f32.mrf.mxu1 }
 0x2e5   : > { %v5895_v21 = vadd.f32 %v10293_v18, %v5856_v62  ;;  %v5739_v40 = vadd.f32 %v7780_v9, %v5578_v12  ;;  %v7671_v19 = vadd.f32 %v7670_v7, %v7669_v51  ;;  %v7785_v31 = vpop.f32.mrf.mxu0 }
 0x2e6   : > { %v7672_v16 = vpop.f32.mrf.mxu1  ;;  %v7786_v62 = vadd.f32 %v7785_v31, %v7784_v2 }
 0x2e7   : > { %5928 = vst.msk [vmem:[%s10298_s11 + $0x10] sm:$0xff] %vm5925_vm6, %v5895_v21  ;;  %v5857_v45 = vadd.f32 %v5739_v40, %v10125_v3  ;;  %v5583_v32 = vadd.f32 %v7671_v19, %v10127_v22  ;;  %v7787_v30 = vpop.f32.mrf.mxu0 }
 0x2e8   : > { %v7673_v27 = vpop.f32.mrf.mxu1 }
 0x2e9   : > { %v5896_v13 = vadd.f32 %v10293_v18, %v5857_v45  ;;  %v5744_v29 = vadd.f32 %v7783_v44, %v5583_v32  ;;  %v7674_v54 = vadd.f32 %v7673_v27, %v7672_v16  ;;  %v7788_v20 = vpop.f32.mrf.mxu0 }
 0x2ea   : > { %v7675_v60 = vpop.f32.mrf.mxu1  ;;  %v7789_v19 = vadd.f32 %v7788_v20, %v7787_v30 }
 0x2eb   : > { %5929 = vst.msk [vmem:[%s10298_s11 + $0x18] sm:$0xff] %vm5925_vm6, %v5896_v13  ;;  %v5858_v35 = vadd.f32 %v5744_v29, %v10131_v14  ;;  %v5586_v51 = vadd.f32 %v7674_v54, %v10133_v23  ;;  %v7790_v12 = vpop.f32.mrf.mxu0 }
 0x2ec   : > { %v7676_v3 = vpop.f32.mrf.mxu1 }
 0x2ed   : > { %v5897_v22 = vadd.f32 %v10293_v18, %v5858_v35  ;;  %v5747_v10 = vadd.f32 %v7786_v62, %v5586_v51  ;;  %v7677_v42 = vadd.f32 %v7676_v3, %v7675_v60  ;;  %v7791_v7 = vpop.f32.mrf.mxu0 }
 0x2ee   : > { %v7678_v9 = vpop.f32.mrf.mxu1  ;;  %v7792_v13 = vadd.f32 %v7791_v7, %v7790_v12 }
 0x2ef   : > { %5930 = vst.msk [vmem:[%s10298_s11 + $0x20] sm:$0xff] %vm5925_vm6, %v5897_v22  ;;  %v5859_v21 = vadd.f32 %v5747_v10, %v10139_v63  ;;  %v5591_v40 = vadd.f32 %v7677_v42, %v10141_v37  ;;  %v7793_v16 = vpop.f32.mrf.mxu0 }
 0x2f0   : > { %v7679_v14 = vpop.f32.mrf.mxu1 }
 0x2f1   : > { %v5898_v23 = vadd.f32 %v10293_v18, %v5859_v21  ;;  %v5752_v2 = vadd.f32 %v7789_v19, %v5591_v40  ;;  %v7680_v31 = vadd.f32 %v7679_v14, %v7678_v9  ;;  %v7794_v32 = vpop.f32.mrf.mxu0 }
 0x2f2   : > { %v7681_v45 = vpop.f32.mrf.mxu1  ;;  %v7795_v62 = vadd.f32 %v7794_v32, %v7793_v16 }
 0x2f3   : > { %5931 = vst.msk [vmem:[%s10298_s11 + $0x28] sm:$0xff] %vm5925_vm6, %v5898_v23  ;;  %v5860_v44 = vadd.f32 %v5752_v2, %v10145_v46  ;;  %v5594_v27 = vadd.f32 %v7680_v31, %v10147_v48  ;;  %v7796_v29 = vpop.f32.mrf.mxu0 }
 0x2f4   : > { %v7682_v63 = vpop.f32.mrf.mxu1 }
 0x2f5   : > { %v5899_v37 = vadd.f32 %v10293_v18, %v5860_v44  ;;  %v5755_v30 = vadd.f32 %v7792_v13, %v5594_v27  ;;  %v7683_v54 = vadd.f32 %v7682_v63, %v7681_v45  ;;  %v7797_v20 = vpop.f32.mrf.mxu0 }
 0x2f6   : > { %v7684_v60 = vpop.f32.mrf.mxu1  ;;  %v7798_v21 = vadd.f32 %v7797_v20, %v7796_v29 }
 0x2f7   : > { %5932 = vst.msk [vmem:[%s10298_s11 + $0x30] sm:$0xff] %vm5925_vm6, %v5899_v37  ;;  %v5861_v35 = vadd.f32 %v5755_v30, %v10153_v43  ;;  %v5599_v51 = vadd.f32 %v7683_v54, %v10155_v49  ;;  %v7799_v3 = vpop.f32.mrf.mxu0 }
 0x2f8   : > { %v7685_v46 = vpop.f32.mrf.mxu1 }
 0x2f9   : > { %v5900_v48 = vadd.f32 %v10293_v18, %v5861_v35  ;;  %v5760_v12 = vadd.f32 %v7795_v62, %v5599_v51  ;;  %v7686_v22 = vadd.f32 %v7685_v46, %v7684_v60  ;;  %v7800_v42 = vpop.f32.mrf.mxu0 }
 0x2fa   : > { %v7687_v10 = vpop.f32.mrf.mxu1  ;;  %v7801_v45 = vadd.f32 %v7800_v42, %v7799_v3 }
 0x2fb   : > { %5933 = vst.msk [vmem:[%s10298_s11 + $0x38] sm:$0xff] %vm5925_vm6, %v5900_v48  ;;  %v5862_v9 = vadd.f32 %v5760_v12, %v10159_v28  ;;  %v5602_v7 = vadd.f32 %v7686_v22, %v10161_v25  ;;  %v7802_v40 = vpop.f32.mrf.mxu0 }
 0x2fc   : > { %v7688_v43 = vpop.f32.mrf.mxu1 }
 0x2fd   : > { %v5901_v49 = vadd.f32 %v10293_v18, %v5862_v9  ;;  %v5763_v19 = vadd.f32 %v7798_v21, %v5602_v7  ;;  %v7689_v14 = vadd.f32 %v7688_v43, %v7687_v10  ;;  %v7803_v23 = vpop.f32.mrf.mxu0 }
 0x2fe   : > { %v7690_v16 = vpop.f32.mrf.mxu1  ;;  %v7804_v30 = vadd.f32 %v7803_v23, %v7802_v40  ;;  %v11070_v23 = vld [vmem:[#allocation55_spill] sm:$0xff] }
 0x2ff   : > { %5934 = vst.msk [vmem:[%s10298_s11 + $0x40] sm:$0xff] %vm5925_vm6, %v5901_v49  ;;  %v5863_v2 = vadd.f32 %v5763_v19, %v10167_v36  ;;  %v5607_v31 = vadd.f32 %v7689_v14, %v10169_v47  ;;  %v7805_v32 = vpop.f32.mrf.mxu0 }
 0x300   : > { %v7691_v28 = vpop.f32.mrf.mxu1 }
 0x301   : > { %v5902_v25 = vadd.f32 %v10293_v18, %v5863_v2  ;;  %v5768_v44 = vadd.f32 %v7801_v45, %v5607_v31  ;;  %v7692_v27 = vadd.f32 %v7691_v28, %v7690_v16  ;;  %v7806_v63 = vpop.f32.mrf.mxu0 }
 0x302   : > { %v7693_v13 = vpop.f32.mrf.mxu1  ;;  %v7807_v3 = vadd.f32 %v7806_v63, %v7805_v32 }
 0x303   : > { %5935 = vst.msk [vmem:[%s10298_s11 + $0x48] sm:$0xff] %vm5925_vm6, %v5902_v25  ;;  %v5864_v29 = vadd.f32 %v5768_v44, %v10173_v55  ;;  %v5610_v37 = vadd.f32 %v7692_v27, %v10175_v39  ;;  %v7808_v54 = vpop.f32.mrf.mxu0 }
 0x304   : > { %v7694_v36 = vpop.f32.mrf.mxu1 }
 0x305   : > { %v5903_v47 = vadd.f32 %v10293_v18, %v5864_v29  ;;  %v5771_v60 = vadd.f32 %v7804_v30, %v5610_v37  ;;  %v7695_v20 = vadd.f32 %v7694_v36, %v7693_v13  ;;  %v7809_v51 = vpop.f32.mrf.mxu0  ;;  %v11071_v13 = vld [vmem:[#allocation59_spill] sm:$0xff] }
 0x306   : > { %v7696_v35 = vpop.f32.mrf.mxu1  ;;  %v7810_v21 = vadd.f32 %v7809_v51, %v7808_v54 }
 0x307   : > { %5936 = vst.msk [vmem:[%s10298_s11 + $0x50] sm:$0xff] %vm5925_vm6, %v5903_v47  ;;  %v5865_v62 = vadd.f32 %v5771_v60, %v10181_v52  ;;  %v5615_v46 = vadd.f32 %v7695_v20, %v10183_v4  ;;  %v7811_v48 = vpop.f32.mrf.mxu0 }
 0x308   : > { %v7697_v55 = vpop.f32.mrf.mxu1 }
 0x309   : > { %v5904_v39 = vadd.f32 %v10293_v18, %v5865_v62  ;;  %v5776_v12 = vadd.f32 %v7807_v3, %v5615_v46  ;;  %v7698_v22 = vadd.f32 %v7697_v55, %v7696_v35  ;;  %v7812_v42 = vpop.f32.mrf.mxu0  ;;  %v11072_v35 = vld [vmem:[#allocation63_spill] sm:$0xff] }
 0x30a   : > { %v7699_v10 = vpop.f32.mrf.mxu1  ;;  %v7813_v31 = vadd.f32 %v7812_v42, %v7811_v48 }
 0x30b   : > { %5937 = vst.msk [vmem:[%s10298_s11 + $0x58] sm:$0xff] %vm5925_vm6, %v5904_v39  ;;  %v5866_v9 = vadd.f32 %v5776_v12, %v10187_v0  ;;  %v5618_v7 = vadd.f32 %v7698_v22, %v10189_v6  ;;  %v7814_v43 = vpop.f32.mrf.mxu0 }
 0x30c   : > { %v7700_v52 = vpop.f32.mrf.mxu1 }
 0x30d   : > { %v5905_v4 = vadd.f32 %v10293_v18, %v5866_v9  ;;  %v5779_v40 = vadd.f32 %v7810_v21, %v5618_v7  ;;  %v7701_v49 = vadd.f32 %v7700_v52, %v7699_v10  ;;  %v7815_v14 = vpop.f32.mrf.mxu0  ;;  %v11073_v10 = vld [vmem:[#allocation68_spill] sm:$0xff] }
 0x30e   : > { %v7702_v19 = vpop.f32.mrf.mxu1  ;;  %v7816_v29 = vadd.f32 %v7815_v14, %v7814_v43 }
 0x30f   : > { %5938 = vst.msk [vmem:[%s10298_s11 + $0x60] sm:$0xff] %vm5925_vm6, %v5905_v4  ;;  %v5867_v16 = vadd.f32 %v5779_v40, %v10194_v61  ;;  %v5623_v2 = vadd.f32 %v7701_v49, %v11070_v23  ;;  %v7817_v45 = vpop.f32.mrf.mxu0 }
 0x310   : > { %v7703_v0 = vpop.f32.mrf.mxu1 }
 0x311   : > { %v5906_v6 = vadd.f32 %v10293_v18, %v5867_v16  ;;  %v5784_v28 = vadd.f32 %v7813_v31, %v5623_v2  ;;  %v7704_v32 = vadd.f32 %v7703_v0, %v7702_v19  ;;  %v7818_v44 = vpop.f32.mrf.mxu0  ;;  %v11074_v19 = vld [vmem:[#allocation71_spill] sm:$0xff] }
 0x312   : > { %v7705_v25 = vpop.f32.mrf.mxu1  ;;  %v7819_v62 = vadd.f32 %v7818_v44, %v7817_v45 }
 0x313   : > { %5939 = vst.msk [vmem:[%s10298_s11 + $0x68] sm:$0xff] %vm5925_vm6, %v5906_v6  ;;  %v5868_v27 = vadd.f32 %v5784_v28, %v10199_v34  ;;  %v5626_v63 = vadd.f32 %v7704_v32, %v11071_v13  ;;  %v7820_v37 = vpop.f32.mrf.mxu0  ;;  %v11075_v32 = vld [vmem:[#allocation72_spill] sm:$0xff] }
 0x314   : > { %v7706_v61 = vpop.f32.mrf.mxu1 }
 0x315   : > { %v5907_v30 = vadd.f32 %v10293_v18, %v5868_v27  ;;  %v5787_v36 = vadd.f32 %v7816_v29, %v5626_v63  ;;  %v7707_v54 = vadd.f32 %v7706_v61, %v7705_v25  ;;  %v7821_v60 = vpop.f32.mrf.mxu0 }
 0x316   : > { %v7708_v47 = vpop.f32.mrf.mxu1  ;;  %v7822_v9 = vadd.f32 %v7821_v60, %v7820_v37 }
 0x317   : > { %5940 = vst.msk [vmem:[%s10298_s11 + $0x70] sm:$0xff] %vm5925_vm6, %v5907_v30  ;;  %v5869_v20 = vadd.f32 %v5787_v36, %v10204_v17  ;;  %v5631_v51 = vadd.f32 %v7707_v54, %v11072_v35  ;;  %v7823_v46 = vpop.f32.mrf.mxu0  ;;  %v11076_v36 = vld [vmem:[#allocation73_spill] sm:$0xff] }
 0x318   : > { %v7709_v34 = vpop.f32.mrf.mxu1 }
 0x319   : > { %v5908_v3 = vadd.f32 %v10293_v18, %v5869_v20  ;;  %v5792_v55 = vadd.f32 %v7819_v62, %v5631_v51  ;;  %v7710_v48 = vadd.f32 %v7709_v34, %v7708_v47  ;;  %v7824_v12 = vpop.f32.mrf.mxu0 }
 0x31a   : > { %v7711_v39 = vpop.f32.mrf.mxu1  ;;  %v7825_v16 = vadd.f32 %v7824_v12, %v7823_v46 }
 0x31b   : > { %5941 = vst.msk [vmem:[%s10298_s11 + $0x78] sm:$0xff] %vm5925_vm6, %v5908_v3  ;;  %v5870_v22 = vadd.f32 %v5792_v55, %v10209_v11  ;;  %v5634_v42 = vadd.f32 %v7710_v48, %v11073_v10  ;;  %v7826_v7 = vpop.f32.mrf.mxu0  ;;  %v11077_v3 = vld [vmem:[#allocation80_spill] sm:$0xff] }
 0x31c   : > { %v7712_v17 = vpop.f32.mrf.mxu1 }
 0x31d   : > { %v5909_v21 = vadd.f32 %v10293_v18, %v5870_v22  ;;  %v5795_v52 = vadd.f32 %v7822_v9, %v5634_v42  ;;  %v7713_v43 = vadd.f32 %v7712_v17, %v7711_v39  ;;  %v7827_v40 = vpop.f32.mrf.mxu0 }
 0x31e   : > { %v7714_v4 = vpop.f32.mrf.mxu1  ;;  %v7828_v44 = vadd.f32 %v7827_v40, %v7826_v7  ;;  %v11078_v7 = vld [vmem:[#allocation6_spill] sm:$0xff] }
 0x31f   : > { %5942 = vst.msk [vmem:[%s10298_s11 + $0x80] sm:$0xff] %vm5925_vm6, %v5909_v21  ;;  %v5871_v49 = vadd.f32 %v5795_v52, %v10214_v8  ;;  %v5639_v14 = vadd.f32 %v7713_v43, %v11074_v19  ;;  %v7829_v23 = vpop.f32.mrf.mxu0 }
 0x320   : > { %v7715_v11 = vpop.f32.mrf.mxu1 }
 0x321   : > { %v5910_v2 = vadd.f32 %v10293_v18, %v5871_v49  ;;  %v5800_v31 = vadd.f32 %v7825_v16, %v5639_v14  ;;  %v7716_v0 = vadd.f32 %v7715_v11, %v7714_v4  ;;  %v7830_v6 = vpop.f32.mrf.mxu0  ;;  %v11079_v11 = vld [vmem:[#allocation82_spill] sm:$0xff] }
 0x322   : > { %v7717_v45 = vpop.f32.mrf.mxu1  ;;  %v7831_v47 = vadd.f32 %v7830_v6, %v7829_v23 }
 0x323   : > { %5943 = vst.msk [vmem:[%s10298_s11 + $0x88] sm:$0xff] %vm5925_vm6, %v5910_v2  ;;  %v5872_v28 = vadd.f32 %v5800_v31, %v10219_v50  ;;  %v5642_v25 = vadd.f32 %v7716_v0, %v11075_v32  ;;  %v7832_v27 = vpop.f32.mrf.mxu0 }
 0x324   : > { %v7718_v8 = vpop.f32.mrf.mxu1 }
 0x325   : > { %v5911_v13 = vadd.f32 %v10293_v18, %v5872_v28  ;;  %v5803_v63 = vadd.f32 %v7828_v44, %v5642_v25  ;;  %v7719_v29 = vadd.f32 %v7718_v8, %v7717_v45  ;;  %v7833_v37 = vpop.f32.mrf.mxu0  ;;  %v11080_v44 = vld [vmem:[#allocation10_spill] sm:$0xff] }
 0x326   : > { %v7720_v61 = vpop.f32.mrf.mxu1  ;;  %v7834_v48 = vadd.f32 %v7833_v37, %v7832_v27 }
 0x327   : > { %5944 = vst.msk [vmem:[%s10298_s11 + $0x90] sm:$0xff] %vm5925_vm6, %v5911_v13  ;;  %v5873_v30 = vadd.f32 %v5803_v63, %v10224_v56  ;;  %v5647_v54 = vadd.f32 %v7719_v29, %v11076_v36  ;;  %v7835_v60 = vpop.f32.mrf.mxu0 }
 0x328   : > { %v7721_v50 = vpop.f32.mrf.mxu1 }
 0x329   : > { %v5912_v20 = vadd.f32 %v10293_v18, %v5873_v30  ;;  %v5808_v35 = vadd.f32 %v7831_v47, %v5647_v54  ;;  %v7722_v51 = vadd.f32 %v7721_v50, %v7720_v61  ;;  %v7836_v34 = vpop.f32.mrf.mxu0  ;;  %v11081_v54 = vld [vmem:[#allocation53_spill] sm:$0xff] }
 0x32a   : > { %v7723_v62 = vpop.f32.mrf.mxu1  ;;  %v7837_v52 = vadd.f32 %v7836_v34, %v7835_v60 }
 0x32b   : > { %5945 = vst.msk [vmem:[%s10298_s11 + $0x98] sm:$0xff] %vm5925_vm6, %v5912_v20  ;;  %v5874_v46 = vadd.f32 %v5808_v35, %v10229_v41  ;;  %v5650_v55 = vadd.f32 %v7722_v51, %v11077_v3  ;;  %v7838_v39 = vpop.f32.mrf.mxu0  ;;  %v11082_v3 = vld [vmem:[#allocation58_spill] sm:$0xff] }
 0x32c   : > { %v7724_v56 = vpop.f32.mrf.mxu1 }
 0x32d   : > { %v5913_v12 = vadd.f32 %v10293_v18, %v5874_v46  ;;  %v5811_v22 = vadd.f32 %v7834_v48, %v5650_v55  ;;  %v7725_v10 = vadd.f32 %v7724_v56, %v7723_v62  ;;  %v7839_v9 = vpop.f32.mrf.mxu0 }
 0x32e   : > { %v7726_v42 = vpop.f32.mrf.mxu1  ;;  %v7840_v2 = vadd.f32 %v7839_v9, %v7838_v39 }
 0x32f   : > { %5946 = vst.msk [vmem:[%s10298_s11 + $0xa0] sm:$0xff] %vm5925_vm6, %v5913_v12  ;;  %v5875_v17 = vadd.f32 %v5811_v22, %v10234_v57  ;;  %v5655_v21 = vadd.f32 %v7725_v10, %v11078_v7  ;;  %v7841_v43 = vpop.f32.mrf.mxu0 }
 0x330   : > { %v7727_v41 = vpop.f32.mrf.mxu1 }
 0x331   : > { %v5914_v4 = vadd.f32 %v10293_v18, %v5875_v17  ;;  %v5816_v40 = vadd.f32 %v7837_v52, %v5655_v21  ;;  %v7728_v49 = vadd.f32 %v7727_v41, %v7726_v42  ;;  %v7842_v14 = vpop.f32.mrf.mxu0  ;;  %v11083_v17 = vld [vmem:[#allocation86_spill] sm:$0xff] }
 0x332   : > { %v7729_v19 = vpop.f32.mrf.mxu1  ;;  %v7843_v27 = vadd.f32 %v7842_v14, %v7841_v43  ;;  %v11084_v14 = vld [vmem:[#allocation8_spill] sm:$0xff] }
 0x333   : > { %5947 = vst.msk [vmem:[%s10298_s11 + $0xa8] sm:$0xff] %vm5925_vm6, %v5914_v4  ;;  %v5876_v16 = vadd.f32 %v5816_v40, %v10239_v15  ;;  %v5658_v23 = vadd.f32 %v7728_v49, %v11079_v11  ;;  %v7844_v31 = vpop.f32.mrf.mxu0 }
 0x334   : > { %v7730_v57 = vpop.f32.mrf.mxu1 }
 0x335   : > { %v5915_v0 = vadd.f32 %v10293_v18, %v5876_v16  ;;  %v5819_v45 = vadd.f32 %v7840_v2, %v5658_v23  ;;  %v7731_v6 = vadd.f32 %v7730_v57, %v7729_v19  ;;  %v7845_v32 = vpop.f32.mrf.mxu0 }
 0x336   : > { %v7732_v28 = vpop.f32.mrf.mxu1  ;;  %v7846_v50 = vadd.f32 %v7845_v32, %v7844_v31 }
 0x337   : > { %5948 = vst.msk [vmem:[%s10298_s11 + $0xb0] sm:$0xff] %vm5925_vm6, %v5915_v0  ;;  %v5877_v25 = vadd.f32 %v5819_v45, %v10244_v58  ;;  %v5663_v8 = vadd.f32 %v7731_v6, %v11080_v44  ;;  %v7847_v13 = vpop.f32.mrf.mxu0 }
 0x338   : > { %v7733_v15 = vpop.f32.mrf.mxu1 }
 0x339   : > { %v5916_v63 = vadd.f32 %v10293_v18, %v5877_v25  ;;  %v5824_v29 = vadd.f32 %v7843_v27, %v5663_v8  ;;  %v7734_v61 = vadd.f32 %v7733_v15, %v7732_v28  ;;  %v7848_v30 = vpop.f32.mrf.mxu0 }
 0x33a   : > { %v7735_v37 = vpop.f32.mrf.mxu1  ;;  %v7849_v48 = vadd.f32 %v7848_v30, %v7847_v13 }
 0x33b   : > { %5949 = vst.msk [vmem:[%s10298_s11 + $0xb8] sm:$0xff] %vm5925_vm6, %v5916_v63  ;;  %v5878_v36 = vadd.f32 %v5824_v29, %v10249_v33  ;;  %v5666_v47 = vadd.f32 %v7734_v61, %v11081_v54  ;;  %v7850_v60 = vpop.f32.mrf.mxu0  ;;  %v11085_v63 = vld [vmem:[#allocation87_spill] sm:$0xff] }
 0x33c   : > { %v7736_v58 = vpop.f32.mrf.mxu1 }
 0x33d   : > { %v5917_v20 = vadd.f32 %v10293_v18, %v5878_v36  ;;  %v5827_v35 = vadd.f32 %v7846_v50, %v5666_v47  ;;  %v7737_v51 = vadd.f32 %v7736_v58, %v7735_v37  ;;  %v7851_v34 = vpop.f32.mrf.mxu0  ;;  %v11086_v47 = vld [vmem:[#allocation13_spill] sm:$0xff] }
 0x33e   : > { %v7738_v62 = vpop.f32.mrf.mxu1  ;;  %v7852_v21 = vadd.f32 %v7851_v34, %v7850_v60 }
 0x33f   : > { %5950 = vst.msk [vmem:[%s10298_s11 + $0xc0] sm:$0xff] %vm5925_vm6, %v5917_v20  ;;  %v5879_v46 = vadd.f32 %v5827_v35, %v10254_v24  ;;  %v5671_v55 = vadd.f32 %v7737_v51, %v11082_v3  ;;  %v7853_v56 = vpop.f32.mrf.mxu0  ;;  %v11087_v20 = vld [vmem:[#allocation61_spill] sm:$0xff] }
 0x340   : > { %v7739_v33 = vpop.f32.mrf.mxu1 }
 0x341   : > { %v5918_v39 = vadd.f32 %v10293_v18, %v5879_v46  ;;  %v5832_v12 = vadd.f32 %v7849_v48, %v5671_v55  ;;  %v7740_v22 = vadd.f32 %v7739_v33, %v7738_v62  ;;  %v7854_v42 = vpop.f32.mrf.mxu0 }
 0x342   : > { %v7741_v10 = vpop.f32.mrf.mxu1  ;;  %v7855_v11 = vadd.f32 %v7854_v42, %v7853_v56 }
 0x343   : > { %5951 = vst.msk [vmem:[%s10298_s11 + $0xc8] sm:$0xff] %vm5925_vm6, %v5918_v39  ;;  %v5880_v9 = vadd.f32 %v5832_v12, %v10259_v38  ;;  %v5674_v7 = vadd.f32 %v7740_v22, %v11083_v17  ;;  %v7856_v52 = vpop.f32.mrf.mxu0 }
 0x344   : > { %v7742_v24 = vpop.f32.mrf.mxu1 }
 0x345   : > { %v5919_v41 = vadd.f32 %v10293_v18, %v5880_v9  ;;  %v5835_v43 = vadd.f32 %v7852_v21, %v5674_v7  ;;  %v7743_v4 = vadd.f32 %v7742_v24, %v7741_v10  ;;  %v7857_v49 = vpop.f32.mrf.mxu0 }
 0x346   : > { %v7744_v40 = vpop.f32.mrf.mxu1  ;;  %v7858_v32 = vadd.f32 %v7857_v49, %v7856_v52 }
 0x347   : > { %5952 = vst.msk [vmem:[%s10298_s11 + $0xd0] sm:$0xff] %vm5925_vm6, %v5919_v41  ;;  %v5881_v19 = vadd.f32 %v5835_v43, %v10264_v1  ;;  %v5679_v16 = vadd.f32 %v7743_v4, %v11084_v14  ;;  %v7859_v23 = vpop.f32.mrf.mxu0 }
 0x348   : > { %v7745_v38 = vpop.f32.mrf.mxu1 }
 0x349   : > { %v5920_v2 = vadd.f32 %v10293_v18, %v5881_v19  ;;  %v5840_v57 = vadd.f32 %v7855_v11, %v5679_v16  ;;  %v7746_v31 = vadd.f32 %v7745_v38, %v7744_v40  ;;  %v7860_v45 = vpop.f32.mrf.mxu0 }
 0x34a   : > { %v7747_v0 = vpop.f32.mrf.mxu1  ;;  %v7861_v29 = vadd.f32 %v7860_v45, %v7859_v23 }
 0x34b   : > { %5953 = vst.msk [vmem:[%s10298_s11 + $0xd8] sm:$0xff] %vm5925_vm6, %v5920_v2  ;;  %v5882_v6 = vadd.f32 %v5840_v57, %v10269_v5  ;;  %v5682_v28 = vadd.f32 %v7746_v31, %v10271_v59  ;;  %v7862_v25 = vpop.f32.mrf.mxu0 }
 0x34c   : > { %v7748_v1 = vpop.f32.mrf.mxu1 }
 0x34d   : > { %v5921_v44 = vadd.f32 %v10293_v18, %v5882_v6  ;;  %v5843_v8 = vadd.f32 %v7858_v32, %v5682_v28  ;;  %v7749_v27 = vadd.f32 %v7748_v1, %v7747_v0  ;;  %v7863_v61 = vpop.f32.mrf.mxu0 }
 0x34e   : > { %v7750_v15 = vpop.f32.mrf.mxu1 }
 0x34f   : > { %5954 = vst.msk [vmem:[%s10298_s11 + $0xe0] sm:$0xff] %vm5925_vm6, %v5921_v44  ;;  %v5883_v13 = vadd.f32 %v5843_v8, %v10274_v26  ;;  %v5687_v5 = vadd.f32 %v7749_v27, %v11085_v63  ;;  %v7864_v26 = vadd.f32 %v7863_v61, %v7862_v25 }
 0x350   : > { %v7751_v59 = vpop.f32.mrf.mxu1 }
 0x351   : > { %v5922_v37 = vadd.f32 %v10293_v18, %v5883_v13  ;;  %v5848_v30 = vadd.f32 %v7861_v29, %v5687_v5  ;;  %v7752_v36 = vadd.f32 %v7751_v59, %v7750_v15 }
 0x353   : > { %5955 = vst.msk [vmem:[%s10298_s11 + $0xe8] sm:$0xff] %vm5925_vm6, %v5922_v37  ;;  %v5884_v54 = vadd.f32 %v5848_v30, %v10279_v53  ;;  %v5690_v50 = vadd.f32 %v7752_v36, %v11086_v47 }
 0x355   : > { %v5923_v58 = vadd.f32 %v10293_v18, %v5884_v54  ;;  %v5851_v60 = vadd.f32 %v7864_v26, %v5690_v50 }
 0x357   : > { %5956 = vst.msk [vmem:[%s10298_s11 + $0xf0] sm:$0xff] %vm5925_vm6, %v5923_v58  ;;  %v5885_v35 = vadd.f32 %v5851_v60, %v11087_v20 }
 0x359   : > { %v5924_v53 = vadd.f32 %v10293_v18, %v5885_v35 }
 0x35b   : > { %5957 = vst.msk [vmem:[%s10298_s11 + $0xf8] sm:$0xff] %vm5925_vm6, %v5924_v53 }
 0x35c   : > { %8080 = shalt.err (!%p8077_p3)
}
 0x35d   : > { %s8081_s17 = scalar_lea.hbm %s10458_s12, 4096  ;;  %s8085_s26 = scalar_lea.hbm %s10512_s5, 8192 }
 0x35e   : > { %p8082_p4 = scmp.ne.s32.totalorder %s10458_s12, %s8081_s17  ;;  %p8086_p9 = scmp.lt.s32.totalorder %s10458_s12, %s10512_s5 }
 0x35f   : > { %p8087_p10 = scmp.lt.s32.totalorder %s8085_s26, %s8081_s17 }
 0x360   : > { %p8083_p7 = pnand %p8082_p4, %p8201_p5 }
 0x361   : > { %p8088_p11 = por %p8087_p10, %p8086_p9 }
 0x362   : > { %p8084_p8 = pneg %p8083_p7 }
 0x364   : > { %p8089_p12 = pnand %p8088_p11, %p8084_p8 }
 0x366   : > { %8092 = shalt.err (!%p8089_p12)
}
 0x367   : > { %s8131_s11 = smov 128   ;;  %s8132_s7 = smov 8  }
 0x368   : > { %7881 = dma.vmem_to_hbm [thread:$0]  (%p8201_p5), %s10460_s8, 4096, %s10458_s12, %s10467_s22, %s8131_s11, %s8131_s11, %s8132_s7  }
 0x369 PF: > { %p7887_p13 = scmp.ge.s32.totalorder %s8127_s21, 2  ;;  %s5987_s9 = sand.u32 1, %s8115_s18  }
 0x36a   : > { %s5988_s10 = scalar_lea.sflag [#allocation4], %s5987_s9 }
 0x36b   : > { %p7884_p0 = pnand %p7887_p13, %p8205_p6 }
 0x36d   : > { %p7885_p1 = pneg %p7884_p0 }
 0x36f   : > { %8110 = dma.done.wait (%p7885_p1), %s5988_s10, 4096  }
 0x370   : > { %8112 = vsyncadd (%p7885_p1), %s5988_s10, 4294963200  ;;  %p15_p2 = scmp.ge.s32.totalorder %s8188_s24, 4   ;;  %s11088_s18 = smov %s8119_s19 }
 0x371   : > { %s11089_s19 = smov %s8123_s20  ;;  %s11090_s20 = smov %s8199_s27 }
 0x372   : > { %s11091_s21 = smov %s8188_s24  ;;  %17 = sbr.rel (!%p15_p2) target bundleno = 3 (0x3), region = 86 }
 0x377   :  { %5993 = vsyncpa [#allocation4], 1 }
 0x378   :  { %5995 = vsyncpa [#allocation4 + $0x1], 1 }

</bundles_post_ra>
